<compile_context>
chip_gen: v7x
topology: tpu7x:2x2x1
jax: 0.10.0
libtpu: 0.0.40
codegen_flags: <defaults>
</compile_context>

<pallas_src>
import functools
import math

import jax
import jax.numpy as jnp
from jax.experimental import pallas as pl
from jax.experimental.pallas import tpu as pltpu

BN_EPS = 1e-5
LANE = 128
VMEM_LIMIT = 32 * 1024 * 1024


def _conv3x3_kernel(*refs, fuse_affine: bool):
    """One image per grid step: 3x3 conv as 9 accumulating MXU matmuls.

    Optionally fuses a per-channel affine + ReLU (folded BN of the *previous*
    layer) into the input prologue, applied only to the interior so the
    1-pixel halo stays exactly zero.

    refs (fuse_affine=False): x, w, z_out, stats_out, xpad_scratch, acc_scratch
    refs (fuse_affine=True) : x, w, scale, shift, z_out, stats_out, xpad, acc
      x     : (1, H, W, Cp)      bf16 unpadded input tile
      w     : (3, 3, Cp, Cp)     bf16 weights (constant across the grid)
      scale : (1, Cp) f32, shift : (1, Cp) f32
      z_out : (H*W, Cp)          bf16 pre-BN conv output rows for this image
      stats : (1, 2, Cp)         f32 per-image partial [sum, sum_sq]
      xpad  : (H+2, W+2, Cp)     bf16 VMEM scratch (halo tile)
      acc   : (H*W, Cp)          f32 VMEM accumulator
    """
    if fuse_affine:
        x_ref, w_ref, sc_ref, sh_ref, z_ref, s_ref, xpad_ref, acc_ref = refs
    else:
        x_ref, w_ref, z_ref, s_ref, xpad_ref, acc_ref = refs

    _, h, w, cp = x_ref.shape
    kh, kw = w_ref.shape[0], w_ref.shape[1]
    hp, wp = h + kh - 1, w + kw - 1

    # Build the zero-padded (optionally BN+ReLU-activated) tile in VMEM.
    # Zeroing every step (not only step 0) keeps this correct when the
    # "parallel" grid axis is split across v7x's two TensorCores.
    xpad_ref[...] = jnp.zeros(xpad_ref.shape, xpad_ref.dtype)
    xin = x_ref[0]                                        # (H, W, Cp) bf16
    if fuse_affine:
        sc = sc_ref[...].reshape(1, 1, cp)
        sh = sh_ref[...].reshape(1, 1, cp)
        xin = jnp.maximum(xin.astype(jnp.float32) * sc + sh, 0.0)
    xpad_ref[1:1 + h, 1:1 + w, :] = xin.astype(xpad_ref.dtype)

    # 3x3 conv = 9 accumulating MXU matmuls over shifted in-VMEM views.
    # Shift along W once per tap column, flatten (H+2, W) -> rows, so the row
    # (dy) shift becomes a sublane-aligned slice (W % 8 == 0 asserted).
    for dx in range(kw):
        xw = xpad_ref[:, dx:dx + w, :].reshape(hp * w, cp)
        for dy in range(kh):
            lhs = xw[dy * w:(dy + h) * w, :]              # (H*W, Cp) bf16
            part = jnp.dot(lhs, w_ref[dy, dx],
                           preferred_element_type=jnp.float32)
            if dx == 0 and dy == 0:
                acc_ref[...] = part
            else:
                acc_ref[...] += part                      # in-place f32 accumulate

    acc = acc_ref[...]
    z_ref[...] = acc.astype(z_ref.dtype)                  # bf16 to HBM
    # Per-image BN partials from the f32 accumulator; combined across grid
    # tiles outside the kernel (keeps the grid axis "parallel"-safe).
    s_ref[0, 0:1, :] = jnp.sum(acc, axis=0, keepdims=True)
    s_ref[0, 1:2, :] = jnp.sum(acc * acc, axis=0, keepdims=True)


def _bn_res_relu_kernel(z_ref, r_ref, sc_ref, sh_ref, o_ref):
    # out = relu(z * scale + shift + residual) — single lane-dense VPU pass.
    y = (z_ref[...].astype(jnp.float32) * sc_ref[...] + sh_ref[...]
         + r_ref[...].astype(jnp.float32))
    o_ref[...] = jnp.maximum(y, 0.0).astype(o_ref.dtype)


def _conv3x3_bn_stats(x_nhwc, wk, scale=None, shift=None):
    """x_nhwc: (N, H, W, Cp) bf16 (unpadded), wk: (3, 3, Cp, Cp) bf16.

    If scale/shift (1, Cp) f32 are given, relu(x*scale+shift) (= folded BN +
    ReLU of the previous layer) is applied to the input inside the kernel.
    Returns z: (N*H*W, Cp) bf16 pre-BN conv output and stats: (N, 2, Cp) f32.
    """
    n, h, w, cp = x_nhwc.shape
    kh, kw = wk.shape[0], wk.shape[1]
    m = n * h * w
    fuse = scale is not None

    in_specs = [
        pl.BlockSpec((1, h, w, cp), lambda i: (i, 0, 0, 0)),
        # Constant index_map: Pallas fetches the weights once across the grid.
        pl.BlockSpec((kh, kw, cp, cp), lambda i: (0, 0, 0, 0)),
    ]
    args = [x_nhwc, wk]
    if fuse:
        in_specs += [pl.BlockSpec((1, cp), lambda i: (0, 0)),
                     pl.BlockSpec((1, cp), lambda i: (0, 0))]
        args += [scale, shift]

    flops = 2 * m * kh * kw * cp * cp
    bytes_accessed = (m * cp * 2                 # x (bf16)
                      + kh * kw * cp * cp * 2    # weights (bf16)
                      + m * cp * 2               # z out (bf16)
                      + n * 2 * cp * 4)          # stats (f32)

    z, stats = pl.pallas_call(
        functools.partial(_conv3x3_kernel, fuse_affine=fuse),
        out_shape=(jax.ShapeDtypeStruct((m, cp), jnp.bfloat16),
                   jax.ShapeDtypeStruct((n, 2, cp), jnp.float32)),
        grid=(n,),
        in_specs=in_specs,
        out_specs=(pl.BlockSpec((h * w, cp), lambda i: (i, 0)),
                   pl.BlockSpec((1, 2, cp), lambda i: (i, 0, 0))),
        scratch_shapes=[pltpu.VMEM((h + kh - 1, w + kw - 1, cp), jnp.bfloat16),
                        pltpu.VMEM((h * w, cp), jnp.float32)],
        compiler_params=pltpu.CompilerParams(
            dimension_semantics=("parallel",),
            vmem_limit_bytes=VMEM_LIMIT),
        cost_estimate=pl.CostEstimate(flops=flops, transcendentals=0,
                                      bytes_accessed=bytes_accessed),
    )(*args)
    return z, stats


def _fold_bn(stats, gamma_p, beta_p, count, eps):
    """Combine per-image partials into global train-mode BN (scale, shift)."""
    # NOTE: E[x^2] - E[x]^2 in f32; adequate at these magnitudes.  Use a
    # Welford-style combine if bit-tight parity with PyTorch is required.
    tot = jnp.sum(stats, axis=0)                          # (2, Cp)
    mean = tot[0] / count
    var = jnp.maximum(tot[1] / count - mean * mean, 0.0)  # biased (train-mode)
    scale = gamma_p * jax.lax.rsqrt(var + eps)
    shift = beta_p - mean * scale
    return (scale.reshape(1, -1).astype(jnp.float32),
            shift.reshape(1, -1).astype(jnp.float32))


def _pick_row_tile(m, target=2048):
    """Largest divisor of m that is <= target and a multiple of 8."""
    if m <= target:
        return m
    t = target - (target % 8)
    while t >= 8:
        if m % t == 0:
            return t
        t -= 8
    return m


def _bn_residual_relu(z, residual, scale, shift, *, out_dtype):
    """Tiled out = relu(z * scale + shift + residual) over (M, Cp) rows."""
    m, cp = z.shape
    tile = _pick_row_tile(m)
    row_spec = pl.BlockSpec((tile, cp), lambda i: (i, 0))
    vec_spec = pl.BlockSpec((1, cp), lambda i: (0, 0))
    return pl.pallas_call(
        _bn_res_relu_kernel,
        out_shape=jax.ShapeDtypeStruct((m, cp), out_dtype),
        grid=(m // tile,),
        in_specs=[row_spec, row_spec, vec_spec, vec_spec],
        out_specs=row_spec,
        compiler_params=pltpu.CompilerParams(
            dimension_semantics=("parallel",),
            vmem_limit_bytes=VMEM_LIMIT),
    )(z, residual, scale, shift)


def residual_layer_forward(x_nchw, w1, g1, b1, w2, g2, b2, *, eps=BN_EPS):
    """relu( bn2(conv2( relu(bn1(conv1(x))) )) + x ), BN in train mode."""
    # TODO(synk): BatchNorm running_mean/running_var momentum updates are a
    # training-state side effect and do not affect this forward output; skipped.
    n, c, h, w = x_nchw.shape
    c_out = w1.shape[0]
    assert w1.shape == (c_out, c, 3, 3) and w2.shape == (c_out, c_out, 3, 3)
    assert c_out == c, "residual add requires in_c == out_c"
    assert (h * w) % 8 == 0, "H*W must be a multiple of 8 (sublane tiling)"
    cp = ((c + LANE - 1) // LANE) * LANE                  # lane-dense channels

    # NCHW -> NHWC once at the module boundary; channel-pad to Cp; bf16.
    # This single buffer is both conv1's MXU input and the residual stream.
    x_nhwc = jnp.transpose(x_nchw, (0, 2, 3, 1))
    x_bf = jnp.pad(x_nhwc, ((0, 0), (0, 0), (0, 0), (0, cp - c))
                   ).astype(jnp.bfloat16)
    count = n * h * w

    def prep_w(wt):   # OIHW -> (KH, KW, Cin_pad, Cout_pad), bf16 (MXU input)
        wt = jnp.transpose(wt, (2, 3, 1, 0))
        wt = jnp.pad(wt, ((0, 0), (0, 0),
                          (0, cp - wt.shape[2]), (0, cp - wt.shape[3])))
        return wt.astype(jnp.bfloat16)

    def prep_v(v):
        return jnp.pad(v.astype(jnp.float32), (0, cp - v.shape[0]))

    # --- stage 1: conv1 + per-image BN1 partial stats (z1 stays bf16) ---
    z1, st1 = _conv3x3_bn_stats(x_bf, prep_w(w1))
    sc1, sh1 = _fold_bn(st1, prep_v(g1), prep_v(b1), count, eps)

    # --- stage 2: conv2 with BN1 + ReLU fused into its input prologue ---
    z2, st2 = _conv3x3_bn_stats(z1.reshape(n, h, w, cp), prep_w(w2), sc1, sh1)
    sc2, sh2 = _fold_bn(st2, prep_v(g2), prep_v(b2), count, eps)

    # --- epilogue: BN2 + residual add + ReLU, lane-dense row tiles ---
    out_flat = _bn_residual_relu(z2, x_bf.reshape(n * h * w, cp), sc2, sh2,
                                 out_dtype=x_nchw.dtype)
    out = out_flat.reshape(n, h, w, cp)[..., :c]
    return jnp.transpose(out, (0, 3, 1, 2))               # back to NCHW once


def _reference(x, w1, g1, b1, w2, g2, b2, *, eps=BN_EPS):
    """Pure-JAX reference mirroring the kernel's bf16 MXU-input / bf16-z policy
    (accumulation, BN statistics and the output remain f32 in both paths)."""
    def conv(inp, wt):
        return jax.lax.conv_general_dilated(
            inp.astype(jnp.bfloat16), wt.astype(jnp.bfloat16),
            window_strides=(1, 1), padding=((1, 1), (1, 1)),
            dimension_numbers=("NCHW", "OIHW", "NCHW"),
            preferred_element_type=jnp.float32)

    def bn(z, g, b):
        z = z.astype(jnp.bfloat16).astype(jnp.float32)    # kernel stores z bf16
        mean = jnp.mean(z, axis=(0, 2, 3), keepdims=True)
        var = jnp.mean((z - mean) ** 2, axis=(0, 2, 3), keepdims=True)
        zn = (z - mean) * jax.lax.rsqrt(var + eps)
        return zn * g.reshape(1, -1, 1, 1) + b.reshape(1, -1, 1, 1)

    y = jnp.maximum(bn(conv(x, w1), g1, b1), 0.0)
    y = bn(conv(y, w2), g2, b2)
    res = x.astype(jnp.bfloat16).astype(jnp.float32)      # kernel residual bf16
    return jnp.maximum(y + res, 0.0)


if __name__ == "__main__":
    # ResidualLayer(in_c=4, out_c=4) on a (2, 4, 16, 16) input.
    N, C, H, W, K = 2, 4, 16, 16, 3

    key = jax.random.PRNGKey(0)
    kx, kw1, kw2, kg1, kb1, kg2, kb2 = jax.random.split(key, 7)

    x = jax.random.normal(kx, (N, C, H, W), dtype=jnp.float32)

    fan_in = C * K * K
    bound = 1.0 / math.sqrt(fan_in)
    w1 = jax.random.uniform(kw1, (C, C, K, K), jnp.float32, -bound, bound)
    w2 = jax.random.uniform(kw2, (C, C, K, K), jnp.float32, -bound, bound)
    g1 = jax.random.uniform(kg1, (C,), jnp.float32, 0.5, 1.5)
    b1 = jax.random.uniform(kb1, (C,), jnp.float32, -0.5, 0.5)
    g2 = jax.random.uniform(kg2, (C,), jnp.float32, 0.5, 1.5)
    b2 = jax.random.uniform(kb2, (C,), jnp.float32, -0.5, 0.5)

    out = jax.jit(residual_layer_forward)(x, w1, g1, b1, w2, g2, b2)
    out = jax.block_until_ready(out)

    ref = _reference(x, w1, g1, b1, w2, g2, b2)

    assert out.shape == x.shape
    max_err = float(jnp.max(jnp.abs(out - ref)))
    assert jnp.allclose(out, ref, atol=2e-2, rtol=2e-2), max_err

    print("KERNEL_OK")
</pallas_src>

<mosaic_0001>
module attributes {stable_mosaic.version = 11 : i64} {
  func.func @_conv3x3_kernel(%arg0: i32, %arg1: memref<1x16x16x128xbf16, #tpu.memory_space<vmem>>, %arg2: memref<3x3x128x128xbf16, #tpu.memory_space<vmem>>, %arg3: memref<256x128xbf16, #tpu.memory_space<vmem>>, %arg4: memref<1x2x128xf32, #tpu.memory_space<vmem>>, %arg5: memref<18x18x128xbf16, #tpu.memory_space<vmem>>, %arg6: memref<256x128xf32, #tpu.memory_space<vmem>>) attributes {dimension_semantics = [#tpu.dimension_semantics<parallel>], iteration_bounds = array<i64: 2>, scalar_prefetch = 0 : i64, scratch_operands = 2 : i64, tpu.core_type = #tpu.core_type<tc>, window_params = [{transform_indices = @transform_0, window_bounds = array<i64: 1, 16, 16, 128>}, {pipeline_mode = #tpu.pipeline_mode<synchronous>, transform_indices = @transform_1, window_bounds = array<i64: 3, 3, 128, 128>}, {transform_indices = @transform_2, window_bounds = array<i64: 256, 128>}, {transform_indices = @transform_3, window_bounds = array<i64: 1, 2, 128>}]} {
    %cst = arith.constant 0.000000e+00 : bf16
    %0 = vector.broadcast %cst : bf16 to vector<18x18x128xbf16>
    %c0 = arith.constant 0 : index
    %c0_0 = arith.constant 0 : index
    %c0_1 = arith.constant 0 : index
    %1 = vector.load %arg5[%c0, %c0_0, %c0_1] : memref<18x18x128xbf16, #tpu.memory_space<vmem>>, vector<18x18x128xbf16>
    tpu.vector_store %arg5[%c0, %c0_0, %c0_1], %0 {strides = array<i32>} : memref<18x18x128xbf16, #tpu.memory_space<vmem>>, vector<18x18x128xbf16>,
    %c0_2 = arith.constant 0 : index
    %c0_3 = arith.constant 0 : index
    %c0_4 = arith.constant 0 : index
    %c0_5 = arith.constant 0 : index
    %2 = vector.load %arg1[%c0_2, %c0_3, %c0_4, %c0_5] : memref<1x16x16x128xbf16, #tpu.memory_space<vmem>>, vector<1x16x16x128xbf16>
    %3 = vector.shape_cast %2 : vector<1x16x16x128xbf16> to vector<16x16x128xbf16>
    %c1 = arith.constant 1 : index
    %c1_6 = arith.constant 1 : index
    %c0_7 = arith.constant 0 : index
    %4 = vector.load %arg5[%c1, %c1_6, %c0_7] : memref<18x18x128xbf16, #tpu.memory_space<vmem>>, vector<16x16x128xbf16>
    tpu.vector_store %arg5[%c1, %c1_6, %c0_7], %3 {strides = array<i32>} : memref<18x18x128xbf16, #tpu.memory_space<vmem>>, vector<16x16x128xbf16>,
    %c0_8 = arith.constant 0 : index
    %c0_9 = arith.constant 0 : index
    %c0_10 = arith.constant 0 : index
    %5 = vector.load %arg5[%c0_8, %c0_9, %c0_10] : memref<18x18x128xbf16, #tpu.memory_space<vmem>>, vector<18x16x128xbf16>
    %6 = vector.shape_cast %5 : vector<18x16x128xbf16> to vector<288x128xbf16>
    %7 = vector.extract_strided_slice %6 {offsets = [0, 0], sizes = [256, 128], strides = [1, 1]} : vector<288x128xbf16> to vector<256x128xbf16>
    %c0_11 = arith.constant 0 : index
    %c0_12 = arith.constant 0 : index
    %c0_13 = arith.constant 0 : index
    %c0_14 = arith.constant 0 : index
    %8 = vector.load %arg2[%c0_11, %c0_12, %c0_13, %c0_14] : memref<3x3x128x128xbf16, #tpu.memory_space<vmem>>, vector<1x1x128x128xbf16>
    %9 = vector.shape_cast %8 : vector<1x1x128x128xbf16> to vector<128x128xbf16>
    %cst_15 = arith.constant dense<0.000000e+00> : vector<256x128xf32>
    %10 = tpu.matmul %7, %9, %cst_15 {dimension_numbers = #tpu.dot_dimension_numbers<[1], [0], [0], [1], [0, 0, 1, 1], [], []>} : vector<256x128xbf16>, vector<128x128xbf16>, vector<256x128xf32> -> vector<256x128xf32>
    %c0_16 = arith.constant 0 : index
    %c0_17 = arith.constant 0 : index
    %11 = vector.load %arg6[%c0_16, %c0_17] : memref<256x128xf32, #tpu.memory_space<vmem>>, vector<256x128xf32>
    tpu.vector_store %arg6[%c0_16, %c0_17], %10 {strides = array<i32>} : memref<256x128xf32, #tpu.memory_space<vmem>>, vector<256x128xf32>,
    %12 = vector.extract_strided_slice %6 {offsets = [16, 0], sizes = [256, 128], strides = [1, 1]} : vector<288x128xbf16> to vector<256x128xbf16>
    %c1_18 = arith.constant 1 : index
    %c0_19 = arith.constant 0 : index
    %c0_20 = arith.constant 0 : index
    %c0_21 = arith.constant 0 : index
    %13 = vector.load %arg2[%c1_18, %c0_19, %c0_20, %c0_21] : memref<3x3x128x128xbf16, #tpu.memory_space<vmem>>, vector<1x1x128x128xbf16>
    %14 = vector.shape_cast %13 : vector<1x1x128x128xbf16> to vector<128x128xbf16>
    %cst_22 = arith.constant dense<0.000000e+00> : vector<256x128xf32>
    %15 = tpu.matmul %12, %14, %cst_22 {dimension_numbers = #tpu.dot_dimension_numbers<[1], [0], [0], [1], [0, 0, 1, 1], [], []>} : vector<256x128xbf16>, vector<128x128xbf16>, vector<256x128xf32> -> vector<256x128xf32>
    %c0_23 = arith.constant 0 : index
    %c0_24 = arith.constant 0 : index
    %16 = vector.load %arg6[%c0_23, %c0_24] : memref<256x128xf32, #tpu.memory_space<vmem>>, vector<256x128xf32>
    %17 = arith.addf %16, %15 : vector<256x128xf32>
    %c0_25 = arith.constant 0 : index
    %c0_26 = arith.constant 0 : index
    %18 = vector.load %arg6[%c0_25, %c0_26] : memref<256x128xf32, #tpu.memory_space<vmem>>, vector<256x128xf32>
    tpu.vector_store %arg6[%c0_25, %c0_26], %17 {strides = array<i32>} : memref<256x128xf32, #tpu.memory_space<vmem>>, vector<256x128xf32>,
    %19 = vector.extract_strided_slice %6 {offsets = [32, 0], sizes = [256, 128], strides = [1, 1]} : vector<288x128xbf16> to vector<256x128xbf16>
    %c2 = arith.constant 2 : index
    %c0_27 = arith.constant 0 : index
    %c0_28 = arith.constant 0 : index
    %c0_29 = arith.constant 0 : index
    %20 = vector.load %arg2[%c2, %c0_27, %c0_28, %c0_29] : memref<3x3x128x128xbf16, #tpu.memory_space<vmem>>, vector<1x1x128x128xbf16>
    %21 = vector.shape_cast %20 : vector<1x1x128x128xbf16> to vector<128x128xbf16>
    %cst_30 = arith.constant dense<0.000000e+00> : vector<256x128xf32>
    %22 = tpu.matmul %19, %21, %cst_30 {dimension_numbers = #tpu.dot_dimension_numbers<[1], [0], [0], [1], [0, 0, 1, 1], [], []>} : vector<256x128xbf16>, vector<128x128xbf16>, vector<256x128xf32> -> vector<256x128xf32>
    %c0_31 = arith.constant 0 : index
    %c0_32 = arith.constant 0 : index
    %23 = vector.load %arg6[%c0_31, %c0_32] : memref<256x128xf32, #tpu.memory_space<vmem>>, vector<256x128xf32>
    %24 = arith.addf %23, %22 : vector<256x128xf32>
    %c0_33 = arith.constant 0 : index
    %c0_34 = arith.constant 0 : index
    %25 = vector.load %arg6[%c0_33, %c0_34] : memref<256x128xf32, #tpu.memory_space<vmem>>, vector<256x128xf32>
    tpu.vector_store %arg6[%c0_33, %c0_34], %24 {strides = array<i32>} : memref<256x128xf32, #tpu.memory_space<vmem>>, vector<256x128xf32>,
    %c0_35 = arith.constant 0 : index
    %c1_36 = arith.constant 1 : index
    %c0_37 = arith.constant 0 : index
    %26 = vector.load %arg5[%c0_35, %c1_36, %c0_37] : memref<18x18x128xbf16, #tpu.memory_space<vmem>>, vector<18x16x128xbf16>
    %27 = vector.shape_cast %26 : vector<18x16x128xbf16> to vector<288x128xbf16>
    %28 = vector.extract_strided_slice %27 {offsets = [0, 0], sizes = [256, 128], strides = [1, 1]} : vector<288x128xbf16> to vector<256x128xbf16>
    %c0_38 = arith.constant 0 : index
    %c1_39 = arith.constant 1 : index
    %c0_40 = arith.constant 0 : index
    %c0_41 = arith.constant 0 : index
    %29 = vector.load %arg2[%c0_38, %c1_39, %c0_40, %c0_41] : memref<3x3x128x128xbf16, #tpu.memory_space<vmem>>, vector<1x1x128x128xbf16>
    %30 = vector.shape_cast %29 : vector<1x1x128x128xbf16> to vector<128x128xbf16>
    %cst_42 = arith.constant dense<0.000000e+00> : vector<256x128xf32>
    %31 = tpu.matmul %28, %30, %cst_42 {dimension_numbers = #tpu.dot_dimension_numbers<[1], [0], [0], [1], [0, 0, 1, 1], [], []>} : vector<256x128xbf16>, vector<128x128xbf16>, vector<256x128xf32> -> vector<256x128xf32>
    %c0_43 = arith.constant 0 : index
    %c0_44 = arith.constant 0 : index
    %32 = vector.load %arg6[%c0_43, %c0_44] : memref<256x128xf32, #tpu.memory_space<vmem>>, vector<256x128xf32>
    %33 = arith.addf %32, %31 : vector<256x128xf32>
    %c0_45 = arith.constant 0 : index
    %c0_46 = arith.constant 0 : index
    %34 = vector.load %arg6[%c0_45, %c0_46] : memref<256x128xf32, #tpu.memory_space<vmem>>, vector<256x128xf32>
    tpu.vector_store %arg6[%c0_45, %c0_46], %33 {strides = array<i32>} : memref<256x128xf32, #tpu.memory_space<vmem>>, vector<256x128xf32>,
    %35 = vector.extract_strided_slice %27 {offsets = [16, 0], sizes = [256, 128], strides = [1, 1]} : vector<288x128xbf16> to vector<256x128xbf16>
    %c1_47 = arith.constant 1 : index
    %c1_48 = arith.constant 1 : index
    %c0_49 = arith.constant 0 : index
    %c0_50 = arith.constant 0 : index
    %36 = vector.load %arg2[%c1_47, %c1_48, %c0_49, %c0_50] : memref<3x3x128x128xbf16, #tpu.memory_space<vmem>>, vector<1x1x128x128xbf16>
    %37 = vector.shape_cast %36 : vector<1x1x128x128xbf16> to vector<128x128xbf16>
    %cst_51 = arith.constant dense<0.000000e+00> : vector<256x128xf32>
    %38 = tpu.matmul %35, %37, %cst_51 {dimension_numbers = #tpu.dot_dimension_numbers<[1], [0], [0], [1], [0, 0, 1, 1], [], []>} : vector<256x128xbf16>, vector<128x128xbf16>, vector<256x128xf32> -> vector<256x128xf32>
    %c0_52 = arith.constant 0 : index
    %c0_53 = arith.constant 0 : index
    %39 = vector.load %arg6[%c0_52, %c0_53] : memref<256x128xf32, #tpu.memory_space<vmem>>, vector<256x128xf32>
    %40 = arith.addf %39, %38 : vector<256x128xf32>
    %c0_54 = arith.constant 0 : index
    %c0_55 = arith.constant 0 : index
    %41 = vector.load %arg6[%c0_54, %c0_55] : memref<256x128xf32, #tpu.memory_space<vmem>>, vector<256x128xf32>
    tpu.vector_store %arg6[%c0_54, %c0_55], %40 {strides = array<i32>} : memref<256x128xf32, #tpu.memory_space<vmem>>, vector<256x128xf32>,
    %42 = vector.extract_strided_slice %27 {offsets = [32, 0], sizes = [256, 128], strides = [1, 1]} : vector<288x128xbf16> to vector<256x128xbf16>
    %c2_56 = arith.constant 2 : index
    %c1_57 = arith.constant 1 : index
    %c0_58 = arith.constant 0 : index
    %c0_59 = arith.constant 0 : index
    %43 = vector.load %arg2[%c2_56, %c1_57, %c0_58, %c0_59] : memref<3x3x128x128xbf16, #tpu.memory_space<vmem>>, vector<1x1x128x128xbf16>
    %44 = vector.shape_cast %43 : vector<1x1x128x128xbf16> to vector<128x128xbf16>
    %cst_60 = arith.constant dense<0.000000e+00> : vector<256x128xf32>
    %45 = tpu.matmul %42, %44, %cst_60 {dimension_numbers = #tpu.dot_dimension_numbers<[1], [0], [0], [1], [0, 0, 1, 1], [], []>} : vector<256x128xbf16>, vector<128x128xbf16>, vector<256x128xf32> -> vector<256x128xf32>
    %c0_61 = arith.constant 0 : index
    %c0_62 = arith.constant 0 : index
    %46 = vector.load %arg6[%c0_61, %c0_62] : memref<256x128xf32, #tpu.memory_space<vmem>>, vector<256x128xf32>
    %47 = arith.addf %46, %45 : vector<256x128xf32>
    %c0_63 = arith.constant 0 : index
    %c0_64 = arith.constant 0 : index
    %48 = vector.load %arg6[%c0_63, %c0_64] : memref<256x128xf32, #tpu.memory_space<vmem>>, vector<256x128xf32>
    tpu.vector_store %arg6[%c0_63, %c0_64], %47 {strides = array<i32>} : memref<256x128xf32, #tpu.memory_space<vmem>>, vector<256x128xf32>,
    %c0_65 = arith.constant 0 : index
    %c2_66 = arith.constant 2 : index
    %c0_67 = arith.constant 0 : index
    %49 = vector.load %arg5[%c0_65, %c2_66, %c0_67] : memref<18x18x128xbf16, #tpu.memory_space<vmem>>, vector<18x16x128xbf16>
    %50 = vector.shape_cast %49 : vector<18x16x128xbf16> to vector<288x128xbf16>
    %51 = vector.extract_strided_slice %50 {offsets = [0, 0], sizes = [256, 128], strides = [1, 1]} : vector<288x128xbf16> to vector<256x128xbf16>
    %c0_68 = arith.constant 0 : index
    %c2_69 = arith.constant 2 : index
    %c0_70 = arith.constant 0 : index
    %c0_71 = arith.constant 0 : index
    %52 = vector.load %arg2[%c0_68, %c2_69, %c0_70, %c0_71] : memref<3x3x128x128xbf16, #tpu.memory_space<vmem>>, vector<1x1x128x128xbf16>
    %53 = vector.shape_cast %52 : vector<1x1x128x128xbf16> to vector<128x128xbf16>
    %cst_72 = arith.constant dense<0.000000e+00> : vector<256x128xf32>
    %54 = tpu.matmul %51, %53, %cst_72 {dimension_numbers = #tpu.dot_dimension_numbers<[1], [0], [0], [1], [0, 0, 1, 1], [], []>} : vector<256x128xbf16>, vector<128x128xbf16>, vector<256x128xf32> -> vector<256x128xf32>
    %c0_73 = arith.constant 0 : index
    %c0_74 = arith.constant 0 : index
    %55 = vector.load %arg6[%c0_73, %c0_74] : memref<256x128xf32, #tpu.memory_space<vmem>>, vector<256x128xf32>
    %56 = arith.addf %55, %54 : vector<256x128xf32>
    %c0_75 = arith.constant 0 : index
    %c0_76 = arith.constant 0 : index
    %57 = vector.load %arg6[%c0_75, %c0_76] : memref<256x128xf32, #tpu.memory_space<vmem>>, vector<256x128xf32>
    tpu.vector_store %arg6[%c0_75, %c0_76], %56 {strides = array<i32>} : memref<256x128xf32, #tpu.memory_space<vmem>>, vector<256x128xf32>,
    %58 = vector.extract_strided_slice %50 {offsets = [16, 0], sizes = [256, 128], strides = [1, 1]} : vector<288x128xbf16> to vector<256x128xbf16>
    %c1_77 = arith.constant 1 : index
    %c2_78 = arith.constant 2 : index
    %c0_79 = arith.constant 0 : index
    %c0_80 = arith.constant 0 : index
    %59 = vector.load %arg2[%c1_77, %c2_78, %c0_79, %c0_80] : memref<3x3x128x128xbf16, #tpu.memory_space<vmem>>, vector<1x1x128x128xbf16>
    %60 = vector.shape_cast %59 : vector<1x1x128x128xbf16> to vector<128x128xbf16>
    %cst_81 = arith.constant dense<0.000000e+00> : vector<256x128xf32>
    %61 = tpu.matmul %58, %60, %cst_81 {dimension_numbers = #tpu.dot_dimension_numbers<[1], [0], [0], [1], [0, 0, 1, 1], [], []>} : vector<256x128xbf16>, vector<128x128xbf16>, vector<256x128xf32> -> vector<256x128xf32>
    %c0_82 = arith.constant 0 : index
    %c0_83 = arith.constant 0 : index
    %62 = vector.load %arg6[%c0_82, %c0_83] : memref<256x128xf32, #tpu.memory_space<vmem>>, vector<256x128xf32>
    %63 = arith.addf %62, %61 : vector<256x128xf32>
    %c0_84 = arith.constant 0 : index
    %c0_85 = arith.constant 0 : index
    %64 = vector.load %arg6[%c0_84, %c0_85] : memref<256x128xf32, #tpu.memory_space<vmem>>, vector<256x128xf32>
    tpu.vector_store %arg6[%c0_84, %c0_85], %63 {strides = array<i32>} : memref<256x128xf32, #tpu.memory_space<vmem>>, vector<256x128xf32>,
    %65 = vector.extract_strided_slice %50 {offsets = [32, 0], sizes = [256, 128], strides = [1, 1]} : vector<288x128xbf16> to vector<256x128xbf16>
    %c2_86 = arith.constant 2 : index
    %c2_87 = arith.constant 2 : index
    %c0_88 = arith.constant 0 : index
    %c0_89 = arith.constant 0 : index
    %66 = vector.load %arg2[%c2_86, %c2_87, %c0_88, %c0_89] : memref<3x3x128x128xbf16, #tpu.memory_space<vmem>>, vector<1x1x128x128xbf16>
    %67 = vector.shape_cast %66 : vector<1x1x128x128xbf16> to vector<128x128xbf16>
    %cst_90 = arith.constant dense<0.000000e+00> : vector<256x128xf32>
    %68 = tpu.matmul %65, %67, %cst_90 {dimension_numbers = #tpu.dot_dimension_numbers<[1], [0], [0], [1], [0, 0, 1, 1], [], []>} : vector<256x128xbf16>, vector<128x128xbf16>, vector<256x128xf32> -> vector<256x128xf32>
    %c0_91 = arith.constant 0 : index
    %c0_92 = arith.constant 0 : index
    %69 = vector.load %arg6[%c0_91, %c0_92] : memref<256x128xf32, #tpu.memory_space<vmem>>, vector<256x128xf32>
    %70 = arith.addf %69, %68 : vector<256x128xf32>
    %c0_93 = arith.constant 0 : index
    %c0_94 = arith.constant 0 : index
    %71 = vector.load %arg6[%c0_93, %c0_94] : memref<256x128xf32, #tpu.memory_space<vmem>>, vector<256x128xf32>
    tpu.vector_store %arg6[%c0_93, %c0_94], %70 {strides = array<i32>} : memref<256x128xf32, #tpu.memory_space<vmem>>, vector<256x128xf32>,
    %c0_95 = arith.constant 0 : index
    %c0_96 = arith.constant 0 : index
    %72 = vector.load %arg6[%c0_95, %c0_96] : memref<256x128xf32, #tpu.memory_space<vmem>>, vector<256x128xf32>
    %73 = arith.truncf %72 : vector<256x128xf32> to vector<256x128xbf16>
    %c0_97 = arith.constant 0 : index
    %c0_98 = arith.constant 0 : index
    %74 = vector.load %arg3[%c0_97, %c0_98] : memref<256x128xbf16, #tpu.memory_space<vmem>>, vector<256x128xbf16>
    tpu.vector_store %arg3[%c0_97, %c0_98], %73 {strides = array<i32>} : memref<256x128xbf16, #tpu.memory_space<vmem>>, vector<256x128xbf16>,
    %cst_99 = arith.constant dense<0.000000e+00> : vector<128xf32>
    %75 = vector.multi_reduction <add>, %72, %cst_99 [0] : vector<256x128xf32> to vector<128xf32>
    %76 = vector.shape_cast %75 : vector<128xf32> to vector<1x128xf32>
    %c0_100 = arith.constant 0 : index
    %c0_101 = arith.constant 0 : index
    %c0_102 = arith.constant 0 : index
    %77 = vector.load %arg4[%c0_100, %c0_101, %c0_102] : memref<1x2x128xf32, #tpu.memory_space<vmem>>, vector<1x1x128xf32>
    %78 = vector.shape_cast %77 : vector<1x1x128xf32> to vector<1x128xf32>
    %79 = vector.shape_cast %76 : vector<1x128xf32> to vector<1x1x128xf32>
    tpu.vector_store %arg4[%c0_100, %c0_101, %c0_102], %79 {strides = array<i32>} : memref<1x2x128xf32, #tpu.memory_space<vmem>>, vector<1x1x128xf32>,
    %80 = arith.mulf %72, %72 : vector<256x128xf32>
    %cst_103 = arith.constant dense<0.000000e+00> : vector<128xf32>
    %81 = vector.multi_reduction <add>, %80, %cst_103 [0] : vector<256x128xf32> to vector<128xf32>
    %82 = vector.shape_cast %81 : vector<128xf32> to vector<1x128xf32>
    %c0_104 = arith.constant 0 : index
    %c1_105 = arith.constant 1 : index
    %c0_106 = arith.constant 0 : index
    %83 = vector.load %arg4[%c0_104, %c1_105, %c0_106] : memref<1x2x128xf32, #tpu.memory_space<vmem>>, vector<1x1x128xf32>
    %84 = vector.shape_cast %83 : vector<1x1x128xf32> to vector<1x128xf32>
    %85 = vector.shape_cast %82 : vector<1x128xf32> to vector<1x1x128xf32>
    tpu.vector_store %arg4[%c0_104, %c1_105, %c0_106], %85 {strides = array<i32>} : memref<1x2x128xf32, #tpu.memory_space<vmem>>, vector<1x1x128xf32>,
    return
  }
  func.func @transform_0(%arg0: i32) -> (i32, i32, i32, i32) {
    %c0_i32 = arith.constant 0 : i32
    %c0_i32_0 = arith.constant 0 : i32
    %c0_i32_1 = arith.constant 0 : i32
    %c0_i32_2 = arith.constant 0 : i32
    return %arg0, %c0_i32, %c0_i32_0, %c0_i32_1 : i32, i32, i32, i32
  }
  func.func @transform_1(%arg0: i32) -> (i32, i32, i32, i32) {
    %c0_i32 = arith.constant 0 : i32
    %c0_i32_0 = arith.constant 0 : i32
    %c0_i32_1 = arith.constant 0 : i32
    %c0_i32_2 = arith.constant 0 : i32
    %c0_i32_3 = arith.constant 0 : i32
    return %c0_i32, %c0_i32_0, %c0_i32_1, %c0_i32_2 : i32, i32, i32, i32
  }
  func.func @transform_2(%arg0: i32) -> (i32, i32) {
    %c0_i32 = arith.constant 0 : i32
    %c0_i32_0 = arith.constant 0 : i32
    return %arg0, %c0_i32 : i32, i32
  }
  func.func @transform_3(%arg0: i32) -> (i32, i32, i32) {
    %c0_i32 = arith.constant 0 : i32
    %c0_i32_0 = arith.constant 0 : i32
    %c0_i32_1 = arith.constant 0 : i32
    return %arg0, %c0_i32, %c0_i32_0 : i32, i32, i32
  }
}

module attributes {stable_mosaic.version = 11 : i64} {
  func.func @_bn_res_relu_kernel(%arg0: i32, %arg1: memref<512x128xbf16, #tpu.memory_space<vmem>>, %arg2: memref<512x128xbf16, #tpu.memory_space<vmem>>, %arg3: memref<1x128xf32, #tpu.memory_space<vmem>>, %arg4: memref<1x128xf32, #tpu.memory_space<vmem>>, %arg5: memref<512x128xf32, #tpu.memory_space<vmem>>) attributes {dimension_semantics = [#tpu.dimension_semantics<parallel>], iteration_bounds = array<i64: 1>, scalar_prefetch = 0 : i64, scratch_operands = 0 : i64, tpu.core_type = #tpu.core_type<tc>, window_params = [{transform_indices = @transform_0, window_bounds = array<i64: 512, 128>}, {transform_indices = @transform_1, window_bounds = array<i64: 512, 128>}, {pipeline_mode = #tpu.pipeline_mode<synchronous>, transform_indices = @transform_2, window_bounds = array<i64: 1, 128>}, {pipeline_mode = #tpu.pipeline_mode<synchronous>, transform_indices = @transform_3, window_bounds = array<i64: 1, 128>}, {transform_indices = @transform_4, window_bounds = array<i64: 512, 128>}]} {
    %c0 = arith.constant 0 : index
    %c0_0 = arith.constant 0 : index
    %0 = vector.load %arg1[%c0, %c0_0] : memref<512x128xbf16, #tpu.memory_space<vmem>>, vector<512x128xbf16>
    %1 = arith.extf %0 : vector<512x128xbf16> to vector<512x128xf32>
    %c0_1 = arith.constant 0 : index
    %c0_2 = arith.constant 0 : index
    %2 = vector.load %arg3[%c0_1, %c0_2] : memref<1x128xf32, #tpu.memory_space<vmem>>, vector<1x128xf32>
    %3 = vector.broadcast %2 : vector<1x128xf32> to vector<512x128xf32>
    %4 = arith.mulf %1, %3 : vector<512x128xf32>
    %c0_3 = arith.constant 0 : index
    %c0_4 = arith.constant 0 : index
    %5 = vector.load %arg4[%c0_3, %c0_4] : memref<1x128xf32, #tpu.memory_space<vmem>>, vector<1x128xf32>
    %6 = vector.broadcast %5 : vector<1x128xf32> to vector<512x128xf32>
    %7 = arith.addf %4, %6 : vector<512x128xf32>
    %c0_5 = arith.constant 0 : index
    %c0_6 = arith.constant 0 : index
    %8 = vector.load %arg2[%c0_5, %c0_6] : memref<512x128xbf16, #tpu.memory_space<vmem>>, vector<512x128xbf16>
    %9 = arith.extf %8 : vector<512x128xbf16> to vector<512x128xf32>
    %10 = arith.addf %7, %9 : vector<512x128xf32>
    %cst = arith.constant 0.000000e+00 : f32
    %11 = vector.broadcast %cst : f32 to vector<512x128xf32>
    %12 = arith.maximumf %10, %11 : vector<512x128xf32>
    %c0_7 = arith.constant 0 : index
    %c0_8 = arith.constant 0 : index
    %13 = vector.load %arg5[%c0_7, %c0_8] : memref<512x128xf32, #tpu.memory_space<vmem>>, vector<512x128xf32>
    tpu.vector_store %arg5[%c0_7, %c0_8], %12 {strides = array<i32>} : memref<512x128xf32, #tpu.memory_space<vmem>>, vector<512x128xf32>,
    return
  }
  func.func @transform_0(%arg0: i32) -> (i32, i32) {
    %c0_i32 = arith.constant 0 : i32
    %c0_i32_0 = arith.constant 0 : i32
    return %arg0, %c0_i32 : i32, i32
  }
  func.func @transform_1(%arg0: i32) -> (i32, i32) {
    %c0_i32 = arith.constant 0 : i32
    %c0_i32_0 = arith.constant 0 : i32
    return %arg0, %c0_i32 : i32, i32
  }
  func.func @transform_2(%arg0: i32) -> (i32, i32) {
    %c0_i32 = arith.constant 0 : i32
    %c0_i32_0 = arith.constant 0 : i32
    %c0_i32_1 = arith.constant 0 : i32
    return %c0_i32, %c0_i32_0 : i32, i32
  }
  func.func @transform_3(%arg0: i32) -> (i32, i32) {
    %c0_i32 = arith.constant 0 : i32
    %c0_i32_0 = arith.constant 0 : i32
    %c0_i32_1 = arith.constant 0 : i32
    return %c0_i32, %c0_i32_0 : i32, i32
  }
  func.func @transform_4(%arg0: i32) -> (i32, i32) {
    %c0_i32 = arith.constant 0 : i32
    %c0_i32_0 = arith.constant 0 : i32
    return %arg0, %c0_i32 : i32, i32
  }
}

module attributes {stable_mosaic.version = 11 : i64} {
  func.func @_conv3x3_kernel(%arg0: i32, %arg1: memref<1x16x16x128xbf16, #tpu.memory_space<vmem>>, %arg2: memref<3x3x128x128xbf16, #tpu.memory_space<vmem>>, %arg3: memref<1x128xf32, #tpu.memory_space<vmem>>, %arg4: memref<1x128xf32, #tpu.memory_space<vmem>>, %arg5: memref<256x128xbf16, #tpu.memory_space<vmem>>, %arg6: memref<1x2x128xf32, #tpu.memory_space<vmem>>, %arg7: memref<18x18x128xbf16, #tpu.memory_space<vmem>>, %arg8: memref<256x128xf32, #tpu.memory_space<vmem>>) attributes {dimension_semantics = [#tpu.dimension_semantics<parallel>], iteration_bounds = array<i64: 2>, scalar_prefetch = 0 : i64, scratch_operands = 2 : i64, tpu.core_type = #tpu.core_type<tc>, window_params = [{transform_indices = @transform_0, window_bounds = array<i64: 1, 16, 16, 128>}, {pipeline_mode = #tpu.pipeline_mode<synchronous>, transform_indices = @transform_1, window_bounds = array<i64: 3, 3, 128, 128>}, {pipeline_mode = #tpu.pipeline_mode<synchronous>, transform_indices = @transform_2, window_bounds = array<i64: 1, 128>}, {pipeline_mode = #tpu.pipeline_mode<synchronous>, transform_indices = @transform_3, window_bounds = array<i64: 1, 128>}, {transform_indices = @transform_4, window_bounds = array<i64: 256, 128>}, {transform_indices = @transform_5, window_bounds = array<i64: 1, 2, 128>}]} {
    %cst = arith.constant 0.000000e+00 : bf16
    %0 = vector.broadcast %cst : bf16 to vector<18x18x128xbf16>
    %c0 = arith.constant 0 : index
    %c0_0 = arith.constant 0 : index
    %c0_1 = arith.constant 0 : index
    %1 = vector.load %arg7[%c0, %c0_0, %c0_1] : memref<18x18x128xbf16, #tpu.memory_space<vmem>>, vector<18x18x128xbf16>
    tpu.vector_store %arg7[%c0, %c0_0, %c0_1], %0 {strides = array<i32>} : memref<18x18x128xbf16, #tpu.memory_space<vmem>>, vector<18x18x128xbf16>,
    %c0_2 = arith.constant 0 : index
    %c0_3 = arith.constant 0 : index
    %c0_4 = arith.constant 0 : index
    %c0_5 = arith.constant 0 : index
    %2 = vector.load %arg1[%c0_2, %c0_3, %c0_4, %c0_5] : memref<1x16x16x128xbf16, #tpu.memory_space<vmem>>, vector<1x16x16x128xbf16>
    %3 = vector.shape_cast %2 : vector<1x16x16x128xbf16> to vector<16x16x128xbf16>
    %c0_6 = arith.constant 0 : index
    %c0_7 = arith.constant 0 : index
    %4 = vector.load %arg3[%c0_6, %c0_7] : memref<1x128xf32, #tpu.memory_space<vmem>>, vector<1x128xf32>
    %5 = vector.shape_cast %4 : vector<1x128xf32> to vector<1x1x128xf32>
    %c0_8 = arith.constant 0 : index
    %c0_9 = arith.constant 0 : index
    %6 = vector.load %arg4[%c0_8, %c0_9] : memref<1x128xf32, #tpu.memory_space<vmem>>, vector<1x128xf32>
    %7 = vector.shape_cast %6 : vector<1x128xf32> to vector<1x1x128xf32>
    %8 = arith.extf %3 : vector<16x16x128xbf16> to vector<16x16x128xf32>
    %9 = vector.broadcast %5 : vector<1x1x128xf32> to vector<16x16x128xf32>
    %10 = arith.mulf %8, %9 : vector<16x16x128xf32>
    %11 = vector.broadcast %7 : vector<1x1x128xf32> to vector<16x16x128xf32>
    %12 = arith.addf %10, %11 : vector<16x16x128xf32>
    %cst_10 = arith.constant 0.000000e+00 : f32
    %13 = vector.broadcast %cst_10 : f32 to vector<16x16x128xf32>
    %14 = arith.maximumf %12, %13 : vector<16x16x128xf32>
    %15 = arith.truncf %14 : vector<16x16x128xf32> to vector<16x16x128xbf16>
    %c1 = arith.constant 1 : index
    %c1_11 = arith.constant 1 : index
    %c0_12 = arith.constant 0 : index
    %16 = vector.load %arg7[%c1, %c1_11, %c0_12] : memref<18x18x128xbf16, #tpu.memory_space<vmem>>, vector<16x16x128xbf16>
    tpu.vector_store %arg7[%c1, %c1_11, %c0_12], %15 {strides = array<i32>} : memref<18x18x128xbf16, #tpu.memory_space<vmem>>, vector<16x16x128xbf16>,
    %c0_13 = arith.constant 0 : index
    %c0_14 = arith.constant 0 : index
    %c0_15 = arith.constant 0 : index
    %17 = vector.load %arg7[%c0_13, %c0_14, %c0_15] : memref<18x18x128xbf16, #tpu.memory_space<vmem>>, vector<18x16x128xbf16>
    %18 = vector.shape_cast %17 : vector<18x16x128xbf16> to vector<288x128xbf16>
    %19 = vector.extract_strided_slice %18 {offsets = [0, 0], sizes = [256, 128], strides = [1, 1]} : vector<288x128xbf16> to vector<256x128xbf16>
    %c0_16 = arith.constant 0 : index
    %c0_17 = arith.constant 0 : index
    %c0_18 = arith.constant 0 : index
    %c0_19 = arith.constant 0 : index
    %20 = vector.load %arg2[%c0_16, %c0_17, %c0_18, %c0_19] : memref<3x3x128x128xbf16, #tpu.memory_space<vmem>>, vector<1x1x128x128xbf16>
    %21 = vector.shape_cast %20 : vector<1x1x128x128xbf16> to vector<128x128xbf16>
    %cst_20 = arith.constant dense<0.000000e+00> : vector<256x128xf32>
    %22 = tpu.matmul %19, %21, %cst_20 {dimension_numbers = #tpu.dot_dimension_numbers<[1], [0], [0], [1], [0, 0, 1, 1], [], []>} : vector<256x128xbf16>, vector<128x128xbf16>, vector<256x128xf32> -> vector<256x128xf32>
    %c0_21 = arith.constant 0 : index
    %c0_22 = arith.constant 0 : index
    %23 = vector.load %arg8[%c0_21, %c0_22] : memref<256x128xf32, #tpu.memory_space<vmem>>, vector<256x128xf32>
    tpu.vector_store %arg8[%c0_21, %c0_22], %22 {strides = array<i32>} : memref<256x128xf32, #tpu.memory_space<vmem>>, vector<256x128xf32>,
    %24 = vector.extract_strided_slice %18 {offsets = [16, 0], sizes = [256, 128], strides = [1, 1]} : vector<288x128xbf16> to vector<256x128xbf16>
    %c1_23 = arith.constant 1 : index
    %c0_24 = arith.constant 0 : index
    %c0_25 = arith.constant 0 : index
    %c0_26 = arith.constant 0 : index
    %25 = vector.load %arg2[%c1_23, %c0_24, %c0_25, %c0_26] : memref<3x3x128x128xbf16, #tpu.memory_space<vmem>>, vector<1x1x128x128xbf16>
    %26 = vector.shape_cast %25 : vector<1x1x128x128xbf16> to vector<128x128xbf16>
    %cst_27 = arith.constant dense<0.000000e+00> : vector<256x128xf32>
    %27 = tpu.matmul %24, %26, %cst_27 {dimension_numbers = #tpu.dot_dimension_numbers<[1], [0], [0], [1], [0, 0, 1, 1], [], []>} : vector<256x128xbf16>, vector<128x128xbf16>, vector<256x128xf32> -> vector<256x128xf32>
    %c0_28 = arith.constant 0 : index
    %c0_29 = arith.constant 0 : index
    %28 = vector.load %arg8[%c0_28, %c0_29] : memref<256x128xf32, #tpu.memory_space<vmem>>, vector<256x128xf32>
    %29 = arith.addf %28, %27 : vector<256x128xf32>
    %c0_30 = arith.constant 0 : index
    %c0_31 = arith.constant 0 : index
    %30 = vector.load %arg8[%c0_30, %c0_31] : memref<256x128xf32, #tpu.memory_space<vmem>>, vector<256x128xf32>
    tpu.vector_store %arg8[%c0_30, %c0_31], %29 {strides = array<i32>} : memref<256x128xf32, #tpu.memory_space<vmem>>, vector<256x128xf32>,
    %31 = vector.extract_strided_slice %18 {offsets = [32, 0], sizes = [256, 128], strides = [1, 1]} : vector<288x128xbf16> to vector<256x128xbf16>
    %c2 = arith.constant 2 : index
    %c0_32 = arith.constant 0 : index
    %c0_33 = arith.constant 0 : index
    %c0_34 = arith.constant 0 : index
    %32 = vector.load %arg2[%c2, %c0_32, %c0_33, %c0_34] : memref<3x3x128x128xbf16, #tpu.memory_space<vmem>>, vector<1x1x128x128xbf16>
    %33 = vector.shape_cast %32 : vector<1x1x128x128xbf16> to vector<128x128xbf16>
    %cst_35 = arith.constant dense<0.000000e+00> : vector<256x128xf32>
    %34 = tpu.matmul %31, %33, %cst_35 {dimension_numbers = #tpu.dot_dimension_numbers<[1], [0], [0], [1], [0, 0, 1, 1], [], []>} : vector<256x128xbf16>, vector<128x128xbf16>, vector<256x128xf32> -> vector<256x128xf32>
    %c0_36 = arith.constant 0 : index
    %c0_37 = arith.constant 0 : index
    %35 = vector.load %arg8[%c0_36, %c0_37] : memref<256x128xf32, #tpu.memory_space<vmem>>, vector<256x128xf32>
    %36 = arith.addf %35, %34 : vector<256x128xf32>
    %c0_38 = arith.constant 0 : index
    %c0_39 = arith.constant 0 : index
    %37 = vector.load %arg8[%c0_38, %c0_39] : memref<256x128xf32, #tpu.memory_space<vmem>>, vector<256x128xf32>
    tpu.vector_store %arg8[%c0_38, %c0_39], %36 {strides = array<i32>} : memref<256x128xf32, #tpu.memory_space<vmem>>, vector<256x128xf32>,
    %c0_40 = arith.constant 0 : index
    %c1_41 = arith.constant 1 : index
    %c0_42 = arith.constant 0 : index
    %38 = vector.load %arg7[%c0_40, %c1_41, %c0_42] : memref<18x18x128xbf16, #tpu.memory_space<vmem>>, vector<18x16x128xbf16>
    %39 = vector.shape_cast %38 : vector<18x16x128xbf16> to vector<288x128xbf16>
    %40 = vector.extract_strided_slice %39 {offsets = [0, 0], sizes = [256, 128], strides = [1, 1]} : vector<288x128xbf16> to vector<256x128xbf16>
    %c0_43 = arith.constant 0 : index
    %c1_44 = arith.constant 1 : index
    %c0_45 = arith.constant 0 : index
    %c0_46 = arith.constant 0 : index
    %41 = vector.load %arg2[%c0_43, %c1_44, %c0_45, %c0_46] : memref<3x3x128x128xbf16, #tpu.memory_space<vmem>>, vector<1x1x128x128xbf16>
    %42 = vector.shape_cast %41 : vector<1x1x128x128xbf16> to vector<128x128xbf16>
    %cst_47 = arith.constant dense<0.000000e+00> : vector<256x128xf32>
    %43 = tpu.matmul %40, %42, %cst_47 {dimension_numbers = #tpu.dot_dimension_numbers<[1], [0], [0], [1], [0, 0, 1, 1], [], []>} : vector<256x128xbf16>, vector<128x128xbf16>, vector<256x128xf32> -> vector<256x128xf32>
    %c0_48 = arith.constant 0 : index
    %c0_49 = arith.constant 0 : index
    %44 = vector.load %arg8[%c0_48, %c0_49] : memref<256x128xf32, #tpu.memory_space<vmem>>, vector<256x128xf32>
    %45 = arith.addf %44, %43 : vector<256x128xf32>
    %c0_50 = arith.constant 0 : index
    %c0_51 = arith.constant 0 : index
    %46 = vector.load %arg8[%c0_50, %c0_51] : memref<256x128xf32, #tpu.memory_space<vmem>>, vector<256x128xf32>
    tpu.vector_store %arg8[%c0_50, %c0_51], %45 {strides = array<i32>} : memref<256x128xf32, #tpu.memory_space<vmem>>, vector<256x128xf32>,
    %47 = vector.extract_strided_slice %39 {offsets = [16, 0], sizes = [256, 128], strides = [1, 1]} : vector<288x128xbf16> to vector<256x128xbf16>
    %c1_52 = arith.constant 1 : index
    %c1_53 = arith.constant 1 : index
    %c0_54 = arith.constant 0 : index
    %c0_55 = arith.constant 0 : index
    %48 = vector.load %arg2[%c1_52, %c1_53, %c0_54, %c0_55] : memref<3x3x128x128xbf16, #tpu.memory_space<vmem>>, vector<1x1x128x128xbf16>
    %49 = vector.shape_cast %48 : vector<1x1x128x128xbf16> to vector<128x128xbf16>
    %cst_56 = arith.constant dense<0.000000e+00> : vector<256x128xf32>
    %50 = tpu.matmul %47, %49, %cst_56 {dimension_numbers = #tpu.dot_dimension_numbers<[1], [0], [0], [1], [0, 0, 1, 1], [], []>} : vector<256x128xbf16>, vector<128x128xbf16>, vector<256x128xf32> -> vector<256x128xf32>
    %c0_57 = arith.constant 0 : index
    %c0_58 = arith.constant 0 : index
    %51 = vector.load %arg8[%c0_57, %c0_58] : memref<256x128xf32, #tpu.memory_space<vmem>>, vector<256x128xf32>
    %52 = arith.addf %51, %50 : vector<256x128xf32>
    %c0_59 = arith.constant 0 : index
    %c0_60 = arith.constant 0 : index
    %53 = vector.load %arg8[%c0_59, %c0_60] : memref<256x128xf32, #tpu.memory_space<vmem>>, vector<256x128xf32>
    tpu.vector_store %arg8[%c0_59, %c0_60], %52 {strides = array<i32>} : memref<256x128xf32, #tpu.memory_space<vmem>>, vector<256x128xf32>,
    %54 = vector.extract_strided_slice %39 {offsets = [32, 0], sizes = [256, 128], strides = [1, 1]} : vector<288x128xbf16> to vector<256x128xbf16>
    %c2_61 = arith.constant 2 : index
    %c1_62 = arith.constant 1 : index
    %c0_63 = arith.constant 0 : index
    %c0_64 = arith.constant 0 : index
    %55 = vector.load %arg2[%c2_61, %c1_62, %c0_63, %c0_64] : memref<3x3x128x128xbf16, #tpu.memory_space<vmem>>, vector<1x1x128x128xbf16>
    %56 = vector.shape_cast %55 : vector<1x1x128x128xbf16> to vector<128x128xbf16>
    %cst_65 = arith.constant dense<0.000000e+00> : vector<256x128xf32>
    %57 = tpu.matmul %54, %56, %cst_65 {dimension_numbers = #tpu.dot_dimension_numbers<[1], [0], [0], [1], [0, 0, 1, 1], [], []>} : vector<256x128xbf16>, vector<128x128xbf16>, vector<256x128xf32> -> vector<256x128xf32>
    %c0_66 = arith.constant 0 : index
    %c0_67 = arith.constant 0 : index
    %58 = vector.load %arg8[%c0_66, %c0_67] : memref<256x128xf32, #tpu.memory_space<vmem>>, vector<256x128xf32>
    %59 = arith.addf %58, %57 : vector<256x128xf32>
    %c0_68 = arith.constant 0 : index
    %c0_69 = arith.constant 0 : index
    %60 = vector.load %arg8[%c0_68, %c0_69] : memref<256x128xf32, #tpu.memory_space<vmem>>, vector<256x128xf32>
    tpu.vector_store %arg8[%c0_68, %c0_69], %59 {strides = array<i32>} : memref<256x128xf32, #tpu.memory_space<vmem>>, vector<256x128xf32>,
    %c0_70 = arith.constant 0 : index
    %c2_71 = arith.constant 2 : index
    %c0_72 = arith.constant 0 : index
    %61 = vector.load %arg7[%c0_70, %c2_71, %c0_72] : memref<18x18x128xbf16, #tpu.memory_space<vmem>>, vector<18x16x128xbf16>
    %62 = vector.shape_cast %61 : vector<18x16x128xbf16> to vector<288x128xbf16>
    %63 = vector.extract_strided_slice %62 {offsets = [0, 0], sizes = [256, 128], strides = [1, 1]} : vector<288x128xbf16> to vector<256x128xbf16>
    %c0_73 = arith.constant 0 : index
    %c2_74 = arith.constant 2 : index
    %c0_75 = arith.constant 0 : index
    %c0_76 = arith.constant 0 : index
    %64 = vector.load %arg2[%c0_73, %c2_74, %c0_75, %c0_76] : memref<3x3x128x128xbf16, #tpu.memory_space<vmem>>, vector<1x1x128x128xbf16>
    %65 = vector.shape_cast %64 : vector<1x1x128x128xbf16> to vector<128x128xbf16>
    %cst_77 = arith.constant dense<0.000000e+00> : vector<256x128xf32>
    %66 = tpu.matmul %63, %65, %cst_77 {dimension_numbers = #tpu.dot_dimension_numbers<[1], [0], [0], [1], [0, 0, 1, 1], [], []>} : vector<256x128xbf16>, vector<128x128xbf16>, vector<256x128xf32> -> vector<256x128xf32>
    %c0_78 = arith.constant 0 : index
    %c0_79 = arith.constant 0 : index
    %67 = vector.load %arg8[%c0_78, %c0_79] : memref<256x128xf32, #tpu.memory_space<vmem>>, vector<256x128xf32>
    %68 = arith.addf %67, %66 : vector<256x128xf32>
    %c0_80 = arith.constant 0 : index
    %c0_81 = arith.constant 0 : index
    %69 = vector.load %arg8[%c0_80, %c0_81] : memref<256x128xf32, #tpu.memory_space<vmem>>, vector<256x128xf32>
    tpu.vector_store %arg8[%c0_80, %c0_81], %68 {strides = array<i32>} : memref<256x128xf32, #tpu.memory_space<vmem>>, vector<256x128xf32>,
    %70 = vector.extract_strided_slice %62 {offsets = [16, 0], sizes = [256, 128], strides = [1, 1]} : vector<288x128xbf16> to vector<256x128xbf16>
    %c1_82 = arith.constant 1 : index
    %c2_83 = arith.constant 2 : index
    %c0_84 = arith.constant 0 : index
    %c0_85 = arith.constant 0 : index
    %71 = vector.load %arg2[%c1_82, %c2_83, %c0_84, %c0_85] : memref<3x3x128x128xbf16, #tpu.memory_space<vmem>>, vector<1x1x128x128xbf16>
    %72 = vector.shape_cast %71 : vector<1x1x128x128xbf16> to vector<128x128xbf16>
    %cst_86 = arith.constant dense<0.000000e+00> : vector<256x128xf32>
    %73 = tpu.matmul %70, %72, %cst_86 {dimension_numbers = #tpu.dot_dimension_numbers<[1], [0], [0], [1], [0, 0, 1, 1], [], []>} : vector<256x128xbf16>, vector<128x128xbf16>, vector<256x128xf32> -> vector<256x128xf32>
    %c0_87 = arith.constant 0 : index
    %c0_88 = arith.constant 0 : index
    %74 = vector.load %arg8[%c0_87, %c0_88] : memref<256x128xf32, #tpu.memory_space<vmem>>, vector<256x128xf32>
    %75 = arith.addf %74, %73 : vector<256x128xf32>
    %c0_89 = arith.constant 0 : index
    %c0_90 = arith.constant 0 : index
    %76 = vector.load %arg8[%c0_89, %c0_90] : memref<256x128xf32, #tpu.memory_space<vmem>>, vector<256x128xf32>
    tpu.vector_store %arg8[%c0_89, %c0_90], %75 {strides = array<i32>} : memref<256x128xf32, #tpu.memory_space<vmem>>, vector<256x128xf32>,
    %77 = vector.extract_strided_slice %62 {offsets = [32, 0], sizes = [256, 128], strides = [1, 1]} : vector<288x128xbf16> to vector<256x128xbf16>
    %c2_91 = arith.constant 2 : index
    %c2_92 = arith.constant 2 : index
    %c0_93 = arith.constant 0 : index
    %c0_94 = arith.constant 0 : index
    %78 = vector.load %arg2[%c2_91, %c2_92, %c0_93, %c0_94] : memref<3x3x128x128xbf16, #tpu.memory_space<vmem>>, vector<1x1x128x128xbf16>
    %79 = vector.shape_cast %78 : vector<1x1x128x128xbf16> to vector<128x128xbf16>
    %cst_95 = arith.constant dense<0.000000e+00> : vector<256x128xf32>
    %80 = tpu.matmul %77, %79, %cst_95 {dimension_numbers = #tpu.dot_dimension_numbers<[1], [0], [0], [1], [0, 0, 1, 1], [], []>} : vector<256x128xbf16>, vector<128x128xbf16>, vector<256x128xf32> -> vector<256x128xf32>
    %c0_96 = arith.constant 0 : index
    %c0_97 = arith.constant 0 : index
    %81 = vector.load %arg8[%c0_96, %c0_97] : memref<256x128xf32, #tpu.memory_space<vmem>>, vector<256x128xf32>
    %82 = arith.addf %81, %80 : vector<256x128xf32>
    %c0_98 = arith.constant 0 : index
    %c0_99 = arith.constant 0 : index
    %83 = vector.load %arg8[%c0_98, %c0_99] : memref<256x128xf32, #tpu.memory_space<vmem>>, vector<256x128xf32>
    tpu.vector_store %arg8[%c0_98, %c0_99], %82 {strides = array<i32>} : memref<256x128xf32, #tpu.memory_space<vmem>>, vector<256x128xf32>,
    %c0_100 = arith.constant 0 : index
    %c0_101 = arith.constant 0 : index
    %84 = vector.load %arg8[%c0_100, %c0_101] : memref<256x128xf32, #tpu.memory_space<vmem>>, vector<256x128xf32>
    %85 = arith.truncf %84 : vector<256x128xf32> to vector<256x128xbf16>
    %c0_102 = arith.constant 0 : index
    %c0_103 = arith.constant 0 : index
    %86 = vector.load %arg5[%c0_102, %c0_103] : memref<256x128xbf16, #tpu.memory_space<vmem>>, vector<256x128xbf16>
    tpu.vector_store %arg5[%c0_102, %c0_103], %85 {strides = array<i32>} : memref<256x128xbf16, #tpu.memory_space<vmem>>, vector<256x128xbf16>,
    %cst_104 = arith.constant dense<0.000000e+00> : vector<128xf32>
    %87 = vector.multi_reduction <add>, %84, %cst_104 [0] : vector<256x128xf32> to vector<128xf32>
    %88 = vector.shape_cast %87 : vector<128xf32> to vector<1x128xf32>
    %c0_105 = arith.constant 0 : index
    %c0_106 = arith.constant 0 : index
    %c0_107 = arith.constant 0 : index
    %89 = vector.load %arg6[%c0_105, %c0_106, %c0_107] : memref<1x2x128xf32, #tpu.memory_space<vmem>>, vector<1x1x128xf32>
    %90 = vector.shape_cast %89 : vector<1x1x128xf32> to vector<1x128xf32>
    %91 = vector.shape_cast %88 : vector<1x128xf32> to vector<1x1x128xf32>
    tpu.vector_store %arg6[%c0_105, %c0_106, %c0_107], %91 {strides = array<i32>} : memref<1x2x128xf32, #tpu.memory_space<vmem>>, vector<1x1x128xf32>,
    %92 = arith.mulf %84, %84 : vector<256x128xf32>
    %cst_108 = arith.constant dense<0.000000e+00> : vector<128xf32>
    %93 = vector.multi_reduction <add>, %92, %cst_108 [0] : vector<256x128xf32> to vector<128xf32>
    %94 = vector.shape_cast %93 : vector<128xf32> to vector<1x128xf32>
    %c0_109 = arith.constant 0 : index
    %c1_110 = arith.constant 1 : index
    %c0_111 = arith.constant 0 : index
    %95 = vector.load %arg6[%c0_109, %c1_110, %c0_111] : memref<1x2x128xf32, #tpu.memory_space<vmem>>, vector<1x1x128xf32>
    %96 = vector.shape_cast %95 : vector<1x1x128xf32> to vector<1x128xf32>
    %97 = vector.shape_cast %94 : vector<1x128xf32> to vector<1x1x128xf32>
    tpu.vector_store %arg6[%c0_109, %c1_110, %c0_111], %97 {strides = array<i32>} : memref<1x2x128xf32, #tpu.memory_space<vmem>>, vector<1x1x128xf32>,
    return
  }
  func.func @transform_0(%arg0: i32) -> (i32, i32, i32, i32) {
    %c0_i32 = arith.constant 0 : i32
    %c0_i32_0 = arith.constant 0 : i32
    %c0_i32_1 = arith.constant 0 : i32
    %c0_i32_2 = arith.constant 0 : i32
    return %arg0, %c0_i32, %c0_i32_0, %c0_i32_1 : i32, i32, i32, i32
  }
  func.func @transform_1(%arg0: i32) -> (i32, i32, i32, i32) {
    %c0_i32 = arith.constant 0 : i32
    %c0_i32_0 = arith.constant 0 : i32
    %c0_i32_1 = arith.constant 0 : i32
    %c0_i32_2 = arith.constant 0 : i32
    %c0_i32_3 = arith.constant 0 : i32
    return %c0_i32, %c0_i32_0, %c0_i32_1, %c0_i32_2 : i32, i32, i32, i32
  }
  func.func @transform_2(%arg0: i32) -> (i32, i32) {
    %c0_i32 = arith.constant 0 : i32
    %c0_i32_0 = arith.constant 0 : i32
    %c0_i32_1 = arith.constant 0 : i32
    return %c0_i32, %c0_i32_0 : i32, i32
  }
  func.func @transform_3(%arg0: i32) -> (i32, i32) {
    %c0_i32 = arith.constant 0 : i32
    %c0_i32_0 = arith.constant 0 : i32
    %c0_i32_1 = arith.constant 0 : i32
    return %c0_i32, %c0_i32_0 : i32, i32
  }
  func.func @transform_4(%arg0: i32) -> (i32, i32) {
    %c0_i32 = arith.constant 0 : i32
    %c0_i32_0 = arith.constant 0 : i32
    return %arg0, %c0_i32 : i32, i32
  }
  func.func @transform_5(%arg0: i32) -> (i32, i32, i32) {
    %c0_i32 = arith.constant 0 : i32
    %c0_i32_0 = arith.constant 0 : i32
    %c0_i32_1 = arith.constant 0 : i32
    return %arg0, %c0_i32, %c0_i32_0 : i32, i32, i32
  }
}

</mosaic_0001>

<bundles_post_ra>
// kernel: residual_layer_forward.5
= control target key start
LH: loop header
LB: loop body
LE: loop exit
PB: predicated region body
PF: predicated region fallthrough
CT: control target
= control target key end

     0   :  { %s1478_s0 = inlined_call_operand.vmem [shape: bf16[512,128], index: 0, kind: input, shape index: {}]   ;;  %s1479_s1 = inlined_call_operand.vmem [shape: bf16[512,128], index: 1, kind: input, shape index: {}]   ;;  %s1480_s2 = inlined_call_operand.vmem [shape: f32[1,128], index: 2, kind: input, shape index: {}]   ;;  %s1481_s3 = inlined_call_operand.vmem [shape: f32[1,128], index: 3, kind: input, shape index: {}]   ;;  %s1482_s4 = inlined_call_operand.vmem [shape: f32[512,128], index: 4, kind: output, shape index: {}]  }
   0x1   :  { %v614_v0 = vld [vmem:[%s1478_s0] sm:$0xff]   ;;  %v869_v5 = vld [vmem:[%s1478_s0 + $0x8] sm:$0xff]   ;;  %v870_v12 = vld [vmem:[%s1478_s0 + $0x10] sm:$0xff]  }
   0x2   :  { %v962_v1 = vld [vmem:[%s1480_s2] ss:$0 sm:$0xff]  ;;  %v615_v2 = vunpack.c.l.bf16 %v614_v0  ;;  %v616_v4 = vunpack.c.h.bf16 %v614_v0  ;;  %v900_v6 = vld [vmem:[%s1479_s1 + $0x8] sm:$0xff]   ;;  %v619_v10 = vunpack.c.l.bf16 %v869_v5  ;;  %v901_v13 = vld [vmem:[%s1479_s1 + $0x10] sm:$0xff]   ;;  %v620_v16 = vunpack.c.h.bf16 %v869_v5 }
   0x3   :  { %v742_v3 = vld [vmem:[%s1479_s1] sm:$0xff]   ;;  %v747_v11 = vunpack.c.l.bf16 %v900_v6  ;;  %v748_v17 = vunpack.c.h.bf16 %v900_v6  ;;  %v871_v18 = vld [vmem:[%s1478_s0 + $0x18] sm:$0xff]   ;;  %v623_v20 = vunpack.c.l.bf16 %v870_v12  ;;  %v751_v21 = vunpack.c.l.bf16 %v901_v13  ;;  %v873_v54 = vld [vmem:[%s1478_s0 + $0x28] sm:$0xff]  }
   0x4   :  { %v976_v7 = vld [vmem:[%s1481_s3] ss:$0 sm:$0xff]  ;;  %v743_v8 = vunpack.c.l.bf16 %v742_v3  ;;  %v744_v9 = vunpack.c.h.bf16 %v742_v3  ;;  %v152_v14 = vmul.f32 %v615_v2, %v962_v1  ;;  %v153_v15 = vmul.f32 %v616_v4, %v962_v1  ;;  %v902_v23 = vld [vmem:[%s1479_s1 + $0x18] sm:$0xff]   ;;  %v904_v55 = vld [vmem:[%s1479_s1 + $0x28] sm:$0xff]  }
   0x5   :  { %v154_v19 = vmul.f32 %v619_v10, %v962_v1  ;;  %v624_v22 = vunpack.c.h.bf16 %v870_v12  ;;  %v155_v26 = vmul.f32 %v620_v16, %v962_v1  ;;  %v752_v27 = vunpack.c.h.bf16 %v901_v13  ;;  %v872_v40 = vld [vmem:[%s1478_s0 + $0x20] sm:$0xff]   ;;  %v874_v0 = vld [vmem:[%s1478_s0 + $0x30] sm:$0xff]   ;;  %v875_v16 = vld [vmem:[%s1478_s0 + $0x38] sm:$0xff]  }
   0x6   :  { %v223_v24 = vadd.f32 %v976_v7, %v152_v14  ;;  %v224_v25 = vadd.f32 %v976_v7, %v153_v15  ;;  %v156_v29 = vmul.f32 %v623_v20, %v962_v1  ;;  %v627_v31 = vunpack.c.l.bf16 %v871_v18  ;;  %v903_v45 = vld [vmem:[%s1479_s1 + $0x20] sm:$0xff]   ;;  %v905_v2 = vld [vmem:[%s1479_s1 + $0x30] sm:$0xff]  }
   0x7   :  { %v225_v28 = vadd.f32 %v976_v7, %v154_v19  ;;  %v157_v30 = vmul.f32 %v624_v22, %v962_v1  ;;  %v226_v34 = vadd.f32 %v976_v7, %v155_v26  ;;  %v755_v35 = vunpack.c.l.bf16 %v902_v23 }
   0x8   :  { %v415_v32 = vadd.f32 %v743_v8, %v223_v24  ;;  %v416_v33 = vadd.f32 %v744_v9, %v224_v25  ;;  %v227_v37 = vadd.f32 %v976_v7, %v156_v29  ;;  %v158_v39 = vmul.f32 %v627_v31, %v962_v1 }
   0x9   :  { %v417_v36 = vadd.f32 %v747_v11, %v225_v28  ;;  %v228_v38 = vadd.f32 %v976_v7, %v157_v30  ;;  %v418_v43 = vadd.f32 %v748_v17, %v226_v34  ;;  %v628_v44 = vunpack.c.h.bf16 %v871_v18  ;;  %v876_v34 = vld [vmem:[%s1478_s0 + $0x40] sm:$0xff]  }
   0xa   :  { %v479_v41 = vmax.f32 %v415_v32, 0.0  ;;  %v480_v42 = vmax.f32 %v416_v33, 0.0  ;;  %v419_v47 = vadd.f32 %v751_v21, %v227_v37  ;;  %v229_v49 = vadd.f32 %v976_v7, %v158_v39  ;;  %v906_v21 = vld [vmem:[%s1479_s1 + $0x38] sm:$0xff]   ;;  %v907_v39 = vld [vmem:[%s1479_s1 + $0x40] sm:$0xff]  }
   0xb   :  { %v481_v46 = vmax.f32 %v417_v36, 0.0  ;;  %v420_v48 = vadd.f32 %v752_v27, %v228_v38  ;;  %v482_v50 = vmax.f32 %v418_v43, 0.0  ;;  %v159_v51 = vmul.f32 %v628_v44, %v962_v1 }
   0xc   :  { %543 = vst [vmem:[%s1482_s4] sm:$0xff] %v479_v41  ;;  %544 = vst [vmem:[%s1482_s4 + $0x8] sm:$0xff] %v480_v42  ;;  %v756_v52 = vunpack.c.h.bf16 %v902_v23  ;;  %v631_v53 = vunpack.c.l.bf16 %v872_v40  ;;  %v483_v56 = vmax.f32 %v419_v47, 0.0  ;;  %v421_v58 = vadd.f32 %v755_v35, %v229_v49  ;;  %v908_v49 = vld [vmem:[%s1479_s1 + $0x48] sm:$0xff]  }
   0xd   :  { %545 = vst [vmem:[%s1482_s4 + $0x10] sm:$0xff] %v481_v46  ;;  %v484_v57 = vmax.f32 %v420_v48, 0.0  ;;  %v759_v59 = vunpack.c.l.bf16 %v903_v45  ;;  %546 = vst [vmem:[%s1482_s4 + $0x18] sm:$0xff] %v482_v50  ;;  %v230_v60 = vadd.f32 %v976_v7, %v159_v51  ;;  %v632_v62 = vunpack.c.h.bf16 %v872_v40  ;;  %v877_v48 = vld [vmem:[%s1478_s0 + $0x48] sm:$0xff]  }
   0xe   :  { %v160_v61 = vmul.f32 %v631_v53, %v962_v1  ;;  %v760_v63 = vunpack.c.h.bf16 %v903_v45  ;;  %547 = vst [vmem:[%s1482_s4 + $0x20] sm:$0xff] %v483_v56  ;;  %v485_v3 = vmax.f32 %v421_v58, 0.0  ;;  %v635_v4 = vunpack.c.l.bf16 %v873_v54  ;;  %v878_v58 = vld [vmem:[%s1478_s0 + $0x50] sm:$0xff]  }
   0xf   :  { %548 = vst [vmem:[%s1482_s4 + $0x28] sm:$0xff] %v484_v57  ;;  %v763_v5 = vunpack.c.l.bf16 %v904_v55  ;;  %v636_v6 = vunpack.c.h.bf16 %v873_v54  ;;  %v422_v8 = vadd.f32 %v756_v52, %v230_v60  ;;  %v161_v10 = vmul.f32 %v632_v62, %v962_v1 }
  0x10   :  { %v231_v9 = vadd.f32 %v976_v7, %v160_v61  ;;  %v764_v11 = vunpack.c.h.bf16 %v904_v55  ;;  %549 = vst [vmem:[%s1482_s4 + $0x30] sm:$0xff] %v485_v3  ;;  %v162_v12 = vmul.f32 %v635_v4, %v962_v1  ;;  %v639_v14 = vunpack.c.l.bf16 %v874_v0 }
  0x11   :  { %v163_v13 = vmul.f32 %v636_v6, %v962_v1  ;;  %v767_v15 = vunpack.c.l.bf16 %v905_v2  ;;  %v486_v17 = vmax.f32 %v422_v8, 0.0  ;;  %v232_v19 = vadd.f32 %v976_v7, %v161_v10  ;;  %v879_v10 = vld [vmem:[%s1478_s0 + $0x58] sm:$0xff]  }
  0x12   :  { %v423_v18 = vadd.f32 %v759_v59, %v231_v9  ;;  %v640_v20 = vunpack.c.h.bf16 %v874_v0  ;;  %v233_v22 = vadd.f32 %v976_v7, %v162_v12  ;;  %v164_v24 = vmul.f32 %v639_v14, %v962_v1 }
  0x13   :  { %v234_v23 = vadd.f32 %v976_v7, %v163_v13  ;;  %v768_v25 = vunpack.c.h.bf16 %v905_v2  ;;  %550 = vst [vmem:[%s1482_s4 + $0x38] sm:$0xff] %v486_v17  ;;  %v424_v27 = vadd.f32 %v760_v63, %v232_v19  ;;  %v643_v29 = vunpack.c.l.bf16 %v875_v16  ;;  %v909_v63 = vld [vmem:[%s1479_s1 + $0x50] sm:$0xff]   ;;  %v910_v19 = vld [vmem:[%s1479_s1 + $0x58] sm:$0xff]  }
  0x14   :  { %v487_v26 = vmax.f32 %v423_v18, 0.0  ;;  %v165_v28 = vmul.f32 %v640_v20, %v962_v1  ;;  %v425_v30 = vadd.f32 %v763_v5, %v233_v22  ;;  %v235_v32 = vadd.f32 %v976_v7, %v164_v24 }
  0x15   :  { %v426_v31 = vadd.f32 %v764_v11, %v234_v23  ;;  %v771_v33 = vunpack.c.l.bf16 %v906_v21  ;;  %v488_v35 = vmax.f32 %v424_v27, 0.0  ;;  %v166_v37 = vmul.f32 %v643_v29, %v962_v1 }
  0x16   :  { %551 = vst [vmem:[%s1482_s4 + $0x40] sm:$0xff] %v487_v26  ;;  %v236_v36 = vadd.f32 %v976_v7, %v165_v28  ;;  %v644_v38 = vunpack.c.h.bf16 %v875_v16  ;;  %v489_v40 = vmax.f32 %v425_v30, 0.0  ;;  %v427_v42 = vadd.f32 %v767_v15, %v235_v32  ;;  %v880_v28 = vld [vmem:[%s1478_s0 + $0x60] sm:$0xff]  }
  0x17   :  { %v490_v41 = vmax.f32 %v426_v31, 0.0  ;;  %v772_v43 = vunpack.c.h.bf16 %v906_v21  ;;  %552 = vst [vmem:[%s1482_s4 + $0x48] sm:$0xff] %v488_v35  ;;  %v237_v45 = vadd.f32 %v976_v7, %v166_v37  ;;  %v647_v47 = vunpack.c.l.bf16 %v876_v34 }
  0x18   :  { %v428_v44 = vadd.f32 %v768_v25, %v236_v36  ;;  %v167_v46 = vmul.f32 %v644_v38, %v962_v1  ;;  %553 = vst [vmem:[%s1482_s4 + $0x50] sm:$0xff] %v489_v40  ;;  %v491_v50 = vmax.f32 %v427_v42, 0.0  ;;  %v775_v51 = vunpack.c.l.bf16 %v907_v39  ;;  %v881_v42 = vld [vmem:[%s1478_s0 + $0x68] sm:$0xff]  }
  0x19   :  { %554 = vst [vmem:[%s1482_s4 + $0x58] sm:$0xff] %v490_v41  ;;  %v648_v52 = vunpack.c.h.bf16 %v876_v34  ;;  %v776_v53 = vunpack.c.h.bf16 %v907_v39  ;;  %v429_v55 = vadd.f32 %v771_v33, %v237_v45  ;;  %v168_v57 = vmul.f32 %v647_v47, %v962_v1  ;;  %v911_v33 = vld [vmem:[%s1479_s1 + $0x60] sm:$0xff]  }
  0x1a   :  { %v492_v54 = vmax.f32 %v428_v44, 0.0  ;;  %v238_v56 = vadd.f32 %v976_v7, %v167_v46  ;;  %555 = vst [vmem:[%s1482_s4 + $0x60] sm:$0xff] %v491_v50  ;;  %v651_v60 = vunpack.c.l.bf16 %v877_v48  ;;  %v779_v61 = vunpack.c.l.bf16 %v908_v49 }
  0x1b   :  { %v169_v59 = vmul.f32 %v648_v52, %v962_v1  ;;  %v652_v62 = vunpack.c.h.bf16 %v877_v48  ;;  %v493_v0 = vmax.f32 %v429_v55, 0.0  ;;  %v239_v3 = vadd.f32 %v976_v7, %v168_v57  ;;  %v882_v52 = vld [vmem:[%s1478_s0 + $0x70] sm:$0xff]  }
  0x1c   :  { %556 = vst [vmem:[%s1482_s4 + $0x68] sm:$0xff] %v492_v54  ;;  %v430_v2 = vadd.f32 %v772_v43, %v238_v56  ;;  %v780_v4 = vunpack.c.h.bf16 %v908_v49  ;;  %v170_v6 = vmul.f32 %v651_v60, %v962_v1  ;;  %v655_v9 = vunpack.c.l.bf16 %v878_v58  ;;  %v912_v43 = vld [vmem:[%s1479_s1 + $0x68] sm:$0xff]   ;;  %v913_v57 = vld [vmem:[%s1479_s1 + $0x70] sm:$0xff]  }
  0x1d   :  { %v240_v5 = vadd.f32 %v976_v7, %v169_v59  ;;  %v171_v8 = vmul.f32 %v652_v62, %v962_v1  ;;  %557 = vst [vmem:[%s1482_s4 + $0x70] sm:$0xff] %v493_v0  ;;  %v431_v12 = vadd.f32 %v775_v51, %v239_v3  ;;  %v783_v13 = vunpack.c.l.bf16 %v909_v63  ;;  %v883_v3 = vld [vmem:[%s1478_s0 + $0x78] sm:$0xff]  }
  0x1e   :  { %v494_v11 = vmax.f32 %v430_v2, 0.0  ;;  %v656_v14 = vunpack.c.h.bf16 %v878_v58  ;;  %v241_v16 = vadd.f32 %v976_v7, %v170_v6  ;;  %v172_v18 = vmul.f32 %v655_v9, %v962_v1 }
  0x1f   :  { %v432_v15 = vadd.f32 %v776_v53, %v240_v5  ;;  %v242_v17 = vadd.f32 %v976_v7, %v171_v8  ;;  %v495_v20 = vmax.f32 %v431_v12, 0.0  ;;  %v784_v22 = vunpack.c.h.bf16 %v909_v63 }
  0x20   :  { %558 = vst [vmem:[%s1482_s4 + $0x78] sm:$0xff] %v494_v11  ;;  %v173_v21 = vmul.f32 %v656_v14, %v962_v1  ;;  %v659_v23 = vunpack.c.l.bf16 %v879_v10  ;;  %v433_v25 = vadd.f32 %v779_v61, %v241_v16  ;;  %v243_v27 = vadd.f32 %v976_v7, %v172_v18 }
  0x21   :  { %v496_v24 = vmax.f32 %v432_v15, 0.0  ;;  %v434_v26 = vadd.f32 %v780_v4, %v242_v17  ;;  %559 = vst [vmem:[%s1482_s4 + $0x80] sm:$0xff] %v495_v20  ;;  %v787_v31 = vunpack.c.l.bf16 %v910_v19  ;;  %v660_v32 = vunpack.c.h.bf16 %v879_v10 }
  0x22   :  { %v244_v29 = vadd.f32 %v976_v7, %v173_v21  ;;  %v174_v30 = vmul.f32 %v659_v23, %v962_v1  ;;  %v497_v34 = vmax.f32 %v433_v25, 0.0  ;;  %v435_v36 = vadd.f32 %v783_v13, %v243_v27  ;;  %v914_v13 = vld [vmem:[%s1479_s1 + $0x78] sm:$0xff]   ;;  %v915_v27 = vld [vmem:[%s1479_s1 + $0x80] sm:$0xff]  }
  0x23   :  { %560 = vst [vmem:[%s1482_s4 + $0x88] sm:$0xff] %v496_v24  ;;  %v498_v35 = vmax.f32 %v434_v26, 0.0  ;;  %v788_v37 = vunpack.c.h.bf16 %v910_v19  ;;  %v175_v40 = vmul.f32 %v660_v32, %v962_v1  ;;  %v663_v41 = vunpack.c.l.bf16 %v880_v28 }
  0x24   :  { %v436_v38 = vadd.f32 %v784_v22, %v244_v29  ;;  %v245_v39 = vadd.f32 %v976_v7, %v174_v30  ;;  %561 = vst [vmem:[%s1482_s4 + $0x90] sm:$0xff] %v497_v34  ;;  %v499_v44 = vmax.f32 %v435_v36, 0.0  ;;  %v791_v45 = vunpack.c.l.bf16 %v911_v33  ;;  %v884_v22 = vld [vmem:[%s1478_s0 + $0x80] sm:$0xff]   ;;  %v885_v36 = vld [vmem:[%s1478_s0 + $0x88] sm:$0xff]  }
  0x25   :  { %562 = vst [vmem:[%s1482_s4 + $0x98] sm:$0xff] %v498_v35  ;;  %v664_v46 = vunpack.c.h.bf16 %v880_v28  ;;  %v792_v47 = vunpack.c.h.bf16 %v911_v33  ;;  %v246_v50 = vadd.f32 %v976_v7, %v175_v40  ;;  %v176_v51 = vmul.f32 %v663_v41, %v962_v1 }
  0x26   :  { %v500_v48 = vmax.f32 %v436_v38, 0.0  ;;  %v437_v49 = vadd.f32 %v787_v31, %v245_v39  ;;  %563 = vst [vmem:[%s1482_s4 + $0xa0] sm:$0xff] %v499_v44  ;;  %v667_v54 = vunpack.c.l.bf16 %v881_v42  ;;  %v795_v55 = vunpack.c.l.bf16 %v912_v43 }
  0x27   :  { %v177_v53 = vmul.f32 %v664_v46, %v962_v1  ;;  %v668_v56 = vunpack.c.h.bf16 %v881_v42  ;;  %v438_v59 = vadd.f32 %v788_v37, %v246_v50  ;;  %v247_v60 = vadd.f32 %v976_v7, %v176_v51  ;;  %v916_v37 = vld [vmem:[%s1479_s1 + $0x88] sm:$0xff]   ;;  %v886_v46 = vld [vmem:[%s1478_s0 + $0x90] sm:$0xff]  }
  0x28   :  { %564 = vst [vmem:[%s1482_s4 + $0xa8] sm:$0xff] %v500_v48  ;;  %v501_v58 = vmax.f32 %v437_v49, 0.0  ;;  %v796_v61 = vunpack.c.h.bf16 %v912_v43  ;;  %v178_v63 = vmul.f32 %v667_v54, %v962_v1  ;;  %v671_v2 = vunpack.c.l.bf16 %v882_v52  ;;  %v917_v51 = vld [vmem:[%s1479_s1 + $0x90] sm:$0xff]  }
  0x29   :  { %v248_v62 = vadd.f32 %v976_v7, %v177_v53  ;;  %v179_v0 = vmul.f32 %v668_v56, %v962_v1  ;;  %v502_v4 = vmax.f32 %v438_v59, 0.0  ;;  %v439_v5 = vadd.f32 %v791_v45, %v247_v60  ;;  %v887_v60 = vld [vmem:[%s1478_s0 + $0x98] sm:$0xff]  }
  0x2a   :  { %565 = vst [vmem:[%s1482_s4 + $0xb0] sm:$0xff] %v501_v58  ;;  %v799_v6 = vunpack.c.l.bf16 %v913_v57  ;;  %v672_v8 = vunpack.c.h.bf16 %v882_v52  ;;  %v249_v10 = vadd.f32 %v976_v7, %v178_v63  ;;  %v180_v12 = vmul.f32 %v671_v2, %v962_v1 }
  0x2b   :  { %v440_v9 = vadd.f32 %v792_v47, %v248_v62  ;;  %v250_v11 = vadd.f32 %v976_v7, %v179_v0  ;;  %566 = vst [vmem:[%s1482_s4 + $0xb8] sm:$0xff] %v502_v4  ;;  %v503_v14 = vmax.f32 %v439_v5, 0.0  ;;  %v800_v16 = vunpack.c.h.bf16 %v913_v57 }
  0x2c   :  { %v181_v15 = vmul.f32 %v672_v8, %v962_v1  ;;  %v675_v17 = vunpack.c.l.bf16 %v883_v3  ;;  %v441_v19 = vadd.f32 %v795_v55, %v249_v10  ;;  %v251_v21 = vadd.f32 %v976_v7, %v180_v12 }
  0x2d   :  { %v504_v18 = vmax.f32 %v440_v9, 0.0  ;;  %v442_v20 = vadd.f32 %v796_v61, %v250_v11  ;;  %567 = vst [vmem:[%s1482_s4 + $0xc0] sm:$0xff] %v503_v14  ;;  %v803_v25 = vunpack.c.l.bf16 %v914_v13  ;;  %v676_v26 = vunpack.c.h.bf16 %v883_v3 }
  0x2e   :  { %v252_v23 = vadd.f32 %v976_v7, %v181_v15  ;;  %v182_v24 = vmul.f32 %v675_v17, %v962_v1  ;;  %v505_v28 = vmax.f32 %v441_v19, 0.0  ;;  %v443_v30 = vadd.f32 %v799_v6, %v251_v21  ;;  %v918_v6 = vld [vmem:[%s1479_s1 + $0x98] sm:$0xff]   ;;  %v919_v21 = vld [vmem:[%s1479_s1 + $0xa0] sm:$0xff]  }
  0x2f   :  { %568 = vst [vmem:[%s1482_s4 + $0xc8] sm:$0xff] %v504_v18  ;;  %v506_v29 = vmax.f32 %v442_v20, 0.0  ;;  %v804_v31 = vunpack.c.h.bf16 %v914_v13  ;;  %v183_v34 = vmul.f32 %v676_v26, %v962_v1  ;;  %v679_v35 = vunpack.c.l.bf16 %v884_v22 }
  0x30   :  { %v444_v32 = vadd.f32 %v800_v16, %v252_v23  ;;  %v253_v33 = vadd.f32 %v976_v7, %v182_v24  ;;  %569 = vst [vmem:[%s1482_s4 + $0xd0] sm:$0xff] %v505_v28  ;;  %v507_v38 = vmax.f32 %v443_v30, 0.0  ;;  %v807_v39 = vunpack.c.l.bf16 %v915_v27  ;;  %v888_v16 = vld [vmem:[%s1478_s0 + $0xa0] sm:$0xff]   ;;  %v889_v30 = vld [vmem:[%s1478_s0 + $0xa8] sm:$0xff]  }
  0x31   :  { %570 = vst [vmem:[%s1482_s4 + $0xd8] sm:$0xff] %v506_v29  ;;  %v680_v40 = vunpack.c.h.bf16 %v884_v22  ;;  %v808_v41 = vunpack.c.h.bf16 %v915_v27  ;;  %v254_v44 = vadd.f32 %v976_v7, %v183_v34  ;;  %v184_v45 = vmul.f32 %v679_v35, %v962_v1 }
  0x32   :  { %v508_v42 = vmax.f32 %v444_v32, 0.0  ;;  %v445_v43 = vadd.f32 %v803_v25, %v253_v33  ;;  %571 = vst [vmem:[%s1482_s4 + $0xe0] sm:$0xff] %v507_v38  ;;  %v683_v48 = vunpack.c.l.bf16 %v885_v36  ;;  %v811_v49 = vunpack.c.l.bf16 %v916_v37 }
  0x33   :  { %v185_v47 = vmul.f32 %v680_v40, %v962_v1  ;;  %v684_v50 = vunpack.c.h.bf16 %v885_v36  ;;  %v446_v53 = vadd.f32 %v804_v31, %v254_v44  ;;  %v255_v54 = vadd.f32 %v976_v7, %v184_v45  ;;  %v920_v31 = vld [vmem:[%s1479_s1 + $0xa8] sm:$0xff]   ;;  %v890_v40 = vld [vmem:[%s1478_s0 + $0xb0] sm:$0xff]  }
  0x34   :  { %572 = vst [vmem:[%s1482_s4 + $0xe8] sm:$0xff] %v508_v42  ;;  %v509_v52 = vmax.f32 %v445_v43, 0.0  ;;  %v812_v55 = vunpack.c.h.bf16 %v916_v37  ;;  %v186_v57 = vmul.f32 %v683_v48, %v962_v1  ;;  %v687_v59 = vunpack.c.l.bf16 %v886_v46  ;;  %v921_v45 = vld [vmem:[%s1479_s1 + $0xb0] sm:$0xff]  }
  0x35   :  { %v256_v56 = vadd.f32 %v976_v7, %v185_v47  ;;  %v187_v58 = vmul.f32 %v684_v50, %v962_v1  ;;  %v510_v61 = vmax.f32 %v446_v53, 0.0  ;;  %v447_v62 = vadd.f32 %v807_v39, %v255_v54  ;;  %v891_v54 = vld [vmem:[%s1478_s0 + $0xb8] sm:$0xff]  }
  0x36   :  { %573 = vst [vmem:[%s1482_s4 + $0xf0] sm:$0xff] %v509_v52  ;;  %v815_v63 = vunpack.c.l.bf16 %v917_v51  ;;  %v688_v0 = vunpack.c.h.bf16 %v886_v46  ;;  %v257_v3 = vadd.f32 %v976_v7, %v186_v57  ;;  %v188_v5 = vmul.f32 %v687_v59, %v962_v1 }
  0x37   :  { %v448_v2 = vadd.f32 %v808_v41, %v256_v56  ;;  %v258_v4 = vadd.f32 %v976_v7, %v187_v58  ;;  %574 = vst [vmem:[%s1482_s4 + $0xf8] sm:$0xff] %v510_v61  ;;  %v511_v8 = vmax.f32 %v447_v62, 0.0  ;;  %v816_v10 = vunpack.c.h.bf16 %v917_v51 }
  0x38   :  { %v189_v9 = vmul.f32 %v688_v0, %v962_v1  ;;  %v691_v11 = vunpack.c.l.bf16 %v887_v60  ;;  %v449_v13 = vadd.f32 %v811_v49, %v257_v3  ;;  %v259_v15 = vadd.f32 %v976_v7, %v188_v5 }
  0x39   :  { %v512_v12 = vmax.f32 %v448_v2, 0.0  ;;  %v450_v14 = vadd.f32 %v812_v55, %v258_v4  ;;  %575 = vst [vmem:[%s1482_s4 + $0x100] sm:$0xff] %v511_v8  ;;  %v819_v19 = vunpack.c.l.bf16 %v918_v6  ;;  %v692_v20 = vunpack.c.h.bf16 %v887_v60 }
  0x3a   :  { %v260_v17 = vadd.f32 %v976_v7, %v189_v9  ;;  %v190_v18 = vmul.f32 %v691_v11, %v962_v1  ;;  %v513_v22 = vmax.f32 %v449_v13, 0.0  ;;  %v451_v24 = vadd.f32 %v815_v63, %v259_v15  ;;  %v922_v63 = vld [vmem:[%s1479_s1 + $0xb8] sm:$0xff]   ;;  %v923_v15 = vld [vmem:[%s1479_s1 + $0xc0] sm:$0xff]  }
  0x3b   :  { %576 = vst [vmem:[%s1482_s4 + $0x108] sm:$0xff] %v512_v12  ;;  %v514_v23 = vmax.f32 %v450_v14, 0.0  ;;  %v820_v25 = vunpack.c.h.bf16 %v918_v6  ;;  %v191_v28 = vmul.f32 %v692_v20, %v962_v1  ;;  %v695_v29 = vunpack.c.l.bf16 %v888_v16 }
  0x3c   :  { %v452_v26 = vadd.f32 %v816_v10, %v260_v17  ;;  %v261_v27 = vadd.f32 %v976_v7, %v190_v18  ;;  %577 = vst [vmem:[%s1482_s4 + $0x110] sm:$0xff] %v513_v22  ;;  %v515_v32 = vmax.f32 %v451_v24, 0.0  ;;  %v823_v33 = vunpack.c.l.bf16 %v919_v21  ;;  %v892_v10 = vld [vmem:[%s1478_s0 + $0xc0] sm:$0xff]   ;;  %v893_v24 = vld [vmem:[%s1478_s0 + $0xc8] sm:$0xff]  }
  0x3d   :  { %578 = vst [vmem:[%s1482_s4 + $0x118] sm:$0xff] %v514_v23  ;;  %v696_v34 = vunpack.c.h.bf16 %v888_v16  ;;  %v824_v35 = vunpack.c.h.bf16 %v919_v21  ;;  %v262_v38 = vadd.f32 %v976_v7, %v191_v28  ;;  %v192_v39 = vmul.f32 %v695_v29, %v962_v1 }
  0x3e   :  { %v516_v36 = vmax.f32 %v452_v26, 0.0  ;;  %v453_v37 = vadd.f32 %v819_v19, %v261_v27  ;;  %579 = vst [vmem:[%s1482_s4 + $0x120] sm:$0xff] %v515_v32  ;;  %v699_v42 = vunpack.c.l.bf16 %v889_v30  ;;  %v827_v43 = vunpack.c.l.bf16 %v920_v31 }
  0x3f   :  { %v193_v41 = vmul.f32 %v696_v34, %v962_v1  ;;  %v700_v44 = vunpack.c.h.bf16 %v889_v30  ;;  %v454_v47 = vadd.f32 %v820_v25, %v262_v38  ;;  %v263_v48 = vadd.f32 %v976_v7, %v192_v39  ;;  %v924_v25 = vld [vmem:[%s1479_s1 + $0xc8] sm:$0xff]   ;;  %v894_v34 = vld [vmem:[%s1478_s0 + $0xd0] sm:$0xff]  }
  0x40   :  { %580 = vst [vmem:[%s1482_s4 + $0x128] sm:$0xff] %v516_v36  ;;  %v517_v46 = vmax.f32 %v453_v37, 0.0  ;;  %v828_v49 = vunpack.c.h.bf16 %v920_v31  ;;  %v194_v51 = vmul.f32 %v699_v42, %v962_v1  ;;  %v703_v53 = vunpack.c.l.bf16 %v890_v40  ;;  %v925_v39 = vld [vmem:[%s1479_s1 + $0xd0] sm:$0xff]  }
  0x41   :  { %v264_v50 = vadd.f32 %v976_v7, %v193_v41  ;;  %v195_v52 = vmul.f32 %v700_v44, %v962_v1  ;;  %v518_v55 = vmax.f32 %v454_v47, 0.0  ;;  %v455_v56 = vadd.f32 %v823_v33, %v263_v48  ;;  %v895_v48 = vld [vmem:[%s1478_s0 + $0xd8] sm:$0xff]  }
  0x42   :  { %581 = vst [vmem:[%s1482_s4 + $0x130] sm:$0xff] %v517_v46  ;;  %v831_v57 = vunpack.c.l.bf16 %v921_v45  ;;  %v704_v58 = vunpack.c.h.bf16 %v890_v40  ;;  %v265_v60 = vadd.f32 %v976_v7, %v194_v51  ;;  %v196_v62 = vmul.f32 %v703_v53, %v962_v1 }
  0x43   :  { %v456_v59 = vadd.f32 %v824_v35, %v264_v50  ;;  %v266_v61 = vadd.f32 %v976_v7, %v195_v52  ;;  %582 = vst [vmem:[%s1482_s4 + $0x138] sm:$0xff] %v518_v55  ;;  %v519_v0 = vmax.f32 %v455_v56, 0.0  ;;  %v832_v3 = vunpack.c.h.bf16 %v921_v45 }
  0x44   :  { %v197_v2 = vmul.f32 %v704_v58, %v962_v1  ;;  %v707_v4 = vunpack.c.l.bf16 %v891_v54  ;;  %v457_v6 = vadd.f32 %v827_v43, %v265_v60  ;;  %v267_v9 = vadd.f32 %v976_v7, %v196_v62 }
  0x45   :  { %v520_v5 = vmax.f32 %v456_v59, 0.0  ;;  %v458_v8 = vadd.f32 %v828_v49, %v266_v61  ;;  %583 = vst [vmem:[%s1482_s4 + $0x140] sm:$0xff] %v519_v0  ;;  %v835_v13 = vunpack.c.l.bf16 %v922_v63  ;;  %v708_v14 = vunpack.c.h.bf16 %v891_v54 }
  0x46   :  { %v268_v11 = vadd.f32 %v976_v7, %v197_v2  ;;  %v198_v12 = vmul.f32 %v707_v4, %v962_v1  ;;  %v521_v16 = vmax.f32 %v457_v6, 0.0  ;;  %v459_v18 = vadd.f32 %v831_v57, %v267_v9  ;;  %v926_v57 = vld [vmem:[%s1479_s1 + $0xd8] sm:$0xff]   ;;  %v927_v9 = vld [vmem:[%s1479_s1 + $0xe0] sm:$0xff]  }
  0x47   :  { %584 = vst [vmem:[%s1482_s4 + $0x148] sm:$0xff] %v520_v5  ;;  %v522_v17 = vmax.f32 %v458_v8, 0.0  ;;  %v836_v19 = vunpack.c.h.bf16 %v922_v63  ;;  %v199_v22 = vmul.f32 %v708_v14, %v962_v1  ;;  %v711_v23 = vunpack.c.l.bf16 %v892_v10 }
  0x48   :  { %v460_v20 = vadd.f32 %v832_v3, %v268_v11  ;;  %v269_v21 = vadd.f32 %v976_v7, %v198_v12  ;;  %585 = vst [vmem:[%s1482_s4 + $0x150] sm:$0xff] %v521_v16  ;;  %v523_v26 = vmax.f32 %v459_v18, 0.0  ;;  %v839_v27 = vunpack.c.l.bf16 %v923_v15  ;;  %v896_v3 = vld [vmem:[%s1478_s0 + $0xe0] sm:$0xff]   ;;  %v897_v18 = vld [vmem:[%s1478_s0 + $0xe8] sm:$0xff]  }
  0x49   :  { %586 = vst [vmem:[%s1482_s4 + $0x158] sm:$0xff] %v522_v17  ;;  %v712_v28 = vunpack.c.h.bf16 %v892_v10  ;;  %v840_v29 = vunpack.c.h.bf16 %v923_v15  ;;  %v270_v32 = vadd.f32 %v976_v7, %v199_v22  ;;  %v200_v33 = vmul.f32 %v711_v23, %v962_v1 }
  0x4a   :  { %v524_v30 = vmax.f32 %v460_v20, 0.0  ;;  %v461_v31 = vadd.f32 %v835_v13, %v269_v21  ;;  %587 = vst [vmem:[%s1482_s4 + $0x160] sm:$0xff] %v523_v26  ;;  %v715_v36 = vunpack.c.l.bf16 %v893_v24  ;;  %v843_v37 = vunpack.c.l.bf16 %v924_v25 }
  0x4b   :  { %v201_v35 = vmul.f32 %v712_v28, %v962_v1  ;;  %v716_v38 = vunpack.c.h.bf16 %v893_v24  ;;  %v462_v41 = vadd.f32 %v836_v19, %v270_v32  ;;  %v271_v42 = vadd.f32 %v976_v7, %v200_v33  ;;  %v928_v19 = vld [vmem:[%s1479_s1 + $0xe8] sm:$0xff]   ;;  %v898_v28 = vld [vmem:[%s1478_s0 + $0xf0] sm:$0xff]  }
  0x4c   :  { %588 = vst [vmem:[%s1482_s4 + $0x168] sm:$0xff] %v524_v30  ;;  %v525_v40 = vmax.f32 %v461_v31, 0.0  ;;  %v844_v43 = vunpack.c.h.bf16 %v924_v25  ;;  %v202_v45 = vmul.f32 %v715_v36, %v962_v1  ;;  %v719_v47 = vunpack.c.l.bf16 %v894_v34  ;;  %v929_v33 = vld [vmem:[%s1479_s1 + $0xf0] sm:$0xff]  }
  0x4d   :  { %v272_v44 = vadd.f32 %v976_v7, %v201_v35  ;;  %v203_v46 = vmul.f32 %v716_v38, %v962_v1  ;;  %v526_v49 = vmax.f32 %v462_v41, 0.0  ;;  %v463_v50 = vadd.f32 %v839_v27, %v271_v42  ;;  %v899_v42 = vld [vmem:[%s1478_s0 + $0xf8] sm:$0xff]  }
  0x4e   :  { %589 = vst [vmem:[%s1482_s4 + $0x170] sm:$0xff] %v525_v40  ;;  %v847_v51 = vunpack.c.l.bf16 %v925_v39  ;;  %v720_v52 = vunpack.c.h.bf16 %v894_v34  ;;  %v273_v54 = vadd.f32 %v976_v7, %v202_v45  ;;  %v204_v56 = vmul.f32 %v719_v47, %v962_v1 }
  0x4f   :  { %v464_v53 = vadd.f32 %v840_v29, %v272_v44  ;;  %v274_v55 = vadd.f32 %v976_v7, %v203_v46  ;;  %590 = vst [vmem:[%s1482_s4 + $0x178] sm:$0xff] %v526_v49  ;;  %v527_v58 = vmax.f32 %v463_v50, 0.0  ;;  %v848_v60 = vunpack.c.h.bf16 %v925_v39 }
  0x50   :  { %v205_v59 = vmul.f32 %v720_v52, %v962_v1  ;;  %v723_v61 = vunpack.c.l.bf16 %v895_v48  ;;  %v465_v63 = vadd.f32 %v843_v37, %v273_v54  ;;  %v275_v2 = vadd.f32 %v976_v7, %v204_v56 }
  0x51   :  { %v528_v62 = vmax.f32 %v464_v53, 0.0  ;;  %v466_v0 = vadd.f32 %v844_v43, %v274_v55  ;;  %591 = vst [vmem:[%s1482_s4 + $0x180] sm:$0xff] %v527_v58  ;;  %v851_v6 = vunpack.c.l.bf16 %v926_v57  ;;  %v724_v8 = vunpack.c.h.bf16 %v895_v48 }
  0x52   :  { %v276_v4 = vadd.f32 %v976_v7, %v205_v59  ;;  %v206_v5 = vmul.f32 %v723_v61, %v962_v1  ;;  %v529_v10 = vmax.f32 %v465_v63, 0.0  ;;  %v467_v12 = vadd.f32 %v847_v51, %v275_v2  ;;  %v930_v51 = vld [vmem:[%s1479_s1 + $0xf8] sm:$0xff]  }
  0x53   :  { %592 = vst [vmem:[%s1482_s4 + $0x188] sm:$0xff] %v528_v62  ;;  %v530_v11 = vmax.f32 %v466_v0, 0.0  ;;  %v852_v13 = vunpack.c.h.bf16 %v926_v57  ;;  %v207_v16 = vmul.f32 %v724_v8, %v962_v1  ;;  %v727_v17 = vunpack.c.l.bf16 %v896_v3 }
  0x54   :  { %v468_v14 = vadd.f32 %v848_v60, %v276_v4  ;;  %v277_v15 = vadd.f32 %v976_v7, %v206_v5  ;;  %593 = vst [vmem:[%s1482_s4 + $0x190] sm:$0xff] %v529_v10  ;;  %v531_v20 = vmax.f32 %v467_v12, 0.0  ;;  %v855_v21 = vunpack.c.l.bf16 %v927_v9 }
  0x55   :  { %594 = vst [vmem:[%s1482_s4 + $0x198] sm:$0xff] %v530_v11  ;;  %v728_v22 = vunpack.c.h.bf16 %v896_v3  ;;  %v856_v23 = vunpack.c.h.bf16 %v927_v9  ;;  %v278_v26 = vadd.f32 %v976_v7, %v207_v16  ;;  %v208_v27 = vmul.f32 %v727_v17, %v962_v1 }
  0x56   :  { %v532_v24 = vmax.f32 %v468_v14, 0.0  ;;  %v469_v25 = vadd.f32 %v851_v6, %v277_v15  ;;  %595 = vst [vmem:[%s1482_s4 + $0x1a0] sm:$0xff] %v531_v20  ;;  %v731_v30 = vunpack.c.l.bf16 %v897_v18  ;;  %v859_v31 = vunpack.c.l.bf16 %v928_v19 }
  0x57   :  { %v209_v29 = vmul.f32 %v728_v22, %v962_v1  ;;  %v732_v32 = vunpack.c.h.bf16 %v897_v18  ;;  %v470_v35 = vadd.f32 %v852_v13, %v278_v26  ;;  %v279_v36 = vadd.f32 %v976_v7, %v208_v27 }
  0x58   :  { %596 = vst [vmem:[%s1482_s4 + $0x1a8] sm:$0xff] %v532_v24  ;;  %v533_v34 = vmax.f32 %v469_v25, 0.0  ;;  %v860_v37 = vunpack.c.h.bf16 %v928_v19  ;;  %v210_v39 = vmul.f32 %v731_v30, %v962_v1  ;;  %v735_v41 = vunpack.c.l.bf16 %v898_v28 }
  0x59   :  { %v280_v38 = vadd.f32 %v976_v7, %v209_v29  ;;  %v211_v40 = vmul.f32 %v732_v32, %v962_v1  ;;  %v534_v43 = vmax.f32 %v470_v35, 0.0  ;;  %v471_v44 = vadd.f32 %v855_v21, %v279_v36 }
  0x5a   :  { %597 = vst [vmem:[%s1482_s4 + $0x1b0] sm:$0xff] %v533_v34  ;;  %v863_v45 = vunpack.c.l.bf16 %v929_v33  ;;  %v736_v46 = vunpack.c.h.bf16 %v898_v28  ;;  %v281_v48 = vadd.f32 %v976_v7, %v210_v39  ;;  %v212_v50 = vmul.f32 %v735_v41, %v962_v1 }
  0x5b   :  { %v472_v47 = vadd.f32 %v856_v23, %v280_v38  ;;  %v282_v49 = vadd.f32 %v976_v7, %v211_v40  ;;  %598 = vst [vmem:[%s1482_s4 + $0x1b8] sm:$0xff] %v534_v43  ;;  %v535_v52 = vmax.f32 %v471_v44, 0.0  ;;  %v864_v54 = vunpack.c.h.bf16 %v929_v33 }
  0x5c   :  { %v213_v53 = vmul.f32 %v736_v46, %v962_v1  ;;  %v739_v55 = vunpack.c.l.bf16 %v899_v42  ;;  %v473_v57 = vadd.f32 %v859_v31, %v281_v48  ;;  %v283_v59 = vadd.f32 %v976_v7, %v212_v50 }
  0x5d   :  { %v536_v56 = vmax.f32 %v472_v47, 0.0  ;;  %v474_v58 = vadd.f32 %v860_v37, %v282_v49  ;;  %599 = vst [vmem:[%s1482_s4 + $0x1c0] sm:$0xff] %v535_v52  ;;  %v867_v62 = vunpack.c.l.bf16 %v930_v51  ;;  %v740_v63 = vunpack.c.h.bf16 %v899_v42 }
  0x5e   :  { %v284_v60 = vadd.f32 %v976_v7, %v213_v53  ;;  %v214_v61 = vmul.f32 %v739_v55, %v962_v1  ;;  %v537_v0 = vmax.f32 %v473_v57, 0.0  ;;  %v475_v3 = vadd.f32 %v863_v45, %v283_v59 }
  0x5f   :  { %600 = vst [vmem:[%s1482_s4 + $0x1c8] sm:$0xff] %v536_v56  ;;  %v538_v2 = vmax.f32 %v474_v58, 0.0  ;;  %v215_v6 = vmul.f32 %v740_v63, %v962_v1  ;;  %v868_v8 = vunpack.c.h.bf16 %v930_v51 }
  0x60   :  { %v476_v4 = vadd.f32 %v864_v54, %v284_v60  ;;  %v285_v5 = vadd.f32 %v976_v7, %v214_v61  ;;  %601 = vst [vmem:[%s1482_s4 + $0x1d0] sm:$0xff] %v537_v0  ;;  %v539_v9 = vmax.f32 %v475_v3, 0.0 }
  0x61   :  { %602 = vst [vmem:[%s1482_s4 + $0x1d8] sm:$0xff] %v538_v2  ;;  %v286_v12 = vadd.f32 %v976_v7, %v215_v6 }
  0x62   :  { %v540_v10 = vmax.f32 %v476_v4, 0.0  ;;  %v477_v11 = vadd.f32 %v867_v62, %v285_v5  ;;  %603 = vst [vmem:[%s1482_s4 + $0x1e0] sm:$0xff] %v539_v9 }
  0x63   :  { %v478_v13 = vadd.f32 %v868_v8, %v286_v12 }
  0x64   :  { %604 = vst [vmem:[%s1482_s4 + $0x1e8] sm:$0xff] %v540_v10  ;;  %v541_v1 = vmax.f32 %v477_v11, 0.0 }
  0x65   :  { %v542_v14 = vmax.f32 %v478_v13, 0.0 }
  0x66   :  { %605 = vst [vmem:[%s1482_s4 + $0x1f0] sm:$0xff] %v541_v1 }
  0x67   :  { %606 = vst [vmem:[%s1482_s4 + $0x1f8] sm:$0xff] %v542_v14 }

// kernel: residual_layer_forward.3
= control target key start
LH: loop header
LB: loop body
LE: loop exit
PB: predicated region body
PF: predicated region fallthrough
CT: control target
= control target key end

     0   :  { %s6460_s12 = smov 0   ;;  %s7411_s0 = inlined_call_operand.vmem [shape: bf16[2,16,16,128], index: 0, kind: input, shape index: {}]   ;;  %s7412_s1 = inlined_call_operand.vmem [shape: bf16[3,3,128,128], index: 1, kind: input, shape index: {}]   ;;  %s7413_s2 = inlined_call_operand.vmem [shape: bf16[512,128], index: 2, kind: output, shape index: {0}]   ;;  %s7414_s3 = inlined_call_operand.vmem [shape: f32[2,2,128], index: 3, kind: output, shape index: {1}]  }
   0x1 LB: > { %s6466_s13 = sadd.s32 4294967295, %s6437_s12   ;;  %p4949_p0 = scmp.ge.s32.totalorder %s6437_s12, 1  ;;  %s6437_s12 = sphi %s6460_s12, %s14_s12  }
   0x2   : > { %p140_p1 = scmp.lt.s32.totalorder %s6437_s12, 3 }
   0x4   : > { %p141_p2 = pnand %p4949_p0, %p140_p1 }
   0x5   : > { %v6318_v0 = vld [vmem:[%s7412_s1] sm:$0xff] (!%p141_p2)   ;;  %v6439_v2 = vmov (!%p141_p2), 0   ;;  %v6320_v3 = vld [vmem:[%s7412_s1 + $0x8] sm:$0xff] (!%p141_p2)   ;;  %p168_p3 = scmp.lt.s32.totalorder (!%p141_p2), %s6466_s13, 1  ;;  %v6322_v5 = vld [vmem:[%s7412_s1 + $0x10] sm:$0xff] (!%p141_p2)   ;;  %vm601_vm0 = vcmask (!%p141_p2), 1040384  }
   0x6   : > { %144 = sbr.rel (%p141_p2) target bundleno = 609 (0x261), region = 28  ;;  %v6319_v1 = vld [vmem:[%s7412_s1 + $0x100] sm:$0xff] (!%p141_p2)   ;;  %184 = vst [vmem:[#allocation2] sm:$0xf] (!%p141_p2), %v6439_v2  ;;  %185 = vst [vmem:[#allocation2 + $0x4] sm:$0xf] (!%p141_p2), %v6439_v2  ;;  %5605 = vmatprep.subr.bf16.mxu1 (!%p141_p2), %v6318_v0 }
   0x7   : > { %186 = vst [vmem:[#allocation2 + $0x8] sm:$0x1] (!%p141_p2), %v6439_v2  ;;  %187 = vst [vmem:[#allocation2 + $0xc] sm:$0xf] (!%p141_p2), %v6439_v2  ;;  %5797 = vmatprep.subr.bf16.mxu0 (!%p141_p2), %v6319_v1  ;;  %5606 = vmatpush3.bf16.msra.mxu1 (!%p141_p2), %v6318_v0  ;;  %v6321_v4 = vld [vmem:[%s7412_s1 + $0x108] sm:$0xff] (!%p141_p2)   ;;  %v6323_v6 = vld [vmem:[%s7412_s1 + $0x110] sm:$0xff] (!%p141_p2)  }
   0x8   : > { %188 = vst [vmem:[#allocation2 + $0x10] sm:$0xf] (!%p141_p2), %v6439_v2  ;;  %189 = vst [vmem:[#allocation2 + $0x14] sm:$0x1] (!%p141_p2), %v6439_v2  ;;  %5798 = vmatpush3.bf16.msra.mxu0 (!%p141_p2), %v6319_v1  ;;  %5607 = vmatprep.subr.bf16.mxu1 (!%p141_p2), %v6320_v3  ;;  %v6324_v7 = vld [vmem:[%s7412_s1 + $0x18] sm:$0xff] (!%p141_p2)   ;;  %v6326_v9 = vld [vmem:[%s7412_s1 + $0x20] sm:$0xff] (!%p141_p2)  }
   0x9   : > { %190 = vst [vmem:[#allocation2 + $0x18] sm:$0xf] (!%p141_p2), %v6439_v2  ;;  %191 = vst [vmem:[#allocation2 + $0x1c] sm:$0xf] (!%p141_p2), %v6439_v2  ;;  %5799 = vmatprep.subr.bf16.mxu0 (!%p141_p2), %v6321_v4  ;;  %v6325_v8 = vld [vmem:[%s7412_s1 + $0x118] sm:$0xff] (!%p141_p2)   ;;  %v6327_v10 = vld [vmem:[%s7412_s1 + $0x120] sm:$0xff] (!%p141_p2)  }
   0xa   : > { %192 = vst [vmem:[#allocation2 + $0x20] sm:$0x1] (!%p141_p2), %v6439_v2  ;;  %193 = vst [vmem:[#allocation2 + $0x24] sm:$0xf] (!%p141_p2), %v6439_v2  ;;  %v6328_v11 = vld [vmem:[%s7412_s1 + $0x28] sm:$0xff] (!%p141_p2)   ;;  %vm594_vm1 = vcmask (!%p141_p2), 1043456  }
   0xb   : > { %194 = vst [vmem:[#allocation2 + $0x28] sm:$0xf] (!%p141_p2), %v6439_v2  ;;  %195 = vst [vmem:[#allocation2 + $0x2c] sm:$0x1] (!%p141_p2), %v6439_v2  ;;  %5608 = vmatpush3.bf16.msra.mxu1 (!%p141_p2), %v6320_v3  ;;  %v6329_v12 = vld [vmem:[%s7412_s1 + $0x128] sm:$0xff] (!%p141_p2)   ;;  %v6330_v20 = vld [vmem:[%s7412_s1 + $0x30] sm:$0xff] (!%p141_p2)  }
   0xc   : > { %196 = vst [vmem:[#allocation2 + $0x30] sm:$0xf] (!%p141_p2), %v6439_v2  ;;  %197 = vst [vmem:[#allocation2 + $0x34] sm:$0xf] (!%p141_p2), %v6439_v2  ;;  %5800 = vmatpush3.bf16.msra.mxu0 (!%p141_p2), %v6321_v4  ;;  %5609 = vmatprep.subr.bf16.mxu1 (!%p141_p2), %v6322_v5  ;;  %vm270_vm2 = vsmask.f32 (!%p141_p2), 256 }
   0xd   : > { %198 = vst [vmem:[#allocation2 + $0x38] sm:$0x1] %v6439_v2  ;;  %199 = vst [vmem:[#allocation2 + $0x3c] sm:$0xf] %v6439_v2  ;;  %s6490_s26 = scalar_select %p168_p3, %s6466_s13, 1  ;;  %5801 = vmatprep.subr.bf16.mxu0 %v6323_v6  ;;  %v6334_v13 = vld [vmem:[#allocation2] sm:$0xff]  }
   0xe   : > { %200 = vst [vmem:[#allocation2 + $0x40] sm:$0xf] %v6439_v2  ;;  %201 = vst [vmem:[#allocation2 + $0x44] sm:$0x1] %v6439_v2  ;;  %5621 = vmatprep.mubr.bf16.mxu1 %v6334_v13  ;;  %vm271_vm3 = vsmask.f32 4368 }
   0xf   : > { %202 = vst [vmem:[#allocation2 + $0x48] sm:$0xf] %v6439_v2  ;;  %203 = vst [vmem:[#allocation2 + $0x4c] sm:$0xf] %v6439_v2  ;;  %5610 = vmatpush3.bf16.msra.mxu1 %v6322_v5  ;;  %s5261_s4 = sshll.u32 %s6490_s26, 7  ;;  %v6331_v23 = vld [vmem:[%s7412_s1 + $0x130] sm:$0xff]  }
  0x10   : > { %204 = vst [vmem:[#allocation2 + $0x50] sm:$0x1] %v6439_v2  ;;  %205 = vst [vmem:[#allocation2 + $0x54] sm:$0xf] %v6439_v2  ;;  %5802 = vmatpush3.bf16.msra.mxu0 %v6323_v6  ;;  %5611 = vmatprep.subr.bf16.mxu1 %v6324_v7  ;;  %s6511_s15 = scalar_lea.vmem %s7411_s0, %s5261_s4  ;;  %vm595_vm6 = vsmask.f32 7938 }
  0x11   : > { %206 = vst [vmem:[#allocation2 + $0x58] sm:$0xf] %v6439_v2  ;;  %207 = vst [vmem:[#allocation2 + $0x5c] sm:$0x1] %v6439_v2  ;;  %5803 = vmatprep.subr.bf16.mxu0 %v6325_v8  ;;  %v238_v14 = vld [vmem:[%s6511_s15] sm:$0xf] }
  0x12   : > { %208 = vst [vmem:[#allocation2 + $0x60] sm:$0xf] %v6439_v2  ;;  %209 = vst [vmem:[#allocation2 + $0x64] sm:$0xf] %v6439_v2  ;;  %v239_v15 = vld [vmem:[%s6511_s15 + $0x4] sm:$0xf] }
  0x13   : > { %210 = vst [vmem:[#allocation2 + $0x68] sm:$0x1] %v6439_v2  ;;  %211 = vst [vmem:[#allocation2 + $0x6c] sm:$0xf] %v6439_v2  ;;  %5612 = vmatpush3.bf16.msra.mxu1 %v6324_v7  ;;  %v274_v16 = vshrl.u32 %v238_v14, 16  ;;  %v277_v17 = vshll.u32 %v238_v14, 16 }
  0x14   : > { %212 = vst [vmem:[#allocation2 + $0x70] sm:$0xf] %v6439_v2  ;;  %213 = vst [vmem:[#allocation2 + $0x74] sm:$0x1] %v6439_v2  ;;  %5804 = vmatpush3.bf16.msra.mxu0 %v6325_v8  ;;  %5613 = vmatprep.subr.bf16.mxu1 %v6326_v9  ;;  %v282_v18 = vshrl.u32 %v239_v15, 16  ;;  %v285_v22 = vshll.u32 %v239_v15, 16 }
  0x15   : > { %214 = vst [vmem:[#allocation2 + $0x78] sm:$0xf] %v6439_v2  ;;  %215 = vst [vmem:[#allocation2 + $0x7c] sm:$0xf] %v6439_v2  ;;  %5805 = vmatprep.subr.bf16.mxu0 %v6327_v10  ;;  %v276_v24 = vrot.slane %v274_v16, 7  ;;  %v6332_v35 = vld [vmem:[%s7412_s1 + $0x38] sm:$0xff]  }
  0x16   : > { %216 = vst [vmem:[#allocation2 + $0x80] sm:$0x1] %v6439_v2  ;;  %217 = vst [vmem:[#allocation2 + $0x84] sm:$0xf] %v6439_v2  ;;  %v284_v25 = vrot.slane %v282_v18, 7  ;;  %v6333_v36 = vld [vmem:[%s7412_s1 + $0x138] sm:$0xff]  }
  0x17   : > { %218 = vst [vmem:[#allocation2 + $0x88] sm:$0xf] %v6439_v2  ;;  %219 = vst [vmem:[#allocation2 + $0x8c] sm:$0x1] %v6439_v2  ;;  %5614 = vmatpush3.bf16.msra.mxu1 %v6326_v9  ;;  %v597_v27 = vld [vmem:[#allocation2 + $0xc] sm:$0xf]  ;;  %v279_v29 = vor.u32 %v277_v17, %v276_v24 }
  0x18   : > { %220 = vst [vmem:[#allocation2 + $0x90] sm:$0xf] %v6439_v2  ;;  %221 = vst [vmem:[#allocation2 + $0x94] sm:$0xf] %v6439_v2  ;;  %5806 = vmatpush3.bf16.msra.mxu0 %v6327_v10  ;;  %5615 = vmatprep.subr.bf16.mxu1 %v6328_v11  ;;  %v603_v28 = vld [vmem:[#allocation2 + $0x14] sm:$0x1]  ;;  %v287_v31 = vor.u32 %v285_v22, %v284_v25 }
  0x19   : > { %222 = vst [vmem:[#allocation2 + $0x98] sm:$0x1] %v6439_v2  ;;  %223 = vst [vmem:[#allocation2 + $0x9c] sm:$0xf] %v6439_v2  ;;  %5807 = vmatprep.subr.bf16.mxu0 %v6329_v12  ;;  %v280_v30 = vrot.slane %v276_v24, 4  ;;  %v289_v32 = vrot.slane %v284_v25, 4 }
  0x1a   : > { %224 = vst [vmem:[#allocation2 + $0xa0] sm:$0xf] %v6439_v2  ;;  %225 = vst [vmem:[#allocation2 + $0xa4] sm:$0x1] %v6439_v2  ;;  %v240_v33 = vld [vmem:[%s6511_s15 + $0x8] sm:$0xf] }
  0x1b   : > { %226 = vst [vmem:[#allocation2 + $0xa8] sm:$0xf] %v6439_v2  ;;  %227 = vst [vmem:[#allocation2 + $0xac] sm:$0xf] %v6439_v2  ;;  %v241_v34 = vld [vmem:[%s6511_s15 + $0xc] sm:$0xf]  ;;  %5616 = vmatpush3.bf16.msra.mxu1 %v6328_v11 }
  0x1c   : > { %228 = vst [vmem:[#allocation2 + $0xb0] sm:$0x1] %v6439_v2  ;;  %229 = vst [vmem:[#allocation2 + $0xb4] sm:$0xf] %v6439_v2  ;;  %v291_v37 = vshrl.u32 %v240_v33, 16  ;;  %v294_v38 = vshll.u32 %v240_v33, 16  ;;  %5808 = vmatpush3.bf16.msra.mxu0 %v6329_v12  ;;  %5617 = vmatprep.subr.bf16.mxu1 %v6330_v20 }
  0x1d   : > { %230 = vst [vmem:[#allocation2 + $0xb8] sm:$0xf] %v6439_v2  ;;  %231 = vst [vmem:[#allocation2 + $0xbc] sm:$0x1] %v6439_v2  ;;  %v299_v39 = vshrl.u32 %v241_v34, 16  ;;  %v302_v40 = vshll.u32 %v241_v34, 16  ;;  %5809 = vmatprep.subr.bf16.mxu0 %v6331_v23 }
  0x1e   : > { %232 = vst [vmem:[#allocation2 + $0xc0] sm:$0xf] %v6439_v2  ;;  %233 = vst [vmem:[#allocation2 + $0xc4] sm:$0xf] %v6439_v2  ;;  %v606_v44 = vld [vmem:[#allocation2 + $0x18] sm:$0xf] }
  0x1f   : > { %234 = vst [vmem:[#allocation2 + $0xc8] sm:$0x1] %v6439_v2  ;;  %235 = vst [vmem:[#allocation2 + $0xcc] sm:$0xf] %v6439_v2  ;;  %v293_v45 = vrot.slane %v291_v37, 7  ;;  %v301_v46 = vrot.slane %v299_v39, 7  ;;  %5618 = vmatpush3.bf16.msra.mxu1 %v6330_v20 }
  0x20   : > { %236 = vst [vmem:[#allocation2 + $0xd0] sm:$0xf] %v6439_v2  ;;  %237 = vst [vmem:[#allocation2 + $0xd4] sm:$0x1] %v6439_v2  ;;  %v610_v47 = vld [vmem:[#allocation2 + $0x20] sm:$0x1]  ;;  %5810 = vmatpush3.bf16.msra.mxu0 %v6331_v23  ;;  %5619 = vmatprep.subr.bf16.mxu1 %v6332_v35 }
  0x21   : > { %vm6518_vm4 = vmand %vm601_vm0, %vm270_vm2  ;;  %v242_v48 = vld [vmem:[%s6511_s15 + $0x10] sm:$0xf]  ;;  %v243_v49 = vld [vmem:[%s6511_s15 + $0x14] sm:$0xf]  ;;  %vm1810_vm8 = vsmask.f32 3328  ;;  %v296_v51 = vor.u32 %v294_v38, %v293_v45  ;;  %v304_v53 = vor.u32 %v302_v40, %v301_v46  ;;  %5811 = vmatprep.subr.bf16.mxu0 %v6333_v36 }
  0x22   : > { %vm6525_vm5 = vmor %vm270_vm2, %vm271_vm3  ;;  %v604_v43 = vsel %vm6518_vm4, %v289_v32, %v603_v28  ;;  %v6556_v50 = vld [vmem:[%s7412_s1 + $0xc0] sm:$0xff]   ;;  %v297_v52 = vrot.slane %v293_v45, 4  ;;  %v306_v54 = vrot.slane %v301_v46, 4  ;;  %v308_v56 = vshrl.u32 %v242_v48, 16  ;;  %v244_v63 = vld [vmem:[%s6511_s15 + $0x18] sm:$0xf] }
  0x23   : > { %vm6533_vm7 = vmand %vm594_vm1, %vm595_vm6  ;;  %v288_v41 = vsel %vm6525_vm5, %v280_v30, %v287_v31  ;;  %605 = vst [vmem:[#allocation2 + $0x14] sm:$0x1] %v604_v43  ;;  %v6561_v55 = vld [vmem:[%s7412_s1 + $0x1c0] sm:$0xff]   ;;  %v311_v57 = vshll.u32 %v242_v48, 16  ;;  %v316_v58 = vshrl.u32 %v243_v49, 16  ;;  %v319_v59 = vshll.u32 %v243_v49, 16  ;;  %5620 = vmatpush3.bf16.msra.mxu1 %v6332_v35 }
  0x24   : > { %v598_v42 = vsel %vm6533_vm7, %v279_v29, %v597_v27  ;;  %600 = vst [vmem:[#allocation2 + $0x10] sm:$0xf] %v288_v41  ;;  %vm1811_vm9 = vsmask.f32 7440  ;;  %v305_v60 = vsel %vm6525_vm5, %v297_v52, %v304_v53  ;;  %v607_v61 = vsel %vm6533_vm7, %v296_v51, %v606_v44  ;;  %v613_v2 = vld [vmem:[#allocation2 + $0x24] sm:$0xf]  ;;  %5812 = vmatpush3.bf16.msra.mxu0 %v6333_v36 }
  0x25   : > { %599 = vst [vmem:[#allocation2 + $0xc] sm:$0xf] %v598_v42  ;;  %v611_v62 = vsel %vm6518_vm4, %v306_v54, %v610_v47  ;;  %608 = vst [vmem:[#allocation2 + $0x18] sm:$0xf] %v607_v61  ;;  %v310_v0 = vrot.slane %v308_v56, 7  ;;  %v318_v1 = vrot.slane %v316_v58, 7  ;;  %5653 = vmatprep.subr.bf16.mxu1 %v6556_v50  ;;  %5845 = vmatprep.subr.bf16.mxu0 %v6561_v55 }
  0x26   : > { %609 = vst [vmem:[#allocation2 + $0x1c] sm:$0xf] %v305_v60  ;;  %612 = vst [vmem:[#allocation2 + $0x20] sm:$0x1] %v611_v62  ;;  %v6571_v3 = vld [vmem:[%s6511_s15 + $0x1c] sm:$0xf] }
  0x27   : > { %v617_v4 = vld [vmem:[#allocation2 + $0x2c] sm:$0x1]  ;;  %v325_v5 = vshrl.u32 %v244_v63, 16  ;;  %v328_v6 = vshll.u32 %v244_v63, 16  ;;  %v333_v7 = vshrl.u32 %v6571_v3, 16  ;;  %v336_v8 = vshll.u32 %v6571_v3, 16  ;;  %vm6589_vm10 = vmor %vm1810_vm8, %vm1811_vm9 }
  0x28   : > { %v313_v12 = vor.u32 %v311_v57, %v310_v0  ;;  %v321_v13 = vor.u32 %v319_v59, %v318_v1  ;;  %v6341_v14 = vld [vmem:[%s7412_s1 + $0xc8] sm:$0xff]   ;;  %v314_v23 = vrot.slane %v310_v0, 4  ;;  %v323_v24 = vrot.slane %v318_v1, 4  ;;  %v620_v45 = vld [vmem:[#allocation2 + $0x30] sm:$0xf]  ;;  %v6404_v40 = vld [vmem:[%s7412_s1 + $0x220] sm:$0xff]  }
  0x29   : > { %v327_v34 = vrot.slane %v325_v5, 7  ;;  %v246_v60 = vld [vmem:[%s6511_s15 + $0x20] sm:$0xf]  ;;  %v335_v1 = vrot.slane %v333_v7, 7  ;;  %v3284_v19 = vld [vmem:[#allocation2 + $0x4] sm:$0xf] }
  0x2a   : > { %v1761_v11 = vld [vmem:[#allocation2 + $0x14] sm:$0x1]  ;;  %v614_v25 = vsel %vm6533_vm7, %v313_v12, %v613_v2  ;;  %v322_v32 = vsel %vm6525_vm5, %v314_v23, %v321_v13  ;;  %v618_v33 = vsel %vm6518_vm4, %v323_v24, %v617_v4  ;;  %v624_v24 = vld [vmem:[#allocation2 + $0x38] sm:$0x1]  ;;  %vm3391_vm11 = vcmask 1042432   ;;  %s4952_s10 = sshll.u32 %s6466_s13, 5 }
  0x2b   : > { %v1760_v10 = vld [vmem:[#allocation2 + $0x10] sm:$0xf]  ;;  %v1857_v20 = vshll.u32 %v1761_v11, 16  ;;  %615 = vst [vmem:[#allocation2 + $0x24] sm:$0xf] %v614_v25  ;;  %v331_v59 = vrot.slane %v327_v34, 4  ;;  %v338_v7 = vor.u32 %v336_v8, %v335_v1 }
  0x2c   : > { %v1759_v9 = vld [vmem:[#allocation2 + $0xc] sm:$0xf]  ;;  %v1847_v17 = vshll.u32 %v1760_v10, 16  ;;  %v1851_v18 = vshrl.u32 %v1760_v10, 16  ;;  %v1762_v37 = vld [vmem:[#allocation2 + $0x18] sm:$0xf] }
  0x2d   : > { %v1838_v15 = vshrl.u32 %v1759_v9, 16  ;;  %v1841_v16 = vshll.u32 %v1759_v9, 16  ;;  %v6335_v22 = vld [vmem:[#allocation2 + $0xc] sm:$0xff]   ;;  %v1859_v31 = vrot.slane %v1857_v20, 5  ;;  %v1763_v38 = vld [vmem:[#allocation2 + $0x1c] sm:$0xf]  ;;  %v339_v23 = vsel %vm6525_vm5, %v331_v59, %v338_v7 }
  0x2e   : > { %v1849_v29 = vrot.slane %v1847_v17, 5  ;;  %v1853_v30 = vrot.slane %v1851_v18, 4  ;;  %5622 = vmatmul.mubr.bf16.vlgmr.msra.gmra.mrb[0].mxu1 %v6335_v22  ;;  %v1764_v39 = vld [vmem:[#allocation2 + $0x20] sm:$0x1]  ;;  %616 = vst [vmem:[#allocation2 + $0x28] sm:$0xf] %v322_v32 }
  0x2f   : > { %v1840_v27 = vrot.slane %v1838_v15, 4  ;;  %v1843_v28 = vrot.slane %v1841_v16, 5  ;;  %5654 = vmatpush3.bf16.msra.mxu1 %v6556_v50  ;;  %619 = vst [vmem:[#allocation2 + $0x2c] sm:$0x1] %v618_v33  ;;  %v1862_v41 = vshrl.u32 %v1762_v37, 16  ;;  %v1865_v42 = vshll.u32 %v1762_v37, 16 }
  0x30   : > { %v1854_v36 = vor.u32 %v1853_v30, %v1849_v29  ;;  %v1871_v43 = vshll.u32 %v1763_v38, 16  ;;  %v1875_v44 = vshrl.u32 %v1763_v38, 16  ;;  %5655 = vmatprep.subr.bf16.mxu1 %v6341_v14  ;;  %v1881_v48 = vshll.u32 %v1764_v39, 16  ;;  %v6339_v49 = vld [vmem:[#allocation2 + $0x18] sm:$0xff]   ;;  %v6346_v2 = vld [vmem:[%s7412_s1 + $0xd0] sm:$0xff]   ;;  %p174_p4 = scmp.lt.s32.totalorder %s4952_s10, 63 }
  0x31   : > { %v1844_v35 = vor.u32 %v1843_v28, %v1840_v27  ;;  %v330_v50 = vor.u32 %v328_v6, %v327_v34  ;;  %v1864_v51 = vrot.slane %v1862_v41, 4  ;;  %v1867_v52 = vrot.slane %v1865_v42, 5  ;;  %5625 = vmatprep.mubr.bf16.mxu1 %v6339_v49  ;;  %v247_v25 = vld [vmem:[%s6511_s15 + $0x24] sm:$0xf]  ;;  %623 = vst [vmem:[#allocation2 + $0x34] sm:$0xf] %v339_v23 }
  0x32   : > { %v1855_v47 = vrot.slane %v1854_v36, 4  ;;  %v1873_v53 = vrot.slane %v1871_v43, 5  ;;  %v1877_v54 = vrot.slane %v1875_v44, 4  ;;  %v1883_v58 = vrot.slane %v1881_v48, 5  ;;  %v1765_v0 = vld [vmem:[#allocation2 + $0x24] sm:$0xf] }
  0x33   : > { %v1845_v46 = vrot.slane %v1844_v35, 4  ;;  %5656 = vmatpush3.bf16.msra.mxu1 %v6341_v14  ;;  %v1868_v62 = vor.u32 %v1867_v52, %v1864_v51  ;;  %v1886_v4 = vshrl.u32 %v1765_v0, 16  ;;  %v1889_v5 = vshll.u32 %v1765_v0, 16  ;;  %v6338_v14 = vld [vmem:[%s7412_s1 + $0x1c8] sm:$0xff]   ;;  %v627_v41 = vld [vmem:[#allocation2 + $0x3c] sm:$0xf] }
  0x34   : > { %v1860_v57 = vsel %vm6589_vm10, %v1855_v47, %v1859_v31  ;;  %v1878_v63 = vor.u32 %v1877_v54, %v1873_v53  ;;  %v621_v6 = vsel %vm6533_vm7, %v330_v50, %v620_v45  ;;  %v342_v9 = vshrl.u32 %v246_v60, 16  ;;  %5657 = vmatprep.subr.bf16.mxu1 %v6346_v2  ;;  %v248_v35 = vld [vmem:[%s6511_s15 + $0x28] sm:$0xf]  ;;  %v6342_v43 = vld [vmem:[%s7412_s1 + $0x1d0] sm:$0xff]   ;;  %s7426_s10 = smov (!%p174_p4, %s4952_s10), 63  ;;  %s4954_s13 = sshll.u32 %s6490_s26, 1 }
  0x35   : > { %v1850_v56 = vsel %vm6589_vm10, %v1845_v46, %v1849_v29  ;;  %v1869_v10 = vrot.slane %v1868_v62, 4  ;;  %v1766_v12 = vld [vmem:[#allocation2 + $0x28] sm:$0xf]  ;;  %622 = vst [vmem:[#allocation2 + $0x30] sm:$0xf] %v621_v6  ;;  %v1888_v15 = vrot.slane %v1886_v4, 4  ;;  %s182_s19 = scalar_lea.vmem %s7414_s3, %s4954_s13 }
  0x36   : > { %v6598_v61 = vcombine.low %v1850_v56, %v1860_v57  ;;  %v1879_v11 = vrot.slane %v1878_v63, 4  ;;  %v1767_v13 = vld [vmem:[#allocation2 + $0x2c] sm:$0x1]  ;;  %v1891_v16 = vrot.slane %v1889_v5, 5  ;;  %v1895_v17 = vshll.u32 %v1766_v12, 16  ;;  %v6340_v8 = vld [vmem:[#allocation2 + $0x24] sm:$0xff]  }
  0x37   : > { %v1899_v18 = vshrl.u32 %v1766_v12, 16  ;;  %5658 = vmatpush3.bf16.msra.mxu1 %v6346_v2  ;;  %v1874_v20 = vsel %vm6589_vm10, %v1869_v10, %v1873_v53  ;;  %v1905_v3 = vshll.u32 %v1767_v13, 16  ;;  %v340_v32 = vrot.slane %v335_v1, 4  ;;  %v631_v46 = vld [vmem:[#allocation2 + $0x44] sm:$0x1]  ;;  %v6351_v57 = vld [vmem:[%s7412_s1 + $0xd8] sm:$0xff]  }
  0x38   : > { %5813 = vmatprep.mubr.bf16.mxu0 %v6598_v61  ;;  %v1884_v22 = vsel %vm6589_vm10, %v1879_v11, %v1883_v58  ;;  %v1892_v28 = vor.u32 %v1891_v16, %v1888_v15  ;;  %v1897_v29 = vrot.slane %v1895_v17, 5  ;;  %5626 = vmatmul.mubr.bf16.gmra.mrb[4].mxu1 %v6340_v8  ;;  %v344_v33 = vrot.slane %v342_v9, 7  ;;  %v634_v63 = vld [vmem:[#allocation2 + $0x48] sm:$0xf]  ;;  %v1769_v1 = vld [vmem:[#allocation2 + $0x34] sm:$0xf] }
  0x39   : > { %v6620_v27 = vcombine.low %v1874_v20, %v1884_v22  ;;  %v1901_v30 = vrot.slane %v1899_v18, 4  ;;  %v1907_v31 = vrot.slane %v1905_v3, 5  ;;  %v345_v34 = vshll.u32 %v246_v60, 16  ;;  %5659 = vmatprep.subr.bf16.mxu1 %v6351_v57  ;;  %v6343_v9 = vld [vmem:[%s7412_s1 + $0x1d8] sm:$0xff]   ;;  %v250_v16 = vld [vmem:[%s6511_s15 + $0x30] sm:$0xf] }
  0x3a   : > { %v1893_v36 = vrot.slane %v1892_v28, 4  ;;  %v350_v38 = vshrl.u32 %v247_v25, 16  ;;  %v353_v39 = vshll.u32 %v247_v25, 16  ;;  %v625_v42 = vsel %vm6518_vm4, %v340_v32, %v624_v24  ;;  %v6656_v17 = vld [vmem:[%s6511_s15 + $0x34] sm:$0xf]  ;;  %v6347_v28 = vld [vmem:[%s7412_s1 + $0x1e0] sm:$0xff]  }
  0x3b   : > { %5814 = vmatmul.mubr.bf16.vlgmr.msra.gmra.mrb[0].mxu0 %v6620_v27  ;;  %v1902_v37 = vor.u32 %v1901_v30, %v1897_v29  ;;  %v347_v44 = vor.u32 %v345_v34, %v344_v33  ;;  %v348_v45 = vrot.slane %v344_v33, 4  ;;  %v359_v47 = vshrl.u32 %v248_v35, 16  ;;  %626 = vst [vmem:[#allocation2 + $0x38] sm:$0x1] %v625_v42  ;;  %5660 = vmatpush3.bf16.msra.mxu1 %v6351_v57  ;;  %v638_v32 = vld [vmem:[#allocation2 + $0x50] sm:$0x1] }
  0x3c   : > { %5846 = vmatpush3.bf16.msra.mxu0 %v6561_v55  ;;  %v1898_v48 = vsel %vm6589_vm10, %v1893_v36, %v1897_v29  ;;  %v1768_v50 = vld [vmem:[#allocation2 + $0x30] sm:$0xf]  ;;  %v352_v51 = vrot.slane %v350_v38, 7  ;;  %v249_v55 = vld [vmem:[%s6511_s15 + $0x2c] sm:$0xf]  ;;  %v362_v62 = vshll.u32 %v248_v35, 16 }
  0x3d   : > { %5847 = vmatprep.subr.bf16.mxu0 %v6338_v14  ;;  %v1903_v49 = vrot.slane %v1902_v37, 4  ;;  %v1910_v52 = vshrl.u32 %v1768_v50, 16  ;;  %v1913_v53 = vshll.u32 %v1768_v50, 16  ;;  %v628_v54 = vsel %vm6533_vm7, %v347_v44, %v627_v41  ;;  %v6344_v10 = vld [vmem:[#allocation2 + $0x30] sm:$0xff]   ;;  %v6356_v35 = vld [vmem:[%s7412_s1 + $0xe0] sm:$0xff]   ;;  %s4953_s11 = sshll.u32 %s7426_s10, 2 }
  0x3e   : > { %v6635_v56 = vrot.slane %v359_v47, 7  ;;  %v355_v59 = vor.u32 %v353_v39, %v352_v51  ;;  %v357_v60 = vrot.slane %v352_v51, 4  ;;  %629 = vst [vmem:[#allocation2 + $0x3c] sm:$0xf] %v628_v54  ;;  %v1919_v5 = vshll.u32 %v1769_v1, 16  ;;  %5629 = vmatprep.mubr.bf16.mxu1 %v6344_v10  ;;  %5661 = vmatprep.subr.bf16.mxu1 %v6356_v35  ;;  %s7349_s17 = scalar_lea.vmem %s7413_s2, %s4953_s11 }
  0x3f   : > { %v1908_v58 = vsel %vm6589_vm10, %v1903_v49, %v1907_v31  ;;  %v1912_v2 = vrot.slane %v1910_v52, 4  ;;  %v1915_v4 = vrot.slane %v1913_v53, 5  ;;  %v1923_v6 = vshrl.u32 %v1769_v1, 16  ;;  %v641_v42 = vld [vmem:[#allocation2 + $0x54] sm:$0xf]  ;;  %v6348_v49 = vld [vmem:[%s7412_s1 + $0x1e8] sm:$0xff]   ;;  %5662 = vmatpush3.bf16.msra.mxu1 %v6356_v35 }
  0x40   : > { %5848 = vmatpush3.bf16.msra.mxu0 %v6338_v14  ;;  %v6642_v0 = vcombine.low %v1898_v48, %v1908_v58  ;;  %v356_v11 = vsel %vm6525_vm5, %v348_v45, %v355_v59  ;;  %v632_v12 = vsel %vm6518_vm4, %v357_v60, %v631_v46  ;;  %v364_v7 = vor.u32 %v362_v62, %v6635_v56 }
  0x41   : > { %5849 = vmatprep.subr.bf16.mxu0 %v6342_v43  ;;  %v1916_v13 = vor.u32 %v1915_v4, %v1912_v2  ;;  %630 = vst [vmem:[#allocation2 + $0x40] sm:$0xf] %v356_v11  ;;  %633 = vst [vmem:[#allocation2 + $0x44] sm:$0x1] %v632_v12  ;;  %v365_v14 = vrot.slane %v6635_v56, 4  ;;  %v367_v15 = vshrl.u32 %v249_v55, 16 }
  0x42   : > { %5817 = vmatprep.mubr.bf16.mxu0 %v6642_v0  ;;  %v1921_v18 = vrot.slane %v1919_v5, 5  ;;  %v1925_v20 = vrot.slane %v1923_v6, 4  ;;  %v370_v22 = vshll.u32 %v249_v55, 16  ;;  %v376_v3 = vshrl.u32 %v250_v16, 16  ;;  %v1770_v8 = vld [vmem:[#allocation2 + $0x38] sm:$0x1] }
  0x43   : > { %v1917_v23 = vrot.slane %v1916_v13, 4  ;;  %v369_v24 = vrot.slane %v367_v15, 7  ;;  %v635_v25 = vsel %vm6533_vm7, %v364_v7, %v634_v63  ;;  %v379_v29 = vshll.u32 %v250_v16, 16  ;;  %v252_v55 = vld [vmem:[%s6511_s15 + $0x38] sm:$0xf] }
  0x44   : > { %5850 = vmatpush3.bf16.msra.mxu0 %v6342_v43  ;;  %v1926_v30 = vor.u32 %v1925_v20, %v1921_v18  ;;  %v1929_v31 = vshll.u32 %v1770_v8, 16  ;;  %636 = vst [vmem:[#allocation2 + $0x48] sm:$0xf] %v635_v25  ;;  %v6663_v33 = vrot.slane %v376_v3, 7  ;;  %v384_v34 = vshrl.u32 %v6656_v17, 16 }
  0x45   : > { %5851 = vmatprep.subr.bf16.mxu0 %v6343_v9  ;;  %v1922_v36 = vsel %vm6589_vm10, %v1917_v23, %v1921_v18  ;;  %v1771_v37 = vld [vmem:[#allocation2 + $0x3c] sm:$0xf]  ;;  %v372_v38 = vor.u32 %v370_v22, %v369_v24  ;;  %v374_v39 = vrot.slane %v369_v24, 4  ;;  %v387_v41 = vshll.u32 %v6656_v17, 16  ;;  %v6360_v18 = vld [vmem:[%s7412_s1 + $0xe8] sm:$0xff]   ;;  %v6352_v23 = vld [vmem:[%s7412_s1 + $0x1f0] sm:$0xff]  }
  0x46   : > { %v1927_v43 = vrot.slane %v1926_v30, 4  ;;  %v1931_v44 = vrot.slane %v1929_v31, 5  ;;  %v1934_v45 = vshrl.u32 %v1771_v37, 16  ;;  %v1937_v46 = vshll.u32 %v1771_v37, 16  ;;  %v645_v5 = vld [vmem:[#allocation2 + $0x5c] sm:$0x1]  ;;  %5663 = vmatprep.subr.bf16.mxu1 %v6360_v18 }
  0x47   : > { %v373_v47 = vsel %vm6525_vm5, %v365_v14, %v372_v38  ;;  %v639_v48 = vsel %vm6518_vm4, %v374_v39, %v638_v32  ;;  %v381_v50 = vor.u32 %v379_v29, %v6663_v33  ;;  %v382_v51 = vrot.slane %v6663_v33, 4  ;;  %v253_v6 = vld [vmem:[%s6511_s15 + $0x3c] sm:$0xf]  ;;  %5664 = vmatpush3.bf16.msra.mxu1 %v6360_v18 }
  0x48   : > { %5852 = vmatpush3.bf16.msra.mxu0 %v6343_v9  ;;  %v1932_v52 = vsel %vm6589_vm10, %v1927_v43, %v1931_v44  ;;  %v1772_v53 = vld [vmem:[#allocation2 + $0x40] sm:$0xf]  ;;  %v1773_v54 = vld [vmem:[#allocation2 + $0x44] sm:$0x1]  ;;  %v1936_v56 = vrot.slane %v1934_v45, 4  ;;  %v1939_v57 = vrot.slane %v1937_v46, 5 }
  0x49   : > { %637 = vst [vmem:[#allocation2 + $0x4c] sm:$0xf] %v373_v47  ;;  %640 = vst [vmem:[#allocation2 + $0x50] sm:$0x1] %v639_v48  ;;  %5853 = vmatprep.subr.bf16.mxu0 %v6347_v28  ;;  %v6684_v58 = vcombine.low %v1922_v36, %v1932_v52  ;;  %v1943_v59 = vshll.u32 %v1772_v53, 16  ;;  %v1947_v60 = vshrl.u32 %v1772_v53, 16  ;;  %v642_v4 = vsel %vm6533_vm7, %v381_v50, %v641_v42 }
  0x4a   : > { %v1953_v62 = vshll.u32 %v1773_v54, 16  ;;  %v6686_v63 = vld [vmem:[#allocation2 + $0x3c] sm:$0xff]   ;;  %v1940_v1 = vor.u32 %v1939_v57, %v1936_v56  ;;  %v386_v2 = vrot.slane %v384_v34, 7  ;;  %v393_v9 = vshrl.u32 %v252_v55, 16  ;;  %643 = vst [vmem:[#allocation2 + $0x54] sm:$0xf] %v642_v4 }
  0x4b   : > { %5818 = vmatmul.mubr.bf16.gmra.mrb[4].mxu0 %v6684_v58  ;;  %v1945_v10 = vrot.slane %v1943_v59, 5  ;;  %v1949_v11 = vrot.slane %v1947_v60, 4  ;;  %5630 = vmatmul.mubr.bf16.gmra.mrb[8].mxu1 %v6686_v63  ;;  %v1774_v13 = vld [vmem:[#allocation2 + $0x48] sm:$0xf]  ;;  %v396_v7 = vshll.u32 %v252_v55, 16  ;;  %v401_v8 = vshrl.u32 %v253_v6, 16 }
  0x4c   : > { %v1955_v12 = vrot.slane %v1953_v62, 5  ;;  %v1941_v14 = vrot.slane %v1940_v1, 4  ;;  %v1958_v15 = vshrl.u32 %v1774_v13, 16  ;;  %v1961_v16 = vshll.u32 %v1774_v13, 16  ;;  %5854 = vmatpush3.bf16.msra.mxu0 %v6347_v28  ;;  %v648_v36 = vld [vmem:[#allocation2 + $0x60] sm:$0xf] }
  0x4d   : > { %v389_v17 = vor.u32 %v387_v41, %v386_v2  ;;  %v1950_v20 = vor.u32 %v1949_v11, %v1945_v10  ;;  %5855 = vmatprep.subr.bf16.mxu0 %v6348_v49  ;;  %v391_v22 = vrot.slane %v386_v2, 4  ;;  %v395_v3 = vrot.slane %v393_v9, 7  ;;  %v6364_v42 = vld [vmem:[%s7412_s1 + $0xf0] sm:$0xff]   ;;  %v6353_v47 = vld [vmem:[%s7412_s1 + $0x1f8] sm:$0xff]   ;;  %v652_v57 = vld [vmem:[#allocation2 + $0x68] sm:$0x1] }
  0x4e   : > { %v1960_v24 = vrot.slane %v1958_v15, 4  ;;  %v1963_v25 = vrot.slane %v1961_v16, 5  ;;  %v1946_v28 = vsel %vm6589_vm10, %v1941_v14, %v1945_v10  ;;  %v403_v45 = vrot.slane %v401_v8, 7  ;;  %5665 = vmatprep.subr.bf16.mxu1 %v6364_v42  ;;  %v6368_v52 = vld [vmem:[%s7412_s1 + $0xf8] sm:$0xff]   ;;  %v6724_v59 = vld [vmem:[%s7412_s1 + $0x80] sm:$0xff]  }
  0x4f   : > { %v390_v29 = vsel %vm6525_vm5, %v382_v51, %v389_v17  ;;  %v1951_v30 = vrot.slane %v1950_v20, 4  ;;  %v646_v34 = vsel %vm6518_vm4, %v391_v22, %v645_v5  ;;  %v398_v35 = vor.u32 %v396_v7, %v395_v3  ;;  %5666 = vmatpush3.bf16.msra.mxu1 %v6364_v42  ;;  %v254_v4 = vld [vmem:[%s6511_s15 + $0x40] sm:$0xf]  ;;  %v255_v10 = vld [vmem:[%s6511_s15 + $0x44] sm:$0xf] }
  0x50   : > { %v1775_v31 = vld [vmem:[#allocation2 + $0x4c] sm:$0xf]  ;;  %v1776_v32 = vld [vmem:[#allocation2 + $0x50] sm:$0x1]  ;;  %644 = vst [vmem:[#allocation2 + $0x58] sm:$0xf] %v390_v29  ;;  %v1964_v37 = vor.u32 %v1963_v25, %v1960_v24  ;;  %5856 = vmatpush3.bf16.msra.mxu0 %v6348_v49  ;;  %5667 = vmatprep.subr.bf16.mxu1 %v6368_v52 }
  0x51   : > { %v6703_v33 = vld [vmem:[#allocation2 + $0x48] sm:$0xff]   ;;  %v1967_v38 = vshll.u32 %v1775_v31, 16  ;;  %v1971_v39 = vshrl.u32 %v1775_v31, 16  ;;  %v1977_v41 = vshll.u32 %v1776_v32, 16  ;;  %647 = vst [vmem:[#allocation2 + $0x5c] sm:$0x1] %v646_v34  ;;  %v1956_v43 = vsel %vm6589_vm10, %v1951_v30, %v1955_v12  ;;  %5857 = vmatprep.subr.bf16.mxu0 %v6352_v23 }
  0x52   : > { %5633 = vmatprep.mubr.bf16.mxu1 %v6703_v33  ;;  %v399_v44 = vrot.slane %v395_v3, 4  ;;  %v404_v46 = vshll.u32 %v253_v6, 16  ;;  %v6716_v48 = vcombine.low %v1946_v28, %v1956_v43  ;;  %v1965_v49 = vrot.slane %v1964_v37, 4  ;;  %v1777_v55 = vld [vmem:[#allocation2 + $0x54] sm:$0xf]  ;;  %v6736_v12 = vld [vmem:[%s7412_s1 + $0x180] sm:$0xff]  }
  0x53   : > { %v1969_v50 = vrot.slane %v1967_v38, 5  ;;  %v1973_v51 = vrot.slane %v1971_v39, 4  ;;  %v1982_v53 = vshrl.u32 %v1777_v55, 16  ;;  %v1985_v54 = vshll.u32 %v1777_v55, 16  ;;  %5668 = vmatpush3.bf16.msra.mxu1 %v6368_v52  ;;  %v655_v29 = vld [vmem:[#allocation2 + $0x6c] sm:$0xf] }
  0x54   : > { %v406_v56 = vor.u32 %v404_v46, %v403_v45  ;;  %5821 = vmatprep.mubr.bf16.mxu0 %v6716_v48  ;;  %v1979_v62 = vrot.slane %v1977_v41, 5  ;;  %v408_v1 = vrot.slane %v403_v45, 4  ;;  %v649_v2 = vsel %vm6533_vm7, %v398_v35, %v648_v36  ;;  %5858 = vmatpush3.bf16.msra.mxu0 %v6352_v23 }
  0x55   : > { %v1974_v60 = vor.u32 %v1973_v51, %v1969_v50  ;;  %v1984_v5 = vrot.slane %v1982_v53, 4  ;;  %v1987_v6 = vrot.slane %v1985_v54, 5  ;;  %650 = vst [vmem:[#allocation2 + $0x60] sm:$0xf] %v649_v2  ;;  %5859 = vmatprep.subr.bf16.mxu0 %v6353_v47  ;;  %v410_v11 = vshrl.u32 %v254_v4, 16  ;;  %5701 = vmatprep.subr.bf16.mxu1 %v6736_v12 }
  0x56   : > { %v407_v9 = vsel %vm6525_vm5, %v399_v44, %v406_v56  ;;  %v1970_v13 = vsel %vm6589_vm10, %v1965_v49, %v1969_v50  ;;  %v653_v16 = vsel %vm6518_vm4, %v408_v1, %v652_v57  ;;  %v413_v24 = vshll.u32 %v254_v4, 16 }
  0x57   : > { %v1975_v7 = vrot.slane %v1974_v60, 4  ;;  %v1778_v14 = vld [vmem:[#allocation2 + $0x58] sm:$0xf]  ;;  %651 = vst [vmem:[#allocation2 + $0x64] sm:$0xf] %v407_v9  ;;  %v1988_v18 = vor.u32 %v1987_v6, %v1984_v5  ;;  %v412_v3 = vrot.slane %v410_v11, 7 }
  0x58   : > { %v6740_v15 = vld [vmem:[#allocation2 + $0x54] sm:$0xff]   ;;  %v1779_v17 = vld [vmem:[#allocation2 + $0x5c] sm:$0x1]  ;;  %v1991_v20 = vshll.u32 %v1778_v14, 16  ;;  %v1995_v22 = vshrl.u32 %v1778_v14, 16  ;;  %5860 = vmatpush3.bf16.msra.mxu0 %v6353_v47  ;;  %v418_v25 = vshrl.u32 %v255_v10, 16 }
  0x59   : > { %654 = vst [vmem:[#allocation2 + $0x68] sm:$0x1] %v653_v16  ;;  %v1980_v8 = vsel %vm6589_vm10, %v1975_v7, %v1979_v62  ;;  %v2001_v23 = vshll.u32 %v1779_v17, 16  ;;  %5634 = vmatmul.mubr.bf16.gmra.mrb[12].mxu1 %v6740_v15  ;;  %v1989_v30 = vrot.slane %v1988_v18, 4  ;;  %5893 = vmatprep.subr.bf16.mxu0 %v6724_v59  ;;  %v415_v34 = vor.u32 %v413_v24, %v412_v3  ;;  %v256_v60 = vld [vmem:[%s6511_s15 + $0x48] sm:$0xf] }
  0x5a   : > { %v6747_v28 = vcombine.low %v1970_v13, %v1980_v8  ;;  %v1993_v31 = vrot.slane %v1991_v20, 5  ;;  %v1997_v32 = vrot.slane %v1995_v22, 4  ;;  %v6751_v35 = vrot.slane %v418_v25, 7  ;;  %v257_v5 = vld [vmem:[%s6511_s15 + $0x4c] sm:$0xf] }
  0x5b   : > { %v2003_v37 = vrot.slane %v2001_v23, 5  ;;  %v421_v38 = vshll.u32 %v255_v10, 16  ;;  %v416_v42 = vrot.slane %v412_v3, 4  ;;  %v656_v43 = vsel %vm6533_vm7, %v415_v34, %v655_v29  ;;  %v258_v13 = vld [vmem:[%s6511_s15 + $0x50] sm:$0xf] }
  0x5c   : > { %5822 = vmatmul.mubr.bf16.gmra.mrb[8].mxu0 %v6747_v28  ;;  %v1998_v36 = vor.u32 %v1997_v32, %v1993_v31  ;;  %v1994_v39 = vsel %vm6589_vm10, %v1989_v30, %v1993_v31  ;;  %v1780_v41 = vld [vmem:[#allocation2 + $0x60] sm:$0xf]  ;;  %657 = vst [vmem:[#allocation2 + $0x6c] sm:$0xf] %v656_v43  ;;  %v427_v10 = vshrl.u32 %v256_v60, 16  ;;  %v430_v11 = vshll.u32 %v256_v60, 16 }
  0x5d   : > { %v2006_v46 = vshrl.u32 %v1780_v41, 16  ;;  %v2009_v47 = vshll.u32 %v1780_v41, 16  ;;  %v423_v50 = vor.u32 %v421_v38, %v6751_v35  ;;  %v435_v14 = vshrl.u32 %v257_v5, 16  ;;  %v662_v17 = vld [vmem:[#allocation2 + $0x78] sm:$0xf] }
  0x5e   : > { %v1999_v44 = vrot.slane %v1998_v36, 4  ;;  %v1781_v45 = vld [vmem:[#allocation2 + $0x64] sm:$0xf]  ;;  %v438_v16 = vshll.u32 %v257_v5, 16  ;;  %v259_v18 = vld [vmem:[%s6511_s15 + $0x54] sm:$0xf] }
  0x5f   : > { %v6758_v49 = vld [vmem:[#allocation2 + $0x60] sm:$0xff]   ;;  %v2015_v55 = vshll.u32 %v1781_v45, 16  ;;  %v2019_v52 = vshrl.u32 %v1781_v45, 16  ;;  %v2008_v54 = vrot.slane %v2006_v46, 4  ;;  %v2011_v56 = vrot.slane %v2009_v47, 5 }
  0x60   : > { %v1782_v51 = vld [vmem:[#allocation2 + $0x68] sm:$0x1]  ;;  %v2004_v53 = vsel %vm6589_vm10, %v1999_v44, %v2003_v37  ;;  %5637 = vmatprep.mubr.bf16.mxu1 %v6758_v49  ;;  %v424_v4 = vsel %vm6525_vm5, %v416_v42, %v423_v50  ;;  %v444_v20 = vshrl.u32 %v258_v13, 16  ;;  %v429_v3 = vrot.slane %v427_v10, 7  ;;  %v669_v24 = vld [vmem:[#allocation2 + $0x84] sm:$0xf] }
  0x61   : > { %v2025_v57 = vshll.u32 %v1782_v51, 16  ;;  %v6765_v62 = vcombine.low %v1994_v39, %v2004_v53  ;;  %v2017_v1 = vrot.slane %v2015_v55, 5  ;;  %v2021_v2 = vrot.slane %v2019_v52, 4  ;;  %658 = vst [vmem:[#allocation2 + $0x70] sm:$0xf] %v424_v4 }
  0x62   : > { %v2012_v6 = vor.u32 %v2011_v56, %v2008_v54  ;;  %v447_v8 = vshll.u32 %v258_v13, 16  ;;  %v452_v23 = vshrl.u32 %v259_v18, 16  ;;  %v6773_v29 = vrot.slane %v435_v14, 7  ;;  %v260_v46 = vld [vmem:[%s6511_s15 + $0x58] sm:$0xf] }
  0x63   : > { %v2027_v9 = vrot.slane %v2025_v57, 5  ;;  %5825 = vmatprep.mubr.bf16.mxu0 %v6765_v62  ;;  %v2022_v7 = vor.u32 %v2021_v2, %v2017_v1  ;;  %v446_v30 = vrot.slane %v444_v20, 7  ;;  %v455_v31 = vshll.u32 %v259_v18, 16  ;;  %v261_v47 = vld [vmem:[%s6511_s15 + $0x5c] sm:$0xf] }
  0x64   : > { %v2013_v22 = vrot.slane %v2012_v6, 4  ;;  %v432_v34 = vor.u32 %v430_v11, %v429_v3  ;;  %v433_v36 = vrot.slane %v429_v3, 4  ;;  %v6777_v37 = vrot.slane %v452_v23, 7  ;;  %v263_v2 = vld [vmem:[%s6511_s15 + $0x64] sm:$0xf] }
  0x65   : > { %v2023_v25 = vrot.slane %v2022_v7, 4  ;;  %v440_v39 = vor.u32 %v438_v16, %v6773_v29  ;;  %v449_v41 = vor.u32 %v447_v8, %v446_v30  ;;  %v450_v44 = vrot.slane %v446_v30, 4  ;;  %v676_v5 = vld [vmem:[#allocation2 + $0x90] sm:$0xf]  ;;  %v264_v3 = vld [vmem:[%s6511_s15 + $0x68] sm:$0xf] }
  0x66   : > { %v2018_v32 = vsel %vm6589_vm10, %v2013_v22, %v2017_v1  ;;  %v663_v43 = vsel %vm6533_vm7, %v432_v34, %v662_v17  ;;  %v457_v45 = vor.u32 %v455_v31, %v6777_v37  ;;  %v461_v52 = vshrl.u32 %v260_v46, 16  ;;  %v262_v1 = vld [vmem:[%s6511_s15 + $0x60] sm:$0xf]  ;;  %v683_v22 = vld [vmem:[#allocation2 + $0x9c] sm:$0xf]  ;;  %v6361_v8 = vld [vmem:[%s7412_s1 + $0x88] sm:$0xff]  }
  0x67   : > { %v2028_v38 = vsel %vm6589_vm10, %v2023_v25, %v2027_v9  ;;  %v441_v51 = vsel %vm6525_vm5, %v433_v36, %v440_v39  ;;  %664 = vst [vmem:[#allocation2 + $0x78] sm:$0xf] %v663_v43  ;;  %v670_v55 = vsel %vm6533_vm7, %v449_v41, %v669_v24  ;;  %v464_v54 = vshll.u32 %v260_v46, 16  ;;  %v265_v30 = vld [vmem:[%s6511_s15 + $0x6c] sm:$0xf]  ;;  %v6365_v39 = vld [vmem:[%s7412_s1 + $0x90] sm:$0xff]  }
  0x68   : > { %v6782_v42 = vcombine.low %v2018_v32, %v2028_v38  ;;  %v6789_v50 = vld [vmem:[#allocation2 + $0x6c] sm:$0xff]   ;;  %665 = vst [vmem:[#allocation2 + $0x7c] sm:$0xf] %v441_v51  ;;  %v458_v53 = vsel %vm6525_vm5, %v450_v44, %v457_v45  ;;  %671 = vst [vmem:[#allocation2 + $0x84] sm:$0xf] %v670_v55  ;;  %v469_v56 = vshrl.u32 %v261_v47, 16 }
  0x69   : > { %v472_v57 = vshll.u32 %v261_v47, 16  ;;  %5638 = vmatmul.mubr.bf16.gmra.mrb[16].mxu1 %v6789_v50  ;;  %672 = vst [vmem:[#allocation2 + $0x88] sm:$0xf] %v458_v53  ;;  %v463_v60 = vrot.slane %v461_v52, 7  ;;  %v478_v6 = vshrl.u32 %v262_v1, 16  ;;  %v481_v9 = vshll.u32 %v262_v1, 16 }
  0x6a   : > { %5826 = vmatmul.mubr.bf16.gmra.mrb[12].mxu0 %v6782_v42  ;;  %v6802_v4 = vrot.slane %v469_v56, 7  ;;  %v486_v10 = vshrl.u32 %v263_v2, 16  ;;  %v489_v7 = vshll.u32 %v263_v2, 16  ;;  %v425_v14 = vrot.slane %v6751_v35, 4  ;;  %v266_v46 = vld [vmem:[%s6511_s15 + $0x70] sm:$0xf] }
  0x6b   : > { %5861 = vmatprep.mubr.bf16.mxu0 %v6620_v27  ;;  %v466_v11 = vor.u32 %v464_v54, %v463_v60  ;;  %v467_v13 = vrot.slane %v463_v60, 4  ;;  %v480_v17 = vrot.slane %v478_v6, 7  ;;  %v442_v31 = vrot.slane %v6773_v29, 4  ;;  %v267_v47 = vld [vmem:[%s6511_s15 + $0x74] sm:$0xf]  ;;  %v6369_v6 = vld [vmem:[%s7412_s1 + $0x98] sm:$0xff]  }
  0x6c   : > { %v474_v16 = vor.u32 %v472_v57, %v6802_v4  ;;  %v6806_v18 = vrot.slane %v486_v10, 7  ;;  %v495_v41 = vshrl.u32 %v264_v3, 16  ;;  %v498_v43 = vshll.u32 %v264_v3, 16  ;;  %v690_v55 = vld [vmem:[#allocation2 + $0xa8] sm:$0xf] }
  0x6d   : > { %v677_v20 = vsel %vm6533_vm7, %v466_v11, %v676_v5  ;;  %v483_v24 = vor.u32 %v481_v9, %v480_v17  ;;  %v484_v35 = vrot.slane %v480_v17, 4  ;;  %v503_v44 = vshrl.u32 %v265_v30, 16  ;;  %v659_v5 = vld [vmem:[#allocation2 + $0x74] sm:$0x1]  ;;  %v1784_v3 = vld [vmem:[#allocation2 + $0x70] sm:$0xf] }
  0x6e   : > { %v475_v23 = vsel %vm6525_vm5, %v467_v13, %v474_v16  ;;  %678 = vst [vmem:[#allocation2 + $0x90] sm:$0xf] %v677_v20  ;;  %v491_v25 = vor.u32 %v489_v7, %v6806_v18  ;;  %v506_v45 = vshll.u32 %v265_v30, 16  ;;  %v497_v51 = vrot.slane %v495_v41, 7  ;;  %v697_v10 = vld [vmem:[#allocation2 + $0xb4] sm:$0xf] }
  0x6f   : > { %v6819_v32 = vld [vmem:[#allocation2 + $0x78] sm:$0xff]   ;;  %679 = vst [vmem:[#allocation2 + $0x94] sm:$0xf] %v475_v23  ;;  %v684_v38 = vsel %vm6533_vm7, %v483_v24, %v683_v22  ;;  %v512_v52 = vshrl.u32 %v266_v46, 16  ;;  %v515_v53 = vshll.u32 %v266_v46, 16  ;;  %v520_v54 = vshrl.u32 %v267_v47, 16 }
  0x70   : > { %v6822_v34 = vld [vmem:[#allocation2 + $0x84] sm:$0xff]   ;;  %v492_v36 = vsel %vm6525_vm5, %v484_v35, %v491_v25  ;;  %5641 = vmatprep.mubr.bf16.mxu1 %v6819_v32  ;;  %685 = vst [vmem:[#allocation2 + $0x9c] sm:$0xf] %v684_v38  ;;  %v6837_v56 = vrot.slane %v503_v44, 7  ;;  %v500_v57 = vor.u32 %v498_v43, %v497_v51  ;;  %v501_v60 = vrot.slane %v497_v51, 4 }
  0x71   : > { %686 = vst [vmem:[#allocation2 + $0xa0] sm:$0xf] %v492_v36  ;;  %5642 = vmatmul.mubr.bf16.gmra.mrb[20].mxu1 %v6822_v34  ;;  %v514_v1 = vrot.slane %v512_v52, 7  ;;  %v6839_v2 = vrot.slane %v520_v54, 7  ;;  %v660_v11 = vsel %vm6518_vm4, %v425_v14, %v659_v5  ;;  %v1783_v13 = vld [vmem:[#allocation2 + $0x6c] sm:$0xf] }
  0x72   : > { %5862 = vmatmul.mubr.bf16.vlgmr.msra.gmra.mrb[0].mxu0 %v6642_v0  ;;  %v508_v9 = vor.u32 %v506_v45, %v6837_v56  ;;  %v691_v16 = vsel %vm6533_vm7, %v500_v57, %v690_v55  ;;  %661 = vst [vmem:[#allocation2 + $0x74] sm:$0x1] %v660_v11  ;;  %v2030_v14 = vshrl.u32 %v1783_v13, 16  ;;  %v2033_v24 = vshll.u32 %v1783_v13, 16  ;;  %v6371_v36 = vld [vmem:[%s7412_s1 + $0xa0] sm:$0xff]   ;;  %v6373_v29 = vld [vmem:[%s7412_s1 + $0xa8] sm:$0xff]  }
  0x73   : > { %5894 = vmatpush3.bf16.msra.mxu0 %v6724_v59  ;;  %5865 = vmatprep.mubr.bf16.mxu0 %v6684_v58  ;;  %v523_v59 = vshll.u32 %v267_v47, 16  ;;  %v517_v17 = vor.u32 %v515_v53, %v514_v1  ;;  %v518_v20 = vrot.slane %v514_v1, 4  ;;  %692 = vst [vmem:[#allocation2 + $0xa8] sm:$0xf] %v691_v16  ;;  %v476_v38 = vrot.slane %v6802_v4, 4 }
  0x74   : > { %5895 = vmatprep.subr.bf16.mxu0 %v6361_v8  ;;  %v509_v23 = vsel %vm6525_vm5, %v501_v60, %v508_v9  ;;  %v2032_v41 = vrot.slane %v2030_v14, 4  ;;  %v2035_v43 = vrot.slane %v2033_v24, 5  ;;  %v2043_v44 = vshrl.u32 %v1784_v3, 16  ;;  %v666_v47 = vld [vmem:[#allocation2 + $0x80] sm:$0x1] }
  0x75   : > { %v525_v22 = vor.u32 %v523_v59, %v6839_v2  ;;  %693 = vst [vmem:[#allocation2 + $0xac] sm:$0xf] %v509_v23  ;;  %v698_v30 = vsel %vm6533_vm7, %v517_v17, %v697_v10  ;;  %v493_v45 = vrot.slane %v6806_v18, 4  ;;  %v1786_v51 = vld [vmem:[#allocation2 + $0x78] sm:$0xf]  ;;  %v510_v59 = vrot.slane %v6837_v56, 4 }
  0x76   : > { %v6847_v7 = vld [vmem:[#allocation2 + $0x90] sm:$0xff]   ;;  %699 = vst [vmem:[#allocation2 + $0xb4] sm:$0xf] %v698_v30  ;;  %v2036_v55 = vor.u32 %v2035_v43, %v2032_v41  ;;  %v2045_v52 = vrot.slane %v2043_v44, 4  ;;  %v1787_v53 = vld [vmem:[#allocation2 + $0x7c] sm:$0xf] }
  0x77   : > { %5896 = vmatpush3.bf16.msra.mxu0 %v6361_v8  ;;  %v459_v8 = vrot.slane %v6777_v37, 4  ;;  %5645 = vmatprep.mubr.bf16.mxu1 %v6847_v7  ;;  %v526_v25 = vsel %vm6525_vm5, %v518_v20, %v525_v22  ;;  %v2039_v37 = vshll.u32 %v1784_v3, 16  ;;  %v2054_v54 = vshrl.u32 %v1786_v51, 16  ;;  %v673_v13 = vld [vmem:[#allocation2 + $0x8c] sm:$0x1] }
  0x78   : > { %5897 = vmatprep.subr.bf16.mxu0 %v6365_v39  ;;  %v6857_v35 = vld [vmem:[#allocation2 + $0x9c] sm:$0xff]   ;;  %700 = vst [vmem:[#allocation2 + $0xb8] sm:$0xf] %v526_v25  ;;  %v2057_v57 = vshll.u32 %v1786_v51, 16  ;;  %v2063_v60 = vshll.u32 %v1787_v53, 16  ;;  %v2067_v1 = vshrl.u32 %v1787_v53, 16 }
  0x79   : > { %5646 = vmatmul.mubr.bf16.gmra.mrb[24].mxu1 %v6857_v35  ;;  %v2041_v46 = vrot.slane %v2039_v37, 5  ;;  %v1785_v5 = vld [vmem:[#allocation2 + $0x74] sm:$0x1]  ;;  %v2037_v9 = vrot.slane %v2036_v55, 4  ;;  %v2056_v11 = vrot.slane %v2054_v54, 4  ;;  %v674_v23 = vsel %vm6518_vm4, %v459_v8, %v673_v13 }
  0x7a   : > { %5866 = vmatmul.mubr.bf16.gmra.mrb[4].mxu0 %v6716_v48  ;;  %v2049_v16 = vshll.u32 %v1785_v5, 16  ;;  %v6878_v17 = vrot.slane %v2063_v60, 5  ;;  %v2069_v20 = vrot.slane %v2067_v1, 4  ;;  %v1789_v14 = vld [vmem:[#allocation2 + $0x84] sm:$0xf]  ;;  %v527_v44 = vrot.slane %v6839_v2, 4 }
  0x7b   : > { %5869 = vmatprep.mubr.bf16.mxu0 %v6747_v28  ;;  %5898 = vmatpush3.bf16.msra.mxu0 %v6365_v39  ;;  %v667_v39 = vsel %vm6518_vm4, %v442_v31, %v666_v47  ;;  %v2046_v10 = vor.u32 %v2045_v52, %v2041_v46  ;;  %v2059_v31 = vrot.slane %v2057_v57, 5  ;;  %675 = vst [vmem:[#allocation2 + $0x8c] sm:$0x1] %v674_v23  ;;  %v1790_v41 = vld [vmem:[#allocation2 + $0x88] sm:$0xf]  ;;  %v2078_v43 = vshrl.u32 %v1789_v14, 16 }
  0x7c   : > { %5899 = vmatprep.subr.bf16.mxu0 %v6369_v6  ;;  %668 = vst [vmem:[#allocation2 + $0x80] sm:$0x1] %v667_v39  ;;  %v6880_v22 = vld [vmem:[#allocation2 + $0xa8] sm:$0xff]   ;;  %v2051_v24 = vrot.slane %v2049_v16, 5  ;;  %v2070_v30 = vor.u32 %v2069_v20, %v6878_v17  ;;  %v2042_v37 = vsel %vm6589_vm10, %v2037_v9, %v2041_v46  ;;  %v2081_v8 = vshll.u32 %v1789_v14, 16  ;;  %v6375_v52 = vld [vmem:[%s7412_s1 + $0xb0] sm:$0xff]  }
  0x7d   : > { %v2047_v3 = vrot.slane %v2046_v10, 4  ;;  %v2060_v25 = vor.u32 %v2059_v31, %v2056_v11  ;;  %5649 = vmatprep.mubr.bf16.mxu1 %v6880_v22  ;;  %v2087_v55 = vshll.u32 %v1790_v41, 16  ;;  %v6408_v39 = vld [vmem:[#allocation2 + $0xc] sm:$0xff]   ;;  %v2080_v54 = vrot.slane %v2078_v43, 4  ;;  %v680_v10 = vld [vmem:[#allocation2 + $0x98] sm:$0x1] }
  0x7e   : > { %v2071_v53 = vrot.slane %v2070_v30, 4  ;;  %v2083_v57 = vrot.slane %v2081_v8, 5  ;;  %v2091_v60 = vshrl.u32 %v1790_v41, 16  ;;  %v1792_v11 = vld [vmem:[#allocation2 + $0x90] sm:$0xf]  ;;  %v681_v31 = vsel %vm6518_vm4, %v476_v38, %v680_v10 }
  0x7f   : > { %5900 = vmatpush3.bf16.msra.mxu0 %v6369_v6  ;;  %v6885_v6 = vld [vmem:[#allocation2 + $0xb4] sm:$0xff]   ;;  %v2052_v47 = vsel %vm6589_vm10, %v2047_v3, %v2051_v24  ;;  %v2061_v51 = vrot.slane %v2060_v25, 4  ;;  %v2102_v3 = vshrl.u32 %v1792_v11, 16  ;;  %682 = vst [vmem:[#allocation2 + $0x98] sm:$0x1] %v681_v31  ;;  %v2105_v14 = vshll.u32 %v1792_v11, 16 }
  0x80   : > { %5901 = vmatprep.subr.bf16.mxu0 %v6371_v36  ;;  %v6899_v1 = vcombine.low %v2042_v37, %v2052_v47  ;;  %v2084_v13 = vor.u32 %v2083_v57, %v2080_v54  ;;  %v2093_v16 = vrot.slane %v2091_v60, 4  ;;  %v1793_v20 = vld [vmem:[#allocation2 + $0x94] sm:$0xf]  ;;  %v687_v4 = vld [vmem:[#allocation2 + $0xa4] sm:$0x1]  ;;  %vm3392_vm12 = vcmask 1046532  }
  0x81   : > { %5650 = vmatmul.mubr.bf16.gmra.mrb[28].mxu1 %v6885_v6  ;;  %v2066_v5 = vsel %vm6589_vm10, %v2061_v51, %v6878_v17  ;;  %v2111_v24 = vshll.u32 %v1793_v20, 16  ;;  %v2115_v25 = vshrl.u32 %v1793_v20, 16  ;;  %v6372_v17 = vld [vmem:[%s7412_s1 + $0x188] sm:$0xff]   ;;  %v2104_v43 = vrot.slane %v2102_v3, 4  ;;  %v1796_v60 = vld [vmem:[#allocation2 + $0xa0] sm:$0xf]  ;;  %vm7034_vm13 = vmor %vm3391_vm11, %vm3392_vm12 }
  0x82   : > { %5870 = vmatmul.mubr.bf16.gmra.mrb[8].mxu0 %v6765_v62  ;;  %5669 = vmatprep.mubr.bf16.mxu1 %v6408_v39  ;;  %v1791_v30 = vld [vmem:[#allocation2 + $0x8c] sm:$0x1]  ;;  %v2085_v37 = vrot.slane %v2084_v13, 4  ;;  %v2107_v47 = vrot.slane %v2105_v14, 5  ;;  %v688_v11 = vsel %vm6518_vm4, %v493_v45, %v687_v4  ;;  %v2135_v18 = vshll.u32 %v1796_v60, 16  ;;  %v6941_v45 = vld [vmem:[%s7412_s1 + $0x140] sm:$0xff]  }
  0x83   : > { %5873 = vmatprep.mubr.bf16.mxu0 %v6782_v42  ;;  %5902 = vmatpush3.bf16.msra.mxu0 %v6371_v36  ;;  %v1788_v46 = vld [vmem:[#allocation2 + $0x80] sm:$0x1]  ;;  %v2089_v36 = vrot.slane %v2087_v55, 5  ;;  %v2097_v8 = vshll.u32 %v1791_v30, 16  ;;  %v6914_v51 = vrot.slane %v2111_v24, 5  ;;  %v2117_v57 = vrot.slane %v2115_v25, 4 }
  0x84   : > { %5903 = vmatprep.subr.bf16.mxu0 %v6373_v29  ;;  %v2073_v9 = vshll.u32 %v1788_v46, 16  ;;  %v1795_v55 = vld [vmem:[#allocation2 + $0x9c] sm:$0xf]  ;;  %v2108_v10 = vor.u32 %v2107_v47, %v2104_v43  ;;  %689 = vst [vmem:[#allocation2 + $0xa4] sm:$0x1] %v688_v11  ;;  %v2139_v20 = vshrl.u32 %v1796_v60, 16 }
  0x85   : > { %v2094_v41 = vor.u32 %v2093_v16, %v2089_v36  ;;  %v2090_v46 = vsel %vm6589_vm10, %v2085_v37, %v2089_v36  ;;  %v2126_v13 = vshrl.u32 %v1795_v55, 16  ;;  %v6933_v36 = vld [vmem:[%s7412_s1 + $0x190] sm:$0xff]   ;;  %v2118_v16 = vor.u32 %v2117_v57, %v6914_v51  ;;  %v1798_v3 = vld [vmem:[#allocation2 + $0xa8] sm:$0xf]  ;;  %v1799_v25 = vld [vmem:[#allocation2 + $0xac] sm:$0xf] }
  0x86   : > { %v2075_v23 = vrot.slane %v2073_v9, 5  ;;  %v6923_v9 = vld [vmem:[#allocation2 + $0x18] sm:$0xff]   ;;  %v2129_v31 = vshll.u32 %v1795_v55, 16  ;;  %v6954_v4 = vrot.slane %v2135_v18, 5  ;;  %v2141_v47 = vrot.slane %v2139_v20, 4  ;;  %v6972_v20 = vld [vmem:[#allocation2 + $0x30] sm:$0xff]  }
  0x87   : > { %5904 = vmatpush3.bf16.msra.mxu0 %v6373_v29  ;;  %v6377_v29 = vld [vmem:[%s7412_s1 + $0xb8] sm:$0xff]   ;;  %v2095_v54 = vrot.slane %v2094_v41, 4  ;;  %v2128_v14 = vrot.slane %v2126_v13, 4  ;;  %v2119_v41 = vrot.slane %v2118_v16, 4  ;;  %v2150_v56 = vshrl.u32 %v1798_v3, 16 }
  0x88   : > { %5905 = vmatprep.subr.bf16.mxu0 %v6375_v52  ;;  %v2076_v38 = vsel %vm6589_vm10, %v2071_v53, %v2075_v23  ;;  %v2099_v53 = vrot.slane %v2097_v8, 5  ;;  %v1794_v37 = vld [vmem:[#allocation2 + $0x98] sm:$0x1]  ;;  %v2131_v43 = vrot.slane %v2129_v31, 5  ;;  %v701_v57 = vld [vmem:[#allocation2 + $0xbc] sm:$0x1] }
  0x89   : > { %v6919_v39 = vcombine.low %v2066_v5, %v2076_v38  ;;  %5670 = vmatmul.mubr.bf16.vlgmr.msra.gmra.mrb[0].mxu1 %v6923_v9  ;;  %v694_v5 = vld [vmem:[#allocation2 + $0xb0] sm:$0x1]  ;;  %v2121_v8 = vshll.u32 %v1794_v37, 16  ;;  %v6376_v60 = vld [vmem:[%s7412_s1 + $0x198] sm:$0xff]  }
  0x8a   : > { %5874 = vmatmul.mubr.bf16.gmra.mrb[12].mxu0 %v6899_v1  ;;  %5702 = vmatpush3.bf16.msra.mxu1 %v6736_v12  ;;  %v2100_v23 = vsel %vm6589_vm10, %v2095_v54, %v2099_v53  ;;  %v2109_v12 = vrot.slane %v2108_v10, 4  ;;  %v695_v24 = vsel %vm6518_vm4, %v510_v59, %v694_v5  ;;  %v2132_v55 = vor.u32 %v2131_v43, %v2128_v14  ;;  %v1802_v11 = vld [vmem:[#allocation2 + $0xb8] sm:$0xf] }
  0x8b   : > { %5906 = vmatpush3.bf16.msra.mxu0 %v6375_v52  ;;  %5877 = vmatprep.mubr.bf16.mxu0 %v6919_v39  ;;  %v6945_v52 = vld [vmem:[#allocation2 + $0x24] sm:$0xff]   ;;  %v6952_v30 = vcombine.low %v2090_v46, %v2100_v23  ;;  %696 = vst [vmem:[#allocation2 + $0xb0] sm:$0x1] %v695_v24  ;;  %v2153_v59 = vshll.u32 %v1798_v3, 16  ;;  %v2159_v46 = vshll.u32 %v1799_v25, 16  ;;  %v2163_v54 = vshrl.u32 %v1799_v25, 16 }
  0x8c   : > { %5673 = vmatprep.mubr.bf16.mxu1 %v6945_v52  ;;  %5703 = vmatprep.subr.bf16.mxu1 %v6372_v17  ;;  %v2114_v38 = vsel %vm6589_vm10, %v2109_v12, %v6914_v51  ;;  %v2123_v53 = vrot.slane %v2121_v8, 5  ;;  %v2142_v51 = vor.u32 %v2141_v47, %v6954_v4  ;;  %v2152_v10 = vrot.slane %v2150_v56, 4  ;;  %v1797_v3 = vld [vmem:[#allocation2 + $0xa4] sm:$0x1]  ;;  %v268_v37 = vld [vmem:[%s6511_s15 + $0x78] sm:$0xf] }
  0x8d   : > { %5907 = vmatprep.subr.bf16.mxu0 %v6377_v29  ;;  %v2133_v13 = vrot.slane %v2132_v55, 4  ;;  %v2155_v5 = vrot.slane %v2153_v59, 5  ;;  %v2161_v16 = vrot.slane %v2159_v46, 5  ;;  %v2165_v31 = vrot.slane %v2163_v54, 4 }
  0x8e   : > { %5704 = vmatpush3.bf16.msra.mxu1 %v6372_v17  ;;  %v702_v17 = vsel %vm6518_vm4, %v527_v44, %v701_v57  ;;  %v2124_v18 = vsel %vm6589_vm10, %v2119_v41, %v2123_v53  ;;  %v2143_v2 = vrot.slane %v2142_v51, 4  ;;  %v2145_v24 = vshll.u32 %v1797_v3, 16  ;;  %v269_v57 = vld [vmem:[%s6511_s15 + $0x7c] sm:$0xf] }
  0x8f   : > { %5908 = vmatpush3.bf16.msra.mxu0 %v6377_v29  ;;  %5705 = vmatprep.subr.bf16.mxu1 %v6933_v36  ;;  %v1801_v29 = vld [vmem:[#allocation2 + $0xb4] sm:$0xf]  ;;  %703 = vst [vmem:[#allocation2 + $0xbc] sm:$0x1] %v702_v17  ;;  %v6975_v44 = vcombine.low %v2114_v38, %v2124_v18  ;;  %v2138_v14 = vsel %vm6589_vm10, %v2133_v13, %v6954_v4  ;;  %v2183_v56 = vshll.u32 %v1802_v11, 16  ;;  %v6378_v38 = vld [vmem:[%s7412_s1 + $0x1a0] sm:$0xff]  }
  0x90   : > { %5941 = vmatprep.subr.bf16.mxu0 %v6941_v45  ;;  %v2174_v23 = vshrl.u32 %v1801_v29, 16  ;;  %v2177_v12 = vshll.u32 %v1801_v29, 16  ;;  %v2156_v25 = vor.u32 %v2155_v5, %v2152_v10  ;;  %v2166_v43 = vor.u32 %v2165_v31, %v2161_v16  ;;  %v704_v13 = vld [vmem:[#allocation2 + $0xc0] sm:$0xf] }
  0x91   : > { %5674 = vmatmul.mubr.bf16.gmra.mrb[4].mxu1 %v6972_v20  ;;  %v2147_v4 = vrot.slane %v2145_v24, 5  ;;  %v2187_v59 = vshrl.u32 %v1802_v11, 16  ;;  %v2185_v54 = vrot.slane %v2183_v56, 5  ;;  %v529_v53 = vshrl.u32 %v268_v37, 16 }
  0x92   : > { %5878 = vmatmul.mubr.bf16.gmra.mrb[16].mxu0 %v6952_v30  ;;  %5677 = vmatprep.mubr.bf16.mxu1 %v6686_v63  ;;  %v1800_v41 = vld [vmem:[#allocation2 + $0xb0] sm:$0x1]  ;;  %v2176_v8 = vrot.slane %v2174_v23, 4  ;;  %v2179_v47 = vrot.slane %v2177_v12, 5  ;;  %v2157_v55 = vrot.slane %v2156_v25, 4  ;;  %v2167_v46 = vrot.slane %v2166_v43, 4 }
  0x93   : > { %5706 = vmatpush3.bf16.msra.mxu1 %v6933_v36  ;;  %5881 = vmatprep.mubr.bf16.mxu0 %v6975_v44  ;;  %v2169_v63 = vshll.u32 %v1800_v41, 16  ;;  %v2148_v51 = vsel %vm6589_vm10, %v2143_v2, %v2147_v4  ;;  %v2189_v29 = vrot.slane %v2187_v59, 4  ;;  %v531_v11 = vrot.slane %v529_v53, 7  ;;  %v6380_v23 = vld [vmem:[%s7412_s1 + $0x1a8] sm:$0xff]  }
  0x94   : > { %5707 = vmatprep.subr.bf16.mxu1 %v6376_v60  ;;  %v2180_v36 = vor.u32 %v2179_v47, %v2176_v8  ;;  %v2162_v10 = vsel %vm6589_vm10, %v2157_v55, %v2161_v16  ;;  %v6992_v5 = vcombine.low %v2138_v14, %v2148_v51  ;;  %v532_v3 = vshll.u32 %v268_v37, 16  ;;  %v1807_v25 = vld [vmem:[#allocation2 + $0xcc] sm:$0xf]  ;;  %v708_v43 = vld [vmem:[#allocation2 + $0xc8] sm:$0x1] }
  0x95   : > { %v2171_v17 = vrot.slane %v2169_v63, 5  ;;  %v2190_v12 = vor.u32 %v2189_v29, %v2185_v54  ;;  %v537_v24 = vshrl.u32 %v269_v57, 16  ;;  %v535_v41 = vrot.slane %v531_v11, 4  ;;  %v1808_v8 = vld [vmem:[#allocation2 + $0xd0] sm:$0xf] }
  0x96   : > { %v1803_v31 = vld [vmem:[#allocation2 + $0xbc] sm:$0x1]  ;;  %v2181_v18 = vrot.slane %v2180_v36, 4  ;;  %v534_v37 = vor.u32 %v532_v3, %v531_v11  ;;  %v540_v55 = vshll.u32 %v269_v57, 16  ;;  %v2225_v59 = vshll.u32 %v1807_v25, 16  ;;  %v6382_v36 = vld [vmem:[%s7412_s1 + $0x1b0] sm:$0xff]  }
  0x97   : > { %5708 = vmatpush3.bf16.msra.mxu1 %v6376_v60  ;;  %v2172_v2 = vsel %vm6589_vm10, %v2167_v46, %v2171_v17  ;;  %v2193_v16 = vshll.u32 %v1803_v31, 16  ;;  %v2191_v47 = vrot.slane %v2190_v12, 4  ;;  %v539_v4 = vrot.slane %v537_v24, 7  ;;  %v1809_v17 = vld [vmem:[#allocation2 + $0xd4] sm:$0x1]  ;;  %v7029_v3 = vld [vmem:[%s7412_s1 + $0x40] sm:$0xff]  }
  0x98   : > { %5709 = vmatprep.subr.bf16.mxu1 %v6378_v38  ;;  %v7000_v60 = vcombine.low %v2162_v10, %v2172_v2  ;;  %v2186_v14 = vsel %vm6589_vm10, %v2181_v18, %v2185_v54  ;;  %v705_v63 = vsel %vm6533_vm7, %v534_v37, %v704_v13  ;;  %v2231_v46 = vshll.u32 %v1808_v8, 16  ;;  %v6385_v10 = vld [vmem:[%s7412_s1 + $0x1b8] sm:$0xff]   ;;  %v3283_v24 = vld [vmem:[#allocation2] sm:$0xe] }
  0x99   : > { %5678 = vmatmul.mubr.bf16.gmra.mrb[8].mxu1 %v6703_v33  ;;  %v2195_v56 = vrot.slane %v2193_v16, 5  ;;  %v2222_v33 = vshrl.u32 %v1807_v25, 16  ;;  %v544_v53 = vrot.slane %v539_v4, 4  ;;  %706 = vst [vmem:[#allocation2 + $0xc0] sm:$0xf] %v705_v63  ;;  %v2227_v13 = vrot.slane %v2225_v59, 5 }
  0x9a   : > { %5882 = vmatmul.mubr.bf16.gmra.mrb[20].mxu0 %v6992_v5  ;;  %5681 = vmatprep.mubr.bf16.mxu1 %v6740_v15  ;;  %v542_v15 = vor.u32 %v540_v55, %v539_v4  ;;  %v2233_v31 = vrot.slane %v2231_v46, 5  ;;  %v2241_v11 = vshll.u32 %v1809_v17, 16  ;;  %v3285_v25 = vld [vmem:[#allocation2 + $0x8] sm:$0x1]  ;;  %v3287_v59 = vld [vmem:[#allocation2 + $0x10] sm:$0xf] }
  0x9b   : > { %5710 = vmatpush3.bf16.msra.mxu1 %v6378_v38  ;;  %5885 = vmatprep.mubr.bf16.mxu0 %v7000_v60  ;;  %v2196_v54 = vsel %vm6589_vm10, %v2191_v47, %v2195_v56  ;;  %v2235_v38 = vshrl.u32 %v1808_v8, 16  ;;  %v709_v51 = vsel %vm6518_vm4, %v544_v53, %v708_v43  ;;  %v2224_v29 = vrot.slane %v2222_v33, 4  ;;  %v3286_v17 = vld [vmem:[#allocation2 + $0xc] sm:$0xe] }
  0x9c   : > { %5711 = vmatprep.subr.bf16.mxu1 %v6380_v23  ;;  %v7014_v57 = vcombine.low %v2186_v14, %v2196_v54  ;;  %v543_v26 = vsel %vm6525_vm5, %v535_v41, %v542_v15  ;;  %710 = vst [vmem:[#allocation2 + $0xc8] sm:$0x1] %v709_v51  ;;  %v5119_v56 = vrot.slane %v3283_v24, 9  ;;  %v2243_v33 = vrot.slane %v2241_v11, 5 }
  0x9d   : > { %707 = vst [vmem:[#allocation2 + $0xc4] sm:$0xf] %v543_v26  ;;  %v2237_v18 = vrot.slane %v2235_v38, 4  ;;  %v2228_v12 = vor.u32 %v2227_v13, %v2224_v29  ;;  %v3399_v53 = vrot.slane %v3285_v25, 5  ;;  %v3290_v26 = vld [vmem:[#allocation2 + $0x1c] sm:$0xf] }
  0x9e   : > { %v5120_v24 = vrot.slane %v3286_v17, 9 }
  0x9f   : > { %5712 = vmatpush3.bf16.msra.mxu1 %v6380_v23  ;;  %v2238_v16 = vor.u32 %v2237_v18, %v2233_v31  ;;  %v2229_v55 = vrot.slane %v2228_v12, 4  ;;  %v3291_v12 = vld [vmem:[#allocation2 + $0x20] sm:$0x1] }
  0xa0   : > { %5713 = vmatprep.subr.bf16.mxu1 %v6382_v36  ;;  %v1804_v21 = vld [vmem:[#allocation2 + $0xc0] sm:$0xf] }
  0xa1   : > { %5682 = vmatmul.mubr.bf16.gmra.mrb[12].mxu1 %v6758_v49  ;;  %v2198_v23 = vshrl.u32 %v1804_v21, 16  ;;  %v2201_v2 = vshll.u32 %v1804_v21, 16  ;;  %v3396_v49 = vrot.slane %v3284_v19, 5  ;;  %v2239_v63 = vrot.slane %v2238_v16, 4  ;;  %v3288_v19 = vld [vmem:[#allocation2 + $0x14] sm:$0x1] }
  0xa2   : > { %5886 = vmatmul.mubr.bf16.gmra.mrb[24].mxu0 %v7014_v57  ;;  %5685 = vmatprep.mubr.bf16.mxu1 %v6789_v50  ;;  %v2234_v29 = vsel %vm6589_vm10, %v2229_v55, %v2233_v31  ;;  %v3403_v21 = vrot.slane %v3287_v59, 5  ;;  %v3406_v25 = vrot.slane %v3288_v19, 5  ;;  %v3302_v19 = vld [vmem:[#allocation2 + $0x4c] sm:$0xf] }
  0xa3   : > { %5714 = vmatpush3.bf16.msra.mxu1 %v6382_v36  ;;  %v1806_v14 = vld [vmem:[#allocation2 + $0xc8] sm:$0x1]  ;;  %v2200_v37 = vrot.slane %v2198_v23, 4  ;;  %v2203_v41 = vrot.slane %v2201_v2, 5  ;;  %v3398_v15 = vrot.slane %v3396_v49, 4  ;;  %v2244_v13 = vsel %vm6589_vm10, %v2239_v63, %v2243_v33 }
  0xa4   : > { %5715 = vmatprep.subr.bf16.mxu1 %v6385_v10  ;;  %v1805_v50 = vld [vmem:[#allocation2 + $0xc4] sm:$0xf]  ;;  %v2217_v47 = vshll.u32 %v1806_v14, 16  ;;  %v3397_v18 = vsel %vm7034_vm13, %v5119_v56, %v3396_v49  ;;  %v3289_v23 = vld [vmem:[#allocation2 + $0x18] sm:$0xe]  ;;  %v3410_v2 = vrot.slane %v3290_v26, 5  ;;  %v5110_v16 = vcombine.low %v2234_v29, %v2244_v13 }
  0xa5   : > { %v2207_v43 = vshll.u32 %v1805_v50, 16  ;;  %v2211_v8 = vshrl.u32 %v1805_v50, 16  ;;  %v2204_v4 = vor.u32 %v2203_v41, %v2200_v37  ;;  %v3405_v14 = vrot.slane %v3403_v21, 4  ;;  %v3293_v41 = vld [vmem:[#allocation2 + $0x28] sm:$0xf] }
  0xa6   : > { %v5121_v37 = vrot.slane %v3289_v23, 9  ;;  %v3292_v56 = vld [vmem:[#allocation2 + $0x24] sm:$0xe]  ;;  %v3404_v55 = vsel %vm7034_vm13, %v5120_v24, %v3403_v21  ;;  %v3294_v33 = vld [vmem:[#allocation2 + $0x2c] sm:$0x1] }
  0xa7   : > { %5716 = vmatpush3.bf16.msra.mxu1 %v6385_v10  ;;  %v2209_v46 = vrot.slane %v2207_v43, 5  ;;  %v2213_v36 = vrot.slane %v2211_v8, 4  ;;  %v2205_v38 = vrot.slane %v2204_v4, 4  ;;  %v2219_v10 = vrot.slane %v2217_v47, 5  ;;  %v3296_v47 = vld [vmem:[#allocation2 + $0x34] sm:$0xf] }
  0xa8   : > { %5749 = vmatprep.subr.bf16.mxu1 %v7029_v3  ;;  %v3412_v43 = vrot.slane %v3410_v2, 4  ;;  %v3413_v8 = vrot.slane %v3291_v12, 5  ;;  %v3417_v4 = vrot.slane %v3293_v41, 5  ;;  %v3407_v63 = vsel %vm7034_vm13, %v3405_v14, %v3406_v25  ;;  %v3299_v29 = vld [vmem:[#allocation2 + $0x40] sm:$0xf]  ;;  %v6383_v12 = vld [vmem:[%s7412_s1 + $0x150] sm:$0xff]  }
  0xa9   : > { %5686 = vmatmul.mubr.bf16.gmra.mrb[16].mxu1 %v6819_v32  ;;  %v2214_v51 = vor.u32 %v2213_v36, %v2209_v46  ;;  %v2210_v32 = vsel %vm6589_vm10, %v2205_v38, %v2209_v46  ;;  %v3411_v59 = vsel %vm7034_vm13, %v5121_v37, %v3410_v2  ;;  %v3295_v46 = vld [vmem:[#allocation2 + $0x30] sm:$0xe]  ;;  %v3297_v36 = vld [vmem:[#allocation2 + $0x38] sm:$0x1]  ;;  %v3420_v26 = vrot.slane %v3294_v33, 5 }
  0xaa   : > { %5689 = vmatprep.mubr.bf16.mxu1 %v6822_v34  ;;  %v3400_v34 = vsel %vm7034_vm13, %v3398_v15, %v3399_v53  ;;  %v7065_v15 = vcombine.low %v3404_v55, %v3407_v63  ;;  %v5122_v53 = vrot.slane %v3292_v56, 9  ;;  %v3419_v38 = vrot.slane %v3417_v4, 4  ;;  %v3300_v23 = vld [vmem:[#allocation2 + $0x44] sm:$0x1]  ;;  %v3301_v2 = vld [vmem:[#allocation2 + $0x48] sm:$0xe] }
  0xab   : > { %v2215_v11 = vrot.slane %v2214_v51, 4  ;;  %v5153_v49 = vcombine.low %v3397_v18, %v3400_v34  ;;  %v5123_v17 = vrot.slane %v3295_v46, 9  ;;  %v3427_v18 = vrot.slane %v3297_v36, 5  ;;  %v3298_v34 = vld [vmem:[#allocation2 + $0x3c] sm:$0xe] }
  0xac   : > { %v3418_v21 = vsel %vm7034_vm13, %v5122_v53, %v3417_v4  ;;  %v3303_v24 = vld [vmem:[#allocation2 + $0x50] sm:$0x1]  ;;  %v5124_v25 = vrot.slane %v3298_v34, 9  ;;  %v3434_v14 = vrot.slane %v3300_v23, 5  ;;  %v5125_v37 = vrot.slane %v3301_v2, 9  ;;  %v6390_v34 = vld [vmem:[%s7412_s1 + $0x168] sm:$0xff]  }
  0xad   : > { %v2220_v31 = vsel %vm6589_vm10, %v2215_v11, %v2219_v10  ;;  %v6381_v10 = vld [vmem:[%s7412_s1 + $0x148] sm:$0xff]   ;;  %v3431_v11 = vrot.slane %v3299_v29, 5  ;;  %v3305_v41 = vld [vmem:[#allocation2 + $0x58] sm:$0xf]  ;;  %v3441_v4 = vrot.slane %v3303_v24, 5 }
  0xae   : > { %v7052_v50 = vcombine.low %v2210_v32, %v2220_v31  ;;  %v3421_v32 = vsel %vm7034_vm13, %v3419_v38, %v3420_v26  ;;  %v3438_v31 = vrot.slane %v3302_v19, 5  ;;  %v3304_v55 = vld [vmem:[#allocation2 + $0x54] sm:$0xe]  ;;  %v3306_v63 = vld [vmem:[#allocation2 + $0x5c] sm:$0x1]  ;;  %v3445_v33 = vrot.slane %v3305_v41, 5 }
  0xaf   : > { %v3432_v46 = vsel %vm7034_vm13, %v5124_v25, %v3431_v11  ;;  %v3309_v36 = vld [vmem:[#allocation2 + $0x68] sm:$0x1]  ;;  %v5126_v38 = vrot.slane %v3304_v55, 9  ;;  %v3448_v26 = vrot.slane %v3306_v63, 5  ;;  %v3314_v19 = vld [vmem:[#allocation2 + $0x7c] sm:$0xf] }
  0xb0   : > { %5889 = vmatprep.mubr.bf16.mxu0 %v7052_v50  ;;  %v3440_v56 = vrot.slane %v3438_v31, 4  ;;  %v3439_v53 = vsel %vm7034_vm13, %v5125_v37, %v3438_v31  ;;  %v3447_v29 = vrot.slane %v3445_v33, 4  ;;  %v3312_v31 = vld [vmem:[#allocation2 + $0x74] sm:$0x1]  ;;  %v3313_v24 = vld [vmem:[#allocation2 + $0x78] sm:$0xe] }
  0xb1   : > { %5690 = vmatmul.mubr.bf16.gmra.mrb[20].mxu1 %v6847_v7  ;;  %5890 = vmatmul.mubr.bf16.gmra.mrb[28].mxu0 %v5110_v16  ;;  %v3414_v7 = vsel %vm7034_vm13, %v3412_v43, %v3413_v8  ;;  %v7088_v16 = vld [vmem:[#allocation2 + $0xc0] sm:$0xff]   ;;  %v6386_v43 = vld [vmem:[%s7412_s1 + $0x158] sm:$0xff]   ;;  %v3446_v25 = vsel %vm7034_vm13, %v5126_v38, %v3445_v33  ;;  %v5129_v63 = vrot.slane %v3313_v24, 9 }
  0xb2   : > { %5693 = vmatprep.mubr.bf16.mxu1 %v6857_v35  ;;  %5909 = vmatprep.mubr.bf16.mxu0 %v5153_v49  ;;  %v3424_v35 = vrot.slane %v3296_v47, 5  ;;  %v7067_v51 = vcombine.low %v3411_v59, %v3414_v7  ;;  %v3433_v49 = vrot.slane %v3431_v11, 4  ;;  %v3308_v47 = vld [vmem:[#allocation2 + $0x64] sm:$0xf]  ;;  %v3307_v59 = vld [vmem:[#allocation2 + $0x60] sm:$0xe] }
  0xb3   : > { %v3452_v7 = vrot.slane %v3308_v47, 5  ;;  %v3455_v11 = vrot.slane %v3309_v36, 5  ;;  %v6393_v47 = vld [vmem:[%s7412_s1 + $0x58] sm:$0xff]   ;;  %v3320_v36 = vld [vmem:[#allocation2 + $0x94] sm:$0xf] }
  0xb4   : > { %v3426_v13 = vrot.slane %v3424_v35, 4 }
  0xb9   : > { %5694 = vmatmul.mubr.bf16.gmra.mrb[24].mxu1 %v6880_v22  ;;  %5910 = vmatmul.mubr.bf16.vlgmr.msra.gmra.mrb[0].mxu0 %v7065_v15  ;;  %v3425_v22 = vsel %vm7034_vm13, %v5123_v17, %v3424_v35  ;;  %v3435_v35 = vsel %vm7034_vm13, %v3433_v49, %v3434_v14  ;;  %v6389_v17 = vld [vmem:[%s7412_s1 + $0x48] sm:$0xff]   ;;  %v3449_v49 = vsel %vm7034_vm13, %v3447_v29, %v3448_v26  ;;  %v3315_v14 = vld [vmem:[#allocation2 + $0x80] sm:$0x1]  ;;  %v3316_v26 = vld [vmem:[#allocation2 + $0x84] sm:$0xe] }
  0xba   : > { %5697 = vmatprep.mubr.bf16.mxu1 %v6885_v6  ;;  %5942 = vmatpush3.bf16.msra.mxu0 %v6941_v45  ;;  %v3428_v6 = vsel %vm7034_vm13, %v3426_v13, %v3427_v18  ;;  %v7090_v45 = vcombine.low %v3418_v21, %v3421_v32  ;;  %v5127_v13 = vrot.slane %v3307_v59, 9  ;;  %v3311_v18 = vld [vmem:[#allocation2 + $0x70] sm:$0xf]  ;;  %v7115_v21 = vcombine.low %v3432_v46, %v3435_v35  ;;  %v3317_v46 = vld [vmem:[#allocation2 + $0x88] sm:$0xf] }
  0xbb   : > { %5913 = vmatprep.mubr.bf16.mxu0 %v7067_v51  ;;  %5943 = vmatprep.subr.bf16.mxu0 %v6381_v10  ;;  %v7095_v8 = vcombine.low %v3425_v22, %v3428_v6  ;;  %v3454_v32 = vrot.slane %v3452_v7, 4  ;;  %v3459_v2 = vrot.slane %v3311_v18, 5  ;;  %v3466_v22 = vrot.slane %v3314_v19, 5  ;;  %v6391_v6 = vld [vmem:[%s7412_s1 + $0x50] sm:$0xff]   ;;  %v6413_v35 = vld [vmem:[#allocation2 + $0x48] sm:$0xff]   ;;  %v7167_v19 = vld [vmem:[%s7412_s1 + $0x200] sm:$0xff]  }
  0xbc   : > { %v7141_v37 = vcombine.low %v3446_v25, %v3449_v49  ;;  %v3469_v59 = vrot.slane %v3315_v14, 5  ;;  %v3480_v18 = vrot.slane %v3320_v36, 5  ;;  %v6414_v49 = vld [vmem:[#allocation2 + $0x54] sm:$0xff]   ;;  %v3326_v14 = vld [vmem:[#allocation2 + $0xac] sm:$0xf] }
  0xbd   : > { %v3461_v55 = vrot.slane %v3459_v2, 4  ;;  %v3468_v33 = vrot.slane %v3466_v22, 4 }
  0xbe   : > { %5944 = vmatpush3.bf16.msra.mxu0 %v6381_v10  ;;  %v6388_v10 = vld [vmem:[%s7412_s1 + $0x160] sm:$0xff]  }
  0xbf   : > { %5945 = vmatprep.subr.bf16.mxu0 %v6383_v12  ;;  %v3470_v29 = vsel %vm7034_vm13, %v3468_v33, %v3469_v59  ;;  %v3322_v33 = vld [vmem:[#allocation2 + $0x9c] sm:$0xe]  ;;  %v3324_v59 = vld [vmem:[#allocation2 + $0xa4] sm:$0x1] }
  0xc1   : > { %5698 = vmatmul.mubr.bf16.gmra.mrb[28].mxu1 %v7088_v16  ;;  %5914 = vmatmul.mubr.bf16.gmra.mrb[4].mxu0 %v7090_v45 }
  0xc2   : > { %5717 = vmatprep.mubr.bf16.mxu1 %v6923_v9  ;;  %5917 = vmatprep.mubr.bf16.mxu0 %v7095_v8  ;;  %v3442_v9 = vsel %vm7034_vm13, %v3440_v56, %v3441_v4  ;;  %v6394_v56 = vld [vmem:[%s7412_s1 + $0x178] sm:$0xff]  }
  0xc3   : > { %5946 = vmatpush3.bf16.msra.mxu0 %v6383_v12  ;;  %v7120_v23 = vcombine.low %v3439_v53, %v3442_v9  ;;  %v3310_v12 = vld [vmem:[#allocation2 + $0x6c] sm:$0xe]  ;;  %v6395_v53 = vld [vmem:[%s7412_s1 + $0x60] sm:$0xff]  }
  0xc4   : > { %5947 = vmatprep.subr.bf16.mxu0 %v6386_v43  ;;  %v5128_v41 = vrot.slane %v3310_v12, 9 }
  0xc6   : > { %v3460_v9 = vsel %vm7034_vm13, %v5128_v41, %v3459_v2  ;;  %v6397_v2 = vld [vmem:[%s7412_s1 + $0x68] sm:$0xff]   ;;  %v6399_v41 = vld [vmem:[%s7412_s1 + $0x70] sm:$0xff]  }
  0xc7   : > { %5948 = vmatpush3.bf16.msra.mxu0 %v6386_v43  ;;  %v3462_v43 = vrot.slane %v3312_v31, 5 }
  0xc8   : > { %5949 = vmatprep.subr.bf16.mxu0 %v6388_v10 }
  0xc9   : > { %5718 = vmatmul.mubr.bf16.vlgmr.msra.gmra.mrb[0].mxu1 %v6945_v52  ;;  %5918 = vmatmul.mubr.bf16.gmra.mrb[8].mxu0 %v7115_v21  ;;  %v6392_v52 = vld [vmem:[%s7412_s1 + $0x170] sm:$0xff]   ;;  %v3463_v38 = vsel %vm7034_vm13, %v3461_v55, %v3462_v43 }
  0xca   : > { %5750 = vmatpush3.bf16.msra.mxu1 %v7029_v3  ;;  %5721 = vmatprep.mubr.bf16.mxu1 %v6972_v20  ;;  %v3453_v20 = vsel %vm7034_vm13, %v5127_v13, %v3452_v7  ;;  %v3456_v3 = vsel %vm7034_vm13, %v3454_v32, %v3455_v11  ;;  %v6412_v7 = vld [vmem:[#allocation2 + $0x3c] sm:$0xff]   ;;  %v3318_v13 = vld [vmem:[#allocation2 + $0x8c] sm:$0x1]  ;;  %v3319_v32 = vld [vmem:[#allocation2 + $0x90] sm:$0xe] }
  0xcb   : > { %5751 = vmatprep.subr.bf16.mxu1 %v6389_v17  ;;  %5921 = vmatprep.mubr.bf16.mxu0 %v7120_v23  ;;  %v7149_v4 = vcombine.low %v3453_v20, %v3456_v3  ;;  %v3321_v11 = vld [vmem:[#allocation2 + $0x98] sm:$0x1]  ;;  %v3476_v31 = vrot.slane %v3318_v13, 5  ;;  %v5131_v24 = vrot.slane %v3319_v32, 9  ;;  %v3323_v20 = vld [vmem:[#allocation2 + $0xa0] sm:$0xf] }
  0xcc   : > { %5950 = vmatpush3.bf16.msra.mxu0 %v6388_v10  ;;  %v3473_v10 = vrot.slane %v3317_v46, 5  ;;  %v3483_v25 = vrot.slane %v3321_v11, 5  ;;  %v6415_v3 = vld [vmem:[#allocation2 + $0x60] sm:$0xff]   ;;  %v3325_v46 = vld [vmem:[#allocation2 + $0xa8] sm:$0xe]  ;;  %v6416_v32 = vld [vmem:[#allocation2 + $0x6c] sm:$0xff]  }
  0xcd   : > { %5951 = vmatprep.subr.bf16.mxu0 %v6390_v34  ;;  %v3481_v55 = vsel %vm7034_vm13, %v5131_v24, %v3480_v18 }
  0xce   : > { %5752 = vmatpush3.bf16.msra.mxu1 %v6389_v17  ;;  %v3467_v17 = vsel %vm7034_vm13, %v5129_v63, %v3466_v22  ;;  %v3475_v12 = vrot.slane %v3473_v10, 4 }
  0xcf   : > { %5753 = vmatprep.subr.bf16.mxu1 %v6391_v6  ;;  %v7174_v22 = vcombine.low %v3467_v17, %v3470_v29  ;;  %v3490_v17 = vrot.slane %v3324_v59, 5  ;;  %v5133_v29 = vrot.slane %v3325_v46, 9  ;;  %v6420_v59 = vld [vmem:[#allocation2 + $0x90] sm:$0xff]  }
  0xd0   : > { %5952 = vmatpush3.bf16.msra.mxu0 %v6390_v34  ;;  %v7169_v34 = vcombine.low %v3460_v9, %v3463_v38  ;;  %v6402_v9 = vld [vmem:[%s7412_s1 + $0x78] sm:$0xff]  }
  0xd1   : > { %5722 = vmatmul.mubr.bf16.gmra.mrb[4].mxu1 %v6412_v7  ;;  %5953 = vmatprep.subr.bf16.mxu0 %v6392_v52  ;;  %v3494_v7 = vrot.slane %v3326_v14, 5 }
  0xd2   : > { %5725 = vmatprep.mubr.bf16.mxu1 %v6413_v35  ;;  %5754 = vmatpush3.bf16.msra.mxu1 %v6391_v6  ;;  %v5130_v6 = vrot.slane %v3316_v26, 9  ;;  %v3327_v35 = vld [vmem:[#allocation2 + $0xb0] sm:$0x1]  ;;  %v5132_v26 = vrot.slane %v3322_v33, 9 }
  0xd3   : > { %5922 = vmatmul.mubr.bf16.gmra.mrb[12].mxu0 %v7141_v37  ;;  %5755 = vmatprep.subr.bf16.mxu1 %v6393_v47  ;;  %v3496_v13 = vrot.slane %v3494_v7, 4 }
  0xd4   : > { %5925 = vmatprep.mubr.bf16.mxu0 %v7149_v4  ;;  %5954 = vmatpush3.bf16.msra.mxu0 %v6392_v52  ;;  %v3482_v52 = vrot.slane %v3480_v18, 4  ;;  %v3474_v43 = vsel %vm7034_vm13, %v5130_v6, %v3473_v10  ;;  %v3497_v18 = vrot.slane %v3327_v35, 5  ;;  %v3328_v6 = vld [vmem:[#allocation2 + $0xb4] sm:$0xe] }
  0xd5   : > { %5955 = vmatprep.subr.bf16.mxu0 %v6394_v56 }
  0xd6   : > { %5756 = vmatpush3.bf16.msra.mxu1 %v6393_v47  ;;  %v3477_v47 = vsel %vm7034_vm13, %v3475_v12, %v3476_v31  ;;  %v3484_v63 = vsel %vm7034_vm13, %v3482_v52, %v3483_v25  ;;  %v3330_v12 = vld [vmem:[#allocation2 + $0xbc] sm:$0x1]  ;;  %v3495_v52 = vsel %vm7034_vm13, %v5133_v29, %v3494_v7  ;;  %v3498_v25 = vsel %vm7034_vm13, %v3496_v13, %v3497_v18  ;;  %v1758_v13 = vld [vmem:[#allocation2 + $0x8] sm:$0x1] }
  0xd7   : > { %5757 = vmatprep.subr.bf16.mxu1 %v6395_v53  ;;  %v7190_v36 = vcombine.low %v3474_v43, %v3477_v47  ;;  %v7195_v38 = vcombine.low %v3481_v55, %v3484_v63  ;;  %v7212_v43 = vcombine.low %v3495_v52, %v3498_v25  ;;  %v1756_v47 = vld [vmem:[#allocation2] sm:$0xf]  ;;  %v6419_v55 = vld [vmem:[#allocation2 + $0x84] sm:$0xff]   ;;  %v6423_v25 = vld [vmem:[#allocation2 + $0xb4] sm:$0xff]  }
  0xd8   : > { %5956 = vmatpush3.bf16.msra.mxu0 %v6394_v56  ;;  %v3487_v56 = vrot.slane %v3323_v20, 5  ;;  %v1814_v7 = vshrl.u32 %v1756_v47, 16  ;;  %v1817_v46 = vshll.u32 %v1756_v47, 16  ;;  %v6421_v18 = vld [vmem:[#allocation2 + $0x9c] sm:$0xff]   ;;  %v6398_v52 = vld [vmem:[%s7412_s1 + $0x208] sm:$0xff]  }
  0xd9   : > { %5726 = vmatmul.mubr.bf16.gmra.mrb[8].mxu1 %v6414_v49  ;;  %5989 = vmatprep.subr.bf16.mxu0 %v7167_v19  ;;  %v5134_v49 = vrot.slane %v3328_v6, 9  ;;  %v1833_v6 = vshll.u32 %v1758_v13, 16 }
  0xda   : > { %5729 = vmatprep.mubr.bf16.mxu1 %v6415_v3  ;;  %5758 = vmatpush3.bf16.msra.mxu1 %v6395_v53  ;;  %v3329_v53 = vld [vmem:[#allocation2 + $0xb8] sm:$0xf]  ;;  %v3489_v10 = vrot.slane %v3487_v56, 4  ;;  %v3488_v31 = vsel %vm7034_vm13, %v5132_v26, %v3487_v56  ;;  %v3504_v3 = vrot.slane %v3330_v12, 5  ;;  %v1757_v56 = vld [vmem:[#allocation2 + $0x4] sm:$0xf] }
  0xdb   : > { %5926 = vmatmul.mubr.bf16.gmra.mrb[16].mxu0 %v7169_v34  ;;  %5759 = vmatprep.subr.bf16.mxu1 %v6397_v2  ;;  %v3501_v11 = vrot.slane %v3329_v53, 5  ;;  %v1823_v35 = vshll.u32 %v1757_v56, 16  ;;  %v1827_v53 = vshrl.u32 %v1757_v56, 16  ;;  %v1816_v26 = vrot.slane %v1814_v7, 4  ;;  %v6424_v56 = vld [vmem:[%s7412_s1 + $0x108] sm:$0xff]  }
  0xdc   : > { %5929 = vmatprep.mubr.bf16.mxu0 %v7174_v22  ;;  %v3491_v24 = vsel %vm7034_vm13, %v3489_v10, %v3490_v17  ;;  %v1819_v10 = vrot.slane %v1817_v46, 5  ;;  %v3333_v7 = vld [vmem:[#allocation2 + $0xc8] sm:$0x1] }
  0xdd   : > { %v3503_v20 = vrot.slane %v3501_v11, 4  ;;  %v7207_v14 = vcombine.low %v3488_v31, %v3491_v24  ;;  %v3502_v63 = vsel %vm7034_vm13, %v5134_v49, %v3501_v11  ;;  %v1825_v17 = vrot.slane %v1823_v35, 5 }
  0xde   : > { %5760 = vmatpush3.bf16.msra.mxu1 %v6397_v2  ;;  %v6417_v2 = vld [vmem:[#allocation2 + $0x78] sm:$0xff]   ;;  %v1829_v29 = vrot.slane %v1827_v53, 4  ;;  %v1820_v11 = vor.u32 %v1819_v10, %v1816_v26  ;;  %v1835_v24 = vrot.slane %v1833_v6, 5 }
  0xdf   : > { %5761 = vmatprep.subr.bf16.mxu1 %v6399_v41  ;;  %v3505_v33 = vsel %vm7034_vm13, %v3503_v20, %v3504_v3  ;;  %v6401_v3 = vld [vmem:[#allocation2 + $0xcc] sm:$0xff]  }
  0xe0   : > { %v1821_v12 = vrot.slane %v1820_v11, 4 }
  0xe1   : > { %5730 = vmatmul.mubr.bf16.gmra.mrb[12].mxu1 %v6416_v32  ;;  %v6422_v32 = vld [vmem:[#allocation2 + $0xa8] sm:$0xff]  }
  0xe2   : > { %5733 = vmatprep.mubr.bf16.mxu1 %v6417_v2  ;;  %5762 = vmatpush3.bf16.msra.mxu1 %v6399_v41  ;;  %v6418_v41 = vld [vmem:[%s7412_s1 + $0x100] sm:$0xff]   ;;  %v1830_v2 = vor.u32 %v1829_v29, %v1825_v17  ;;  %v1826_v49 = vsel %vm6589_vm10, %v1821_v12, %v1825_v17 }
  0xe3   : > { %5930 = vmatmul.mubr.bf16.gmra.mrb[20].mxu0 %v7190_v36  ;;  %5763 = vmatprep.subr.bf16.mxu1 %v6402_v9 }
  0xe4   : > { %5933 = vmatprep.mubr.bf16.mxu0 %v7195_v38  ;;  %v1831_v31 = vrot.slane %v1830_v2, 4 }
  0xe6   : > { %5764 = vmatpush3.bf16.msra.mxu1 %v6402_v9  ;;  %v7220_v9 = vcombine.low %v3502_v63, %v3505_v33  ;;  %v1836_v20 = vsel %vm6589_vm10, %v1831_v31, %v1835_v24  ;;  %v6429_v63 = vld [vmem:[%s7412_s1 + $0x130] sm:$0xff]  }
  0xe7   : > { %6037 = vmatprep.subr.bf16.mxu1 %v6418_v41  ;;  %v5045_v47 = vcombine.low %v1826_v49, %v1836_v20 }
  0xe9   : > { %5734 = vmatmul.mubr.bf16.gmra.mrb[16].mxu1 %v6419_v55  ;;  %v6426_v55 = vld [vmem:[%s7412_s1 + $0x118] sm:$0xff]  }
  0xea   : > { %5737 = vmatprep.mubr.bf16.mxu1 %v6420_v59  ;;  %v3331_v59 = vld [vmem:[#allocation2 + $0xc0] sm:$0xe] }
  0xeb   : > { %5934 = vmatmul.mubr.bf16.gmra.mrb[24].mxu0 %v7207_v14  ;;  %v5135_v46 = vrot.slane %v3331_v59, 9 }
  0xec   : > { %5937 = vmatprep.mubr.bf16.mxu0 %v7212_v43 }
  0xf1   : > { %5738 = vmatmul.mubr.bf16.gmra.mrb[20].mxu1 %v6421_v18 }
  0xf2   : > { %5741 = vmatprep.mubr.bf16.mxu1 %v6422_v32 }
  0xf3   : > { %5938 = vmatmul.mubr.bf16.gmra.mrb[28].mxu0 %v7220_v9 }
  0xf4   : > { %5957 = vmatprep.mubr.bf16.mxu0 %v7065_v15  ;;  %v6400_v15 = vld [vmem:[%s7412_s1 + $0x210] sm:$0xff]  }
  0xf9   : > { %5742 = vmatmul.mubr.bf16.gmra.mrb[24].mxu1 %v6423_v25 }
  0xfa   : > { %5745 = vmatprep.mubr.bf16.mxu1 %v7088_v16  ;;  %v6403_v16 = vld [vmem:[%s7412_s1 + $0x218] sm:$0xff]  }
  0xfb   : > { %5958 = vmatmul.mubr.bf16.vlgmr.msra.gmra.mrb[0].mxu0 %v7067_v51 }
  0xfc   : > { %5990 = vmatpush3.bf16.msra.mxu0 %v7167_v19  ;;  %5961 = vmatprep.mubr.bf16.mxu0 %v7090_v45  ;;  %v6405_v19 = vld [vmem:[%s7412_s1 + $0x228] sm:$0xff]  }
  0xfd   : > { %5991 = vmatprep.subr.bf16.mxu0 %v6398_v52 }
 0x100   : > { %5992 = vmatpush3.bf16.msra.mxu0 %v6398_v52 }
 0x101   : > { %5993 = vmatprep.subr.bf16.mxu0 %v6400_v15  ;;  %5746 = vmatmul.mubr.bf16.gmra.mrb[28].mxu1 %v6401_v3 }
 0x102   : > { %5765 = vmatprep.mubr.bf16.mxu1 %v5045_v47 }
 0x103   : > { %5962 = vmatmul.mubr.bf16.gmra.mrb[4].mxu0 %v7095_v8 }
 0x104   : > { %5965 = vmatprep.mubr.bf16.mxu0 %v7115_v21  ;;  %5994 = vmatpush3.bf16.msra.mxu0 %v6400_v15 }
 0x105   : > { %5995 = vmatprep.subr.bf16.mxu0 %v6403_v16 }
 0x108   : > { %5996 = vmatpush3.bf16.msra.mxu0 %v6403_v16 }
 0x109   : > { %5766 = vmatmul.mubr.bf16.vlgmr.msra.gmra.mrb[0].mxu1 %v6598_v61  ;;  %5997 = vmatprep.subr.bf16.mxu0 %v6404_v40  ;;  %v6406_v61 = vld [vmem:[%s7412_s1 + $0x230] sm:$0xff]  }
 0x10a   : > { %6045 = vmatpush3.bf16.msra.mxu1 %v6418_v41  ;;  %5769 = vmatprep.mubr.bf16.mxu1 %v6620_v27  ;;  %v6425_v27 = vld [vmem:[%s7412_s1 + $0x110] sm:$0xff]   ;;  %v6407_v41 = vld [vmem:[%s7412_s1 + $0x238] sm:$0xff]  }
 0x10b   : > { %5966 = vmatmul.mubr.bf16.gmra.mrb[8].mxu0 %v7120_v23  ;;  %6038 = vmatprep.subr.bf16.mxu1 %v6424_v56 }
 0x10c   : > { %5969 = vmatprep.mubr.bf16.mxu0 %v7141_v37  ;;  %5998 = vmatpush3.bf16.msra.mxu0 %v6404_v40 }
 0x10d   : > { %5999 = vmatprep.subr.bf16.mxu0 %v6405_v19 }
 0x10e   : > { %6046 = vmatpush3.bf16.msra.mxu1 %v6424_v56 }
 0x10f   : > { %6039 = vmatprep.subr.bf16.mxu1 %v6425_v27 }
 0x110   : > { %6000 = vmatpush3.bf16.msra.mxu0 %v6405_v19 }
 0x111   : > { %5770 = vmatmul.mubr.bf16.gmra.mrb[4].mxu1 %v6642_v0  ;;  %6001 = vmatprep.subr.bf16.mxu0 %v6406_v61  ;;  %v6427_v0 = vld [vmem:[%s7412_s1 + $0x120] sm:$0xff]  }
 0x112   : > { %5773 = vmatprep.mubr.bf16.mxu1 %v6684_v58  ;;  %6047 = vmatpush3.bf16.msra.mxu1 %v6425_v27  ;;  %v6428_v58 = vld [vmem:[%s7412_s1 + $0x128] sm:$0xff]  }
 0x113   : > { %5970 = vmatmul.mubr.bf16.gmra.mrb[12].mxu0 %v7149_v4  ;;  %6040 = vmatprep.subr.bf16.mxu1 %v6426_v55 }
 0x114   : > { %5973 = vmatprep.mubr.bf16.mxu0 %v7169_v34  ;;  %6002 = vmatpush3.bf16.msra.mxu0 %v6406_v61 }
 0x115   : > { %6003 = vmatprep.subr.bf16.mxu0 %v6407_v41 }
 0x116   : > { %6048 = vmatpush3.bf16.msra.mxu1 %v6426_v55 }
 0x117   : > { %6041 = vmatprep.subr.bf16.mxu1 %v6427_v0 }
 0x118   : > { %6004 = vmatpush3.bf16.msra.mxu0 %v6407_v41 }
 0x119   : > { %5774 = vmatmul.mubr.bf16.gmra.mrb[8].mxu1 %v6716_v48  ;;  %v3332_v48 = vld [vmem:[#allocation2 + $0xc4] sm:$0xf] }
 0x11a   : > { %5777 = vmatprep.mubr.bf16.mxu1 %v6747_v28  ;;  %6049 = vmatpush3.bf16.msra.mxu1 %v6427_v0  ;;  %v6430_v28 = vld [vmem:[%s7412_s1 + $0x138] sm:$0xff]   ;;  %v3508_v33 = vrot.slane %v3332_v48, 5 }
 0x11b   : > { %5974 = vmatmul.mubr.bf16.gmra.mrb[16].mxu0 %v7174_v22  ;;  %6042 = vmatprep.subr.bf16.mxu1 %v6428_v58 }
 0x11c   : > { %5977 = vmatprep.mubr.bf16.mxu0 %v7190_v36  ;;  %v3510_v35 = vrot.slane %v3508_v33, 4 }
 0x11e   : > { %6050 = vmatpush3.bf16.msra.mxu1 %v6428_v58 }
 0x11f   : > { %6043 = vmatprep.subr.bf16.mxu1 %v6429_v63 }
 0x121   : > { %5778 = vmatmul.mubr.bf16.gmra.mrb[12].mxu1 %v6765_v62  ;;  %v3511_v62 = vrot.slane %v3333_v7, 5 }
 0x122   : > { %5781 = vmatprep.mubr.bf16.mxu1 %v6782_v42  ;;  %6051 = vmatpush3.bf16.msra.mxu1 %v6429_v63  ;;  %v3509_v42 = vsel %vm7034_vm13, %v5135_v46, %v3508_v33 }
 0x123   : > { %5978 = vmatmul.mubr.bf16.gmra.mrb[20].mxu0 %v7195_v38  ;;  %6044 = vmatprep.subr.bf16.mxu1 %v6430_v28  ;;  %v3512_v53 = vsel %vm7034_vm13, %v3510_v35, %v3511_v62 }
 0x124   : > { %5981 = vmatprep.mubr.bf16.mxu0 %v7207_v14  ;;  %v5193_v26 = vcombine.low %v3509_v42, %v3512_v53 }
 0x126   : > { %6052 = vmatpush3.bf16.msra.mxu1 %v6430_v28 }
 0x129   : > { %5782 = vmatmul.mubr.bf16.gmra.mrb[16].mxu1 %v6899_v1 }
 0x12a   : > { %5785 = vmatprep.mubr.bf16.mxu1 %v6919_v39 }
 0x12b   : > { %5982 = vmatmul.mubr.bf16.gmra.mrb[24].mxu0 %v7212_v43 }
 0x12c   : > { %5985 = vmatprep.mubr.bf16.mxu0 %v7220_v9 }
 0x131   : > { %5786 = vmatmul.mubr.bf16.gmra.mrb[20].mxu1 %v6952_v30 }
 0x132   : > { %5789 = vmatprep.mubr.bf16.mxu1 %v6975_v44 }
 0x133   : > { %5986 = vmatmul.mubr.bf16.gmra.mrb[28].mxu0 %v5193_v26 }
 0x134   : > { %6005 = vmatprep.mubr.bf16.mxu0 %v7067_v51 }
 0x139   : > { %5790 = vmatmul.mubr.bf16.gmra.mrb[24].mxu1 %v6992_v5 }
 0x13a   : > { %5793 = vmatprep.mubr.bf16.mxu1 %v7000_v60 }
 0x13b   : > { %6006 = vmatmul.mubr.bf16.vlgmr.msra.gmra.mrb[0].mxu0 %v7090_v45 }
 0x13c   : > { %6009 = vmatprep.mubr.bf16.mxu0 %v7095_v8 }
 0x141   : > { %5794 = vmatmul.mubr.bf16.gmra.mrb[28].mxu1 %v7014_v57 }
 0x142   : > { %5829 = vmatprep.mubr.bf16.mxu1 %v6899_v1  ;;  %v3335_v1 = vld [vmem:[#allocation2 + $0xd0] sm:$0xf] }
 0x143   : > { %6010 = vmatmul.mubr.bf16.gmra.mrb[4].mxu0 %v7115_v21 }
 0x144   : > { %6013 = vmatprep.mubr.bf16.mxu0 %v7120_v23 }
 0x149   : > { %5830 = vmatmul.mubr.bf16.vlgmr.msra.gmra.mrb[16].mxu1 %v6919_v39  ;;  %v3515_v39 = vrot.slane %v3335_v1, 5 }
 0x14a   : > { %5833 = vmatprep.mubr.bf16.mxu1 %v6952_v30  ;;  %v3334_v30 = vld [vmem:[#allocation2 + $0xcc] sm:$0xe] }
 0x14b   : > { %6014 = vmatmul.mubr.bf16.gmra.mrb[8].mxu0 %v7141_v37  ;;  %v3517_v51 = vrot.slane %v3515_v39, 4 }
 0x14c   : > { %6017 = vmatprep.mubr.bf16.mxu0 %v7149_v4 }
 0x151   : > { %5834 = vmatmul.mubr.bf16.gmra.mrb[20].mxu1 %v6975_v44  ;;  %v3336_v44 = vld [vmem:[#allocation2 + $0xd4] sm:$0x1] }
 0x152   : > { %5837 = vmatprep.mubr.bf16.mxu1 %v6992_v5  ;;  %v5136_v5 = vrot.slane %v3334_v30, 9  ;;  %v3518_v45 = vrot.slane %v3336_v44, 5 }
 0x153   : > { %6018 = vmatmul.mubr.bf16.gmra.mrb[12].mxu0 %v7169_v34 }
 0x154   : > { %6021 = vmatprep.mubr.bf16.mxu0 %v7174_v22 }
 0x159   : > { %5838 = vmatmul.mubr.bf16.gmra.mrb[24].mxu1 %v7000_v60  ;;  %v3516_v60 = vsel %vm7034_vm13, %v5136_v5, %v3515_v39 }
 0x15a   : > { %5841 = vmatprep.mubr.bf16.mxu1 %v7014_v57  ;;  %v3519_v57 = vsel %vm7034_vm13, %v3517_v51, %v3518_v45 }
 0x15b   : > { %6022 = vmatmul.mubr.bf16.gmra.mrb[16].mxu0 %v7190_v36 }
 0x15c   : > { %6025 = vmatprep.mubr.bf16.mxu0 %v7195_v38 }
 0x161   : > { %5842 = vmatmul.mubr.bf16.gmra.mrb[28].mxu1 %v7052_v50  ;;  %v5218_v50 = vcombine.low %v3516_v60, %v3519_v57 }
 0x163   : > { %6026 = vmatmul.mubr.bf16.gmra.mrb[20].mxu0 %v7207_v14 }
 0x164   : > { %6029 = vmatprep.mubr.bf16.mxu0 %v7212_v43 }
 0x16b   : > { %6030 = vmatmul.mubr.bf16.gmra.mrb[24].mxu0 %v7220_v9 }
 0x16c   : > { %6033 = vmatprep.mubr.bf16.mxu0 %v5193_v26 }
 0x173   : > { %6034 = vmatmul.mubr.bf16.gmra.mrb[28].mxu0 %v5218_v50 }
 0x1dc   : > { %v5767_v8 = vpop.f32.mrb[0].mxu1 }
 0x1dd   : > { %v2408_v21 = vpop.f32.mrb[1].mxu1 }
 0x1de   : > { %v5768_v23 = vpop.f32.mrb[2].mxu1 }
 0x1df   : > { %v2411_v37 = vpop.f32.mrb[3].mxu1 }
 0x1e4   : > { %v5771_v4 = vpop.f32.mrb[4].mxu1 }
 0x1e5   : > { %v2424_v34 = vpop.f32.mrb[5].mxu1 }
 0x1e6   : > { %v5772_v22 = vpop.f32.mrb[6].mxu1 }
 0x1e7   : > { %v2427_v36 = vpop.f32.mrb[7].mxu1 }
 0x1ec   : > { %v5775_v38 = vpop.f32.mrb[8].mxu1 }
 0x1ed   : > { %v7331_v14 = vpop.f32.mrb[9].mxu1 }
 0x1ee   : > { %v7333_v43 = vpop.f32.mrb[10].mxu1 }
 0x1ef   : > { %v7335_v9 = vpop.f32.mrb[11].mxu1 }
 0x1f4   : > { %v7337_v54 = vpop.f32.mrb[12].mxu1 }
 0x1f5   : > { %v7339_v10 = vpop.f32.mrb[13].mxu1 }
 0x1f6   : > { %v7341_v17 = vpop.f32.mrb[14].mxu1 }
 0x1f7   : > { %v7343_v29 = vpop.f32.mrb[15].mxu1 }
 0x20e   : > { %v6007_v13 = vpop.f32.mrb[0].mxu0 }
 0x20f   : > { %v6053_v18 = vadd.f32 %v6007_v13, %v5767_v8  ;;  %v4335_v32 = vpop.f32.mrb[1].mxu0 }
 0x210   : > { %v6054_v11 = vadd.f32 %v4335_v32, %v2408_v21  ;;  %v6008_v2 = vpop.f32.mrb[2].mxu0 }
 0x211   : > { %v6055_v6 = vadd.f32 %v6008_v2, %v5768_v23  ;;  %v4338_v12 = vpop.f32.mrb[3].mxu0  ;;  %v4790_v15 = vmul.f32 %v6053_v18, %v6053_v18 }
 0x212   : > { %v6056_v31 = vadd.f32 %v4338_v12, %v2411_v37  ;;  %v4788_v52 = vmul.f32 %v6054_v11, %v6054_v11 }
 0x213   : > { %v5302_v24 = vpack.c.bf16 %v6055_v6, %v6053_v18  ;;  %v4791_v56 = vmul.f32 %v6055_v6, %v6055_v6 }
 0x214   : > { %v5297_v25 = vpack.c.bf16 %v6056_v31, %v6054_v11  ;;  %v4750_v49 = vadd.f32 %v6056_v31, %v6054_v11  ;;  %v4789_v20 = vmul.f32 %v6056_v31, %v6056_v31 }
 0x215   : > { %5374 = vst [vmem:[%s7349_s17 + $0x8] sm:$0xff] %v5302_v24  }
 0x216   : > { %5298 = vst [vmem:[%s7349_s17] sm:$0xff] %v5297_v25   ;;  %v4751_v3 = vadd.f32 %v6053_v18, %v4750_v49  ;;  %v4820_v47 = vadd.f32 %v4789_v20, %v4788_v52  ;;  %v6011_v16 = vpop.f32.mrb[4].mxu0 }
 0x217   : > { %v6057_v40 = vadd.f32 %v6011_v16, %v5771_v4  ;;  %v4351_v19 = vpop.f32.mrb[5].mxu0 }
 0x218   : > { %v4821_v61 = vadd.f32 %v4820_v47, %v4790_v15  ;;  %v6058_v27 = vadd.f32 %v4351_v19, %v2424_v34  ;;  %v4752_v41 = vadd.f32 %v6055_v6, %v4751_v3  ;;  %v6012_v55 = vpop.f32.mrb[6].mxu0 }
 0x219   : > { %v6059_v0 = vadd.f32 %v6012_v55, %v5772_v22  ;;  %v4354_v58 = vpop.f32.mrb[7].mxu0  ;;  %v4794_v26 = vmul.f32 %v6057_v40, %v6057_v40 }
 0x21a   : > { %v4753_v63 = vadd.f32 %v6058_v27, %v4752_v41  ;;  %v4792_v48 = vmul.f32 %v6058_v27, %v6058_v27  ;;  %v4822_v28 = vadd.f32 %v4821_v61, %v4791_v56  ;;  %v6060_v33 = vadd.f32 %v4354_v58, %v2427_v36 }
 0x21b   : > { %v5312_v59 = vpack.c.bf16 %v6059_v0, %v6057_v40  ;;  %v4795_v60 = vmul.f32 %v6059_v0, %v6059_v0 }
 0x21c   : > { %v4823_v7 = vadd.f32 %v4822_v28, %v4792_v48  ;;  %v5307_v46 = vpack.c.bf16 %v6060_v33, %v6058_v27  ;;  %v4754_v35 = vadd.f32 %v6060_v33, %v4753_v63  ;;  %v4793_v62 = vmul.f32 %v6060_v33, %v6060_v33  ;;  %v7353_v42 = vpop.f32.mrb[16].mxu1 }
 0x21d   : > { %5376 = vst [vmem:[%s7349_s17 + $0x18] sm:$0xff] %v5312_v59   ;;  %v7356_v53 = vpop.f32.mrb[17].mxu1 }
 0x21e   : > { %5375 = vst [vmem:[%s7349_s17 + $0x10] sm:$0xff] %v5307_v46   ;;  %v4755_v1 = vadd.f32 %v6057_v40, %v4754_v35  ;;  %v4824_v39 = vadd.f32 %v4823_v7, %v4793_v62  ;;  %v6015_v30 = vpop.f32.mrb[8].mxu0  ;;  %v7359_v44 = vpop.f32.mrb[18].mxu1 }
 0x21f   : > { %v6061_v5 = vadd.f32 %v6015_v30, %v5775_v38  ;;  %v4367_v51 = vpop.f32.mrb[9].mxu0  ;;  %v7361_v45 = vpop.f32.mrb[19].mxu1 }
 0x220   : > { %v4825_v57 = vadd.f32 %v4824_v39, %v4794_v26  ;;  %v6062_v50 = vadd.f32 %v4367_v51, %v7331_v14  ;;  %v4756_v8 = vadd.f32 %v6059_v0, %v4755_v1  ;;  %v6016_v21 = vpop.f32.mrb[10].mxu0 }
 0x221   : > { %v6063_v23 = vadd.f32 %v6016_v21, %v7333_v43  ;;  %v4370_v37 = vpop.f32.mrb[11].mxu0  ;;  %v4798_v6 = vmul.f32 %v6061_v5, %v6061_v5 }
 0x222   : > { %v4757_v4 = vadd.f32 %v6062_v50, %v4756_v8  ;;  %v4796_v34 = vmul.f32 %v6062_v50, %v6062_v50  ;;  %v4826_v22 = vadd.f32 %v4825_v57, %v4795_v60  ;;  %v6064_v36 = vadd.f32 %v4370_v37, %v7335_v9 }
 0x223   : > { %v5322_v38 = vpack.c.bf16 %v6063_v23, %v6061_v5  ;;  %v4799_v49 = vmul.f32 %v6063_v23, %v6063_v23 }
 0x224   : > { %v4827_v13 = vadd.f32 %v4826_v22, %v4796_v34  ;;  %v5317_v18 = vpack.c.bf16 %v6064_v36, %v6062_v50  ;;  %v4758_v32 = vadd.f32 %v6064_v36, %v4757_v4  ;;  %v4797_v11 = vmul.f32 %v6064_v36, %v6064_v36  ;;  %v7366_v2 = vpop.f32.mrb[20].mxu1 }
 0x225   : > { %5378 = vst [vmem:[%s7349_s17 + $0x28] sm:$0xff] %v5322_v38   ;;  %v7369_v14 = vpop.f32.mrb[21].mxu1 }
 0x226   : > { %5377 = vst [vmem:[%s7349_s17 + $0x20] sm:$0xff] %v5317_v18   ;;  %v4759_v12 = vadd.f32 %v6061_v5, %v4758_v32  ;;  %v4828_v43 = vadd.f32 %v4827_v13, %v4797_v11  ;;  %v6019_v31 = vpop.f32.mrb[12].mxu0  ;;  %v7372_v24 = vpop.f32.mrb[22].mxu1 }
 0x227   : > { %v6065_v52 = vadd.f32 %v6019_v31, %v7337_v54  ;;  %v4383_v9 = vpop.f32.mrb[13].mxu0  ;;  %v7375_v25 = vpop.f32.mrb[23].mxu1 }
 0x228   : > { %v4829_v20 = vadd.f32 %v4828_v43, %v4798_v6  ;;  %v6066_v15 = vadd.f32 %v4383_v9, %v7339_v10  ;;  %v4760_v3 = vadd.f32 %v6063_v23, %v4759_v12  ;;  %v6020_v47 = vpop.f32.mrb[14].mxu0 }
 0x229   : > { %v6067_v16 = vadd.f32 %v6020_v47, %v7341_v17  ;;  %v4386_v40 = vpop.f32.mrb[15].mxu0  ;;  %v4802_v10 = vmul.f32 %v6065_v52, %v6065_v52 }
 0x22a   : > { %v4761_v19 = vadd.f32 %v6066_v15, %v4760_v3  ;;  %v4800_v56 = vmul.f32 %v6066_v15, %v6066_v15  ;;  %v4830_v61 = vadd.f32 %v4829_v20, %v4799_v49  ;;  %v6068_v27 = vadd.f32 %v4386_v40, %v7343_v29 }
 0x22b   : > { %v5332_v54 = vpack.c.bf16 %v6067_v16, %v6065_v52  ;;  %v4803_v29 = vmul.f32 %v6067_v16, %v6067_v16 }
 0x22c   : > { %v4831_v41 = vadd.f32 %v4830_v61, %v4800_v56  ;;  %v5327_v55 = vpack.c.bf16 %v6068_v27, %v6066_v15  ;;  %v4762_v0 = vadd.f32 %v6068_v27, %v4761_v19  ;;  %v4801_v58 = vmul.f32 %v6068_v27, %v6068_v27  ;;  %v5839_v63 = vpop.f32.mrb[24].mxu1 }
 0x22d   : > { %5380 = vst [vmem:[%s7349_s17 + $0x38] sm:$0xff] %v5332_v54   ;;  %v7381_v48 = vpop.f32.mrb[25].mxu1 }
 0x22e   : > { %5379 = vst [vmem:[%s7349_s17 + $0x30] sm:$0xff] %v5327_v55   ;;  %v4763_v28 = vadd.f32 %v6065_v52, %v4762_v0  ;;  %v4832_v33 = vadd.f32 %v4831_v41, %v4801_v58  ;;  %v6023_v17 = vpop.f32.mrb[16].mxu0  ;;  %v5840_v59 = vpop.f32.mrb[26].mxu1 }
 0x22f   : > { %v6069_v7 = vadd.f32 %v6023_v17, %v7353_v42  ;;  %v4399_v46 = vpop.f32.mrb[17].mxu0  ;;  %v7385_v35 = vpop.f32.mrb[27].mxu1 }
 0x230   : > { %v4833_v62 = vadd.f32 %v4832_v33, %v4802_v10  ;;  %v6070_v26 = vadd.f32 %v4399_v46, %v7356_v53  ;;  %v4764_v1 = vadd.f32 %v6067_v16, %v4763_v28  ;;  %v6024_v39 = vpop.f32.mrb[18].mxu0 }
 0x231   : > { %v6071_v30 = vadd.f32 %v6024_v39, %v7359_v44  ;;  %v4402_v5 = vpop.f32.mrb[19].mxu0  ;;  %v4806_v53 = vmul.f32 %v6069_v7, %v6069_v7 }
 0x232   : > { %v4765_v51 = vadd.f32 %v6070_v26, %v4764_v1  ;;  %v4804_v60 = vmul.f32 %v6070_v26, %v6070_v26  ;;  %v4834_v57 = vadd.f32 %v4833_v62, %v4803_v29  ;;  %v6072_v50 = vadd.f32 %v4402_v5, %v7361_v45 }
 0x233   : > { %v5342_v42 = vpack.c.bf16 %v6071_v30, %v6069_v7  ;;  %v4807_v11 = vmul.f32 %v6071_v30, %v6071_v30 }
 0x234   : > { %v4835_v8 = vadd.f32 %v4834_v57, %v4804_v60  ;;  %v5337_v21 = vpack.c.bf16 %v6072_v50, %v6070_v26  ;;  %v4766_v23 = vadd.f32 %v6072_v50, %v4765_v51  ;;  %v4805_v37 = vmul.f32 %v6072_v50, %v6072_v50  ;;  %v5843_v4 = vpop.f32.mrb[28].mxu1 }
 0x235   : > { %5382 = vst [vmem:[%s7349_s17 + $0x48] sm:$0xff] %v5342_v42   ;;  %v2846_v34 = vpop.f32.mrb[29].mxu1 }
 0x236   : > { %5381 = vst [vmem:[%s7349_s17 + $0x40] sm:$0xff] %v5337_v21   ;;  %v4767_v22 = vadd.f32 %v6069_v7, %v4766_v23  ;;  %v4836_v36 = vadd.f32 %v4835_v8, %v4805_v37  ;;  %v6027_v38 = vpop.f32.mrb[20].mxu0  ;;  %v5844_v44 = vpop.f32.mrb[30].mxu1 }
 0x237   : > { %v6073_v13 = vadd.f32 %v6027_v38, %v7366_v2  ;;  %v4415_v18 = vpop.f32.mrb[21].mxu0  ;;  %v2849_v32 = vpop.f32.mrb[31].mxu1 }
 0x238   : > { %v4837_v45 = vadd.f32 %v4836_v36, %v4806_v53  ;;  %v6074_v6 = vadd.f32 %v4415_v18, %v7369_v14  ;;  %v4768_v12 = vadd.f32 %v6071_v30, %v4767_v22  ;;  %v6028_v43 = vpop.f32.mrb[22].mxu0 }
 0x239   : > { %v6075_v31 = vadd.f32 %v6028_v43, %v7372_v24  ;;  %v4418_v52 = vpop.f32.mrb[23].mxu0  ;;  %v4810_v19 = vmul.f32 %v6073_v13, %v6073_v13 }
 0x23a   : > { %v4769_v9 = vadd.f32 %v6074_v6, %v4768_v12  ;;  %v4808_v49 = vmul.f32 %v6074_v6, %v6074_v6  ;;  %v4838_v20 = vadd.f32 %v4837_v45, %v4807_v11  ;;  %v6076_v15 = vadd.f32 %v4418_v52, %v7375_v25 }
 0x23b   : > { %v5352_v3 = vpack.c.bf16 %v6075_v31, %v6073_v13  ;;  %v4811_v24 = vmul.f32 %v6075_v31, %v6075_v31 }
 0x23c   : > { %v4839_v2 = vadd.f32 %v4838_v20, %v4808_v49  ;;  %v5347_v47 = vpack.c.bf16 %v6076_v15, %v6074_v6  ;;  %v4770_v16 = vadd.f32 %v6076_v15, %v4769_v9  ;;  %v4809_v40 = vmul.f32 %v6076_v15, %v6076_v15 }
 0x23d   : > { %5384 = vst [vmem:[%s7349_s17 + $0x58] sm:$0xff] %v5352_v3  }
 0x23e   : > { %5383 = vst [vmem:[%s7349_s17 + $0x50] sm:$0xff] %v5347_v47   ;;  %v4771_v14 = vadd.f32 %v6073_v13, %v4770_v16  ;;  %v4840_v56 = vadd.f32 %v4839_v2, %v4809_v40  ;;  %v6031_v61 = vpop.f32.mrb[24].mxu0 }
 0x23f   : > { %v6077_v27 = vadd.f32 %v6031_v61, %v5839_v63  ;;  %v4431_v54 = vpop.f32.mrb[25].mxu0 }
 0x240   : > { %v4841_v41 = vadd.f32 %v4840_v56, %v4810_v19  ;;  %v6078_v55 = vadd.f32 %v4431_v54, %v7381_v48  ;;  %v4772_v25 = vadd.f32 %v6075_v31, %v4771_v14  ;;  %v6032_v0 = vpop.f32.mrb[26].mxu0 }
 0x241   : > { %v6079_v58 = vadd.f32 %v6032_v0, %v5840_v59  ;;  %v4434_v10 = vpop.f32.mrb[27].mxu0  ;;  %v4814_v1 = vmul.f32 %v6077_v27, %v6077_v27 }
 0x242   : > { %v4773_v28 = vadd.f32 %v6078_v55, %v4772_v25  ;;  %v4812_v33 = vmul.f32 %v6078_v55, %v6078_v55  ;;  %v4842_v17 = vadd.f32 %v4841_v41, %v4811_v24  ;;  %v6080_v7 = vadd.f32 %v4434_v10, %v7385_v35 }
 0x243   : > { %v5362_v46 = vpack.c.bf16 %v6079_v58, %v6077_v27  ;;  %v4815_v59 = vmul.f32 %v6079_v58, %v6079_v58 }
 0x244   : > { %v4843_v29 = vadd.f32 %v4842_v17, %v4812_v33  ;;  %v5357_v62 = vpack.c.bf16 %v6080_v7, %v6078_v55  ;;  %v4774_v63 = vadd.f32 %v6080_v7, %v4773_v28  ;;  %v4813_v26 = vmul.f32 %v6080_v7, %v6080_v7 }
 0x245   : > { %5386 = vst [vmem:[%s7349_s17 + $0x68] sm:$0xff] %v5362_v46  }
 0x246   : > { %5385 = vst [vmem:[%s7349_s17 + $0x60] sm:$0xff] %v5357_v62   ;;  %v4775_v39 = vadd.f32 %v6077_v27, %v4774_v63  ;;  %v4844_v48 = vadd.f32 %v4843_v29, %v4813_v26  ;;  %v6035_v30 = vpop.f32.mrb[28].mxu0 }
 0x247   : > { %v6081_v5 = vadd.f32 %v6035_v30, %v5843_v4  ;;  %v4447_v51 = vpop.f32.mrb[29].mxu0 }
 0x248   : > { %v4845_v60 = vadd.f32 %v4844_v48, %v4814_v1  ;;  %v6082_v57 = vadd.f32 %v4447_v51, %v2846_v34  ;;  %v4776_v50 = vadd.f32 %v6079_v58, %v4775_v39  ;;  %v6036_v35 = vpop.f32.mrb[30].mxu0 }
 0x249   : > { %v6083_v42 = vadd.f32 %v6036_v35, %v5844_v44  ;;  %v4450_v8 = vpop.f32.mrb[31].mxu0  ;;  %v4818_v18 = vmul.f32 %v6081_v5, %v6081_v5 }
 0x24a   : > { %v4777_v21 = vadd.f32 %v6082_v57, %v4776_v50  ;;  %v4816_v23 = vmul.f32 %v6082_v57, %v6082_v57  ;;  %v4846_v37 = vadd.f32 %v4845_v60, %v4815_v59  ;;  %v6084_v53 = vadd.f32 %v4450_v8, %v2849_v32 }
 0x24b   : > { %v5372_v22 = vpack.c.bf16 %v6083_v42, %v6081_v5  ;;  %v4819_v45 = vmul.f32 %v6083_v42, %v6083_v42 }
 0x24c   : > { %v4847_v36 = vadd.f32 %v4846_v37, %v4816_v23  ;;  %v5367_v38 = vpack.c.bf16 %v6084_v53, %v6082_v57  ;;  %v4778_v13 = vadd.f32 %v6084_v53, %v4777_v21  ;;  %v4817_v4 = vmul.f32 %v6084_v53, %v6084_v53 }
 0x24d   : > { %5388 = vst [vmem:[%s7349_s17 + $0x78] sm:$0xff] %v5372_v22  }
 0x24e   : > { %5387 = vst [vmem:[%s7349_s17 + $0x70] sm:$0xff] %v5367_v38   ;;  %v4779_v11 = vadd.f32 %v6081_v5, %v4778_v13  ;;  %v4848_v34 = vadd.f32 %v4847_v36, %v4817_v4 }
 0x250   : > { %v4780_v6 = vadd.f32 %v6083_v42, %v4779_v11  ;;  %v4849_v12 = vadd.f32 %v4848_v34, %v4818_v18 }
 0x252   : > { %v4781_v44 = vrot.slane %v4780_v6, 4  ;;  %v4850_v43 = vadd.f32 %v4849_v12, %v4819_v45 }
 0x254   : > { %v4782_v31 = vadd.f32 %v4781_v44, %v4780_v6  ;;  %v4851_v52 = vrot.slane %v4850_v43, 4 }
 0x256   : > { %v4783_v9 = vrot.slane %v4782_v31, 2  ;;  %v4852_v32 = vadd.f32 %v4851_v52, %v4850_v43 }
 0x258   : > { %v4784_v49 = vadd.f32 %v4783_v9, %v4782_v31  ;;  %v4853_v20 = vrot.slane %v4852_v32, 2 }
 0x25a   : > { %v4785_v15 = vrot.slane %v4784_v49, 1  ;;  %v4854_v3 = vadd.f32 %v4853_v20, %v4852_v32 }
 0x25c   : > { %v4786_v2 = vadd.f32 %v4785_v15, %v4784_v49  ;;  %v4855_v47 = vrot.slane %v4854_v3, 1 }
 0x25e   : > { %4787 = vst [vmem:[%s182_s19] sm:$0x1] %v4786_v2  ;;  %v4856_v16 = vadd.f32 %v4855_v47, %v4854_v3 }
 0x260   : > { %4857 = vst [vmem:[%s182_s19 + $0x1] sm:$0x1] %v4856_v16 }
 0x261 PF: > { %s14_s12 = sadd.s32 1, %s6437_s12  }
 0x262   : > { %p11_p5 = scmp.ge.s32.totalorder %s14_s12, 4  }
 0x264   :  { %13 = sbr.rel (!%p11_p5) target bundleno = 1 (0x1), region = 79 }

// kernel: residual_layer_forward.4
= control target key start
LH: loop header
LB: loop body
LE: loop exit
PB: predicated region body
PF: predicated region fallthrough
CT: control target
= control target key end

     0   :  { %s6909_s18 = smov 0   ;;  %s7929_s0 = inlined_call_operand.vmem [shape: bf16[2,16,16,128], index: 0, kind: input, shape index: {}]   ;;  %s7930_s1 = inlined_call_operand.vmem [shape: bf16[3,3,128,128], index: 1, kind: input, shape index: {}]   ;;  %s7931_s2 = inlined_call_operand.vmem [shape: f32[1,128], index: 2, kind: input, shape index: {}]   ;;  %s7932_s3 = inlined_call_operand.vmem [shape: f32[1,128], index: 3, kind: input, shape index: {}]   ;;  %s7933_s4 = inlined_call_operand.vmem [shape: bf16[512,128], index: 4, kind: output, shape index: {0}]   ;;  %s7934_s5 = inlined_call_operand.vmem [shape: f32[2,2,128], index: 5, kind: output, shape index: {1}]  }
   0x1 LB: > { %s6915_s19 = sadd.s32 4294967295, %s6876_s18   ;;  %p5241_p0 = scmp.ge.s32.totalorder %s6876_s18, 1  ;;  %s6876_s18 = sphi %s6909_s18, %s16_s18  }
   0x2   : > { %p190_p1 = scmp.lt.s32.totalorder %s6876_s18, 3 }
   0x4   : > { %p191_p2 = pnand %p5241_p0, %p190_p1 }
   0x5   : > { %v6755_v0 = vld [vmem:[%s7930_s1] sm:$0xff] (!%p191_p2)   ;;  %v6925_v1 = vld [vmem:[%s7930_s1 + $0x8] sm:$0xff] (!%p191_p2)   ;;  %v6878_v2 = vmov (!%p191_p2), 0   ;;  %p222_p3 = scmp.lt.s32.totalorder (!%p191_p2), %s6915_s19, 1  ;;  %v6757_v4 = vld [vmem:[%s7930_s1 + $0x10] sm:$0xff] (!%p191_p2)   ;;  %vm886_vm1 = vcmask (!%p191_p2), 1043456  }
   0x6   : > { %194 = sbr.rel (%p191_p2) target bundleno = 638 (0x27e), region = 36  ;;  %238 = vst [vmem:[#allocation2] sm:$0xf] (!%p191_p2), %v6878_v2  ;;  %239 = vst [vmem:[#allocation2 + $0x4] sm:$0xf] (!%p191_p2), %v6878_v2  ;;  %6042 = vmatprep.subr.bf16.mxu1 (!%p191_p2), %v6755_v0  ;;  %v6758_v3 = vld [vmem:[%s7930_s1 + $0x100] sm:$0xff] (!%p191_p2)  }
   0x7   : > { %240 = vst [vmem:[#allocation2 + $0x8] sm:$0x1] (!%p191_p2), %v6878_v2  ;;  %241 = vst [vmem:[#allocation2 + $0xc] sm:$0xf] (!%p191_p2), %v6878_v2  ;;  %6043 = vmatpush3.bf16.msra.mxu1 (!%p191_p2), %v6755_v0  ;;  %6234 = vmatprep.subr.bf16.mxu0 (!%p191_p2), %v6758_v3  ;;  %v6760_v5 = vld [vmem:[%s7930_s1 + $0x108] sm:$0xff] (!%p191_p2)   ;;  %v6762_v6 = vld [vmem:[%s7930_s1 + $0x110] sm:$0xff] (!%p191_p2)  }
   0x8   : > { %242 = vst [vmem:[#allocation2 + $0x10] sm:$0xf] (!%p191_p2), %v6878_v2  ;;  %243 = vst [vmem:[#allocation2 + $0x14] sm:$0x1] (!%p191_p2), %v6878_v2  ;;  %6044 = vmatprep.subr.bf16.mxu1 (!%p191_p2), %v6925_v1  ;;  %6235 = vmatpush3.bf16.msra.mxu0 (!%p191_p2), %v6758_v3  ;;  %v6759_v7 = vld [vmem:[%s7930_s1 + $0x18] sm:$0xff] (!%p191_p2)   ;;  %v6761_v9 = vld [vmem:[%s7930_s1 + $0x20] sm:$0xff] (!%p191_p2)  }
   0x9   : > { %244 = vst [vmem:[#allocation2 + $0x18] sm:$0xf] (!%p191_p2), %v6878_v2  ;;  %245 = vst [vmem:[#allocation2 + $0x1c] sm:$0xf] (!%p191_p2), %v6878_v2  ;;  %6236 = vmatprep.subr.bf16.mxu0 (!%p191_p2), %v6760_v5  ;;  %v6764_v8 = vld [vmem:[%s7930_s1 + $0x118] sm:$0xff] (!%p191_p2)   ;;  %v6766_v11 = vld [vmem:[%s7930_s1 + $0x120] sm:$0xff] (!%p191_p2)  }
   0xa   : > { %246 = vst [vmem:[#allocation2 + $0x20] sm:$0x1] (!%p191_p2), %v6878_v2  ;;  %247 = vst [vmem:[#allocation2 + $0x24] sm:$0xf] (!%p191_p2), %v6878_v2  ;;  %v6967_v13 = vld [vmem:[%s7931_s2] ss:$0 sm:$0xff] (!%p191_p2) }
   0xb   : > { %248 = vst [vmem:[#allocation2 + $0x28] sm:$0xf] (!%p191_p2), %v6878_v2  ;;  %249 = vst [vmem:[#allocation2 + $0x2c] sm:$0x1] (!%p191_p2), %v6878_v2  ;;  %6045 = vmatpush3.bf16.msra.mxu1 (!%p191_p2), %v6925_v1  ;;  %v6763_v14 = vld [vmem:[%s7930_s1 + $0x28] sm:$0xff] (!%p191_p2)   ;;  %v6765_v21 = vld [vmem:[%s7930_s1 + $0x30] sm:$0xff] (!%p191_p2)  }
   0xc   : > { %250 = vst [vmem:[#allocation2 + $0x30] sm:$0xf] (!%p191_p2), %v6878_v2  ;;  %251 = vst [vmem:[#allocation2 + $0x34] sm:$0xf] (!%p191_p2), %v6878_v2  ;;  %6046 = vmatprep.subr.bf16.mxu1 (!%p191_p2), %v6757_v4  ;;  %6237 = vmatpush3.bf16.msra.mxu0 (!%p191_p2), %v6760_v5  ;;  %v6975_v17 = vld [vmem:[%s7932_s3] ss:$0 sm:$0xff] (!%p191_p2) }
   0xd   : > { %252 = vst [vmem:[#allocation2 + $0x38] sm:$0x1] %v6878_v2  ;;  %253 = vst [vmem:[#allocation2 + $0x3c] sm:$0xf] %v6878_v2  ;;  %s6939_s30 = scalar_select %p222_p3, %s6915_s19, 1  ;;  %6238 = vmatprep.subr.bf16.mxu0 %v6762_v6  ;;  %v6769_v10 = vld [vmem:[#allocation2] sm:$0xff]  }
   0xe   : > { %254 = vst [vmem:[#allocation2 + $0x40] sm:$0xf] %v6878_v2  ;;  %255 = vst [vmem:[#allocation2 + $0x44] sm:$0x1] %v6878_v2  ;;  %6058 = vmatprep.mubr.bf16.mxu1 %v6769_v10  ;;  %v6768_v20 = vld [vmem:[%s7930_s1 + $0x128] sm:$0xff]   ;;  %v6767_v30 = vld [vmem:[%s7930_s1 + $0x38] sm:$0xff]  }
   0xf   : > { %256 = vst [vmem:[#allocation2 + $0x48] sm:$0xf] %v6878_v2  ;;  %257 = vst [vmem:[#allocation2 + $0x4c] sm:$0xf] %v6878_v2  ;;  %s5587_s10 = sshll.u32 %s6939_s30, 7  ;;  %6047 = vmatpush3.bf16.msra.mxu1 %v6757_v4  ;;  %vm893_vm2 = vcmask 1040384  }
  0x10   : > { %258 = vst [vmem:[#allocation2 + $0x50] sm:$0x1] %v6878_v2  ;;  %259 = vst [vmem:[#allocation2 + $0x54] sm:$0xf] %v6878_v2  ;;  %6048 = vmatprep.subr.bf16.mxu1 %v6759_v7  ;;  %s6958_s17 = scalar_lea.vmem %s7929_s0, %s5587_s10  ;;  %6239 = vmatpush3.bf16.msra.mxu0 %v6762_v6  ;;  %vm562_vm0 = vsmask.f32 256 }
  0x11   : > { %260 = vst [vmem:[#allocation2 + $0x58] sm:$0xf] %v6878_v2  ;;  %261 = vst [vmem:[#allocation2 + $0x5c] sm:$0x1] %v6878_v2  ;;  %6240 = vmatprep.subr.bf16.mxu0 %v6764_v8  ;;  %v5653_v12 = vld [vmem:[%s6958_s17] sm:$0xff]   ;;  %v5796_v24 = vld [vmem:[%s6958_s17 + $0x8] sm:$0xff]  }
  0x12   : > { %262 = vst [vmem:[#allocation2 + $0x60] sm:$0xf] %v6878_v2  ;;  %263 = vst [vmem:[#allocation2 + $0x64] sm:$0xf] %v6878_v2  ;;  %v5654_v15 = vunpack.c.l.bf16 %v5653_v12  ;;  %v5655_v16 = vunpack.c.h.bf16 %v5653_v12  ;;  %v5797_v25 = vld [vmem:[%s6958_s17 + $0x10] sm:$0xff]   ;;  %v5658_v26 = vunpack.c.l.bf16 %v5796_v24  ;;  %v5659_v27 = vunpack.c.h.bf16 %v5796_v24  ;;  %v7003_v43 = vld [vmem:[%s6958_s17 + $0x18] sm:$0xff]  }
  0x13   : > { %264 = vst [vmem:[#allocation2 + $0x68] sm:$0x1] %v6878_v2  ;;  %265 = vst [vmem:[#allocation2 + $0x6c] sm:$0xf] %v6878_v2  ;;  %6049 = vmatpush3.bf16.msra.mxu1 %v6759_v7  ;;  %v5662_v28 = vunpack.c.l.bf16 %v5797_v25  ;;  %v5663_v29 = vunpack.c.h.bf16 %v5797_v25  ;;  %v6771_v33 = vld [vmem:[%s7930_s1 + $0x130] sm:$0xff]   ;;  %v6772_v49 = vld [vmem:[%s7930_s1 + $0x138] sm:$0xff]   ;;  %v5666_v58 = vunpack.c.l.bf16 %v7003_v43  ;;  %v5667_v59 = vunpack.c.h.bf16 %v7003_v43 }
  0x14   : > { %266 = vst [vmem:[#allocation2 + $0x70] sm:$0xf] %v6878_v2  ;;  %267 = vst [vmem:[#allocation2 + $0x74] sm:$0x1] %v6878_v2  ;;  %6050 = vmatprep.subr.bf16.mxu1 %v6761_v9  ;;  %6241 = vmatpush3.bf16.msra.mxu0 %v6764_v8  ;;  %v364_v18 = vmul.f32 %v5654_v15, %v6967_v13  ;;  %v365_v19 = vmul.f32 %v5655_v16, %v6967_v13  ;;  %vm563_vm3 = vsmask.f32 4368 }
  0x15   : > { %268 = vst [vmem:[#allocation2 + $0x78] sm:$0xf] %v6878_v2  ;;  %269 = vst [vmem:[#allocation2 + $0x7c] sm:$0xf] %v6878_v2  ;;  %6242 = vmatprep.subr.bf16.mxu0 %v6766_v11  ;;  %v366_v34 = vmul.f32 %v5658_v26, %v6967_v13  ;;  %v367_v35 = vmul.f32 %v5659_v27, %v6967_v13  ;;  %v368_v36 = vmul.f32 %v5662_v28, %v6967_v13  ;;  %vm887_vm4 = vsmask.f32 7938 }
  0x16   : > { %270 = vst [vmem:[#allocation2 + $0x80] sm:$0x1] %v6878_v2  ;;  %271 = vst [vmem:[#allocation2 + $0x84] sm:$0xf] %v6878_v2  ;;  %v402_v22 = vadd.f32 %v6975_v17, %v364_v18  ;;  %v403_v23 = vadd.f32 %v6975_v17, %v365_v19  ;;  %v369_v39 = vmul.f32 %v5663_v29, %v6967_v13  ;;  %v889_v48 = vld [vmem:[#allocation2 + $0xc] sm:$0xf] }
  0x17   : > { %272 = vst [vmem:[#allocation2 + $0x88] sm:$0xf] %v6878_v2  ;;  %273 = vst [vmem:[#allocation2 + $0x8c] sm:$0x1] %v6878_v2  ;;  %6051 = vmatpush3.bf16.msra.mxu1 %v6761_v9  ;;  %v404_v40 = vadd.f32 %v6975_v17, %v366_v34  ;;  %v405_v41 = vadd.f32 %v6975_v17, %v367_v35  ;;  %v406_v42 = vadd.f32 %v6975_v17, %v368_v36  ;;  %v7012_v54 = vld [vmem:[%s7930_s1 + $0xc0] sm:$0xff]   ;;  %v5800_v34 = vld [vmem:[%s6958_s17 + $0x28] sm:$0xff]  }
  0x18   : > { %274 = vst [vmem:[#allocation2 + $0x90] sm:$0xf] %v6878_v2  ;;  %275 = vst [vmem:[#allocation2 + $0x94] sm:$0xf] %v6878_v2  ;;  %6052 = vmatprep.subr.bf16.mxu1 %v6763_v14  ;;  %6243 = vmatpush3.bf16.msra.mxu0 %v6766_v11  ;;  %v434_v31 = vmax.f32 %v402_v22, 0.0  ;;  %v435_v32 = vmax.f32 %v403_v23, 0.0  ;;  %v407_v52 = vadd.f32 %v6975_v17, %v369_v39 }
  0x19   : > { %276 = vst [vmem:[#allocation2 + $0x98] sm:$0x1] %v6878_v2  ;;  %277 = vst [vmem:[#allocation2 + $0x9c] sm:$0xf] %v6878_v2  ;;  %6244 = vmatprep.subr.bf16.mxu0 %v6768_v20  ;;  %v436_v50 = vmax.f32 %v404_v40, 0.0  ;;  %v437_v51 = vmax.f32 %v405_v41, 0.0  ;;  %v370_v28 = vmul.f32 %v5666_v58, %v6967_v13 }
  0x1a   : > { %278 = vst [vmem:[#allocation2 + $0xa0] sm:$0xf] %v6878_v2  ;;  %279 = vst [vmem:[#allocation2 + $0xa4] sm:$0x1] %v6878_v2  ;;  %v5588_v37 = vpack.c.bf16 %v434_v31, %v434_v31  ;;  %v5589_v38 = vpack.c.bf16 %v435_v32, %v435_v32  ;;  %v438_v53 = vmax.f32 %v406_v42, 0.0  ;;  %v439_v63 = vmax.f32 %v407_v52, 0.0 }
  0x1b   : > { %280 = vst [vmem:[#allocation2 + $0xa8] sm:$0xf] %v6878_v2  ;;  %281 = vst [vmem:[#allocation2 + $0xac] sm:$0xf] %v6878_v2  ;;  %6053 = vmatpush3.bf16.msra.mxu1 %v6763_v14  ;;  %v5590_v61 = vpack.c.bf16 %v436_v50, %v436_v50  ;;  %v5591_v62 = vpack.c.bf16 %v437_v51, %v437_v51  ;;  %v895_v1 = vld [vmem:[#allocation2 + $0x14] sm:$0x1]  ;;  %v408_v42 = vadd.f32 %v6975_v17, %v370_v28 }
  0x1c   : > { %282 = vst [vmem:[#allocation2 + $0xb0] sm:$0x1] %v6878_v2  ;;  %283 = vst [vmem:[#allocation2 + $0xb4] sm:$0xf] %v6878_v2  ;;  %6054 = vmatprep.subr.bf16.mxu1 %v6765_v21  ;;  %6245 = vmatpush3.bf16.msra.mxu0 %v6768_v20  ;;  %v566_v44 = vshrl.u32 %v5588_v37, 16  ;;  %v569_v45 = vshll.u32 %v5588_v37, 16  ;;  %v5592_v0 = vpack.c.bf16 %v438_v53, %v438_v53  ;;  %v5674_v52 = vunpack.c.l.bf16 %v5800_v34 }
  0x1d   : > { %284 = vst [vmem:[#allocation2 + $0xb8] sm:$0xf] %v6878_v2  ;;  %285 = vst [vmem:[#allocation2 + $0xbc] sm:$0x1] %v6878_v2  ;;  %v574_v46 = vshrl.u32 %v5589_v38, 16  ;;  %v577_v47 = vshll.u32 %v5589_v38, 16  ;;  %6246 = vmatprep.subr.bf16.mxu0 %v6771_v33  ;;  %v5593_v16 = vpack.c.bf16 %v439_v63, %v439_v63  ;;  %v371_v38 = vmul.f32 %v5667_v59, %v6967_v13 }
  0x1e   : > { %286 = vst [vmem:[#allocation2 + $0xc0] sm:$0xf] %v6878_v2  ;;  %287 = vst [vmem:[#allocation2 + $0xc4] sm:$0xf] %v6878_v2  ;;  %v568_v56 = vrot.slane %v566_v44, 7  ;;  %v7037_v7 = vld [vmem:[%s7930_s1 + $0x1c0] sm:$0xff]   ;;  %v5675_v59 = vunpack.c.h.bf16 %v5800_v34 }
  0x1f   : > { %288 = vst [vmem:[#allocation2 + $0xc8] sm:$0x1] %v6878_v2  ;;  %289 = vst [vmem:[#allocation2 + $0xcc] sm:$0xf] %v6878_v2  ;;  %6055 = vmatpush3.bf16.msra.mxu1 %v6765_v21  ;;  %v576_v57 = vrot.slane %v574_v46, 7  ;;  %v583_v8 = vshrl.u32 %v5590_v61, 16 }
  0x20   : > { %290 = vst [vmem:[#allocation2 + $0xd0] sm:$0xf] %v6878_v2  ;;  %291 = vst [vmem:[#allocation2 + $0xd4] sm:$0x1] %v6878_v2  ;;  %6056 = vmatprep.subr.bf16.mxu1 %v6767_v30  ;;  %v571_v2 = vor.u32 %v569_v45, %v568_v56  ;;  %v572_v3 = vrot.slane %v568_v56, 4  ;;  %6247 = vmatpush3.bf16.msra.mxu0 %v6771_v33  ;;  %v586_v9 = vshll.u32 %v5590_v61, 16 }
  0x21   : > { %vm7016_vm5 = vmor %vm562_vm0, %vm563_vm3  ;;  %v579_v4 = vor.u32 %v577_v47, %v576_v57  ;;  %v581_v6 = vrot.slane %v576_v57, 4  ;;  %6248 = vmatprep.subr.bf16.mxu0 %v6772_v49  ;;  %v591_v10 = vshrl.u32 %v5591_v62, 16  ;;  %v594_v11 = vshll.u32 %v5591_v62, 16  ;;  %v898_v15 = vld [vmem:[#allocation2 + $0x18] sm:$0xf]  ;;  %v5799_v33 = vld [vmem:[%s6958_s17 + $0x20] sm:$0xff]  }
  0x22   : > { %vm7024_vm6 = vmand %vm886_vm1, %vm887_vm4  ;;  %v600_v18 = vshrl.u32 %v5592_v0, 16  ;;  %v585_v19 = vrot.slane %v583_v8, 7  ;;  %v603_v21 = vshll.u32 %v5592_v0, 16  ;;  %v905_v22 = vld [vmem:[#allocation2 + $0x24] sm:$0xf]  ;;  %v608_v26 = vshrl.u32 %v5593_v16, 16 }
  0x23   : > { %vm7030_vm7 = vmand %vm893_vm2, %vm562_vm0  ;;  %6057 = vmatpush3.bf16.msra.mxu1 %v6767_v30  ;;  %v580_v12 = vsel %vm7016_vm5, %v572_v3, %v579_v4  ;;  %v890_v14 = vsel %vm7024_vm6, %v571_v2, %v889_v48  ;;  %v593_v20 = vrot.slane %v591_v10, 7  ;;  %v902_v24 = vld [vmem:[#allocation2 + $0x20] sm:$0x1]  ;;  %v611_v27 = vshll.u32 %v5593_v16, 16  ;;  %v909_v43 = vld [vmem:[#allocation2 + $0x2c] sm:$0x1] }
  0x24   : > { %6090 = vmatprep.subr.bf16.mxu1 %v7012_v54  ;;  %891 = vst [vmem:[#allocation2 + $0xc] sm:$0xf] %v890_v14  ;;  %892 = vst [vmem:[#allocation2 + $0x10] sm:$0xf] %v580_v12  ;;  %v896_v23 = vsel %vm7030_vm7, %v581_v6, %v895_v1  ;;  %6249 = vmatpush3.bf16.msra.mxu0 %v6772_v49  ;;  %v602_v25 = vrot.slane %v600_v18, 7  ;;  %v588_v29 = vor.u32 %v586_v9, %v585_v19  ;;  %v6780_v51 = vld [vmem:[%s7930_s1 + $0xc8] sm:$0xff]  }
  0x25   : > { %897 = vst [vmem:[#allocation2 + $0x14] sm:$0x1] %v896_v23  ;;  %v589_v30 = vrot.slane %v585_v19, 4  ;;  %v596_v31 = vor.u32 %v594_v11, %v593_v20  ;;  %v598_v32 = vrot.slane %v593_v20, 4  ;;  %6282 = vmatprep.subr.bf16.mxu0 %v7037_v7  ;;  %v610_v37 = vrot.slane %v608_v26, 7  ;;  %s5244_s21 = sshll.u32 %s6915_s19, 5 }
  0x26   : > { %v605_v35 = vor.u32 %v603_v21, %v602_v25  ;;  %v606_v36 = vrot.slane %v602_v25, 4  ;;  %vm2102_vm8 = vsmask.f32 3328  ;;  %vm2103_vm9 = vsmask.f32 7440  ;;  %v6785_v21 = vld [vmem:[%s7930_s1 + $0xd0] sm:$0xff]  }
  0x27   : > { %v597_v39 = vsel %vm7016_vm5, %v589_v30, %v596_v31  ;;  %v899_v40 = vsel %vm7024_vm6, %v588_v29, %v898_v15  ;;  %v903_v41 = vsel %vm7030_vm7, %v598_v32, %v902_v24  ;;  %v613_v44 = vor.u32 %v611_v27, %v610_v37  ;;  %v7079_v15 = vld [vmem:[%s6958_s17 + $0x30] sm:$0xff]   ;;  %v6790_v32 = vld [vmem:[%s7930_s1 + $0xd8] sm:$0xff]   ;;  %vm7098_vm10 = vmor %vm2102_vm8, %vm2103_vm9  ;;  %p228_p4 = scmp.lt.s32.totalorder %s5244_s21, 63  ;;  %s5246_s19 = sshll.u32 %s6939_s30, 1 }
  0x28   : > { %900 = vst [vmem:[#allocation2 + $0x18] sm:$0xf] %v899_v40  ;;  %901 = vst [vmem:[#allocation2 + $0x1c] sm:$0xf] %v597_v39  ;;  %v615_v45 = vrot.slane %v610_v37, 4  ;;  %v906_v46 = vsel %vm7024_vm6, %v605_v35, %v905_v22  ;;  %v409_v47 = vadd.f32 %v6975_v17, %v371_v38  ;;  %v440_v48 = vmax.f32 %v408_v42, 0.0  ;;  %s236_s28 = scalar_lea.vmem %s7934_s5, %s5246_s19 }
  0x29   : > { %904 = vst [vmem:[#allocation2 + $0x20] sm:$0x1] %v903_v41  ;;  %907 = vst [vmem:[#allocation2 + $0x24] sm:$0xf] %v906_v46  ;;  %v5670_v49 = vunpack.c.l.bf16 %v5799_v33  ;;  %v5671_v50 = vunpack.c.h.bf16 %v5799_v33  ;;  %v614_v56 = vsel %vm7016_vm5, %v606_v36, %v613_v44  ;;  %v374_v3 = vmul.f32 %v5674_v52, %v6967_v13  ;;  %v912_v52 = vld [vmem:[#allocation2 + $0x30] sm:$0xf] }
  0x2a   : > { %v441_v57 = vmax.f32 %v409_v47, 0.0  ;;  %v910_v58 = vsel %vm7030_vm7, %v615_v45, %v909_v43  ;;  %908 = vst [vmem:[#allocation2 + $0x28] sm:$0xf] %v614_v56  ;;  %v7068_v0 = vpack.c.bf16 %v440_v48, %v440_v48  ;;  %v375_v25 = vmul.f32 %v5675_v59, %v6967_v13  ;;  %v3575_v55 = vld [vmem:[#allocation2] sm:$0xe]  ;;  %s7946_s21 = smov (!%p228_p4, %s5244_s21), 63 }
  0x2b   : > { %v6770_v53 = vld [vmem:[#allocation2 + $0xc] sm:$0xff]   ;;  %v372_v1 = vmul.f32 %v5670_v49, %v6967_v13  ;;  %v373_v2 = vmul.f32 %v5671_v50, %v6967_v13  ;;  %911 = vst [vmem:[#allocation2 + $0x2c] sm:$0x1] %v910_v58  ;;  %v7090_v30 = vadd.f32 %v6975_v17, %v374_v3  ;;  %v5678_v31 = vunpack.c.l.bf16 %v7079_v15  ;;  %v6841_v33 = vld [vmem:[%s7930_s1 + $0x220] sm:$0xff]   ;;  %s5245_s22 = sshll.u32 %s7946_s21, 2 }
  0x2c   : > { %v2051_v61 = vld [vmem:[#allocation2 + $0xc] sm:$0xf]  ;;  %v2052_v62 = vld [vmem:[#allocation2 + $0x10] sm:$0xf]  ;;  %v2053_v63 = vld [vmem:[#allocation2 + $0x14] sm:$0x1]  ;;  %6059 = vmatmul.mubr.bf16.vlgmr.msra.gmra.mrb[0].mxu1 %v6770_v53  ;;  %v7074_v11 = vpack.c.bf16 %v441_v57, %v441_v57  ;;  %v7103_v43 = vadd.f32 %v6975_v17, %v375_v25  ;;  %s7886_s25 = scalar_lea.vmem %s7933_s4, %s5245_s22 }
  0x2d   : > { %v2130_v4 = vshrl.u32 %v2051_v61, 16  ;;  %v2133_v6 = vshll.u32 %v2051_v61, 16  ;;  %v2139_v8 = vshll.u32 %v2052_v62, 16  ;;  %v2143_v9 = vshrl.u32 %v2052_v62, 16  ;;  %6091 = vmatpush3.bf16.msra.mxu1 %v7012_v54 }
  0x2e   : > { %v2149_v10 = vshll.u32 %v2053_v63, 16  ;;  %v617_v12 = vshrl.u32 %v7068_v0, 16  ;;  %v620_v14 = vshll.u32 %v7068_v0, 16  ;;  %6092 = vmatprep.subr.bf16.mxu1 %v6780_v51  ;;  %v410_v54 = vadd.f32 %v6975_v17, %v372_v1 }
  0x2f   : > { %v2132_v16 = vrot.slane %v2130_v4, 4  ;;  %v2135_v18 = vrot.slane %v2133_v6, 5  ;;  %v2141_v19 = vrot.slane %v2139_v8, 5  ;;  %v2145_v20 = vrot.slane %v2143_v9, 4  ;;  %v6773_v22 = vld [vmem:[#allocation2 + $0x18] sm:$0xff]   ;;  %v6777_v6 = vld [vmem:[%s7930_s1 + $0x1c8] sm:$0xff]  }
  0x30   : > { %v2151_v23 = vrot.slane %v2149_v10, 5  ;;  %v7086_v24 = vadd.f32 %v6975_v17, %v373_v2  ;;  %v2054_v28 = vld [vmem:[#allocation2 + $0x18] sm:$0xf]  ;;  %v2055_v29 = vld [vmem:[#allocation2 + $0x1c] sm:$0xf]  ;;  %6062 = vmatprep.mubr.bf16.mxu1 %v6773_v22  ;;  %v625_v59 = vshrl.u32 %v7074_v11, 16 }
  0x31   : > { %v2136_v26 = vor.u32 %v2135_v18, %v2132_v16  ;;  %v2146_v27 = vor.u32 %v2145_v20, %v2141_v19  ;;  %v2056_v34 = vld [vmem:[#allocation2 + $0x20] sm:$0x1]  ;;  %v2154_v35 = vshrl.u32 %v2054_v28, 16  ;;  %v2157_v36 = vshll.u32 %v2054_v28, 16  ;;  %6093 = vmatpush3.bf16.msra.mxu1 %v6780_v51  ;;  %v6774_v39 = vld [vmem:[#allocation2 + $0x24] sm:$0xff]  }
  0x32   : > { %v2163_v37 = vshll.u32 %v2055_v29, 16  ;;  %v2167_v38 = vshrl.u32 %v2055_v29, 16  ;;  %v2173_v42 = vshll.u32 %v2056_v34, 16  ;;  %6094 = vmatprep.subr.bf16.mxu1 %v6785_v21  ;;  %v619_v51 = vrot.slane %v617_v12, 7  ;;  %v2057_v53 = vld [vmem:[#allocation2 + $0x24] sm:$0xf] }
  0x33   : > { %v2137_v40 = vrot.slane %v2136_v26, 4  ;;  %v2147_v41 = vrot.slane %v2146_v27, 4  ;;  %v2156_v44 = vrot.slane %v2154_v35, 4  ;;  %v2159_v45 = vrot.slane %v2157_v36, 5  ;;  %v2058_v10 = vld [vmem:[#allocation2 + $0x28] sm:$0xf] }
  0x34   : > { %v2165_v46 = vrot.slane %v2163_v37, 5  ;;  %v2169_v47 = vrot.slane %v2167_v38, 4  ;;  %6063 = vmatmul.mubr.bf16.gmra.mrb[4].mxu1 %v6774_v39  ;;  %v2175_v50 = vrot.slane %v2173_v42, 5  ;;  %v622_v61 = vor.u32 %v620_v14, %v619_v51  ;;  %v2059_v20 = vld [vmem:[#allocation2 + $0x2c] sm:$0x1]  ;;  %v6795_v22 = vld [vmem:[%s7930_s1 + $0xe0] sm:$0xff]  }
  0x35   : > { %v2142_v48 = vsel %vm7098_vm10, %v2137_v40, %v2141_v19  ;;  %v2152_v49 = vsel %vm7098_vm10, %v2147_v41, %v2151_v23  ;;  %v2160_v57 = vor.u32 %v2159_v45, %v2156_v44  ;;  %6095 = vmatpush3.bf16.msra.mxu1 %v6785_v21  ;;  %v623_v62 = vrot.slane %v619_v51, 4  ;;  %v916_v21 = vld [vmem:[#allocation2 + $0x38] sm:$0x1]  ;;  %v919_v37 = vld [vmem:[#allocation2 + $0x3c] sm:$0xf]  ;;  %v6781_v41 = vld [vmem:[%s7930_s1 + $0x1d0] sm:$0xff]  }
  0x36   : > { %v7109_v56 = vcombine.low %v2142_v48, %v2152_v49  ;;  %v2170_v58 = vor.u32 %v2169_v47, %v2165_v46  ;;  %v628_v63 = vshll.u32 %v7074_v11, 16  ;;  %v442_v0 = vmax.f32 %v410_v54, 0.0  ;;  %6096 = vmatprep.subr.bf16.mxu1 %v6790_v32  ;;  %v6799_v48 = vld [vmem:[%s7930_s1 + $0xe8] sm:$0xff]  }
  0x37   : > { %v2161_v1 = vrot.slane %v2160_v57, 4  ;;  %v627_v3 = vrot.slane %v625_v59, 7  ;;  %v443_v4 = vmax.f32 %v7086_v24, 0.0  ;;  %v913_v8 = vsel %vm7024_vm6, %v622_v61, %v912_v52 }
  0x38   : > { %6250 = vmatprep.mubr.bf16.mxu0 %v7109_v56  ;;  %v2171_v2 = vrot.slane %v2170_v58, 4  ;;  %v5596_v9 = vpack.c.bf16 %v442_v0, %v442_v0  ;;  %v2178_v12 = vshrl.u32 %v2057_v53, 16  ;;  %v2181_v11 = vshll.u32 %v2057_v53, 16  ;;  %914 = vst [vmem:[#allocation2 + $0x30] sm:$0xf] %v913_v8 }
  0x39   : > { %v2166_v14 = vsel %vm7098_vm10, %v2161_v1, %v2165_v46  ;;  %v630_v18 = vor.u32 %v628_v63, %v627_v3  ;;  %v632_v19 = vrot.slane %v627_v3, 4  ;;  %6097 = vmatpush3.bf16.msra.mxu1 %v6790_v32  ;;  %v5597_v54 = vpack.c.bf16 %v443_v4, %v443_v4  ;;  %v6782_v3 = vld [vmem:[%s7930_s1 + $0x1d8] sm:$0xff]  }
  0x3a   : > { %v2176_v16 = vsel %vm7098_vm10, %v2171_v2, %v2175_v50  ;;  %v634_v24 = vshrl.u32 %v5596_v9, 16  ;;  %v637_v25 = vshll.u32 %v5596_v9, 16  ;;  %v2180_v27 = vrot.slane %v2178_v12, 4  ;;  %6098 = vmatprep.subr.bf16.mxu1 %v6795_v22 }
  0x3b   : > { %v7127_v23 = vcombine.low %v2166_v14, %v2176_v16  ;;  %v631_v26 = vsel %vm7016_vm5, %v623_v62, %v630_v18  ;;  %v2183_v28 = vrot.slane %v2181_v11, 5  ;;  %v2187_v29 = vshll.u32 %v2058_v10, 16  ;;  %v7146_v62 = vld [vmem:[%s6958_s17 + $0x38] sm:$0xff]  }
  0x3c   : > { %915 = vst [vmem:[#allocation2 + $0x34] sm:$0xf] %v631_v26  ;;  %v636_v32 = vrot.slane %v634_v24, 7  ;;  %v642_v34 = vshrl.u32 %v5597_v54, 16  ;;  %v645_v35 = vshll.u32 %v5597_v54, 16  ;;  %v2191_v36 = vshrl.u32 %v2058_v10, 16 }
  0x3d   : > { %6251 = vmatmul.mubr.bf16.vlgmr.msra.gmra.mrb[0].mxu0 %v7127_v23  ;;  %v2184_v38 = vor.u32 %v2183_v28, %v2180_v27  ;;  %v2189_v39 = vrot.slane %v2187_v29, 5  ;;  %v2197_v40 = vshll.u32 %v2059_v20, 16  ;;  %v917_v42 = vsel %vm7030_vm7, %v632_v19, %v916_v21  ;;  %6099 = vmatpush3.bf16.msra.mxu1 %v6795_v22  ;;  %v6803_v24 = vld [vmem:[%s7930_s1 + $0xf0] sm:$0xff]   ;;  %v926_v29 = vld [vmem:[#allocation2 + $0x48] sm:$0xf] }
  0x3e   : > { %6283 = vmatpush3.bf16.msra.mxu0 %v7037_v7  ;;  %v639_v44 = vor.u32 %v637_v25, %v636_v32  ;;  %v640_v45 = vrot.slane %v636_v32, 4  ;;  %v644_v46 = vrot.slane %v642_v34, 7  ;;  %v2193_v47 = vrot.slane %v2191_v36, 4  ;;  %918 = vst [vmem:[#allocation2 + $0x38] sm:$0x1] %v917_v42  ;;  %6100 = vmatprep.subr.bf16.mxu1 %v6799_v48  ;;  %v6786_v32 = vld [vmem:[%s7930_s1 + $0x1e0] sm:$0xff]  }
  0x3f   : > { %6284 = vmatprep.subr.bf16.mxu0 %v6777_v6  ;;  %v923_v7 = vld [vmem:[#allocation2 + $0x44] sm:$0x1]  ;;  %v2185_v49 = vrot.slane %v2184_v38, 4  ;;  %v2199_v50 = vrot.slane %v2197_v40, 5  ;;  %v444_v51 = vmax.f32 %v7090_v30, 0.0  ;;  %v445_v52 = vmax.f32 %v7103_v43, 0.0 }
  0x40   : > { %v647_v53 = vor.u32 %v645_v35, %v644_v46  ;;  %v649_v57 = vrot.slane %v644_v46, 4  ;;  %v920_v58 = vsel %vm7024_vm6, %v639_v44, %v919_v37  ;;  %v2194_v59 = vor.u32 %v2193_v47, %v2189_v39  ;;  %v2060_v61 = vld [vmem:[#allocation2 + $0x30] sm:$0xf]  ;;  %v6805_v38 = vld [vmem:[%s7930_s1 + $0xf8] sm:$0xff]  }
  0x41   : > { %921 = vst [vmem:[#allocation2 + $0x3c] sm:$0xf] %v920_v58  ;;  %v2190_v63 = vsel %vm7098_vm10, %v2185_v49, %v2189_v39  ;;  %v2202_v0 = vshrl.u32 %v2060_v61, 16  ;;  %v2205_v1 = vshll.u32 %v2060_v61, 16  ;;  %v5598_v30 = vpack.c.bf16 %v444_v51, %v444_v51  ;;  %6101 = vmatpush3.bf16.msra.mxu1 %v6799_v48 }
  0x42   : > { %6285 = vmatpush3.bf16.msra.mxu0 %v6777_v6  ;;  %v648_v43 = vsel %vm7016_vm5, %v640_v45, %v647_v53  ;;  %v2195_v2 = vrot.slane %v2194_v59, 4  ;;  %v5599_v4 = vpack.c.bf16 %v445_v52, %v445_v52  ;;  %v5679_v6 = vunpack.c.h.bf16 %v7079_v15  ;;  %6102 = vmatprep.subr.bf16.mxu1 %v6803_v24  ;;  %v930_v53 = vld [vmem:[#allocation2 + $0x50] sm:$0x1] }
  0x43   : > { %6286 = vmatprep.subr.bf16.mxu0 %v6781_v41  ;;  %v6778_v8 = vld [vmem:[#allocation2 + $0x30] sm:$0xff]   ;;  %922 = vst [vmem:[#allocation2 + $0x40] sm:$0xf] %v648_v43  ;;  %v2204_v10 = vrot.slane %v2202_v0, 4  ;;  %v376_v12 = vmul.f32 %v5678_v31, %v6967_v13  ;;  %v924_v11 = vsel %vm7030_vm7, %v649_v57, %v923_v7  ;;  %v5682_v14 = vunpack.c.l.bf16 %v7146_v62  ;;  %v6787_v57 = vld [vmem:[%s7930_s1 + $0x1e8] sm:$0xff]  }
  0x44   : > { %v2061_v9 = vld [vmem:[#allocation2 + $0x34] sm:$0xf]  ;;  %v2200_v16 = vsel %vm7098_vm10, %v2195_v2, %v2199_v50  ;;  %v2207_v18 = vrot.slane %v2205_v1, 5  ;;  %925 = vst [vmem:[#allocation2 + $0x44] sm:$0x1] %v924_v11  ;;  %6066 = vmatprep.mubr.bf16.mxu1 %v6778_v8  ;;  %v651_v54 = vshrl.u32 %v5598_v30, 16  ;;  %v377_v37 = vmul.f32 %v5679_v6, %v6967_v13 }
  0x45   : > { %v2211_v19 = vshll.u32 %v2061_v9, 16  ;;  %v2215_v20 = vshrl.u32 %v2061_v9, 16  ;;  %v7164_v21 = vcombine.low %v2190_v63, %v2200_v16  ;;  %v2062_v22 = vld [vmem:[#allocation2 + $0x38] sm:$0x1]  ;;  %v654_v15 = vshll.u32 %v5598_v30, 16  ;;  %6103 = vmatpush3.bf16.msra.mxu1 %v6803_v24 }
  0x46   : > { %6287 = vmatpush3.bf16.msra.mxu0 %v6781_v41  ;;  %v659_v31 = vshrl.u32 %v5599_v4, 16  ;;  %v2208_v25 = vor.u32 %v2207_v18, %v2204_v10  ;;  %v2221_v28 = vshll.u32 %v2062_v22, 16  ;;  %v653_v34 = vrot.slane %v651_v54, 7  ;;  %6104 = vmatprep.subr.bf16.mxu1 %v6805_v38  ;;  %v6807_v10 = vld [vmem:[%s7930_s1 + $0x180] sm:$0xff]  }
  0x47   : > { %v2213_v26 = vrot.slane %v2211_v19, 5  ;;  %v2217_v27 = vrot.slane %v2215_v20, 4  ;;  %6288 = vmatprep.subr.bf16.mxu0 %v6782_v3  ;;  %6254 = vmatprep.mubr.bf16.mxu0 %v7164_v21  ;;  %v662_v36 = vshll.u32 %v5599_v4, 16  ;;  %v414_v42 = vadd.f32 %v6975_v17, %v376_v12  ;;  %v6791_v19 = vld [vmem:[%s7930_s1 + $0x1f0] sm:$0xff]  }
  0x48   : > { %v661_v35 = vrot.slane %v659_v31, 7  ;;  %v2209_v39 = vrot.slane %v2208_v25, 4  ;;  %v2223_v41 = vrot.slane %v2221_v28, 5  ;;  %v2063_v44 = vld [vmem:[#allocation2 + $0x3c] sm:$0xf]  ;;  %v656_v45 = vor.u32 %v654_v15, %v653_v34 }
  0x49   : > { %v2218_v40 = vor.u32 %v2217_v27, %v2213_v26  ;;  %v657_v46 = vrot.slane %v653_v34, 4  ;;  %v415_v51 = vadd.f32 %v6975_v17, %v377_v37  ;;  %v446_v52 = vmax.f32 %v414_v42, 0.0  ;;  %6105 = vmatpush3.bf16.msra.mxu1 %v6805_v38  ;;  %v7203_v27 = vld [vmem:[%s6958_s17 + $0x40] sm:$0xff]   ;;  %v933_v28 = vld [vmem:[#allocation2 + $0x54] sm:$0xf] }
  0x4a   : > { %6289 = vmatpush3.bf16.msra.mxu0 %v6782_v3  ;;  %v664_v47 = vor.u32 %v662_v36, %v661_v35  ;;  %v666_v7 = vrot.slane %v661_v35, 4  ;;  %v6779_v48 = vld [vmem:[#allocation2 + $0x3c] sm:$0xff]   ;;  %v2214_v49 = vsel %vm7098_vm10, %v2209_v39, %v2213_v26  ;;  %v927_v59 = vsel %vm7024_vm6, %v656_v45, %v926_v29  ;;  %6138 = vmatprep.subr.bf16.mxu1 %v6807_v10 }
  0x4b   : > { %v2219_v50 = vrot.slane %v2218_v40, 4  ;;  %6290 = vmatprep.subr.bf16.mxu0 %v6786_v32  ;;  %v2064_v61 = vld [vmem:[#allocation2 + $0x40] sm:$0xf]  ;;  %v2065_v63 = vld [vmem:[#allocation2 + $0x44] sm:$0x1]  ;;  %v2226_v0 = vshrl.u32 %v2063_v44, 16  ;;  %6067 = vmatmul.mubr.bf16.gmra.mrb[8].mxu1 %v6779_v48  ;;  %v5600_v2 = vpack.c.bf16 %v446_v52, %v446_v52  ;;  %v5683_v26 = vunpack.c.h.bf16 %v7146_v62 }
  0x4c   : > { %v665_v58 = vsel %vm7016_vm5, %v657_v46, %v664_v47  ;;  %v2229_v1 = vshll.u32 %v2063_v44, 16  ;;  %928 = vst [vmem:[#allocation2 + $0x48] sm:$0xf] %v927_v59  ;;  %v447_v43 = vmax.f32 %v415_v51, 0.0  ;;  %v2235_v3 = vshll.u32 %v2064_v61, 16  ;;  %v6792_v40 = vld [vmem:[%s7930_s1 + $0x1f8] sm:$0xff]  }
  0x4d   : > { %v2224_v30 = vsel %vm7098_vm10, %v2219_v50, %v2223_v41  ;;  %929 = vst [vmem:[#allocation2 + $0x4c] sm:$0xf] %v665_v58  ;;  %v2228_v6 = vrot.slane %v2226_v0, 4  ;;  %v2239_v9 = vshrl.u32 %v2064_v61, 16  ;;  %v668_v11 = vshrl.u32 %v5600_v2, 16  ;;  %v7228_v0 = vld [vmem:[%s7930_s1 + $0x80] sm:$0xff]  }
  0x4e   : > { %v7190_v4 = vcombine.low %v2214_v49, %v2224_v30  ;;  %v2231_v8 = vrot.slane %v2229_v1, 5  ;;  %6291 = vmatpush3.bf16.msra.mxu0 %v6786_v32  ;;  %v5601_v12 = vpack.c.bf16 %v447_v43, %v447_v43  ;;  %v671_v16 = vshll.u32 %v5600_v2, 16  ;;  %v937_v50 = vld [vmem:[#allocation2 + $0x5c] sm:$0x1] }
  0x4f   : > { %v2237_v18 = vrot.slane %v2235_v3, 5  ;;  %6292 = vmatprep.subr.bf16.mxu0 %v6787_v57  ;;  %v2241_v22 = vrot.slane %v2239_v9, 4  ;;  %v2245_v54 = vshll.u32 %v2065_v63, 16  ;;  %v931_v15 = vsel %vm7030_vm7, %v666_v7, %v930_v53 }
  0x50   : > { %6255 = vmatmul.mubr.bf16.gmra.mrb[4].mxu0 %v7190_v4  ;;  %v2232_v20 = vor.u32 %v2231_v8, %v2228_v6  ;;  %v670_v31 = vrot.slane %v668_v11, 7  ;;  %v676_v24 = vshrl.u32 %v5601_v12, 16  ;;  %v679_v25 = vshll.u32 %v5601_v12, 16  ;;  %932 = vst [vmem:[#allocation2 + $0x50] sm:$0x1] %v931_v15 }
  0x51   : > { %v2242_v32 = vor.u32 %v2241_v22, %v2237_v18  ;;  %v2247_v34 = vrot.slane %v2245_v54, 5  ;;  %v378_v35 = vmul.f32 %v5682_v14, %v6967_v13  ;;  %v379_v39 = vmul.f32 %v5683_v26, %v6967_v13 }
  0x52   : > { %v2233_v29 = vrot.slane %v2232_v20, 4  ;;  %6293 = vmatpush3.bf16.msra.mxu0 %v6787_v57  ;;  %v673_v36 = vor.u32 %v671_v16, %v670_v31  ;;  %v674_v37 = vrot.slane %v670_v31, 4  ;;  %v678_v38 = vrot.slane %v676_v24, 7 }
  0x53   : > { %6294 = vmatprep.subr.bf16.mxu0 %v6791_v19  ;;  %v2243_v44 = vrot.slane %v2242_v32, 4  ;;  %v416_v45 = vadd.f32 %v6975_v17, %v378_v35  ;;  %v5686_v62 = vunpack.c.l.bf16 %v7203_v27  ;;  %v2066_v7 = vld [vmem:[#allocation2 + $0x48] sm:$0xf]  ;;  %v417_v49 = vadd.f32 %v6975_v17, %v379_v39 }
  0x54   : > { %v6783_v41 = vld [vmem:[#allocation2 + $0x48] sm:$0xff]   ;;  %v2238_v42 = vsel %vm7098_vm10, %v2233_v29, %v2237_v18  ;;  %v681_v14 = vor.u32 %v679_v25, %v678_v38  ;;  %v683_v46 = vrot.slane %v678_v38, 4  ;;  %v934_v47 = vsel %vm7024_vm6, %v673_v36, %v933_v28  ;;  %v7247_v38 = vld [vmem:[%s7932_s3] ss:$0 sm:$0xff] }
  0x55   : > { %v2067_v48 = vld [vmem:[#allocation2 + $0x4c] sm:$0xf]  ;;  %6070 = vmatprep.mubr.bf16.mxu1 %v6783_v41  ;;  %935 = vst [vmem:[#allocation2 + $0x54] sm:$0xf] %v934_v47  ;;  %v2248_v51 = vsel %vm7098_vm10, %v2243_v44, %v2247_v34  ;;  %v2250_v52 = vshrl.u32 %v2066_v7, 16  ;;  %v2253_v53 = vshll.u32 %v2066_v7, 16  ;;  %v5687_v10 = vunpack.c.h.bf16 %v7203_v27 }
  0x56   : > { %v2259_v57 = vshll.u32 %v2067_v48, 16  ;;  %6295 = vmatpush3.bf16.msra.mxu0 %v6791_v19  ;;  %v682_v58 = vsel %vm7016_vm5, %v674_v37, %v681_v14  ;;  %v7223_v59 = vcombine.low %v2238_v42, %v2248_v51  ;;  %v2263_v61 = vshrl.u32 %v2067_v48, 16  ;;  %v7236_v19 = vld [vmem:[%s6958_s17 + $0x48] sm:$0xff]   ;;  %v940_v37 = vld [vmem:[#allocation2 + $0x60] sm:$0xf] }
  0x57   : > { %v448_v63 = vmax.f32 %v416_v45, 0.0  ;;  %6296 = vmatprep.subr.bf16.mxu0 %v6792_v40  ;;  %936 = vst [vmem:[#allocation2 + $0x58] sm:$0xf] %v682_v58  ;;  %v2068_v1 = vld [vmem:[#allocation2 + $0x50] sm:$0x1]  ;;  %v2252_v30 = vrot.slane %v2250_v52, 4  ;;  %v380_v16 = vmul.f32 %v5686_v62, %v6967_v13  ;;  %v938_v18 = vsel %vm7030_vm7, %v683_v46, %v937_v50 }
  0x58   : > { %v2255_v43 = vrot.slane %v2253_v53, 5  ;;  %v2261_v2 = vrot.slane %v2259_v57, 5  ;;  %v449_v3 = vmax.f32 %v417_v49, 0.0  ;;  %6258 = vmatprep.mubr.bf16.mxu0 %v7223_v59  ;;  %v2265_v6 = vrot.slane %v2263_v61, 4  ;;  %939 = vst [vmem:[#allocation2 + $0x5c] sm:$0x1] %v938_v18 }
  0x59   : > { %v2269_v8 = vshll.u32 %v2068_v1, 16  ;;  %v5602_v9 = vpack.c.bf16 %v448_v63, %v448_v63  ;;  %v381_v26 = vmul.f32 %v5687_v10, %v6967_v13  ;;  %v418_v29 = vadd.f32 %v6975_v17, %v380_v16  ;;  %v944_v51 = vld [vmem:[#allocation2 + $0x68] sm:$0x1]  ;;  %v5805_v63 = vld [vmem:[%s6958_s17 + $0x50] sm:$0xff]  }
  0x5a   : > { %v2256_v12 = vor.u32 %v2255_v43, %v2252_v30  ;;  %v5603_v11 = vpack.c.bf16 %v449_v3, %v449_v3  ;;  %6297 = vmatpush3.bf16.msra.mxu0 %v6792_v40  ;;  %v2266_v20 = vor.u32 %v2265_v6, %v2261_v2  ;;  %v5690_v34 = vunpack.c.l.bf16 %v7236_v19 }
  0x5b   : > { %v2271_v22 = vrot.slane %v2269_v8, 5  ;;  %v685_v54 = vshrl.u32 %v5602_v9, 16  ;;  %v688_v15 = vshll.u32 %v5602_v9, 16  ;;  %6330 = vmatprep.subr.bf16.mxu0 %v7228_v0  ;;  %v419_v39 = vadd.f32 %v7247_v38, %v381_v26 }
  0x5c   : > { %v2257_v31 = vrot.slane %v2256_v12, 4  ;;  %v693_v24 = vshrl.u32 %v5603_v11, 16  ;;  %v696_v25 = vshll.u32 %v5603_v11, 16  ;;  %v2267_v27 = vrot.slane %v2266_v20, 4  ;;  %v2069_v32 = vld [vmem:[#allocation2 + $0x54] sm:$0xf] }
  0x5d   : > { %v687_v28 = vrot.slane %v685_v54, 7  ;;  %v2274_v13 = vshrl.u32 %v2069_v32, 16  ;;  %v450_v44 = vmax.f32 %v418_v29, 0.0  ;;  %v451_v46 = vmax.f32 %v419_v39, 0.0  ;;  %v947_v20 = vld [vmem:[#allocation2 + $0x6c] sm:$0xf] }
  0x5e   : > { %v2262_v35 = vsel %vm7098_vm10, %v2257_v31, %v2261_v2  ;;  %v695_v36 = vrot.slane %v693_v24, 7  ;;  %v6784_v40 = vld [vmem:[#allocation2 + $0x54] sm:$0xff]   ;;  %v2272_v17 = vsel %vm7098_vm10, %v2267_v27, %v2271_v22  ;;  %v2277_v50 = vshll.u32 %v2069_v32, 16 }
  0x5f   : > { %v690_v41 = vor.u32 %v688_v15, %v687_v28  ;;  %v691_v42 = vrot.slane %v687_v28, 4  ;;  %v7252_v45 = vcombine.low %v2262_v35, %v2272_v17  ;;  %v2070_v47 = vld [vmem:[#allocation2 + $0x58] sm:$0xf]  ;;  %6071 = vmatmul.mubr.bf16.gmra.mrb[12].mxu1 %v6784_v40  ;;  %v5604_v48 = vpack.c.bf16 %v450_v44, %v450_v44  ;;  %v2071_v57 = vld [vmem:[#allocation2 + $0x5c] sm:$0x1] }
  0x60   : > { %v698_v62 = vor.u32 %v696_v25, %v695_v36  ;;  %v700_v14 = vrot.slane %v695_v36, 4  ;;  %v2276_v49 = vrot.slane %v2274_v13, 4  ;;  %v5605_v53 = vpack.c.bf16 %v451_v46, %v451_v46  ;;  %v7268_v15 = vld [vmem:[%s7931_s2] ss:$0 sm:$0xff] }
  0x61   : > { %v941_v7 = vsel %vm7024_vm6, %v690_v41, %v940_v37  ;;  %6259 = vmatmul.mubr.bf16.gmra.mrb[8].mxu0 %v7252_v45  ;;  %v2283_v58 = vshll.u32 %v2070_v47, 16  ;;  %v2287_v61 = vshrl.u32 %v2070_v47, 16  ;;  %v702_v1 = vshrl.u32 %v5604_v48, 16 }
  0x62   : > { %v699_v52 = vsel %vm7016_vm5, %v691_v42, %v698_v62  ;;  %942 = vst [vmem:[#allocation2 + $0x60] sm:$0xf] %v941_v7  ;;  %v705_v30 = vshll.u32 %v5604_v48, 16  ;;  %v2279_v43 = vrot.slane %v2277_v50, 5  ;;  %v2293_v2 = vshll.u32 %v2071_v57, 16 }
  0x63   : > { %943 = vst [vmem:[#allocation2 + $0x64] sm:$0xf] %v699_v52  ;;  %v710_v3 = vshrl.u32 %v5605_v53, 16  ;;  %v713_v6 = vshll.u32 %v5605_v53, 16  ;;  %v2285_v8 = vrot.slane %v2283_v58, 5  ;;  %v2289_v9 = vrot.slane %v2287_v61, 4 }
  0x64   : > { %v704_v10 = vrot.slane %v702_v1, 7  ;;  %v2280_v12 = vor.u32 %v2279_v43, %v2276_v49  ;;  %v2295_v11 = vrot.slane %v2293_v2, 5  ;;  %v945_v16 = vsel %vm7030_vm7, %v700_v14, %v944_v51  ;;  %v5806_v51 = vld [vmem:[%s6958_s17 + $0x58] sm:$0xff]  }
  0x65   : > { %v7262_v18 = vrot.slane %v710_v3, 7  ;;  %v2290_v22 = vor.u32 %v2289_v9, %v2285_v8  ;;  %946 = vst [vmem:[#allocation2 + $0x68] sm:$0x1] %v945_v16  ;;  %v5691_v54 = vunpack.c.h.bf16 %v7236_v19  ;;  %v382_v31 = vmul.f32 %v7268_v15, %v5690_v34 }
  0x66   : > { %v707_v24 = vor.u32 %v705_v30, %v704_v10  ;;  %v708_v25 = vrot.slane %v704_v10, 4  ;;  %v2281_v26 = vrot.slane %v2280_v12, 4  ;;  %v5694_v27 = vunpack.c.l.bf16 %v5805_v63 }
  0x67   : > { %v715_v28 = vor.u32 %v713_v6, %v7262_v18  ;;  %v717_v29 = vrot.slane %v7262_v18, 4  ;;  %v2291_v32 = vrot.slane %v2290_v22, 4  ;;  %v383_v35 = vmul.f32 %v7268_v15, %v5691_v54 }
  0x68   : > { %v948_v19 = vsel %vm7024_vm6, %v707_v24, %v947_v20  ;;  %v2286_v36 = vsel %vm7098_vm10, %v2281_v26, %v2285_v8  ;;  %v420_v34 = vadd.f32 %v7247_v38, %v382_v31  ;;  %v5695_v39 = vunpack.c.h.bf16 %v5805_v63 }
  0x69   : > { %v2072_v37 = vld [vmem:[#allocation2 + $0x60] sm:$0xf]  ;;  %v716_v40 = vsel %vm7016_vm5, %v708_v25, %v715_v28  ;;  %949 = vst [vmem:[#allocation2 + $0x6c] sm:$0xf] %v948_v19  ;;  %v2296_v17 = vsel %vm7098_vm10, %v2291_v32, %v2295_v11  ;;  %v421_v44 = vadd.f32 %v7247_v38, %v383_v35  ;;  %v384_v50 = vmul.f32 %v7268_v15, %v5694_v27  ;;  %v954_v35 = vld [vmem:[#allocation2 + $0x78] sm:$0xf] }
  0x6a   : > { %v6788_v13 = vld [vmem:[#allocation2 + $0x60] sm:$0xff]   ;;  %v2298_v42 = vshrl.u32 %v2072_v37, 16  ;;  %950 = vst [vmem:[#allocation2 + $0x70] sm:$0xf] %v716_v40  ;;  %v7284_v62 = vcombine.low %v2286_v36, %v2296_v17  ;;  %v2301_v14 = vshll.u32 %v2072_v37, 16  ;;  %v452_v48 = vmax.f32 %v420_v34, 0.0 }
  0x6b   : > { %v2073_v41 = vld [vmem:[#allocation2 + $0x64] sm:$0xf]  ;;  %6074 = vmatprep.mubr.bf16.mxu1 %v6788_v13  ;;  %v453_v49 = vmax.f32 %v421_v44, 0.0  ;;  %v385_v61 = vmul.f32 %v7268_v15, %v5695_v39  ;;  %v422_v43 = vadd.f32 %v7247_v38, %v384_v50  ;;  %v5698_v8 = vunpack.c.l.bf16 %v5806_v51 }
  0x6c   : > { %v2307_v46 = vshll.u32 %v2073_v41, 16  ;;  %v2311_v47 = vshrl.u32 %v2073_v41, 16  ;;  %v2300_v7 = vrot.slane %v2298_v42, 4  ;;  %6262 = vmatprep.mubr.bf16.mxu0 %v7284_v62  ;;  %v2074_v52 = vld [vmem:[#allocation2 + $0x68] sm:$0x1]  ;;  %v2303_v53 = vrot.slane %v2301_v14, 5 }
  0x6d   : > { %v2317_v63 = vshll.u32 %v2074_v52, 16  ;;  %v5606_v1 = vpack.c.bf16 %v452_v48, %v452_v48  ;;  %v5607_v30 = vpack.c.bf16 %v453_v49, %v453_v49  ;;  %v423_v6 = vadd.f32 %v7247_v38, %v385_v61  ;;  %v5807_v40 = vld [vmem:[%s6958_s17 + $0x60] sm:$0xff]   ;;  %v5808_v14 = vld [vmem:[%s6958_s17 + $0x68] sm:$0xff]  }
  0x6e   : > { %v2309_v57 = vrot.slane %v2307_v46, 5  ;;  %v2313_v58 = vrot.slane %v2311_v47, 4  ;;  %v2304_v2 = vor.u32 %v2303_v53, %v2300_v7  ;;  %v454_v54 = vmax.f32 %v422_v43, 0.0  ;;  %v961_v53 = vld [vmem:[#allocation2 + $0x84] sm:$0xf] }
  0x6f   : > { %v2319_v9 = vrot.slane %v2317_v63, 5  ;;  %v719_v10 = vshrl.u32 %v5606_v1, 16  ;;  %v722_v12 = vshll.u32 %v5606_v1, 16  ;;  %v727_v11 = vshrl.u32 %v5607_v30, 16 }
  0x70   : > { %v2314_v3 = vor.u32 %v2313_v58, %v2309_v57  ;;  %v2305_v16 = vrot.slane %v2304_v2, 4  ;;  %v730_v22 = vshll.u32 %v5607_v30, 16  ;;  %v455_v26 = vmax.f32 %v423_v6, 0.0 }
  0x71   : > { %v7292_v31 = vld [vmem:[#allocation2 + $0x6c] sm:$0xff]   ;;  %v721_v24 = vrot.slane %v719_v10, 7  ;;  %v7294_v25 = vrot.slane %v727_v11, 7  ;;  %v5699_v27 = vunpack.c.h.bf16 %v5806_v51  ;;  %v5608_v19 = vpack.c.bf16 %v454_v54, %v454_v54 }
  0x72   : > { %v2315_v20 = vrot.slane %v2314_v3, 4  ;;  %v2310_v28 = vsel %vm7098_vm10, %v2305_v16, %v2309_v57  ;;  %v386_v36 = vmul.f32 %v7268_v15, %v5698_v8  ;;  %6075 = vmatmul.mubr.bf16.gmra.mrb[16].mxu1 %v7292_v31  ;;  %v5609_v41 = vpack.c.bf16 %v455_v26, %v455_v26 }
  0x73   : > { %v724_v34 = vor.u32 %v722_v12, %v721_v24  ;;  %v725_v39 = vrot.slane %v721_v24, 4  ;;  %v732_v13 = vor.u32 %v730_v22, %v7294_v25  ;;  %v734_v17 = vrot.slane %v7294_v25, 4  ;;  %v951_v22 = vld [vmem:[#allocation2 + $0x74] sm:$0x1] }
  0x74   : > { %v2320_v32 = vsel %vm7098_vm10, %v2315_v20, %v2319_v9  ;;  %v736_v42 = vshrl.u32 %v5608_v19, 16  ;;  %v739_v44 = vshll.u32 %v5608_v19, 16  ;;  %v387_v7 = vmul.f32 %v7268_v15, %v5699_v27  ;;  %v5809_v20 = vld [vmem:[%s6958_s17 + $0x70] sm:$0xff]  }
  0x75   : > { %v7302_v37 = vcombine.low %v2310_v28, %v2320_v32  ;;  %v733_v46 = vsel %vm7016_vm5, %v725_v39, %v732_v13  ;;  %v955_v47 = vsel %vm7024_vm6, %v724_v34, %v954_v35  ;;  %v424_v48 = vadd.f32 %v7247_v38, %v386_v36  ;;  %v6800_v28 = vld [vmem:[%s7930_s1 + $0x88] sm:$0xff]  }
  0x76   : > { %956 = vst [vmem:[#allocation2 + $0x78] sm:$0xf] %v955_v47  ;;  %957 = vst [vmem:[#allocation2 + $0x7c] sm:$0xf] %v733_v46  ;;  %v738_v49 = vrot.slane %v736_v42, 7  ;;  %v744_v50 = vshrl.u32 %v5609_v41, 16  ;;  %v5702_v52 = vunpack.c.l.bf16 %v5807_v40  ;;  %v425_v57 = vadd.f32 %v7247_v38, %v387_v7 }
  0x77   : > { %6263 = vmatmul.mubr.bf16.gmra.mrb[12].mxu0 %v7302_v37  ;;  %v747_v51 = vshll.u32 %v5609_v41, 16  ;;  %v456_v58 = vmax.f32 %v424_v48, 0.0  ;;  %v5703_v61 = vunpack.c.h.bf16 %v5807_v40  ;;  %v5706_v63 = vunpack.c.l.bf16 %v5808_v14 }
  0x78   : > { %6298 = vmatprep.mubr.bf16.mxu0 %v7127_v23  ;;  %v741_v1 = vor.u32 %v739_v44, %v738_v49  ;;  %v742_v30 = vrot.slane %v738_v49, 4  ;;  %v7317_v43 = vrot.slane %v744_v50, 7  ;;  %v388_v2 = vmul.f32 %v7268_v15, %v5702_v52 }
  0x79   : > { %v457_v3 = vmax.f32 %v425_v57, 0.0  ;;  %v5610_v6 = vpack.c.bf16 %v456_v58, %v456_v58  ;;  %v389_v8 = vmul.f32 %v7268_v15, %v5703_v61  ;;  %v5707_v9 = vunpack.c.h.bf16 %v5808_v14  ;;  %v968_v14 = vld [vmem:[#allocation2 + $0x90] sm:$0xf] }
  0x7a   : > { %v749_v10 = vor.u32 %v747_v51, %v7317_v43  ;;  %v751_v12 = vrot.slane %v7317_v43, 4  ;;  %v962_v11 = vsel %vm7024_vm6, %v741_v1, %v961_v53  ;;  %v426_v16 = vadd.f32 %v7247_v38, %v388_v2 }
  0x7b   : > { %963 = vst [vmem:[#allocation2 + $0x84] sm:$0xf] %v962_v11  ;;  %v5611_v54 = vpack.c.bf16 %v457_v3, %v457_v3  ;;  %v753_v24 = vshrl.u32 %v5610_v6, 16  ;;  %v756_v26 = vshll.u32 %v5610_v6, 16  ;;  %v427_v27 = vadd.f32 %v7247_v38, %v389_v8  ;;  %v975_v6 = vld [vmem:[#allocation2 + $0x9c] sm:$0xf] }
  0x7c   : > { %v750_v32 = vsel %vm7016_vm5, %v742_v30, %v749_v10  ;;  %v458_v35 = vmax.f32 %v426_v16, 0.0  ;;  %v390_v19 = vmul.f32 %v7268_v15, %v5706_v63  ;;  %v391_v36 = vmul.f32 %v7268_v15, %v5707_v9  ;;  %v2075_v11 = vld [vmem:[#allocation2 + $0x6c] sm:$0xf] }
  0x7d   : > { %v7335_v34 = vld [vmem:[#allocation2 + $0x78] sm:$0xff]   ;;  %964 = vst [vmem:[#allocation2 + $0x88] sm:$0xf] %v750_v32  ;;  %v755_v39 = vrot.slane %v753_v24, 7  ;;  %v5710_v13 = vunpack.c.l.bf16 %v5809_v20  ;;  %v5711_v40 = vunpack.c.h.bf16 %v5809_v20  ;;  %v952_v41 = vsel %vm7030_vm7, %v717_v29, %v951_v22 }
  0x7e   : > { %v761_v42 = vshrl.u32 %v5611_v54, 16  ;;  %v764_v44 = vshll.u32 %v5611_v54, 16  ;;  %v459_v46 = vmax.f32 %v427_v27, 0.0  ;;  %v5612_v47 = vpack.c.bf16 %v458_v35, %v458_v35  ;;  %953 = vst [vmem:[#allocation2 + $0x74] sm:$0x1] %v952_v41  ;;  %6078 = vmatprep.mubr.bf16.mxu1 %v7335_v34 }
  0x7f   : > { %6299 = vmatmul.mubr.bf16.vlgmr.msra.gmra.mrb[0].mxu0 %v7164_v21  ;;  %v758_v7 = vor.u32 %v756_v26, %v755_v39  ;;  %v759_v48 = vrot.slane %v755_v39, 4  ;;  %v428_v18 = vadd.f32 %v7247_v38, %v390_v19  ;;  %v429_v49 = vadd.f32 %v7247_v38, %v391_v36  ;;  %v6806_v26 = vld [vmem:[%s7930_s1 + $0x98] sm:$0xff]   ;;  %v2076_v19 = vld [vmem:[#allocation2 + $0x70] sm:$0xf] }
  0x80   : > { %6331 = vmatpush3.bf16.msra.mxu0 %v7228_v0  ;;  %6302 = vmatprep.mubr.bf16.mxu0 %v7190_v4  ;;  %v6804_v0 = vld [vmem:[%s7930_s1 + $0x90] sm:$0xff]   ;;  %v7350_v29 = vrot.slane %v761_v42, 7  ;;  %v5613_v50 = vpack.c.bf16 %v459_v46, %v459_v46  ;;  %v770_v51 = vshrl.u32 %v5612_v47, 16  ;;  %v773_v52 = vshll.u32 %v5612_v47, 16 }
  0x81   : > { %6332 = vmatprep.subr.bf16.mxu0 %v6800_v28  ;;  %v969_v53 = vsel %vm7024_vm6, %v758_v7, %v968_v14  ;;  %v460_v57 = vmax.f32 %v428_v18, 0.0  ;;  %v461_v58 = vmax.f32 %v429_v49, 0.0  ;;  %v392_v61 = vmul.f32 %v7268_v15, %v5710_v13  ;;  %v958_v49 = vld [vmem:[#allocation2 + $0x80] sm:$0x1] }
  0x82   : > { %v766_v63 = vor.u32 %v764_v44, %v7350_v29  ;;  %v768_v1 = vrot.slane %v7350_v29, 4  ;;  %970 = vst [vmem:[#allocation2 + $0x90] sm:$0xf] %v969_v53  ;;  %v772_v30 = vrot.slane %v770_v51, 7  ;;  %v778_v2 = vshrl.u32 %v5613_v50, 16  ;;  %v6808_v51 = vld [vmem:[%s7930_s1 + $0xa0] sm:$0xff]  }
  0x83   : > { %v781_v3 = vshll.u32 %v5613_v50, 16  ;;  %v5614_v8 = vpack.c.bf16 %v460_v57, %v460_v57  ;;  %v5615_v9 = vpack.c.bf16 %v461_v58, %v461_v58  ;;  %v393_v10 = vmul.f32 %v7268_v15, %v5711_v40  ;;  %v982_v44 = vld [vmem:[#allocation2 + $0xa8] sm:$0xf]  ;;  %v2078_v50 = vld [vmem:[#allocation2 + $0x78] sm:$0xf] }
  0x84   : > { %6333 = vmatpush3.bf16.msra.mxu0 %v6800_v28  ;;  %v7358_v16 = vld [vmem:[#allocation2 + $0x84] sm:$0xff]   ;;  %v767_v20 = vsel %vm7016_vm5, %v759_v48, %v766_v63  ;;  %v775_v22 = vor.u32 %v773_v52, %v772_v30  ;;  %v776_v54 = vrot.slane %v772_v30, 4  ;;  %v7362_v24 = vrot.slane %v778_v2, 7 }
  0x85   : > { %6334 = vmatprep.subr.bf16.mxu0 %v6804_v0  ;;  %971 = vst [vmem:[#allocation2 + $0x94] sm:$0xf] %v767_v20  ;;  %v787_v27 = vshrl.u32 %v5614_v8, 16  ;;  %v790_v28 = vshll.u32 %v5614_v8, 16  ;;  %v795_v32 = vshrl.u32 %v5615_v9, 16  ;;  %v798_v35 = vshll.u32 %v5615_v9, 16  ;;  %6079 = vmatmul.mubr.bf16.gmra.mrb[20].mxu1 %v7358_v16 }
  0x86   : > { %v783_v36 = vor.u32 %v781_v3, %v7362_v24  ;;  %v785_v39 = vrot.slane %v7362_v24, 4  ;;  %v976_v13 = vsel %vm7024_vm6, %v775_v22, %v975_v6  ;;  %v430_v40 = vadd.f32 %v7247_v38, %v392_v61  ;;  %v2077_v58 = vld [vmem:[#allocation2 + $0x74] sm:$0x1] }
  0x87   : > { %6303 = vmatmul.mubr.bf16.gmra.mrb[4].mxu0 %v7223_v59  ;;  %977 = vst [vmem:[#allocation2 + $0x9c] sm:$0xf] %v976_v13  ;;  %v789_v41 = vrot.slane %v787_v27, 7  ;;  %v7375_v42 = vrot.slane %v795_v32, 7  ;;  %v431_v14 = vadd.f32 %v7247_v38, %v393_v10  ;;  %v2322_v46 = vshrl.u32 %v2075_v11, 16  ;;  %v6810_v27 = vld [vmem:[%s7930_s1 + $0xa8] sm:$0xff]  }
  0x88   : > { %6306 = vmatprep.mubr.bf16.mxu0 %v7252_v45  ;;  %6335 = vmatpush3.bf16.msra.mxu0 %v6804_v0  ;;  %v784_v47 = vsel %vm7016_vm5, %v776_v54, %v783_v36  ;;  %v462_v7 = vmax.f32 %v430_v40, 0.0  ;;  %v2325_v48 = vshll.u32 %v2075_v11, 16  ;;  %v2331_v18 = vshll.u32 %v2076_v19, 16  ;;  %v965_v13 = vld [vmem:[#allocation2 + $0x8c] sm:$0x1] }
  0x89   : > { %6336 = vmatprep.subr.bf16.mxu0 %v6806_v26  ;;  %978 = vst [vmem:[#allocation2 + $0xa0] sm:$0xf] %v784_v47  ;;  %v792_v52 = vor.u32 %v790_v28, %v789_v41  ;;  %v793_v53 = vrot.slane %v789_v41, 4  ;;  %v800_v57 = vor.u32 %v798_v35, %v7375_v42  ;;  %v802_v0 = vrot.slane %v7375_v42, 4  ;;  %v989_v28 = vld [vmem:[#allocation2 + $0xb4] sm:$0xf] }
  0x8a   : > { %v463_v61 = vmax.f32 %v431_v14, 0.0  ;;  %v5616_v63 = vpack.c.bf16 %v462_v7, %v462_v7  ;;  %v2324_v30 = vrot.slane %v2322_v46, 4  ;;  %v2327_v2 = vrot.slane %v2325_v48, 5  ;;  %v972_v46 = vld [vmem:[#allocation2 + $0x98] sm:$0x1] }
  0x8b   : > { %v801_v3 = vsel %vm7016_vm5, %v793_v53, %v800_v57  ;;  %v983_v6 = vsel %vm7024_vm6, %v792_v52, %v982_v44  ;;  %v2333_v8 = vrot.slane %v2331_v18, 5  ;;  %v2335_v9 = vshrl.u32 %v2076_v19, 16  ;;  %v2079_v19 = vld [vmem:[#allocation2 + $0x7c] sm:$0xf]  ;;  %v2081_v18 = vld [vmem:[#allocation2 + $0x84] sm:$0xf] }
  0x8c   : > { %6337 = vmatpush3.bf16.msra.mxu0 %v6806_v26  ;;  %v7389_v10 = vld [vmem:[#allocation2 + $0x90] sm:$0xff]   ;;  %984 = vst [vmem:[#allocation2 + $0xa8] sm:$0xf] %v983_v6  ;;  %985 = vst [vmem:[#allocation2 + $0xac] sm:$0xf] %v801_v3  ;;  %v5617_v11 = vpack.c.bf16 %v463_v61, %v463_v61  ;;  %v804_v20 = vshrl.u32 %v5616_v63, 16  ;;  %v2328_v54 = vor.u32 %v2327_v2, %v2324_v30 }
  0x8d   : > { %v807_v22 = vshll.u32 %v5616_v63, 16  ;;  %6338 = vmatprep.subr.bf16.mxu0 %v6808_v51  ;;  %v2337_v32 = vrot.slane %v2335_v9, 4  ;;  %v2341_v35 = vshll.u32 %v2077_v58, 16  ;;  %v959_v26 = vsel %vm7030_vm7, %v734_v17, %v958_v49  ;;  %6082 = vmatprep.mubr.bf16.mxu1 %v7389_v10  ;;  %v6812_v58 = vld [vmem:[%s7930_s1 + $0xb0] sm:$0xff]   ;;  %v2082_v2 = vld [vmem:[#allocation2 + $0x88] sm:$0xf] }
  0x8e   : > { %v2346_v36 = vshrl.u32 %v2078_v50, 16  ;;  %v806_v40 = vrot.slane %v804_v20, 7  ;;  %v812_v41 = vshrl.u32 %v5617_v11, 16  ;;  %v815_v44 = vshll.u32 %v5617_v11, 16  ;;  %960 = vst [vmem:[#allocation2 + $0x80] sm:$0x1] %v959_v26 }
  0x8f   : > { %6307 = vmatmul.mubr.bf16.gmra.mrb[8].mxu0 %v7284_v62  ;;  %v2329_v14 = vrot.slane %v2328_v54, 4  ;;  %v2338_v47 = vor.u32 %v2337_v32, %v2333_v8  ;;  %v2343_v7 = vrot.slane %v2341_v35, 5  ;;  %v2349_v25 = vshll.u32 %v2078_v50, 16  ;;  %v2084_v9 = vld [vmem:[#allocation2 + $0x90] sm:$0xf] }
  0x90   : > { %6310 = vmatprep.mubr.bf16.mxu0 %v7302_v37  ;;  %v2348_v48 = vrot.slane %v2346_v36, 4  ;;  %6339 = vmatpush3.bf16.msra.mxu0 %v6808_v51  ;;  %v7401_v17 = vld [vmem:[#allocation2 + $0x9c] sm:$0xff]   ;;  %v809_v49 = vor.u32 %v807_v22, %v806_v40  ;;  %v810_v52 = vrot.slane %v806_v40, 4  ;;  %v7403_v53 = vrot.slane %v812_v41, 7  ;;  %v2085_v26 = vld [vmem:[#allocation2 + $0x94] sm:$0xf] }
  0x91   : > { %v2334_v57 = vsel %vm7098_vm10, %v2329_v14, %v2333_v8  ;;  %6340 = vmatprep.subr.bf16.mxu0 %v6810_v27  ;;  %v2339_v61 = vrot.slane %v2338_v47, 4  ;;  %v2351_v63 = vrot.slane %v2349_v25, 5  ;;  %v2355_v30 = vshll.u32 %v2079_v19, 16  ;;  %6083 = vmatmul.mubr.bf16.gmra.mrb[24].mxu1 %v7401_v17  ;;  %v979_v40 = vld [vmem:[#allocation2 + $0xa4] sm:$0x1] }
  0x92   : > { %v2359_v50 = vshrl.u32 %v2079_v19, 16  ;;  %v817_v51 = vor.u32 %v815_v44, %v7403_v53  ;;  %v819_v3 = vrot.slane %v7403_v53, 4  ;;  %v990_v6 = vsel %vm7024_vm6, %v809_v49, %v989_v28  ;;  %v6814_v19 = vld [vmem:[%s7930_s1 + $0xb8] sm:$0xff]  }
  0x93   : > { %v966_v8 = vsel %vm7030_vm7, %v751_v12, %v965_v13  ;;  %v7419_v11 = vld [vmem:[#allocation2 + $0xa8] sm:$0xff]   ;;  %991 = vst [vmem:[#allocation2 + $0xb4] sm:$0xf] %v990_v6  ;;  %v2344_v20 = vsel %vm7098_vm10, %v2339_v61, %v2343_v7  ;;  %v2352_v22 = vor.u32 %v2351_v63, %v2348_v48  ;;  %v2357_v54 = vrot.slane %v2355_v30, 5  ;;  %v2087_v49 = vld [vmem:[#allocation2 + $0x9c] sm:$0xf] }
  0x94   : > { %967 = vst [vmem:[#allocation2 + $0x8c] sm:$0x1] %v966_v8  ;;  %v973_v28 = vsel %vm7030_vm7, %v768_v1, %v972_v46  ;;  %6341 = vmatpush3.bf16.msra.mxu0 %v6810_v27  ;;  %v818_v43 = vsel %vm7016_vm5, %v810_v52, %v817_v51  ;;  %v7429_v12 = vcombine.low %v2334_v57, %v2344_v20  ;;  %v2361_v32 = vrot.slane %v2359_v50, 4  ;;  %v7441_v63 = vld [vmem:[%s7930_s1 + $0x140] sm:$0xff]  }
  0x95   : > { %v2370_v35 = vshrl.u32 %v2081_v18, 16  ;;  %974 = vst [vmem:[#allocation2 + $0x98] sm:$0x1] %v973_v28  ;;  %6342 = vmatprep.subr.bf16.mxu0 %v6812_v58  ;;  %6086 = vmatprep.mubr.bf16.mxu1 %v7419_v11  ;;  %992 = vst [vmem:[#allocation2 + $0xb8] sm:$0xf] %v818_v43  ;;  %v2353_v1 = vrot.slane %v2352_v22, 4 }
  0x96   : > { %v2080_v29 = vld [vmem:[#allocation2 + $0x80] sm:$0x1]  ;;  %v2373_v27 = vshll.u32 %v2081_v18, 16  ;;  %v2379_v36 = vshll.u32 %v2082_v2, 16  ;;  %v2383_v13 = vshrl.u32 %v2082_v2, 16  ;;  %v2362_v41 = vor.u32 %v2361_v32, %v2357_v54 }
  0x97   : > { %6311 = vmatmul.mubr.bf16.gmra.mrb[12].mxu0 %v7429_v12  ;;  %v2365_v44 = vshll.u32 %v2080_v29, 16  ;;  %v2372_v14 = vrot.slane %v2370_v35, 4  ;;  %v2394_v46 = vshrl.u32 %v2084_v9, 16  ;;  %v2358_v47 = vsel %vm7098_vm10, %v2353_v1, %v2357_v54  ;;  %v2088_v6 = vld [vmem:[#allocation2 + $0xa0] sm:$0xf] }
  0x98   : > { %v2375_v7 = vrot.slane %v2373_v27, 5  ;;  %v2381_v48 = vrot.slane %v2379_v36, 5  ;;  %v2385_v25 = vrot.slane %v2383_v13, 4  ;;  %6343 = vmatpush3.bf16.msra.mxu0 %v6812_v58  ;;  %v2363_v52 = vrot.slane %v2362_v41, 4  ;;  %v986_v54 = vld [vmem:[#allocation2 + $0xb0] sm:$0x1] }
  0x99   : > { %v2367_v57 = vrot.slane %v2365_v44, 5  ;;  %v2396_v18 = vrot.slane %v2394_v46, 4  ;;  %v2397_v61 = vshll.u32 %v2084_v9, 16  ;;  %6344 = vmatprep.subr.bf16.mxu0 %v6814_v19  ;;  %v2403_v2 = vshll.u32 %v2085_v26, 16  ;;  %v993_v44 = vld [vmem:[#allocation2 + $0xbc] sm:$0x1] }
  0x9a   : > { %v2376_v30 = vor.u32 %v2375_v7, %v2372_v14  ;;  %v2386_v50 = vor.u32 %v2385_v25, %v2381_v48  ;;  %v2407_v51 = vshrl.u32 %v2085_v26, 16  ;;  %v980_v9 = vsel %vm7030_vm7, %v785_v39, %v979_v40  ;;  %v2090_v7 = vld [vmem:[#allocation2 + $0xa8] sm:$0xf]  ;;  %v6847_v25 = vld [vmem:[#allocation2 + $0xc] sm:$0xff]  }
  0x9b   : > { %v2368_v8 = vsel %vm7098_vm10, %v2363_v52, %v2367_v57  ;;  %v2083_v20 = vld [vmem:[#allocation2 + $0x8c] sm:$0x1]  ;;  %v2399_v58 = vrot.slane %v2397_v61, 5  ;;  %v2418_v22 = vshrl.u32 %v2087_v49, 16  ;;  %981 = vst [vmem:[#allocation2 + $0xa4] sm:$0x1] %v980_v9 }
  0x9c   : > { %v7449_v28 = vcombine.low %v2358_v47, %v2368_v8  ;;  %v2377_v43 = vrot.slane %v2376_v30, 4  ;;  %v2387_v32 = vrot.slane %v2386_v50, 4  ;;  %v2389_v35 = vshll.u32 %v2083_v20, 16  ;;  %v2086_v29 = vld [vmem:[#allocation2 + $0x98] sm:$0x1]  ;;  %6345 = vmatpush3.bf16.msra.mxu0 %v6814_v19 }
  0x9d   : > { %v7451_v26 = vld [vmem:[#allocation2 + $0xb4] sm:$0xff]   ;;  %v2400_v1 = vor.u32 %v2399_v58, %v2396_v18  ;;  %v2405_v27 = vrot.slane %v2403_v2, 5  ;;  %v2409_v36 = vrot.slane %v2407_v51, 4  ;;  %v2413_v13 = vshll.u32 %v2086_v29, 16  ;;  %6378 = vmatprep.subr.bf16.mxu0 %v7441_v63 }
  0x9e   : > { %6314 = vmatprep.mubr.bf16.mxu0 %v7449_v28  ;;  %v2382_v24 = vsel %vm7098_vm10, %v2377_v43, %v2381_v48  ;;  %v2391_v39 = vrot.slane %v2389_v35, 5  ;;  %v2420_v40 = vrot.slane %v2418_v22, 4  ;;  %v2421_v41 = vshll.u32 %v2087_v49, 16  ;;  %6087 = vmatmul.mubr.bf16.gmra.mrb[28].mxu1 %v7451_v26  ;;  %v2091_v49 = vld [vmem:[#allocation2 + $0xac] sm:$0xf] }
  0x9f   : > { %v2401_v19 = vrot.slane %v2400_v1, 4  ;;  %v2410_v14 = vor.u32 %v2409_v36, %v2405_v27  ;;  %v2415_v46 = vrot.slane %v2413_v13, 5  ;;  %v2427_v47 = vshll.u32 %v2088_v6, 16  ;;  %6106 = vmatprep.mubr.bf16.mxu1 %v6847_v25  ;;  %v2093_v51 = vld [vmem:[#allocation2 + $0xb4] sm:$0xf]  ;;  %v7487_v25 = vld [vmem:[#allocation2 + $0x24] sm:$0xff]  }
  0xa0   : > { %v2392_v52 = vsel %vm7098_vm10, %v2387_v32, %v2391_v39  ;;  %v2423_v57 = vrot.slane %v2421_v41, 5  ;;  %v2431_v18 = vshrl.u32 %v2088_v6, 16  ;;  %v987_v48 = vsel %vm7030_vm7, %v802_v0, %v986_v54  ;;  %v2094_v1 = vld [vmem:[#allocation2 + $0xb8] sm:$0xf] }
  0xa1   : > { %v7464_v61 = vcombine.low %v2382_v24, %v2392_v52  ;;  %v2406_v30 = vsel %vm7098_vm10, %v2401_v19, %v2405_v27  ;;  %v2411_v50 = vrot.slane %v2410_v14, 4  ;;  %v2429_v2 = vrot.slane %v2427_v47, 5  ;;  %988 = vst [vmem:[#allocation2 + $0xb0] sm:$0x1] %v987_v48  ;;  %v6809_v27 = vld [vmem:[%s7930_s1 + $0x188] sm:$0xff]   ;;  %v7484_v19 = vld [vmem:[#allocation2 + $0x18] sm:$0xff]  }
  0xa2   : > { %v2424_v8 = vor.u32 %v2423_v57, %v2420_v40  ;;  %v2433_v20 = vrot.slane %v2431_v18, 4  ;;  %v2442_v58 = vshrl.u32 %v2090_v7, 16  ;;  %v2445_v9 = vshll.u32 %v2090_v7, 16  ;;  %v2089_v0 = vld [vmem:[#allocation2 + $0xa4] sm:$0x1]  ;;  %v5810_v40 = vld [vmem:[%s6958_s17 + $0x78] sm:$0xff]  }
  0xa3   : > { %6315 = vmatmul.mubr.bf16.gmra.mrb[16].mxu0 %v7464_v61  ;;  %v2416_v42 = vsel %vm7098_vm10, %v2411_v50, %v2415_v46  ;;  %v2451_v6 = vshll.u32 %v2091_v49, 16  ;;  %v2455_v22 = vshrl.u32 %v2091_v49, 16  ;;  %v994_v54 = vsel %vm7030_vm7, %v819_v3, %v993_v44  ;;  %v6850_v52 = vld [vmem:[%s7930_s1 + $0x180] sm:$0xff]  }
  0xa4   : > { %v7475_v43 = vcombine.low %v2406_v30, %v2416_v42  ;;  %v2425_v32 = vrot.slane %v2424_v8, 4  ;;  %v2434_v35 = vor.u32 %v2433_v20, %v2429_v2  ;;  %v2437_v29 = vshll.u32 %v2089_v0, 16  ;;  %995 = vst [vmem:[#allocation2 + $0xbc] sm:$0x1] %v994_v54 }
  0xa5   : > { %v2444_v36 = vrot.slane %v2442_v58, 4  ;;  %v2447_v13 = vrot.slane %v2445_v9, 5  ;;  %v2453_v24 = vrot.slane %v2451_v6, 5  ;;  %v2457_v39 = vrot.slane %v2455_v22, 4 }
  0xa6   : > { %6318 = vmatprep.mubr.bf16.mxu0 %v7475_v43  ;;  %v2430_v53 = vsel %vm7098_vm10, %v2425_v32, %v2429_v2  ;;  %v2435_v3 = vrot.slane %v2434_v35, 4  ;;  %v2439_v41 = vrot.slane %v2437_v29, 5  ;;  %v2466_v44 = vshrl.u32 %v2093_v51, 16  ;;  %6107 = vmatmul.mubr.bf16.vlgmr.msra.gmra.mrb[0].mxu1 %v7484_v19  ;;  %v6811_v2 = vld [vmem:[%s7930_s1 + $0x190] sm:$0xff]  }
  0xa7   : > { %v2448_v14 = vor.u32 %v2447_v13, %v2444_v36  ;;  %v2458_v46 = vor.u32 %v2457_v39, %v2453_v24  ;;  %v2469_v47 = vshll.u32 %v2093_v51, 16  ;;  %v2475_v7 = vshll.u32 %v2094_v1, 16  ;;  %6110 = vmatprep.mubr.bf16.mxu1 %v7487_v25  ;;  %6139 = vmatpush3.bf16.msra.mxu1 %v6850_v52 }
  0xa8   : > { %v2440_v57 = vsel %vm7098_vm10, %v2435_v3, %v2439_v41  ;;  %v2092_v18 = vld [vmem:[#allocation2 + $0xb0] sm:$0x1]  ;;  %v2468_v48 = vrot.slane %v2466_v44, 4  ;;  %v2479_v49 = vshrl.u32 %v2094_v1, 16  ;;  %v5714_v30 = vunpack.c.l.bf16 %v5810_v40  ;;  %6140 = vmatprep.subr.bf16.mxu1 %v6809_v27 }
  0xa9   : > { %v7495_v50 = vcombine.low %v2430_v53, %v2440_v57  ;;  %v2449_v51 = vrot.slane %v2448_v14, 4  ;;  %v2459_v8 = vrot.slane %v2458_v46, 4  ;;  %v2461_v20 = vshll.u32 %v2092_v18, 16  ;;  %v7513_v41 = vld [vmem:[#allocation2 + $0x30] sm:$0xff]   ;;  %v7517_v14 = vld [vmem:[#allocation2 + $0x3c] sm:$0xff]  }
  0xaa   : > { %v2471_v58 = vrot.slane %v2469_v47, 5  ;;  %v2477_v9 = vrot.slane %v2475_v7, 5  ;;  %v2481_v42 = vrot.slane %v2479_v49, 4  ;;  %v5715_v0 = vunpack.c.h.bf16 %v5810_v40  ;;  %v2099_v7 = vld [vmem:[#allocation2 + $0xcc] sm:$0xf] }
  0xab   : > { %6319 = vmatmul.mubr.bf16.gmra.mrb[20].mxu0 %v7495_v50  ;;  %v2454_v6 = vsel %vm7098_vm10, %v2449_v51, %v2453_v24  ;;  %v2463_v22 = vrot.slane %v2461_v20, 5  ;;  %v2095_v54 = vld [vmem:[#allocation2 + $0xbc] sm:$0x1]  ;;  %v394_v32 = vmul.f32 %v7268_v15, %v5714_v30  ;;  %6141 = vmatpush3.bf16.msra.mxu1 %v6809_v27  ;;  %v2100_v51 = vld [vmem:[#allocation2 + $0xd0] sm:$0xf]  ;;  %v2514_v20 = vshrl.u32 %v2099_v7, 16 }
  0xac   : > { %v2472_v35 = vor.u32 %v2471_v58, %v2468_v48  ;;  %v2482_v29 = vor.u32 %v2481_v42, %v2477_v9  ;;  %v2485_v1 = vshll.u32 %v2095_v54, 16  ;;  %v395_v36 = vmul.f32 %v7268_v15, %v5715_v0  ;;  %6142 = vmatprep.subr.bf16.mxu1 %v6811_v2  ;;  %v6813_v27 = vld [vmem:[%s7930_s1 + $0x198] sm:$0xff]   ;;  %v1000_v0 = vld [vmem:[#allocation2 + $0xc8] sm:$0x1] }
  0xad   : > { %v2464_v13 = vsel %vm7098_vm10, %v2459_v8, %v2463_v22  ;;  %v432_v39 = vadd.f32 %v7247_v38, %v394_v32  ;;  %v996_v8 = vld [vmem:[#allocation2 + $0xc0] sm:$0xf]  ;;  %v2517_v58 = vshll.u32 %v2099_v7, 16  ;;  %v2527_v22 = vshrl.u32 %v2100_v51, 16  ;;  %v6817_v54 = vld [vmem:[%s7930_s1 + $0x1a8] sm:$0xff]  }
  0xae   : > { %v7508_v40 = vcombine.low %v2454_v6, %v2464_v13  ;;  %v2473_v53 = vrot.slane %v2472_v35, 4  ;;  %v2483_v24 = vrot.slane %v2482_v29, 4  ;;  %v2487_v3 = vrot.slane %v2485_v1, 5  ;;  %6111 = vmatmul.mubr.bf16.gmra.mrb[4].mxu1 %v7513_v41  ;;  %v7534_v32 = vld [vmem:[#allocation2 + $0x48] sm:$0xff]   ;;  %v7537_v13 = vld [vmem:[#allocation2 + $0x54] sm:$0xff]  }
  0xaf   : > { %v433_v15 = vadd.f32 %v7247_v38, %v395_v36  ;;  %v464_v44 = vmax.f32 %v432_v39, 0.0  ;;  %6114 = vmatprep.mubr.bf16.mxu1 %v7517_v14  ;;  %6143 = vmatpush3.bf16.msra.mxu1 %v6811_v2  ;;  %v6815_v38 = vld [vmem:[%s7930_s1 + $0x1a0] sm:$0xff]   ;;  %v2523_v6 = vshll.u32 %v2100_v51, 16  ;;  %v2101_v36 = vld [vmem:[#allocation2 + $0xd4] sm:$0x1]  ;;  %v2516_v39 = vrot.slane %v2514_v20, 4 }
  0xb0   : > { %6322 = vmatprep.mubr.bf16.mxu0 %v7508_v40  ;;  %v2478_v46 = vsel %vm7098_vm10, %v2473_v53, %v2477_v9  ;;  %v2488_v47 = vsel %vm7098_vm10, %v2483_v24, %v2487_v3  ;;  %6144 = vmatprep.subr.bf16.mxu1 %v6813_v27  ;;  %v2519_v53 = vrot.slane %v2517_v58, 5  ;;  %vm3683_vm11 = vcmask 1042432  }
  0xb1   : > { %v7525_v52 = vcombine.low %v2478_v46, %v2488_v47  ;;  %v465_v57 = vmax.f32 %v433_v15, 0.0  ;;  %v5618_v18 = vpack.c.bf16 %v464_v44, %v464_v44  ;;  %v6820_v15 = vld [vmem:[%s7930_s1 + $0x1b0] sm:$0xff]   ;;  %v7545_v44 = vrot.slane %v2523_v6, 5 }
  0xb2   : > { %v2529_v46 = vrot.slane %v2527_v22, 4  ;;  %v2520_v60 = vor.u32 %v2519_v53, %v2516_v39  ;;  %vm3684_vm12 = vcmask 1046532  }
  0xb3   : > { %6323 = vmatmul.mubr.bf16.gmra.mrb[24].mxu0 %v7525_v52  ;;  %v5619_v48 = vpack.c.bf16 %v465_v57, %v465_v57  ;;  %v821_v49 = vshrl.u32 %v5618_v18, 16  ;;  %v824_v30 = vshll.u32 %v5618_v18, 16  ;;  %6145 = vmatpush3.bf16.msra.mxu1 %v6813_v27  ;;  %v2533_v57 = vshll.u32 %v2101_v36, 16  ;;  %vm7566_vm13 = vmor %vm3683_vm11, %vm3684_vm12 }
  0xb4   : > { %6146 = vmatprep.subr.bf16.mxu1 %v6815_v38  ;;  %v2530_v18 = vor.u32 %v2529_v46, %v7545_v44  ;;  %v2521_v5 = vrot.slane %v2520_v60, 4  ;;  %v3578_v46 = vld [vmem:[#allocation2 + $0xc] sm:$0xe] }
  0xb5   : > { %v823_v9 = vrot.slane %v821_v49, 7  ;;  %v829_v2 = vshrl.u32 %v5619_v48, 16  ;;  %v832_v42 = vshll.u32 %v5619_v48, 16  ;;  %v6822_v48 = vld [vmem:[%s7930_s1 + $0x1b8] sm:$0xff]   ;;  %v7555_v49 = vld [vmem:[#allocation2 + $0x60] sm:$0xff]  }
  0xb6   : > { %6115 = vmatmul.mubr.bf16.gmra.mrb[8].mxu1 %v7534_v32 }
  0xb7   : > { %v826_v35 = vor.u32 %v824_v30, %v823_v9  ;;  %v827_v29 = vrot.slane %v823_v9, 4  ;;  %v831_v1 = vrot.slane %v829_v2, 7  ;;  %6118 = vmatprep.mubr.bf16.mxu1 %v7537_v13  ;;  %6147 = vmatpush3.bf16.msra.mxu1 %v6815_v38  ;;  %v3576_v38 = vld [vmem:[#allocation2 + $0x4] sm:$0xf]  ;;  %v2535_v30 = vrot.slane %v2533_v57, 5 }
  0xb8   : > { %6148 = vmatprep.subr.bf16.mxu1 %v6817_v54  ;;  %v3688_v20 = vrot.slane %v3576_v38, 5  ;;  %v2531_v2 = vrot.slane %v2530_v18, 4  ;;  %v2526_v18 = vsel %vm7098_vm10, %v2521_v5, %v7545_v44 }
  0xb9   : > { %v834_v24 = vor.u32 %v832_v42, %v831_v1  ;;  %v836_v3 = vrot.slane %v831_v1, 4  ;;  %v997_v27 = vsel %vm7024_vm6, %v826_v35, %v996_v8  ;;  %v3577_v8 = vld [vmem:[#allocation2 + $0x8] sm:$0x1]  ;;  %v5445_v42 = vrot.slane %v3575_v55, 9  ;;  %v3579_v1 = vld [vmem:[#allocation2 + $0x10] sm:$0xf] }
  0xba   : > { %998 = vst [vmem:[#allocation2 + $0xc0] sm:$0xf] %v997_v27  ;;  %v3690_v39 = vrot.slane %v3688_v20, 4  ;;  %v2536_v38 = vsel %vm7098_vm10, %v2531_v2, %v2535_v30  ;;  %v3695_v55 = vrot.slane %v3579_v1, 5  ;;  %v5446_v30 = vrot.slane %v3578_v46, 9 }
  0xbb   : > { %v835_v47 = vsel %vm7016_vm5, %v827_v29, %v834_v24  ;;  %v1001_v7 = vsel %vm7030_vm7, %v836_v3, %v1000_v0  ;;  %6149 = vmatpush3.bf16.msra.mxu1 %v6817_v54  ;;  %v7562_v0 = vld [vmem:[%s7930_s1 + $0x40] sm:$0xff]   ;;  %v5436_v5 = vcombine.low %v2526_v18, %v2536_v38  ;;  %v3588_v1 = vld [vmem:[#allocation2 + $0x34] sm:$0xf] }
  0xbc   : > { %999 = vst [vmem:[#allocation2 + $0xc4] sm:$0xf] %v835_v47  ;;  %1002 = vst [vmem:[#allocation2 + $0xc8] sm:$0x1] %v1001_v7  ;;  %6150 = vmatprep.subr.bf16.mxu1 %v6820_v15  ;;  %v3582_v47 = vld [vmem:[#allocation2 + $0x1c] sm:$0xf] }
  0xbd   : > { %v3716_v46 = vrot.slane %v3588_v1, 5 }
  0xbe   : > { %6119 = vmatmul.mubr.bf16.gmra.mrb[12].mxu1 %v7555_v49 }
  0xbf   : > { %6122 = vmatprep.mubr.bf16.mxu1 %v7292_v31  ;;  %6151 = vmatpush3.bf16.msra.mxu1 %v6820_v15  ;;  %v3691_v15 = vrot.slane %v3577_v8, 5 }
  0xc0   : > { %6152 = vmatprep.subr.bf16.mxu1 %v6822_v48 }
  0xc1   : > { %v2096_v51 = vld [vmem:[#allocation2 + $0xc0] sm:$0xf]  ;;  %v3692_v8 = vsel %vm7566_vm13, %v3690_v39, %v3691_v15  ;;  %v3584_v15 = vld [vmem:[#allocation2 + $0x24] sm:$0xe] }
  0xc2   : > { %v2490_v58 = vshrl.u32 %v2096_v51, 16  ;;  %v2493_v9 = vshll.u32 %v2096_v51, 16 }
  0xc3   : > { %v2097_v6 = vld [vmem:[#allocation2 + $0xc4] sm:$0xf]  ;;  %v2098_v31 = vld [vmem:[#allocation2 + $0xc8] sm:$0x1]  ;;  %6153 = vmatpush3.bf16.msra.mxu1 %v6822_v48  ;;  %v3689_v48 = vsel %vm7566_vm13, %v5445_v42, %v3688_v20  ;;  %v3697_v42 = vrot.slane %v3695_v55, 4 }
  0xc4   : > { %v2492_v22 = vrot.slane %v2490_v58, 4  ;;  %v2495_v54 = vrot.slane %v2493_v9, 5  ;;  %v2499_v35 = vshll.u32 %v2097_v6, 16  ;;  %v2503_v29 = vshrl.u32 %v2097_v6, 16  ;;  %6186 = vmatprep.subr.bf16.mxu1 %v7562_v0  ;;  %v3580_v58 = vld [vmem:[#allocation2 + $0x14] sm:$0x1] }
  0xc5   : > { %v2509_v36 = vshll.u32 %v2098_v31, 16  ;;  %v3581_v9 = vld [vmem:[#allocation2 + $0x18] sm:$0xe]  ;;  %v3583_v6 = vld [vmem:[#allocation2 + $0x20] sm:$0x1]  ;;  %v5479_v20 = vcombine.low %v3689_v48, %v3692_v8  ;;  %v3698_v31 = vrot.slane %v3580_v58, 5 }
  0xc6   : > { %v2496_v53 = vor.u32 %v2495_v54, %v2492_v22  ;;  %v2501_v24 = vrot.slane %v2499_v35, 5  ;;  %v2505_v3 = vrot.slane %v2503_v29, 4  ;;  %6123 = vmatmul.mubr.bf16.gmra.mrb[16].mxu1 %v7335_v34  ;;  %v5447_v22 = vrot.slane %v3581_v9, 9  ;;  %v3585_v29 = vld [vmem:[#allocation2 + $0x28] sm:$0xf] }
  0xc7   : > { %v2511_v57 = vrot.slane %v2509_v36, 5  ;;  %6126 = vmatprep.mubr.bf16.mxu1 %v7358_v16  ;;  %v3702_v16 = vrot.slane %v3582_v47, 5  ;;  %v3705_v35 = vrot.slane %v3583_v6, 5  ;;  %v3696_v36 = vsel %vm7566_vm13, %v5446_v30, %v3695_v55  ;;  %v3587_v47 = vld [vmem:[#allocation2 + $0x30] sm:$0xe]  ;;  %v6818_v48 = vld [vmem:[%s7930_s1 + $0x148] sm:$0xff]  }
  0xc8   : > { %v2497_v7 = vrot.slane %v2496_v53, 4  ;;  %v2506_v60 = vor.u32 %v2505_v3, %v2501_v24  ;;  %v3699_v39 = vsel %vm7566_vm13, %v3697_v42, %v3698_v31  ;;  %v3709_v53 = vrot.slane %v3585_v29, 5  ;;  %v3591_v8 = vld [vmem:[#allocation2 + $0x40] sm:$0xf]  ;;  %v3594_v58 = vld [vmem:[#allocation2 + $0x4c] sm:$0xf] }
  0xc9   : > { %v3704_v54 = vrot.slane %v3702_v16, 4  ;;  %v5449_v55 = vrot.slane %v3587_v47, 9  ;;  %v3723_v6 = vrot.slane %v3591_v8, 5  ;;  %v3592_v30 = vld [vmem:[#allocation2 + $0x44] sm:$0x1] }
  0xca   : > { %v2502_v34 = vsel %vm7098_vm10, %v2497_v7, %v2501_v24  ;;  %v2507_v51 = vrot.slane %v2506_v60, 4  ;;  %v3703_v24 = vsel %vm7566_vm13, %v5447_v22, %v3702_v16  ;;  %v3589_v7 = vld [vmem:[#allocation2 + $0x38] sm:$0x1]  ;;  %v3711_v18 = vrot.slane %v3709_v53, 4  ;;  %v7622_v42 = vld [vmem:[#allocation2 + $0xc0] sm:$0xff]  }
  0xcb   : > { %v3706_v3 = vsel %vm7566_vm13, %v3704_v54, %v3705_v35  ;;  %v3593_v31 = vld [vmem:[#allocation2 + $0x48] sm:$0xe]  ;;  %v3595_v22 = vld [vmem:[#allocation2 + $0x50] sm:$0x1]  ;;  %v3725_v1 = vrot.slane %v3723_v6, 4 }
  0xcc   : > { %v2512_v44 = vsel %vm7098_vm10, %v2507_v51, %v2511_v57  ;;  %v7601_v60 = vcombine.low %v3703_v24, %v3706_v3  ;;  %v5448_v57 = vrot.slane %v3584_v15, 9  ;;  %v3719_v51 = vrot.slane %v3589_v7, 5  ;;  %v6823_v3 = vld [vmem:[%s7930_s1 + $0x158] sm:$0xff]  }
  0xcd   : > { %v7586_v2 = vcombine.low %v2502_v34, %v2512_v44  ;;  %v3718_v34 = vrot.slane %v3716_v46, 4  ;;  %v3733_v24 = vrot.slane %v3595_v22, 5  ;;  %v3597_v15 = vld [vmem:[#allocation2 + $0x58] sm:$0xf] }
  0xce   : > { %6127 = vmatmul.mubr.bf16.gmra.mrb[20].mxu1 %v7389_v10  ;;  %v3586_v10 = vld [vmem:[#allocation2 + $0x2c] sm:$0x1]  ;;  %v3710_v16 = vsel %vm7566_vm13, %v5448_v57, %v3709_v53  ;;  %v3737_v7 = vrot.slane %v3597_v15, 5  ;;  %v3607_v15 = vld [vmem:[#allocation2 + $0x80] sm:$0x1] }
  0xcf   : > { %6326 = vmatprep.mubr.bf16.mxu0 %v7586_v2  ;;  %6130 = vmatprep.mubr.bf16.mxu1 %v7401_v17  ;;  %v7599_v17 = vcombine.low %v3696_v36, %v3699_v39  ;;  %v3712_v38 = vrot.slane %v3586_v10, 5  ;;  %v3720_v44 = vsel %vm7566_vm13, %v3718_v34, %v3719_v51  ;;  %v3726_v36 = vrot.slane %v3592_v30, 5  ;;  %v3600_v10 = vld [vmem:[#allocation2 + $0x64] sm:$0xf]  ;;  %v3599_v34 = vld [vmem:[#allocation2 + $0x60] sm:$0xe] }
  0xd0   : > { %6327 = vmatmul.mubr.bf16.gmra.mrb[28].mxu0 %v5436_v5  ;;  %v3590_v5 = vld [vmem:[#allocation2 + $0x3c] sm:$0xe]  ;;  %v5451_v39 = vrot.slane %v3593_v31, 9  ;;  %v3601_v51 = vld [vmem:[#allocation2 + $0x68] sm:$0x1] }
  0xd1   : > { %6346 = vmatprep.mubr.bf16.mxu0 %v5479_v20  ;;  %v3713_v9 = vsel %vm7566_vm13, %v3711_v18, %v3712_v38  ;;  %v3730_v20 = vrot.slane %v3594_v58, 5  ;;  %v5450_v29 = vrot.slane %v3590_v5, 9  ;;  %v3727_v47 = vsel %vm7566_vm13, %v3725_v1, %v3726_v36  ;;  %v3596_v38 = vld [vmem:[#allocation2 + $0x54] sm:$0xe]  ;;  %v3603_v5 = vld [vmem:[#allocation2 + $0x70] sm:$0xf] }
  0xd2   : > { %v7624_v54 = vcombine.low %v3710_v16, %v3713_v9  ;;  %v5452_v16 = vrot.slane %v3596_v38, 9  ;;  %v3739_v9 = vrot.slane %v3737_v7, 4  ;;  %v6826_v30 = vld [vmem:[%s7930_s1 + $0x48] sm:$0xff]  }
  0xd3   : > { %v3732_v53 = vrot.slane %v3730_v20, 4  ;;  %v3731_v57 = vsel %vm7566_vm13, %v5451_v39, %v3730_v20  ;;  %v3606_v20 = vld [vmem:[#allocation2 + $0x7c] sm:$0xf]  ;;  %v6827_v31 = vld [vmem:[%s7930_s1 + $0x168] sm:$0xff]  }
  0xd4   : > { %v3738_v22 = vsel %vm7566_vm13, %v5452_v16, %v3737_v7  ;;  %v3602_v39 = vld [vmem:[#allocation2 + $0x6c] sm:$0xe] }
  0xd5   : > { %v3734_v18 = vsel %vm7566_vm13, %v3732_v53, %v3733_v24  ;;  %v3604_v53 = vld [vmem:[#allocation2 + $0x74] sm:$0x1] }
  0xd6   : > { %6131 = vmatmul.mubr.bf16.gmra.mrb[24].mxu1 %v7419_v11  ;;  %v3717_v11 = vsel %vm7566_vm13, %v5449_v55, %v3716_v46  ;;  %v3724_v46 = vsel %vm7566_vm13, %v5450_v29, %v3723_v6  ;;  %v6825_v55 = vld [vmem:[%s7930_s1 + $0x160] sm:$0xff]   ;;  %v7648_v58 = vcombine.low %v3731_v57, %v3734_v18  ;;  %v6828_v24 = vld [vmem:[%s7930_s1 + $0x50] sm:$0xff]   ;;  %v3754_v57 = vrot.slane %v3604_v53, 5 }
  0xd7   : > { %6134 = vmatprep.mubr.bf16.mxu1 %v7451_v26  ;;  %v7626_v35 = vcombine.low %v3717_v11, %v3720_v44  ;;  %v7646_v8 = vcombine.low %v3724_v46, %v3727_v47  ;;  %v5453_v11 = vrot.slane %v3599_v34, 9  ;;  %v5454_v47 = vrot.slane %v3602_v39, 9  ;;  %v3612_v34 = vld [vmem:[#allocation2 + $0x94] sm:$0xf] }
  0xd8   : > { %6347 = vmatmul.mubr.bf16.vlgmr.msra.gmra.mrb[0].mxu0 %v7599_v17 }
  0xd9   : > { %6379 = vmatpush3.bf16.msra.mxu0 %v7441_v63  ;;  %6350 = vmatprep.mubr.bf16.mxu0 %v7601_v60  ;;  %v6821_v63 = vld [vmem:[%s7930_s1 + $0x150] sm:$0xff]  }
  0xda   : > { %6380 = vmatprep.subr.bf16.mxu0 %v6818_v48 }
  0xdd   : > { %6381 = vmatpush3.bf16.msra.mxu0 %v6818_v48  ;;  %v3598_v48 = vld [vmem:[#allocation2 + $0x5c] sm:$0x1] }
  0xde   : > { %6382 = vmatprep.subr.bf16.mxu0 %v6821_v63  ;;  %6135 = vmatmul.mubr.bf16.gmra.mrb[28].mxu1 %v7622_v42  ;;  %v3740_v6 = vrot.slane %v3598_v48, 5  ;;  %v3761_v48 = vrot.slane %v3607_v15, 5  ;;  %v3618_v15 = vld [vmem:[#allocation2 + $0xac] sm:$0xf] }
  0xdf   : > { %6154 = vmatprep.mubr.bf16.mxu1 %v7484_v19  ;;  %v3744_v19 = vrot.slane %v3600_v10, 5 }
  0xe0   : > { %6351 = vmatmul.mubr.bf16.gmra.mrb[4].mxu0 %v7624_v54  ;;  %v3741_v29 = vsel %vm7566_vm13, %v3739_v9, %v3740_v6 }
  0xe1   : > { %6354 = vmatprep.mubr.bf16.mxu0 %v7626_v35  ;;  %6383 = vmatpush3.bf16.msra.mxu0 %v6821_v63  ;;  %v3746_v44 = vrot.slane %v3744_v19, 4  ;;  %v3747_v63 = vrot.slane %v3601_v51, 5  ;;  %v3745_v1 = vsel %vm7566_vm13, %v5453_v11, %v3744_v19  ;;  %v7675_v10 = vcombine.low %v3738_v22, %v3741_v29  ;;  %v3609_v19 = vld [vmem:[#allocation2 + $0x88] sm:$0xf]  ;;  %v6831_v51 = vld [vmem:[%s7930_s1 + $0x178] sm:$0xff]  }
  0xe2   : > { %6384 = vmatprep.subr.bf16.mxu0 %v6823_v3  ;;  %v3765_v6 = vrot.slane %v3609_v19, 5  ;;  %v3617_v19 = vld [vmem:[#allocation2 + $0xa8] sm:$0xe] }
  0xe3   : > { %v3748_v36 = vsel %vm7566_vm13, %v3746_v44, %v3747_v63  ;;  %v3608_v44 = vld [vmem:[#allocation2 + $0x84] sm:$0xe]  ;;  %v3610_v63 = vld [vmem:[#allocation2 + $0x8c] sm:$0x1] }
  0xe4   : > { %v7677_v46 = vcombine.low %v3745_v1, %v3748_v36  ;;  %v3767_v1 = vrot.slane %v3765_v6, 4  ;;  %v3768_v36 = vrot.slane %v3610_v63, 5  ;;  %v3621_v63 = vld [vmem:[#allocation2 + $0xb8] sm:$0xf] }
  0xe5   : > { %6385 = vmatpush3.bf16.msra.mxu0 %v6823_v3  ;;  %v3605_v3 = vld [vmem:[#allocation2 + $0x78] sm:$0xe] }
  0xe6   : > { %6386 = vmatprep.subr.bf16.mxu0 %v6825_v55  ;;  %6155 = vmatmul.mubr.bf16.vlgmr.msra.gmra.mrb[0].mxu1 %v7487_v25  ;;  %v3751_v25 = vrot.slane %v3603_v5, 5  ;;  %v5455_v18 = vrot.slane %v3605_v3, 9  ;;  %v3772_v5 = vrot.slane %v3612_v34, 5  ;;  %v6834_v3 = vld [vmem:[%s7930_s1 + $0x68] sm:$0xff]  }
  0xe7   : > { %6158 = vmatprep.mubr.bf16.mxu1 %v7513_v41  ;;  %6187 = vmatpush3.bf16.msra.mxu1 %v7562_v0  ;;  %v3758_v41 = vrot.slane %v3606_v20, 5  ;;  %v6829_v0 = vld [vmem:[%s7930_s1 + $0x170] sm:$0xff]   ;;  %v3613_v20 = vld [vmem:[#allocation2 + $0x98] sm:$0x1] }
  0xe8   : > { %6355 = vmatmul.mubr.bf16.gmra.mrb[8].mxu0 %v7646_v8  ;;  %6188 = vmatprep.subr.bf16.mxu1 %v6826_v30  ;;  %v3753_v7 = vrot.slane %v3751_v25, 4  ;;  %v3752_v16 = vsel %vm7566_vm13, %v5454_v47, %v3751_v25  ;;  %v5456_v25 = vrot.slane %v3608_v44, 9  ;;  %v3774_v53 = vrot.slane %v3772_v5, 4 }
  0xe9   : > { %6358 = vmatprep.mubr.bf16.mxu0 %v7648_v58  ;;  %6387 = vmatpush3.bf16.msra.mxu0 %v6825_v55  ;;  %v3760_v38 = vrot.slane %v3758_v41, 4  ;;  %v6830_v55 = vld [vmem:[%s7930_s1 + $0x58] sm:$0xff]   ;;  %v3769_v47 = vsel %vm7566_vm13, %v3767_v1, %v3768_v36  ;;  %v3793_v1 = vrot.slane %v3621_v63, 5 }
  0xea   : > { %6388 = vmatprep.subr.bf16.mxu0 %v6827_v31  ;;  %v3755_v9 = vsel %vm7566_vm13, %v3753_v7, %v3754_v57 }
  0xeb   : > { %6189 = vmatpush3.bf16.msra.mxu1 %v6826_v30  ;;  %v3762_v11 = vsel %vm7566_vm13, %v3760_v38, %v3761_v48  ;;  %v3611_v30 = vld [vmem:[#allocation2 + $0x90] sm:$0xe]  ;;  %v7705_v22 = vcombine.low %v3752_v16, %v3755_v9  ;;  %v3616_v38 = vld [vmem:[#allocation2 + $0xa4] sm:$0x1]  ;;  %v3786_v48 = vrot.slane %v3618_v15, 5 }
  0xec   : > { %6190 = vmatprep.subr.bf16.mxu1 %v6828_v24  ;;  %v5457_v39 = vrot.slane %v3611_v30, 9  ;;  %v6857_v30 = vld [vmem:[#allocation2 + $0x78] sm:$0xff]  }
  0xed   : > { %6389 = vmatpush3.bf16.msra.mxu0 %v6827_v31  ;;  %v7703_v31 = vld [vmem:[%s7930_s1 + $0x200] sm:$0xff]  }
  0xee   : > { %6159 = vmatmul.mubr.bf16.gmra.mrb[4].mxu1 %v7517_v14  ;;  %6390 = vmatprep.subr.bf16.mxu0 %v6829_v0  ;;  %v3759_v14 = vsel %vm7566_vm13, %v5455_v18, %v3758_v41  ;;  %v3775_v41 = vrot.slane %v3613_v20, 5  ;;  %v3614_v18 = vld [vmem:[#allocation2 + $0x9c] sm:$0xe] }
  0xef   : > { %6162 = vmatprep.mubr.bf16.mxu1 %v7534_v32  ;;  %6191 = vmatpush3.bf16.msra.mxu1 %v6828_v24  ;;  %v6832_v32 = vld [vmem:[%s7930_s1 + $0x60] sm:$0xff]   ;;  %v7707_v29 = vcombine.low %v3759_v14, %v3762_v11  ;;  %v5458_v16 = vrot.slane %v3614_v18, 9  ;;  %v5459_v14 = vrot.slane %v3617_v19, 9  ;;  %v3788_v11 = vrot.slane %v3786_v48, 4 }
  0xf0   : > { %6359 = vmatmul.mubr.bf16.gmra.mrb[12].mxu0 %v7675_v10  ;;  %6192 = vmatprep.subr.bf16.mxu1 %v6830_v55  ;;  %v3615_v24 = vld [vmem:[#allocation2 + $0xa0] sm:$0xf]  ;;  %v3776_v57 = vsel %vm7566_vm13, %v3774_v53, %v3775_v41  ;;  %v3620_v53 = vld [vmem:[#allocation2 + $0xb4] sm:$0xe]  ;;  %v3622_v41 = vld [vmem:[#allocation2 + $0xbc] sm:$0x1] }
  0xf1   : > { %6362 = vmatprep.mubr.bf16.mxu0 %v7677_v46  ;;  %6391 = vmatpush3.bf16.msra.mxu0 %v6829_v0  ;;  %v3766_v0 = vsel %vm7566_vm13, %v5456_v25, %v3765_v6  ;;  %v3779_v7 = vrot.slane %v3615_v24, 5  ;;  %v3782_v6 = vrot.slane %v3616_v38, 5  ;;  %v3787_v36 = vsel %vm7566_vm13, %v5459_v14, %v3786_v48  ;;  %v6859_v18 = vld [vmem:[#allocation2 + $0x84] sm:$0xff]   ;;  %v6860_v38 = vld [vmem:[#allocation2 + $0x90] sm:$0xff]  }
  0xf2   : > { %6392 = vmatprep.subr.bf16.mxu0 %v6831_v51  ;;  %v7728_v34 = vcombine.low %v3766_v0, %v3769_v47  ;;  %v5460_v15 = vrot.slane %v3620_v53, 9  ;;  %v3795_v0 = vrot.slane %v3793_v1, 4  ;;  %v3796_v47 = vrot.slane %v3622_v41, 5  ;;  %v6835_v41 = vld [vmem:[%s7930_s1 + $0x208] sm:$0xff]  }
  0xf3   : > { %6193 = vmatpush3.bf16.msra.mxu1 %v6830_v55  ;;  %v3619_v55 = vld [vmem:[#allocation2 + $0xb0] sm:$0x1]  ;;  %v3781_v9 = vrot.slane %v3779_v7, 4  ;;  %v3780_v20 = vsel %vm7566_vm13, %v5458_v16, %v3779_v7  ;;  %v2048_v7 = vld [vmem:[#allocation2] sm:$0xf] }
  0xf4   : > { %6194 = vmatprep.subr.bf16.mxu1 %v6832_v32  ;;  %v3789_v44 = vrot.slane %v3619_v55, 5  ;;  %v2106_v48 = vshrl.u32 %v2048_v7, 16  ;;  %v3794_v19 = vsel %vm7566_vm13, %v5460_v15, %v3793_v1  ;;  %v3797_v55 = vsel %vm7566_vm13, %v3795_v0, %v3796_v47  ;;  %v6838_v0 = vld [vmem:[%s7930_s1 + $0x210] sm:$0xff]  }
  0xf5   : > { %6393 = vmatpush3.bf16.msra.mxu0 %v6831_v51  ;;  %v3783_v25 = vsel %vm7566_vm13, %v3781_v9, %v3782_v6  ;;  %v7758_v6 = vcombine.low %v3794_v19, %v3797_v55 }
  0xf6   : > { %6163 = vmatmul.mubr.bf16.gmra.mrb[8].mxu1 %v7537_v13  ;;  %6426 = vmatprep.subr.bf16.mxu0 %v7703_v31  ;;  %v3773_v13 = vsel %vm7566_vm13, %v5457_v39, %v3772_v5  ;;  %v6839_v5 = vld [vmem:[%s7930_s1 + $0x78] sm:$0xff]   ;;  %v3790_v39 = vsel %vm7566_vm13, %v3788_v11, %v3789_v44  ;;  %v7745_v24 = vcombine.low %v3780_v20, %v3783_v25  ;;  %v2108_v14 = vrot.slane %v2106_v48, 4  ;;  %v3625_v48 = vld [vmem:[#allocation2 + $0xc8] sm:$0x1] }
  0xf7   : > { %6166 = vmatprep.mubr.bf16.mxu1 %v7555_v49  ;;  %6195 = vmatpush3.bf16.msra.mxu1 %v6832_v32  ;;  %v6837_v49 = vld [vmem:[%s7930_s1 + $0x70] sm:$0xff]   ;;  %v7730_v51 = vcombine.low %v3773_v13, %v3776_v57  ;;  %v2049_v13 = vld [vmem:[#allocation2 + $0x4] sm:$0xf] }
  0xf8   : > { %6363 = vmatmul.mubr.bf16.gmra.mrb[16].mxu0 %v7705_v22  ;;  %6196 = vmatprep.subr.bf16.mxu1 %v6834_v3  ;;  %v6856_v32 = vld [vmem:[#allocation2 + $0x6c] sm:$0xff]   ;;  %v6858_v57 = vld [vmem:[%s7930_s1 + $0x100] sm:$0xff]   ;;  %v2115_v16 = vshll.u32 %v2049_v13, 16  ;;  %v2119_v9 = vshrl.u32 %v2049_v13, 16  ;;  %v6844_v13 = vld [vmem:[%s7930_s1 + $0x238] sm:$0xff]  }
  0xf9   : > { %6366 = vmatprep.mubr.bf16.mxu0 %v7707_v29 }
  0xfa   : > { %v2117_v44 = vrot.slane %v2115_v16, 5  ;;  %v2121_v63 = vrot.slane %v2119_v9, 4  ;;  %v3803_v16 = vrot.slane %v3625_v48, 5 }
  0xfb   : > { %6197 = vmatpush3.bf16.msra.mxu1 %v6834_v3  ;;  %v7747_v3 = vcombine.low %v3787_v36, %v3790_v39 }
  0xfc   : > { %6198 = vmatprep.subr.bf16.mxu1 %v6837_v49  ;;  %v2122_v25 = vor.u32 %v2121_v63, %v2117_v44 }
  0xfe   : > { %6167 = vmatmul.mubr.bf16.gmra.mrb[12].mxu1 %v6856_v32  ;;  %v6861_v32 = vld [vmem:[#allocation2 + $0x9c] sm:$0xff]   ;;  %v2123_v39 = vrot.slane %v2122_v25, 4 }
  0xff   : > { %6170 = vmatprep.mubr.bf16.mxu1 %v6857_v30  ;;  %6199 = vmatpush3.bf16.msra.mxu1 %v6837_v49  ;;  %v2109_v49 = vshll.u32 %v2048_v7, 16  ;;  %v6862_v30 = vld [vmem:[#allocation2 + $0xa8] sm:$0xff]  }
 0x100   : > { %6367 = vmatmul.mubr.bf16.gmra.mrb[20].mxu0 %v7728_v34  ;;  %6200 = vmatprep.subr.bf16.mxu1 %v6839_v5  ;;  %v6863_v7 = vld [vmem:[%s7930_s1 + $0x108] sm:$0xff]  }
 0x101   : > { %6370 = vmatprep.mubr.bf16.mxu0 %v7730_v51  ;;  %v2111_v11 = vrot.slane %v2109_v49, 5  ;;  %v6869_v49 = vld [vmem:[%s7930_s1 + $0x138] sm:$0xff]  }
 0x103   : > { %6201 = vmatpush3.bf16.msra.mxu1 %v6839_v5  ;;  %v2050_v5 = vld [vmem:[#allocation2 + $0x8] sm:$0x1]  ;;  %v2112_v20 = vor.u32 %v2111_v11, %v2108_v14 }
 0x104   : > { %6474 = vmatprep.subr.bf16.mxu1 %v6858_v57  ;;  %v2125_v1 = vshll.u32 %v2050_v5, 16 }
 0x105   : > { %v2113_v36 = vrot.slane %v2112_v20, 4 }
 0x106   : > { %6171 = vmatmul.mubr.bf16.gmra.mrb[16].mxu1 %v6859_v18  ;;  %v2127_v53 = vrot.slane %v2125_v1, 5  ;;  %v3624_v18 = vld [vmem:[#allocation2 + $0xc4] sm:$0xf] }
 0x107   : > { %6174 = vmatprep.mubr.bf16.mxu1 %v6860_v38  ;;  %v6868_v38 = vld [vmem:[%s7930_s1 + $0x130] sm:$0xff]  }
 0x108   : > { %6371 = vmatmul.mubr.bf16.gmra.mrb[24].mxu0 %v7745_v24  ;;  %v2128_v15 = vsel %vm7098_vm10, %v2123_v39, %v2127_v53 }
 0x109   : > { %6374 = vmatprep.mubr.bf16.mxu0 %v7747_v3 }
 0x10e   : > { %6175 = vmatmul.mubr.bf16.gmra.mrb[20].mxu1 %v6861_v32 }
 0x10f   : > { %6178 = vmatprep.mubr.bf16.mxu1 %v6862_v30 }
 0x110   : > { %6375 = vmatmul.mubr.bf16.gmra.mrb[28].mxu0 %v7758_v6 }
 0x111   : > { %6394 = vmatprep.mubr.bf16.mxu0 %v7599_v17  ;;  %v2118_v17 = vsel %vm7098_vm10, %v2113_v36, %v2117_v44 }
 0x112   : > { %v5371_v47 = vcombine.low %v2118_v17, %v2128_v15 }
 0x116   : > { %6179 = vmatmul.mubr.bf16.gmra.mrb[24].mxu1 %v7451_v26  ;;  %v6836_v26 = vld [vmem:[#allocation2 + $0xcc] sm:$0xff]  }
 0x117   : > { %6182 = vmatprep.mubr.bf16.mxu1 %v7622_v42  ;;  %v6840_v42 = vld [vmem:[%s7930_s1 + $0x218] sm:$0xff]  }
 0x118   : > { %6395 = vmatmul.mubr.bf16.vlgmr.msra.gmra.mrb[0].mxu0 %v7601_v60 }
 0x119   : > { %6427 = vmatpush3.bf16.msra.mxu0 %v7703_v31  ;;  %6398 = vmatprep.mubr.bf16.mxu0 %v7624_v54  ;;  %v6842_v31 = vld [vmem:[%s7930_s1 + $0x228] sm:$0xff]  }
 0x11a   : > { %6428 = vmatprep.subr.bf16.mxu0 %v6835_v41 }
 0x11d   : > { %6429 = vmatpush3.bf16.msra.mxu0 %v6835_v41 }
 0x11e   : > { %6430 = vmatprep.subr.bf16.mxu0 %v6838_v0  ;;  %6183 = vmatmul.mubr.bf16.gmra.mrb[28].mxu1 %v6836_v26 }
 0x11f   : > { %6202 = vmatprep.mubr.bf16.mxu1 %v5371_v47 }
 0x120   : > { %6399 = vmatmul.mubr.bf16.gmra.mrb[4].mxu0 %v7626_v35 }
 0x121   : > { %6402 = vmatprep.mubr.bf16.mxu0 %v7646_v8  ;;  %6431 = vmatpush3.bf16.msra.mxu0 %v6838_v0 }
 0x122   : > { %6432 = vmatprep.subr.bf16.mxu0 %v6840_v42 }
 0x125   : > { %6433 = vmatpush3.bf16.msra.mxu0 %v6840_v42 }
 0x126   : > { %6434 = vmatprep.subr.bf16.mxu0 %v6841_v33  ;;  %6203 = vmatmul.mubr.bf16.vlgmr.msra.gmra.mrb[0].mxu1 %v7109_v56  ;;  %v6843_v56 = vld [vmem:[%s7930_s1 + $0x230] sm:$0xff]  }
 0x127   : > { %6206 = vmatprep.mubr.bf16.mxu1 %v7127_v23  ;;  %6482 = vmatpush3.bf16.msra.mxu1 %v6858_v57  ;;  %v6864_v23 = vld [vmem:[%s7930_s1 + $0x110] sm:$0xff]   ;;  %v6865_v57 = vld [vmem:[%s7930_s1 + $0x118] sm:$0xff]  }
 0x128   : > { %6403 = vmatmul.mubr.bf16.gmra.mrb[8].mxu0 %v7648_v58  ;;  %6475 = vmatprep.subr.bf16.mxu1 %v6863_v7 }
 0x129   : > { %6406 = vmatprep.mubr.bf16.mxu0 %v7675_v10  ;;  %6435 = vmatpush3.bf16.msra.mxu0 %v6841_v33 }
 0x12a   : > { %6436 = vmatprep.subr.bf16.mxu0 %v6842_v31 }
 0x12b   : > { %6483 = vmatpush3.bf16.msra.mxu1 %v6863_v7 }
 0x12c   : > { %6476 = vmatprep.subr.bf16.mxu1 %v6864_v23 }
 0x12d   : > { %6437 = vmatpush3.bf16.msra.mxu0 %v6842_v31 }
 0x12e   : > { %6207 = vmatmul.mubr.bf16.gmra.mrb[4].mxu1 %v7164_v21  ;;  %6438 = vmatprep.subr.bf16.mxu0 %v6843_v56  ;;  %v6866_v21 = vld [vmem:[%s7930_s1 + $0x120] sm:$0xff]  }
 0x12f   : > { %6210 = vmatprep.mubr.bf16.mxu1 %v7190_v4  ;;  %6484 = vmatpush3.bf16.msra.mxu1 %v6864_v23  ;;  %v6867_v4 = vld [vmem:[%s7930_s1 + $0x128] sm:$0xff]  }
 0x130   : > { %6407 = vmatmul.mubr.bf16.gmra.mrb[12].mxu0 %v7677_v46  ;;  %6477 = vmatprep.subr.bf16.mxu1 %v6865_v57 }
 0x131   : > { %6410 = vmatprep.mubr.bf16.mxu0 %v7705_v22  ;;  %6439 = vmatpush3.bf16.msra.mxu0 %v6843_v56 }
 0x132   : > { %6440 = vmatprep.subr.bf16.mxu0 %v6844_v13 }
 0x133   : > { %6485 = vmatpush3.bf16.msra.mxu1 %v6865_v57 }
 0x134   : > { %6478 = vmatprep.subr.bf16.mxu1 %v6866_v21 }
 0x135   : > { %6441 = vmatpush3.bf16.msra.mxu0 %v6844_v13 }
 0x136   : > { %6211 = vmatmul.mubr.bf16.gmra.mrb[8].mxu1 %v7223_v59  ;;  %v3800_v59 = vrot.slane %v3624_v18, 5 }
 0x137   : > { %6214 = vmatprep.mubr.bf16.mxu1 %v7252_v45  ;;  %6486 = vmatpush3.bf16.msra.mxu1 %v6866_v21  ;;  %v3623_v45 = vld [vmem:[#allocation2 + $0xc0] sm:$0xe] }
 0x138   : > { %6411 = vmatmul.mubr.bf16.gmra.mrb[16].mxu0 %v7707_v29  ;;  %6479 = vmatprep.subr.bf16.mxu1 %v6867_v4  ;;  %v5461_v19 = vrot.slane %v3623_v45, 9  ;;  %v3802_v55 = vrot.slane %v3800_v59, 4 }
 0x139   : > { %6414 = vmatprep.mubr.bf16.mxu0 %v7728_v34 }
 0x13b   : > { %6487 = vmatpush3.bf16.msra.mxu1 %v6867_v4 }
 0x13c   : > { %6480 = vmatprep.subr.bf16.mxu1 %v6868_v38 }
 0x13e   : > { %6215 = vmatmul.mubr.bf16.gmra.mrb[12].mxu1 %v7284_v62  ;;  %v3801_v62 = vsel %vm7566_vm13, %v5461_v19, %v3800_v59 }
 0x13f   : > { %6218 = vmatprep.mubr.bf16.mxu1 %v7302_v37  ;;  %6488 = vmatpush3.bf16.msra.mxu1 %v6868_v38  ;;  %v3804_v37 = vsel %vm7566_vm13, %v3802_v55, %v3803_v16 }
 0x140   : > { %6415 = vmatmul.mubr.bf16.gmra.mrb[20].mxu0 %v7730_v51  ;;  %6481 = vmatprep.subr.bf16.mxu1 %v6869_v49  ;;  %v5519_v9 = vcombine.low %v3801_v62, %v3804_v37 }
 0x141   : > { %6418 = vmatprep.mubr.bf16.mxu0 %v7745_v24 }
 0x143   : > { %6489 = vmatpush3.bf16.msra.mxu1 %v6869_v49 }
 0x146   : > { %6219 = vmatmul.mubr.bf16.gmra.mrb[16].mxu1 %v7429_v12 }
 0x147   : > { %6222 = vmatprep.mubr.bf16.mxu1 %v7449_v28 }
 0x148   : > { %6419 = vmatmul.mubr.bf16.gmra.mrb[24].mxu0 %v7747_v3 }
 0x149   : > { %6422 = vmatprep.mubr.bf16.mxu0 %v7758_v6 }
 0x14e   : > { %6223 = vmatmul.mubr.bf16.gmra.mrb[20].mxu1 %v7464_v61 }
 0x14f   : > { %6226 = vmatprep.mubr.bf16.mxu1 %v7475_v43 }
 0x150   : > { %6423 = vmatmul.mubr.bf16.gmra.mrb[28].mxu0 %v5519_v9 }
 0x151   : > { %6442 = vmatprep.mubr.bf16.mxu0 %v7601_v60 }
 0x156   : > { %6227 = vmatmul.mubr.bf16.gmra.mrb[24].mxu1 %v7495_v50 }
 0x157   : > { %6230 = vmatprep.mubr.bf16.mxu1 %v7508_v40 }
 0x158   : > { %6443 = vmatmul.mubr.bf16.vlgmr.msra.gmra.mrb[0].mxu0 %v7624_v54 }
 0x159   : > { %6446 = vmatprep.mubr.bf16.mxu0 %v7626_v35 }
 0x15e   : > { %6231 = vmatmul.mubr.bf16.gmra.mrb[28].mxu1 %v7525_v52 }
 0x15f   : > { %6266 = vmatprep.mubr.bf16.mxu1 %v7429_v12  ;;  %v3627_v12 = vld [vmem:[#allocation2 + $0xd0] sm:$0xf] }
 0x160   : > { %6447 = vmatmul.mubr.bf16.gmra.mrb[4].mxu0 %v7646_v8 }
 0x161   : > { %6450 = vmatprep.mubr.bf16.mxu0 %v7648_v58 }
 0x166   : > { %6267 = vmatmul.mubr.bf16.vlgmr.msra.gmra.mrb[16].mxu1 %v7449_v28  ;;  %v3807_v28 = vrot.slane %v3627_v12, 5 }
 0x167   : > { %6270 = vmatprep.mubr.bf16.mxu1 %v7464_v61  ;;  %v3626_v61 = vld [vmem:[#allocation2 + $0xcc] sm:$0xe] }
 0x168   : > { %6451 = vmatmul.mubr.bf16.gmra.mrb[8].mxu0 %v7675_v10  ;;  %v3809_v60 = vrot.slane %v3807_v28, 4 }
 0x169   : > { %6454 = vmatprep.mubr.bf16.mxu0 %v7677_v46 }
 0x16e   : > { %6271 = vmatmul.mubr.bf16.gmra.mrb[20].mxu1 %v7475_v43  ;;  %v3628_v43 = vld [vmem:[#allocation2 + $0xd4] sm:$0x1] }
 0x16f   : > { %6274 = vmatprep.mubr.bf16.mxu1 %v7495_v50  ;;  %v5462_v50 = vrot.slane %v3626_v61, 9  ;;  %v3810_v54 = vrot.slane %v3628_v43, 5 }
 0x170   : > { %6455 = vmatmul.mubr.bf16.gmra.mrb[12].mxu0 %v7705_v22 }
 0x171   : > { %6458 = vmatprep.mubr.bf16.mxu0 %v7707_v29 }
 0x176   : > { %6275 = vmatmul.mubr.bf16.gmra.mrb[24].mxu1 %v7508_v40  ;;  %v3808_v40 = vsel %vm7566_vm13, %v5462_v50, %v3807_v28 }
 0x177   : > { %6278 = vmatprep.mubr.bf16.mxu1 %v7525_v52  ;;  %v3811_v52 = vsel %vm7566_vm13, %v3809_v60, %v3810_v54 }
 0x178   : > { %6459 = vmatmul.mubr.bf16.gmra.mrb[16].mxu0 %v7728_v34 }
 0x179   : > { %6462 = vmatprep.mubr.bf16.mxu0 %v7730_v51 }
 0x17e   : > { %6279 = vmatmul.mubr.bf16.gmra.mrb[28].mxu1 %v7586_v2  ;;  %v5544_v2 = vcombine.low %v3808_v40, %v3811_v52 }
 0x180   : > { %6463 = vmatmul.mubr.bf16.gmra.mrb[20].mxu0 %v7745_v24 }
 0x181   : > { %6466 = vmatprep.mubr.bf16.mxu0 %v7747_v3 }
 0x188   : > { %6467 = vmatmul.mubr.bf16.gmra.mrb[24].mxu0 %v7758_v6 }
 0x189   : > { %6470 = vmatprep.mubr.bf16.mxu0 %v5519_v9 }
 0x190   : > { %6471 = vmatmul.mubr.bf16.gmra.mrb[28].mxu0 %v5544_v2 }
 0x1f9   : > { %v6204_v35 = vpop.f32.mrb[0].mxu1 }
 0x1fa   : > { %v2700_v8 = vpop.f32.mrb[1].mxu1 }
 0x1fb   : > { %v6205_v58 = vpop.f32.mrb[2].mxu1 }
 0x1fc   : > { %v2703_v10 = vpop.f32.mrb[3].mxu1 }
 0x201   : > { %v6208_v46 = vpop.f32.mrb[4].mxu1 }
 0x202   : > { %v2716_v22 = vpop.f32.mrb[5].mxu1 }
 0x203   : > { %v6209_v29 = vpop.f32.mrb[6].mxu1 }
 0x204   : > { %v2719_v34 = vpop.f32.mrb[7].mxu1 }
 0x209   : > { %v6212_v51 = vpop.f32.mrb[8].mxu1 }
 0x20a   : > { %v2732_v24 = vpop.f32.mrb[9].mxu1 }
 0x20b   : > { %v7870_v3 = vpop.f32.mrb[10].mxu1 }
 0x20c   : > { %v7872_v6 = vpop.f32.mrb[11].mxu1 }
 0x211   : > { %v7874_v14 = vpop.f32.mrb[12].mxu1 }
 0x212   : > { %v7876_v27 = vpop.f32.mrb[13].mxu1 }
 0x213   : > { %v7878_v11 = vpop.f32.mrb[14].mxu1 }
 0x214   : > { %v7880_v44 = vpop.f32.mrb[15].mxu1 }
 0x22b   : > { %v6444_v63 = vpop.f32.mrb[0].mxu0 }
 0x22c   : > { %v6490_v5 = vadd.f32 %v6444_v63, %v6204_v35  ;;  %v4627_v32 = vpop.f32.mrb[1].mxu0 }
 0x22d   : > { %v6491_v30 = vadd.f32 %v4627_v32, %v2700_v8  ;;  %v6445_v20 = vpop.f32.mrb[2].mxu0 }
 0x22e   : > { %v6492_v25 = vadd.f32 %v6445_v20, %v6205_v58  ;;  %v4630_v1 = vpop.f32.mrb[3].mxu0  ;;  %v5082_v0 = vmul.f32 %v6490_v5, %v6490_v5 }
 0x22f   : > { %v6493_v36 = vadd.f32 %v4630_v1, %v2703_v10  ;;  %v5080_v53 = vmul.f32 %v6491_v30, %v6491_v30 }
 0x230   : > { %v5724_v39 = vpack.c.bf16 %v6492_v25, %v6490_v5  ;;  %v5083_v7 = vmul.f32 %v6492_v25, %v6492_v25 }
 0x231   : > { %v5719_v41 = vpack.c.bf16 %v6493_v36, %v6491_v30  ;;  %v5042_v17 = vadd.f32 %v6493_v36, %v6491_v30  ;;  %v5081_v15 = vmul.f32 %v6493_v36, %v6493_v36 }
 0x232   : > { %5811 = vst [vmem:[%s7886_s25 + $0x8] sm:$0xff] %v5724_v39  }
 0x233   : > { %5720 = vst [vmem:[%s7886_s25] sm:$0xff] %v5719_v41   ;;  %v5043_v26 = vadd.f32 %v6490_v5, %v5042_v17  ;;  %v5112_v47 = vadd.f32 %v5081_v15, %v5080_v53  ;;  %v6448_v42 = vpop.f32.mrb[4].mxu0 }
 0x234   : > { %v6494_v33 = vadd.f32 %v6448_v42, %v6208_v46  ;;  %v4643_v31 = vpop.f32.mrb[5].mxu0 }
 0x235   : > { %v5113_v56 = vadd.f32 %v5112_v47, %v5082_v0  ;;  %v6495_v23 = vadd.f32 %v4643_v31, %v2716_v22  ;;  %v5044_v13 = vadd.f32 %v6492_v25, %v5043_v26  ;;  %v6449_v57 = vpop.f32.mrb[6].mxu0 }
 0x236   : > { %v6496_v21 = vadd.f32 %v6449_v57, %v6209_v29  ;;  %v4646_v4 = vpop.f32.mrb[7].mxu0  ;;  %v5086_v37 = vmul.f32 %v6494_v33, %v6494_v33 }
 0x237   : > { %v5045_v18 = vadd.f32 %v6495_v23, %v5044_v13  ;;  %v5084_v38 = vmul.f32 %v6495_v23, %v6495_v23  ;;  %v5114_v59 = vadd.f32 %v5113_v56, %v5083_v7  ;;  %v6497_v45 = vadd.f32 %v4646_v4, %v2719_v34 }
 0x238   : > { %v5734_v48 = vpack.c.bf16 %v6496_v21, %v6494_v33  ;;  %v5087_v54 = vmul.f32 %v6496_v21, %v6496_v21 }
 0x239   : > { %v5115_v49 = vadd.f32 %v5114_v59, %v5084_v38  ;;  %v5729_v19 = vpack.c.bf16 %v6497_v45, %v6495_v23  ;;  %v5046_v55 = vadd.f32 %v6497_v45, %v5045_v18  ;;  %v5085_v16 = vmul.f32 %v6497_v45, %v6497_v45  ;;  %v7891_v62 = vpop.f32.mrb[16].mxu1 }
 0x23a   : > { %5813 = vst [vmem:[%s7886_s25 + $0x18] sm:$0xff] %v5734_v48   ;;  %v3090_v61 = vpop.f32.mrb[17].mxu1 }
 0x23b   : > { %5812 = vst [vmem:[%s7886_s25 + $0x10] sm:$0xff] %v5729_v19   ;;  %v5047_v9 = vadd.f32 %v6494_v33, %v5046_v55  ;;  %v5116_v12 = vadd.f32 %v5115_v49, %v5085_v16  ;;  %v6452_v28 = vpop.f32.mrb[8].mxu0  ;;  %v7894_v60 = vpop.f32.mrb[18].mxu1 }
 0x23c   : > { %v6498_v43 = vadd.f32 %v6452_v28, %v6212_v51  ;;  %v4659_v50 = vpop.f32.mrb[9].mxu0  ;;  %v3093_v8 = vpop.f32.mrb[19].mxu1 }
 0x23d   : > { %v5117_v40 = vadd.f32 %v5116_v12, %v5086_v37  ;;  %v6499_v52 = vadd.f32 %v4659_v50, %v2732_v24  ;;  %v5048_v2 = vadd.f32 %v6496_v21, %v5047_v9  ;;  %v6453_v35 = vpop.f32.mrb[10].mxu0 }
 0x23e   : > { %v6500_v58 = vadd.f32 %v6453_v35, %v7870_v3  ;;  %v4662_v10 = vpop.f32.mrb[11].mxu0  ;;  %v5090_v24 = vmul.f32 %v6498_v43, %v6498_v43 }
 0x23f   : > { %v5049_v46 = vadd.f32 %v6499_v52, %v5048_v2  ;;  %v5088_v22 = vmul.f32 %v6499_v52, %v6499_v52  ;;  %v5118_v29 = vadd.f32 %v5117_v40, %v5087_v54  ;;  %v6501_v34 = vadd.f32 %v4662_v10, %v7872_v6 }
 0x240   : > { %v5744_v51 = vpack.c.bf16 %v6500_v58, %v6498_v43  ;;  %v5091_v6 = vmul.f32 %v6500_v58, %v6500_v58 }
 0x241   : > { %v5119_v63 = vadd.f32 %v5118_v29, %v5088_v22  ;;  %v5739_v5 = vpack.c.bf16 %v6501_v34, %v6499_v52  ;;  %v5050_v32 = vadd.f32 %v6501_v34, %v5049_v46  ;;  %v5089_v30 = vmul.f32 %v6501_v34, %v6501_v34  ;;  %v7899_v20 = vpop.f32.mrb[20].mxu1 }
 0x242   : > { %5815 = vst [vmem:[%s7886_s25 + $0x28] sm:$0xff] %v5744_v51   ;;  %v3106_v3 = vpop.f32.mrb[21].mxu1 }
 0x243   : > { %5814 = vst [vmem:[%s7886_s25 + $0x20] sm:$0xff] %v5739_v5   ;;  %v5051_v25 = vadd.f32 %v6498_v43, %v5050_v32  ;;  %v5120_v1 = vadd.f32 %v5119_v63, %v5089_v30  ;;  %v6456_v36 = vpop.f32.mrb[12].mxu0  ;;  %v7903_v41 = vpop.f32.mrb[22].mxu1 }
 0x244   : > { %v6502_v39 = vadd.f32 %v6456_v36, %v7874_v14  ;;  %v4675_v53 = vpop.f32.mrb[13].mxu0  ;;  %v3109_v47 = vpop.f32.mrb[23].mxu1 }
 0x245   : > { %v5121_v17 = vadd.f32 %v5120_v1, %v5090_v24  ;;  %v6503_v15 = vadd.f32 %v4675_v53, %v7876_v27  ;;  %v5052_v0 = vadd.f32 %v6500_v58, %v5051_v25  ;;  %v6457_v26 = vpop.f32.mrb[14].mxu0 }
 0x246   : > { %v6504_v42 = vadd.f32 %v6457_v26, %v7878_v11  ;;  %v4678_v33 = vpop.f32.mrb[15].mxu0  ;;  %v5094_v27 = vmul.f32 %v6502_v39, %v6502_v39 }
 0x247   : > { %v5053_v31 = vadd.f32 %v6503_v15, %v5052_v0  ;;  %v5092_v7 = vmul.f32 %v6503_v15, %v6503_v15  ;;  %v5122_v56 = vadd.f32 %v5121_v17, %v5091_v6  ;;  %v6505_v14 = vadd.f32 %v4678_v33, %v7880_v44 }
 0x248   : > { %v5754_v23 = vpack.c.bf16 %v6504_v42, %v6502_v39  ;;  %v5095_v55 = vmul.f32 %v6504_v42, %v6504_v42 }
 0x249   : > { %v5123_v13 = vadd.f32 %v5122_v56, %v5092_v7  ;;  %v5749_v57 = vpack.c.bf16 %v6505_v14, %v6503_v15  ;;  %v5054_v21 = vadd.f32 %v6505_v14, %v5053_v31  ;;  %v5093_v4 = vmul.f32 %v6505_v14, %v6505_v14  ;;  %v6276_v18 = vpop.f32.mrb[24].mxu1 }
 0x24a   : > { %5817 = vst [vmem:[%s7886_s25 + $0x38] sm:$0xff] %v5754_v23   ;;  %v3122_v48 = vpop.f32.mrb[25].mxu1 }
 0x24b   : > { %5816 = vst [vmem:[%s7886_s25 + $0x30] sm:$0xff] %v5749_v57   ;;  %v5055_v38 = vadd.f32 %v6502_v39, %v5054_v21  ;;  %v5124_v59 = vadd.f32 %v5123_v13, %v5093_v4  ;;  %v6460_v45 = vpop.f32.mrb[16].mxu0  ;;  %v6277_v19 = vpop.f32.mrb[26].mxu1 }
 0x24c   : > { %v6506_v11 = vadd.f32 %v6460_v45, %v7891_v62  ;;  %v4691_v49 = vpop.f32.mrb[17].mxu0  ;;  %v3125_v12 = vpop.f32.mrb[27].mxu1 }
 0x24d   : > { %v5125_v16 = vadd.f32 %v5124_v59, %v5094_v27  ;;  %v6507_v44 = vadd.f32 %v4691_v49, %v3090_v61  ;;  %v5056_v37 = vadd.f32 %v6504_v42, %v5055_v38  ;;  %v6461_v9 = vpop.f32.mrb[18].mxu0 }
 0x24e   : > { %v6508_v28 = vadd.f32 %v6461_v9, %v7894_v60  ;;  %v4694_v43 = vpop.f32.mrb[19].mxu0  ;;  %v5098_v22 = vmul.f32 %v6506_v11, %v6506_v11 }
 0x24f   : > { %v5057_v50 = vadd.f32 %v6507_v44, %v5056_v37  ;;  %v5096_v54 = vmul.f32 %v6507_v44, %v6507_v44  ;;  %v5126_v40 = vadd.f32 %v5125_v16, %v5095_v55  ;;  %v6509_v52 = vadd.f32 %v4694_v43, %v3093_v8 }
 0x250   : > { %v5764_v2 = vpack.c.bf16 %v6508_v28, %v6506_v11  ;;  %v5099_v32 = vmul.f32 %v6508_v28, %v6508_v28 }
 0x251   : > { %v5127_v35 = vadd.f32 %v5126_v40, %v5096_v54  ;;  %v5759_v62 = vpack.c.bf16 %v6509_v52, %v6507_v44  ;;  %v5058_v58 = vadd.f32 %v6509_v52, %v5057_v50  ;;  %v5097_v10 = vmul.f32 %v6509_v52, %v6509_v52  ;;  %v6280_v46 = vpop.f32.mrb[28].mxu1 }
 0x252   : > { %5819 = vst [vmem:[%s7886_s25 + $0x48] sm:$0xff] %v5764_v2   ;;  %v3138_v51 = vpop.f32.mrb[29].mxu1 }
 0x253   : > { %5818 = vst [vmem:[%s7886_s25 + $0x40] sm:$0xff] %v5759_v62   ;;  %v5059_v61 = vadd.f32 %v6506_v11, %v5058_v58  ;;  %v5128_v29 = vadd.f32 %v5127_v35, %v5097_v10  ;;  %v6464_v34 = vpop.f32.mrb[20].mxu0  ;;  %v6281_v5 = vpop.f32.mrb[30].mxu1 }
 0x254   : > { %v6510_v60 = vadd.f32 %v6464_v34, %v7899_v20  ;;  %v4707_v63 = vpop.f32.mrb[21].mxu0  ;;  %v3141_v1 = vpop.f32.mrb[31].mxu1 }
 0x255   : > { %v5129_v30 = vadd.f32 %v5128_v29, %v5098_v22  ;;  %v6511_v8 = vadd.f32 %v4707_v63, %v3106_v3  ;;  %v5060_v24 = vadd.f32 %v6508_v28, %v5059_v61  ;;  %v6465_v25 = vpop.f32.mrb[22].mxu0 }
 0x256   : > { %v6512_v36 = vadd.f32 %v6465_v25, %v7903_v41  ;;  %v4710_v39 = vpop.f32.mrb[23].mxu0  ;;  %v5102_v31 = vmul.f32 %v6510_v60, %v6510_v60 }
 0x257   : > { %v5061_v53 = vadd.f32 %v6511_v8, %v5060_v24  ;;  %v5100_v6 = vmul.f32 %v6511_v8, %v6511_v8  ;;  %v5130_v17 = vadd.f32 %v5129_v30, %v5099_v32  ;;  %v6513_v15 = vadd.f32 %v4710_v39, %v3109_v47 }
 0x258   : > { %v5774_v0 = vpack.c.bf16 %v6512_v36, %v6510_v60  ;;  %v5103_v13 = vmul.f32 %v6512_v36, %v6512_v36 }
 0x259   : > { %v5131_v26 = vadd.f32 %v5130_v17, %v5100_v6  ;;  %v5769_v20 = vpack.c.bf16 %v6513_v15, %v6511_v8  ;;  %v5062_v42 = vadd.f32 %v6513_v15, %v5061_v53  ;;  %v5101_v33 = vmul.f32 %v6513_v15, %v6513_v15 }
 0x25a   : > { %5821 = vst [vmem:[%s7886_s25 + $0x58] sm:$0xff] %v5774_v0  }
 0x25b   : > { %5820 = vst [vmem:[%s7886_s25 + $0x50] sm:$0xff] %v5769_v20   ;;  %v5063_v3 = vadd.f32 %v6510_v60, %v5062_v42  ;;  %v5132_v7 = vadd.f32 %v5131_v26, %v5101_v33  ;;  %v6468_v56 = vpop.f32.mrb[24].mxu0 }
 0x25c   : > { %v6514_v14 = vadd.f32 %v6468_v56, %v6276_v18  ;;  %v4723_v23 = vpop.f32.mrb[25].mxu0 }
 0x25d   : > { %v5133_v41 = vadd.f32 %v5132_v7, %v5102_v31  ;;  %v6515_v57 = vadd.f32 %v4723_v23, %v3122_v48  ;;  %v5064_v21 = vadd.f32 %v6512_v36, %v5063_v3  ;;  %v6469_v47 = vpop.f32.mrb[26].mxu0 }
 0x25e   : > { %v6516_v4 = vadd.f32 %v6469_v47, %v6277_v19  ;;  %v4726_v27 = vpop.f32.mrb[27].mxu0  ;;  %v5106_v18 = vmul.f32 %v6514_v14, %v6514_v14 }
 0x25f   : > { %v5065_v38 = vadd.f32 %v6515_v57, %v5064_v21  ;;  %v5104_v59 = vmul.f32 %v6515_v57, %v6515_v57  ;;  %v5134_v45 = vadd.f32 %v5133_v41, %v5103_v13  ;;  %v6517_v11 = vadd.f32 %v4726_v27, %v3125_v12 }
 0x260   : > { %v5784_v49 = vpack.c.bf16 %v6516_v4, %v6514_v14  ;;  %v5107_v54 = vmul.f32 %v6516_v4, %v6516_v4 }
 0x261   : > { %v5135_v55 = vadd.f32 %v5134_v45, %v5104_v59  ;;  %v5779_v16 = vpack.c.bf16 %v6517_v11, %v6515_v57  ;;  %v5066_v44 = vadd.f32 %v6517_v11, %v5065_v38  ;;  %v5105_v37 = vmul.f32 %v6517_v11, %v6517_v11 }
 0x262   : > { %5823 = vst [vmem:[%s7886_s25 + $0x68] sm:$0xff] %v5784_v49  }
 0x263   : > { %5822 = vst [vmem:[%s7886_s25 + $0x60] sm:$0xff] %v5779_v16   ;;  %v5067_v9 = vadd.f32 %v6514_v14, %v5066_v44  ;;  %v5136_v28 = vadd.f32 %v5135_v55, %v5105_v37  ;;  %v6472_v48 = vpop.f32.mrb[28].mxu0 }
 0x264   : > { %v6518_v43 = vadd.f32 %v6472_v48, %v6280_v46  ;;  %v4739_v50 = vpop.f32.mrb[29].mxu0 }
 0x265   : > { %v5137_v19 = vadd.f32 %v5136_v28, %v5106_v18  ;;  %v6519_v40 = vadd.f32 %v4739_v50, %v3138_v51  ;;  %v5068_v52 = vadd.f32 %v6516_v4, %v5067_v9  ;;  %v6473_v12 = vpop.f32.mrb[30].mxu0 }
 0x266   : > { %v6520_v2 = vadd.f32 %v6473_v12, %v6281_v5  ;;  %v4742_v35 = vpop.f32.mrb[31].mxu0  ;;  %v5110_v63 = vmul.f32 %v6518_v43, %v6518_v43 }
 0x267   : > { %v5069_v62 = vadd.f32 %v6519_v40, %v5068_v52  ;;  %v5108_v58 = vmul.f32 %v6519_v40, %v6519_v40  ;;  %v5138_v10 = vadd.f32 %v5137_v19, %v5107_v54  ;;  %v6521_v22 = vadd.f32 %v4742_v35, %v3141_v1 }
 0x268   : > { %v5794_v61 = vpack.c.bf16 %v6520_v2, %v6518_v43  ;;  %v5111_v30 = vmul.f32 %v6520_v2, %v6520_v2 }
 0x269   : > { %v5139_v29 = vadd.f32 %v5138_v10, %v5108_v58  ;;  %v5789_v34 = vpack.c.bf16 %v6521_v22, %v6519_v40  ;;  %v5070_v60 = vadd.f32 %v6521_v22, %v5069_v62  ;;  %v5109_v46 = vmul.f32 %v6521_v22, %v6521_v22 }
 0x26a   : > { %5825 = vst [vmem:[%s7886_s25 + $0x78] sm:$0xff] %v5794_v61  }
 0x26b   : > { %5824 = vst [vmem:[%s7886_s25 + $0x70] sm:$0xff] %v5789_v34   ;;  %v5071_v32 = vadd.f32 %v6518_v43, %v5070_v60  ;;  %v5140_v51 = vadd.f32 %v5139_v29, %v5109_v46 }
 0x26d   : > { %v5072_v8 = vadd.f32 %v6520_v2, %v5071_v32  ;;  %v5141_v24 = vadd.f32 %v5140_v51, %v5110_v63 }
 0x26f   : > { %v5073_v5 = vrot.slane %v5072_v8, 4  ;;  %v5142_v25 = vadd.f32 %v5141_v24, %v5111_v30 }
 0x271   : > { %v5074_v36 = vadd.f32 %v5073_v5, %v5072_v8  ;;  %v5143_v39 = vrot.slane %v5142_v25, 4 }
 0x273   : > { %v5075_v53 = vrot.slane %v5074_v36, 2  ;;  %v5144_v1 = vadd.f32 %v5143_v39, %v5142_v25 }
 0x275   : > { %v5076_v6 = vadd.f32 %v5075_v53, %v5074_v36  ;;  %v5145_v17 = vrot.slane %v5144_v1, 2 }
 0x277   : > { %v5077_v15 = vrot.slane %v5076_v6, 1  ;;  %v5146_v0 = vadd.f32 %v5145_v17, %v5144_v1 }
 0x279   : > { %v5078_v26 = vadd.f32 %v5077_v15, %v5076_v6  ;;  %v5147_v20 = vrot.slane %v5146_v0, 1 }
 0x27b   : > { %5079 = vst [vmem:[%s236_s28] sm:$0x1] %v5078_v26  ;;  %v5148_v42 = vadd.f32 %v5147_v20, %v5146_v0 }
 0x27d   : > { %5149 = vst [vmem:[%s236_s28 + $0x1] sm:$0x1] %v5148_v42 }
 0x27e PF: > { %s16_s18 = sadd.s32 1, %s6876_s18  }
 0x27f   : > { %p13_p5 = scmp.ge.s32.totalorder %s16_s18, 4  }
 0x281   :  { %15 = sbr.rel (!%p13_p5) target bundleno = 1 (0x1), region = 87 }

</bundles_post_ra>
